<compile_context>
chip_gen: v7x
topology: tpu7x:2x2x1
jax: 0.10.0
libtpu: 0.0.40
codegen_flags: <defaults>
</compile_context>

<pallas_src>
import functools

import jax
import jax.numpy as jnp
from jax.experimental import pallas as pl
from jax.experimental.pallas import tpu as pltpu

WINDOW = 4
N_ACTIONS = 18


def _round_up(x, m):
    return ((x + m - 1) // m) * m


def _pick_tm(m, cap=512):
    """Pick the M-tile size.

    Large (up to `cap`, per perf review 256-512), a multiple of 16 (bf16
    sublane packing), preferring an exact divisor of m (no masked tail tile),
    and guaranteeing >= 2 grid steps when m is big enough so both v7x
    TensorCores get work on the "parallel" axis.
    """
    if m <= 16:
        return m                                   # single block == full dim (legal)
    limit = min(cap, _round_up(-(-m // 2), 16))    # force >= 2 grid steps
    for cand in range(limit, 15, -16):             # multiples of 16, descending
        if m % cand == 0:
            return cand                            # exact divisor: no tail tile
    return limit                                   # ragged tail handled by Pallas


def _resident(block_shape):
    """BlockSpec for a grid-invariant operand: constant index map and a single
    VMEM buffer (no pointless double-buffering of weights / biases)."""
    return pl.BlockSpec(block_shape, lambda i: (0, 0),
                        pipeline_mode=pl.Buffered(1))


# ----------------------------------------------------------------------------
# Pallas kernel 1: y = relu?(x @ w + b)  -- bf16 operands, f32 accumulation.
# ----------------------------------------------------------------------------
def _mm_bias_kernel(x_ref, w_ref, b_ref, o_ref, *, apply_relu):
    acc = jnp.dot(x_ref[...], w_ref[...], preferred_element_type=jnp.float32)
    acc = acc + b_ref[...]
    if apply_relu:
        acc = jnp.maximum(acc, 0.0)
    o_ref[...] = acc.astype(o_ref.dtype)


def matmul_bias(x, w, b, *, relu, out_dtype=jnp.bfloat16):
    """x: (M, K), w: (K, N) bf16, b: (1, N) f32 -> (M, N).

    N is the *true* output width (32 / 64): it spans the full output dim, so
    the store is legal without lane padding and no out-of-kernel channel slice
    (and its extra HBM round trip) is needed.
    """
    M, K = x.shape
    Kw, N = w.shape
    assert K == Kw and b.shape == (1, N)
    tm = _pick_tm(M, cap=512)
    cost = pl.CostEstimate(
        flops=2 * M * K * N,
        transcendentals=0,
        bytes_accessed=(M * K + K * N) * 2 + N * 4
        + M * N * jnp.dtype(out_dtype).itemsize)
    return pl.pallas_call(
        functools.partial(_mm_bias_kernel, apply_relu=relu),
        out_shape=jax.ShapeDtypeStruct((M, N), out_dtype),
        grid=(pl.cdiv(M, tm),),
        in_specs=[
            pl.BlockSpec((tm, K), lambda i: (i, 0)),
            _resident((K, N)),
            _resident((1, N)),
        ],
        out_specs=pl.BlockSpec((tm, N), lambda i: (i, 0)),
        compiler_params=pltpu.CompilerParams(
            dimension_semantics=("parallel",)),
        cost_estimate=cost,
    )(x.astype(jnp.bfloat16), w, b)


# ----------------------------------------------------------------------------
# Pallas kernel 2: fused FC head  (relu(x @ w1 + b1)) @ w2 + b2
# (w1/b1 are the conv3+fc1 fold; the (M, 512) intermediate never leaves VMEM.)
# ----------------------------------------------------------------------------
def _head_kernel(x_ref, w1_ref, b1_ref, w2_ref, b2_ref, o_ref):
    h = jnp.dot(x_ref[...], w1_ref[...], preferred_element_type=jnp.float32)
    h = jnp.maximum(h + b1_ref[...], 0.0)
    o = jnp.dot(h.astype(jnp.bfloat16), w2_ref[...],
                preferred_element_type=jnp.float32)
    o_ref[...] = (o + b2_ref[...]).astype(o_ref.dtype)


def head_fused(x, w1, b1, w2, b2):
    M, K = x.shape
    K1, H = w1.shape
    H2, N = w2.shape
    assert K == K1 and H == H2
    tm = _pick_tm(M, cap=256)
    cost = pl.CostEstimate(
        flops=2 * M * K * H + 2 * M * H * N,
        transcendentals=0,
        bytes_accessed=(M * K + K * H + H * N) * 2 + (H + N) * 4 + M * N * 4)
    return pl.pallas_call(
        _head_kernel,
        out_shape=jax.ShapeDtypeStruct((M, N), jnp.float32),
        grid=(pl.cdiv(M, tm),),
        in_specs=[
            pl.BlockSpec((tm, K), lambda i: (i, 0)),
            _resident((K, H)),
            _resident((1, H)),
            _resident((H, N)),
            _resident((1, N)),
        ],
        out_specs=pl.BlockSpec((tm, N), lambda i: (i, 0)),
        compiler_params=pltpu.CompilerParams(
            dimension_semantics=("parallel",)),
        cost_estimate=cost,
    )(x.astype(jnp.bfloat16), w1, b1, w2, b2)


# ----------------------------------------------------------------------------
# Conv layer: XLA patch extraction (NHWC) + Pallas MXU matmul.
# TODO(synk): patch extraction stays in XLA (lax.conv_general_dilated_patches);
#             a fully in-kernel im2col needs strided in-kernel gathers for the
#             stride-4 / stride-2 windows.
# ----------------------------------------------------------------------------
def conv_layer(x_nhwc, w, b, *, kernel, stride, relu):
    B, H, W, Cin = x_nhwc.shape
    Ho = (H - kernel) // stride + 1
    Wo = (W - kernel) // stride + 1
    # Output feature order is (Cin, kh, kw) -- same flatten order as the
    # PyTorch weight reshape in prepare_params() (verified by the self-check).
    patches = jax.lax.conv_general_dilated_patches(
        x_nhwc, (kernel, kernel), (stride, stride), "VALID",
        dimension_numbers=("NHWC", "HWIO", "NHWC"))
    patches = patches.reshape(B * Ho * Wo, Cin * kernel * kernel)
    y = matmul_bias(patches, w, b, relu=relu)            # (M, Cout), no padding
    return y.reshape(B, Ho, Wo, w.shape[1])


# ----------------------------------------------------------------------------
# Parameters
# ----------------------------------------------------------------------------
def init_params(key, window=WINDOW, nA=N_ACTIONS):
    """Parameters in the PyTorch layout of the reference module."""
    ks = jax.random.split(key, 10)
    u = lambda k, shp: jax.random.uniform(k, shp, jnp.float32, -0.1, 0.1)
    return {
        "conv1_w": u(ks[0], (32, window, 8, 8)), "conv1_b": u(ks[1], (32,)),
        "conv2_w": u(ks[2], (64, 32, 4, 4)),     "conv2_b": u(ks[3], (64,)),
        "conv3_w": u(ks[4], (64, 64, 3, 3)),     "conv3_b": u(ks[5], (64,)),
        "fc1_w":   u(ks[6], (512, 7 * 7 * 64)),  "fc1_b":   u(ks[7], (512,)),
        "fc2_w":   u(ks[8], (nA, 512)),          "fc2_b":   u(ks[9], (nA,)),
    }


def _fold_conv3_fc1(w3, b3, w1, b1):
    """Compose conv3 (3x3, stride 1) with fc1 into one linear map on the
    flattened NHWC conv2 output.  Exact: the reference forward has no
    nonlinearity between conv3 and fc1 (conv3 -> view -> fc1)."""
    c3, c2, kh, kw = w3.shape                       # (64, 64, 3, 3)
    nhid = w1.shape[0]                              # 512
    side_out = int(round((w1.shape[1] // c3) ** 0.5))   # 7
    side_in = side_out + kh - 1                     # 9 (conv2 output spatial)
    w1r = w1.reshape(nhid, c3, side_out, side_out)  # PyTorch (C,H,W) flatten
    wc = jnp.zeros((nhid, c2, side_in, side_in), jnp.float32)
    for i in range(kh):
        for j in range(kw):
            blk = jnp.einsum("ncij,cd->ndij", w1r, w3[:, :, i, j])
            wc = wc.at[:, :, i:i + side_out, j:j + side_out].add(blk)
    b_comb = b1 + jnp.einsum("ncij,c->n", w1r, b3)
    # Kernel consumes conv2 output flattened NHWC: feature = (h*9 + w)*C2 + c2.
    w_comb = jnp.transpose(wc, (2, 3, 1, 0)).reshape(side_in * side_in * c2, nhid)
    return w_comb, b_comb


def prepare_params(params):
    """One-time repack of PyTorch-layout params into kernel-ready layouts."""
    def pack_conv(w, b):
        cout, cin, k1, k2 = w.shape
        wm = w.reshape(cout, cin * k1 * k2).T        # (K, Cout), K = (Cin, kh, kw)
        return wm.astype(jnp.bfloat16), b.reshape(1, cout).astype(jnp.float32)

    c1w, c1b = pack_conv(params["conv1_w"], params["conv1_b"])
    c2w, c2b = pack_conv(params["conv2_w"], params["conv2_b"])
    w_comb, b_comb = _fold_conv3_fc1(params["conv3_w"], params["conv3_b"],
                                     params["fc1_w"], params["fc1_b"])
    return {
        "conv1_w": c1w, "conv1_b": c1b,
        "conv2_w": c2w, "conv2_b": c2b,
        "head_w1": w_comb.astype(jnp.bfloat16),                      # (5184, 512)
        "head_b1": b_comb.reshape(1, -1).astype(jnp.float32),
        "head_w2": params["fc2_w"].T.astype(jnp.bfloat16),           # (512, nA)
        "head_b2": params["fc2_b"].reshape(1, -1).astype(jnp.float32),
    }


# ----------------------------------------------------------------------------
# Forward passes
# ----------------------------------------------------------------------------
@jax.jit
def dqn_forward(prep, x):
    """x: (B, window, 84, 84) f32 NCHW (PyTorch layout) -> (B, nA) f32."""
    h = jnp.transpose(x, (0, 2, 3, 1)).astype(jnp.bfloat16)   # NHWC, once
    h = conv_layer(h, prep["conv1_w"], prep["conv1_b"], kernel=8, stride=4,
                   relu=True)                                  # (B, 20, 20, 32)
    h = conv_layer(h, prep["conv2_w"], prep["conv2_b"], kernel=4, stride=2,
                   relu=True)                                  # (B,  9,  9, 64)
    h = h.reshape(h.shape[0], -1)                              # (B, 5184) NHWC flat
    return head_fused(h, prep["head_w1"], prep["head_b1"],
                      prep["head_w2"], prep["head_b2"])        # (B, nA) f32


def dqn_reference(params, x):
    """Pure-XLA f32 reference in the exact PyTorch layout / op order."""
    def conv(h, w, b, stride):
        y = jax.lax.conv_general_dilated(
            h, w, (stride, stride), "VALID",
            dimension_numbers=("NCHW", "OIHW", "NCHW"))
        return y + b[None, :, None, None]

    h = jax.nn.relu(conv(x, params["conv1_w"], params["conv1_b"], 4))
    h = jax.nn.relu(conv(h, params["conv2_w"], params["conv2_b"], 2))
    h = conv(h, params["conv3_w"], params["conv3_b"], 1)      # no ReLU (as in ref)
    h = h.reshape(h.shape[0], -1)                              # (B, C*H*W)
    h = jax.nn.relu(h @ params["fc1_w"].T + params["fc1_b"])
    return h @ params["fc2_w"].T + params["fc2_b"]


if __name__ == "__main__":
    key = jax.random.PRNGKey(0)
    kp, kx = jax.random.split(key)
    params = init_params(kp, window=WINDOW, nA=N_ACTIONS)
    prep = prepare_params(params)
    # fc1 expects 7*7*64 features, which pins the input spatial size to 84x84.
    x = jax.random.uniform(kx, (2, WINDOW, 84, 84), jnp.float32)

    q = dqn_forward(prep, x)
    jax.block_until_ready(q)
    assert q.shape == (2, N_ACTIONS) and q.dtype == jnp.float32
    assert bool(jnp.all(jnp.isfinite(q)))

    # One-off numerical self-check (patch ordering + conv3/fc1 fold) against
    # the pure-XLA f32 reference; loose tolerance for the bf16 MXU path.
    q_ref = dqn_reference(params, x)
    err = float(jnp.max(jnp.abs(q - q_ref)))
    scale = float(jnp.max(jnp.abs(q_ref)))
    assert err <= 5e-2 * scale + 5e-2, f"mismatch: err={err}, scale={scale}"

    print("KERNEL_OK")
</pallas_src>

<mosaic_0001>
module attributes {stable_mosaic.version = 11 : i64} {
  func.func @_mm_bias_kernel(%arg0: i32, %arg1: memref<400x256xbf16, #tpu.memory_space<vmem>>, %arg2: memref<256x32xbf16, #tpu.memory_space<vmem>>, %arg3: memref<1x32xf32, #tpu.memory_space<vmem>>, %arg4: memref<400x32xbf16, #tpu.memory_space<vmem>>) attributes {dimension_semantics = [#tpu.dimension_semantics<parallel>], iteration_bounds = array<i64: 2>, scalar_prefetch = 0 : i64, scratch_operands = 0 : i64, tpu.core_type = #tpu.core_type<tc>, window_params = [{transform_indices = @transform_0, window_bounds = array<i64: 400, 256>}, {pipeline_mode = #tpu.pipeline_mode<synchronous>, transform_indices = @transform_1, window_bounds = array<i64: 256, 32>}, {pipeline_mode = #tpu.pipeline_mode<synchronous>, transform_indices = @transform_2, window_bounds = array<i64: 1, 32>}, {transform_indices = @transform_3, window_bounds = array<i64: 400, 32>}]} {
    %c0 = arith.constant 0 : index
    %c0_0 = arith.constant 0 : index
    %0 = vector.load %arg1[%c0, %c0_0] : memref<400x256xbf16, #tpu.memory_space<vmem>>, vector<400x256xbf16>
    %c0_1 = arith.constant 0 : index
    %c0_2 = arith.constant 0 : index
    %1 = vector.load %arg2[%c0_1, %c0_2] : memref<256x32xbf16, #tpu.memory_space<vmem>>, vector<256x32xbf16>
    %cst = arith.constant dense<0.000000e+00> : vector<400x32xf32>
    %2 = tpu.matmul %0, %1, %cst {dimension_numbers = #tpu.dot_dimension_numbers<[1], [0], [0], [1], [0, 0, 1, 1], [], []>} : vector<400x256xbf16>, vector<256x32xbf16>, vector<400x32xf32> -> vector<400x32xf32>
    %c0_3 = arith.constant 0 : index
    %c0_4 = arith.constant 0 : index
    %3 = vector.load %arg3[%c0_3, %c0_4] : memref<1x32xf32, #tpu.memory_space<vmem>>, vector<1x32xf32>
    %4 = vector.broadcast %3 : vector<1x32xf32> to vector<400x32xf32>
    %5 = arith.addf %2, %4 : vector<400x32xf32>
    %cst_5 = arith.constant 0.000000e+00 : f32
    %6 = vector.broadcast %cst_5 : f32 to vector<400x32xf32>
    %7 = arith.maximumf %5, %6 : vector<400x32xf32>
    %8 = arith.truncf %7 : vector<400x32xf32> to vector<400x32xbf16>
    %c0_6 = arith.constant 0 : index
    %c0_7 = arith.constant 0 : index
    %9 = vector.load %arg4[%c0_6, %c0_7] : memref<400x32xbf16, #tpu.memory_space<vmem>>, vector<400x32xbf16>
    tpu.vector_store %arg4[%c0_6, %c0_7], %8 {strides = array<i32>} : memref<400x32xbf16, #tpu.memory_space<vmem>>, vector<400x32xbf16>,
    return
  }
  func.func @transform_0(%arg0: i32) -> (i32, i32) {
    %c0_i32 = arith.constant 0 : i32
    %c0_i32_0 = arith.constant 0 : i32
    return %arg0, %c0_i32 : i32, i32
  }
  func.func @transform_1(%arg0: i32) -> (i32, i32) {
    %c0_i32 = arith.constant 0 : i32
    %c0_i32_0 = arith.constant 0 : i32
    %c0_i32_1 = arith.constant 0 : i32
    return %c0_i32, %c0_i32_0 : i32, i32
  }
  func.func @transform_2(%arg0: i32) -> (i32, i32) {
    %c0_i32 = arith.constant 0 : i32
    %c0_i32_0 = arith.constant 0 : i32
    %c0_i32_1 = arith.constant 0 : i32
    return %c0_i32, %c0_i32_0 : i32, i32
  }
  func.func @transform_3(%arg0: i32) -> (i32, i32) {
    %c0_i32 = arith.constant 0 : i32
    %c0_i32_0 = arith.constant 0 : i32
    return %arg0, %c0_i32 : i32, i32
  }
}

module attributes {stable_mosaic.version = 11 : i64} {
  func.func @_mm_bias_kernel(%arg0: i32, %arg1: memref<96x512xbf16, #tpu.memory_space<vmem>>, %arg2: memref<512x64xbf16, #tpu.memory_space<vmem>>, %arg3: memref<1x64xf32, #tpu.memory_space<vmem>>, %arg4: memref<96x64xbf16, #tpu.memory_space<vmem>>) attributes {dimension_semantics = [#tpu.dimension_semantics<parallel>], iteration_bounds = array<i64: 2>, scalar_prefetch = 0 : i64, scratch_operands = 0 : i64, tpu.core_type = #tpu.core_type<tc>, window_params = [{transform_indices = @transform_0, window_bounds = array<i64: 96, 512>}, {pipeline_mode = #tpu.pipeline_mode<synchronous>, transform_indices = @transform_1, window_bounds = array<i64: 512, 64>}, {pipeline_mode = #tpu.pipeline_mode<synchronous>, transform_indices = @transform_2, window_bounds = array<i64: 1, 64>}, {transform_indices = @transform_3, window_bounds = array<i64: 96, 64>}]} {
    %c0 = arith.constant 0 : index
    %c0_0 = arith.constant 0 : index
    %0 = vector.load %arg1[%c0, %c0_0] : memref<96x512xbf16, #tpu.memory_space<vmem>>, vector<96x512xbf16>
    %c0_1 = arith.constant 0 : index
    %c0_2 = arith.constant 0 : index
    %1 = vector.load %arg2[%c0_1, %c0_2] : memref<512x64xbf16, #tpu.memory_space<vmem>>, vector<512x64xbf16>
    %cst = arith.constant dense<0.000000e+00> : vector<96x64xf32>
    %2 = tpu.matmul %0, %1, %cst {dimension_numbers = #tpu.dot_dimension_numbers<[1], [0], [0], [1], [0, 0, 1, 1], [], []>} : vector<96x512xbf16>, vector<512x64xbf16>, vector<96x64xf32> -> vector<96x64xf32>
    %c0_3 = arith.constant 0 : index
    %c0_4 = arith.constant 0 : index
    %3 = vector.load %arg3[%c0_3, %c0_4] : memref<1x64xf32, #tpu.memory_space<vmem>>, vector<1x64xf32>
    %4 = vector.broadcast %3 : vector<1x64xf32> to vector<96x64xf32>
    %5 = arith.addf %2, %4 : vector<96x64xf32>
    %cst_5 = arith.constant 0.000000e+00 : f32
    %6 = vector.broadcast %cst_5 : f32 to vector<96x64xf32>
    %7 = arith.maximumf %5, %6 : vector<96x64xf32>
    %8 = arith.truncf %7 : vector<96x64xf32> to vector<96x64xbf16>
    %c0_6 = arith.constant 0 : index
    %c0_7 = arith.constant 0 : index
    %9 = vector.load %arg4[%c0_6, %c0_7] : memref<96x64xbf16, #tpu.memory_space<vmem>>, vector<96x64xbf16>
    tpu.vector_store %arg4[%c0_6, %c0_7], %8 {strides = array<i32>} : memref<96x64xbf16, #tpu.memory_space<vmem>>, vector<96x64xbf16>,
    return
  }
  func.func @transform_0(%arg0: i32) -> (i32, i32) {
    %c0_i32 = arith.constant 0 : i32
    %c0_i32_0 = arith.constant 0 : i32
    return %arg0, %c0_i32 : i32, i32
  }
  func.func @transform_1(%arg0: i32) -> (i32, i32) {
    %c0_i32 = arith.constant 0 : i32
    %c0_i32_0 = arith.constant 0 : i32
    %c0_i32_1 = arith.constant 0 : i32
    return %c0_i32, %c0_i32_0 : i32, i32
  }
  func.func @transform_2(%arg0: i32) -> (i32, i32) {
    %c0_i32 = arith.constant 0 : i32
    %c0_i32_0 = arith.constant 0 : i32
    %c0_i32_1 = arith.constant 0 : i32
    return %c0_i32, %c0_i32_0 : i32, i32
  }
  func.func @transform_3(%arg0: i32) -> (i32, i32) {
    %c0_i32 = arith.constant 0 : i32
    %c0_i32_0 = arith.constant 0 : i32
    return %arg0, %c0_i32 : i32, i32
  }
}

module attributes {stable_mosaic.version = 11 : i64} {
  func.func @_head_kernel(%arg0: i32, %arg1: memref<2x5184xbf16, #tpu.memory_space<vmem>>, %arg2: memref<5184x512xbf16, #tpu.memory_space<vmem>>, %arg3: memref<1x512xf32, #tpu.memory_space<vmem>>, %arg4: memref<512x18xbf16, #tpu.memory_space<vmem>>, %arg5: memref<1x18xf32, #tpu.memory_space<vmem>>, %arg6: memref<2x18xf32, #tpu.memory_space<vmem>>) attributes {dimension_semantics = [#tpu.dimension_semantics<parallel>], iteration_bounds = array<i64: 1>, scalar_prefetch = 0 : i64, scratch_operands = 0 : i64, tpu.core_type = #tpu.core_type<tc>, window_params = [{transform_indices = @transform_0, window_bounds = array<i64: 2, 5184>}, {pipeline_mode = #tpu.pipeline_mode<synchronous>, transform_indices = @transform_1, window_bounds = array<i64: 5184, 512>}, {pipeline_mode = #tpu.pipeline_mode<synchronous>, transform_indices = @transform_2, window_bounds = array<i64: 1, 512>}, {pipeline_mode = #tpu.pipeline_mode<synchronous>, transform_indices = @transform_3, window_bounds = array<i64: 512, 18>}, {pipeline_mode = #tpu.pipeline_mode<synchronous>, transform_indices = @transform_4, window_bounds = array<i64: 1, 18>}, {transform_indices = @transform_5, window_bounds = array<i64: 2, 18>}]} {
    %c0 = arith.constant 0 : index
    %c0_0 = arith.constant 0 : index
    %0 = vector.load %arg1[%c0, %c0_0] : memref<2x5184xbf16, #tpu.memory_space<vmem>>, vector<2x5184xbf16>
    %c0_1 = arith.constant 0 : index
    %c0_2 = arith.constant 0 : index
    %1 = vector.load %arg2[%c0_1, %c0_2] : memref<5184x512xbf16, #tpu.memory_space<vmem>>, vector<5184x512xbf16>
    %cst = arith.constant dense<0.000000e+00> : vector<2x512xf32>
    %2 = tpu.matmul %0, %1, %cst {dimension_numbers = #tpu.dot_dimension_numbers<[1], [0], [0], [1], [0, 0, 1, 1], [], []>} : vector<2x5184xbf16>, vector<5184x512xbf16>, vector<2x512xf32> -> vector<2x512xf32>
    %c0_3 = arith.constant 0 : index
    %c0_4 = arith.constant 0 : index
    %3 = vector.load %arg3[%c0_3, %c0_4] : memref<1x512xf32, #tpu.memory_space<vmem>>, vector<1x512xf32>
    %4 = vector.broadcast %3 : vector<1x512xf32> to vector<2x512xf32>
    %5 = arith.addf %2, %4 : vector<2x512xf32>
    %cst_5 = arith.constant 0.000000e+00 : f32
    %6 = vector.broadcast %cst_5 : f32 to vector<2x512xf32>
    %7 = arith.maximumf %5, %6 : vector<2x512xf32>
    %8 = arith.truncf %7 : vector<2x512xf32> to vector<2x512xbf16>
    %c0_6 = arith.constant 0 : index
    %c0_7 = arith.constant 0 : index
    %9 = vector.load %arg4[%c0_6, %c0_7] : memref<512x18xbf16, #tpu.memory_space<vmem>>, vector<512x18xbf16>
    %cst_8 = arith.constant dense<0.000000e+00> : vector<2x18xf32>
    %10 = tpu.matmul %8, %9, %cst_8 {dimension_numbers = #tpu.dot_dimension_numbers<[1], [0], [0], [1], [0, 0, 1, 1], [], []>} : vector<2x512xbf16>, vector<512x18xbf16>, vector<2x18xf32> -> vector<2x18xf32>
    %c0_9 = arith.constant 0 : index
    %c0_10 = arith.constant 0 : index
    %11 = vector.load %arg5[%c0_9, %c0_10] : memref<1x18xf32, #tpu.memory_space<vmem>>, vector<1x18xf32>
    %12 = vector.broadcast %11 : vector<1x18xf32> to vector<2x18xf32>
    %13 = arith.addf %10, %12 : vector<2x18xf32>
    %c0_11 = arith.constant 0 : index
    %c0_12 = arith.constant 0 : index
    %14 = vector.load %arg6[%c0_11, %c0_12] : memref<2x18xf32, #tpu.memory_space<vmem>>, vector<2x18xf32>
    tpu.vector_store %arg6[%c0_11, %c0_12], %13 {strides = array<i32>} : memref<2x18xf32, #tpu.memory_space<vmem>>, vector<2x18xf32>,
    return
  }
  func.func @transform_0(%arg0: i32) -> (i32, i32) {
    %c0_i32 = arith.constant 0 : i32
    %c0_i32_0 = arith.constant 0 : i32
    return %arg0, %c0_i32 : i32, i32
  }
  func.func @transform_1(%arg0: i32) -> (i32, i32) {
    %c0_i32 = arith.constant 0 : i32
    %c0_i32_0 = arith.constant 0 : i32
    %c0_i32_1 = arith.constant 0 : i32
    return %c0_i32, %c0_i32_0 : i32, i32
  }
  func.func @transform_2(%arg0: i32) -> (i32, i32) {
    %c0_i32 = arith.constant 0 : i32
    %c0_i32_0 = arith.constant 0 : i32
    %c0_i32_1 = arith.constant 0 : i32
    return %c0_i32, %c0_i32_0 : i32, i32
  }
  func.func @transform_3(%arg0: i32) -> (i32, i32) {
    %c0_i32 = arith.constant 0 : i32
    %c0_i32_0 = arith.constant 0 : i32
    %c0_i32_1 = arith.constant 0 : i32
    return %c0_i32, %c0_i32_0 : i32, i32
  }
  func.func @transform_4(%arg0: i32) -> (i32, i32) {
    %c0_i32 = arith.constant 0 : i32
    %c0_i32_0 = arith.constant 0 : i32
    %c0_i32_1 = arith.constant 0 : i32
    return %c0_i32, %c0_i32_0 : i32, i32
  }
  func.func @transform_5(%arg0: i32) -> (i32, i32) {
    %c0_i32 = arith.constant 0 : i32
    %c0_i32_0 = arith.constant 0 : i32
    return %arg0, %c0_i32 : i32, i32
  }
}

</mosaic_0001>

<bundles_post_ra>
// kernel: dqn_forward.3
= control target key start
LH: loop header
LB: loop body
LE: loop exit
PB: predicated region body
PF: predicated region fallthrough
CT: control target
= control target key end

     0   :  { %s1542_s12 = smov 0   ;;  %s1852_s0 = inlined_call_operand.vmem [shape: bf16[800,256], index: 0, kind: input, shape index: {}]   ;;  %s1853_s1 = inlined_call_operand.vmem [shape: bf16[256,32], index: 1, kind: input, shape index: {}]   ;;  %s1854_s2 = inlined_call_operand.vmem [shape: f32[1,32], index: 2, kind: input, shape index: {}]   ;;  %s1855_s3 = inlined_call_operand.vmem [shape: bf16[800,32], index: 3, kind: output, shape index: {}]  }
   0x1 LB: > { %s1203_s13 = sadd.s32 4294967295, %s1519_s12   ;;  %p1207_p0 = scmp.ge.s32.totalorder %s1519_s12, 1  ;;  %s1519_s12 = sphi %s1542_s12, %s13_s12  }
   0x2   : > { %p139_p1 = scmp.lt.s32.totalorder %s1519_s12, 3 }
   0x4   : > { %p140_p2 = pnand %p1207_p0, %p139_p1 }
   0x5   : > { %v1422_v0 = vld [vmem:[%s1853_s1] sm:$0xff] (!%p140_p2)   ;;  %v1521_v1 = vmov (!%p140_p2), 0   ;;  %s164_s16 = smul.u32 (!%p140_p2), 50, %s1203_s13  ;;  %v1423_v2 = vld [vmem:[%s1853_s1 + $0x8] sm:$0xff] (!%p140_p2)   ;;  %v1424_v3 = vld [vmem:[%s1853_s1 + $0x10] sm:$0xff] (!%p140_p2)   ;;  %vm1096_vm0 = vcmask (!%p140_p2), 257024  }
   0x6   : > { %143 = sbr.rel (%p140_p2) target bundleno = 387 (0x183), region = 32  ;;  %613 = vmatprep.subr.bf16.mxu0 (!%p140_p2), %v1521_v1  ;;  %1381 = vmatprep.subr.bf16.mxu1 (!%p140_p2), %v1521_v1  ;;  %v1425_v4 = vld [vmem:[%s1853_s1 + $0x18] sm:$0xff] (!%p140_p2)   ;;  %v1426_v5 = vld [vmem:[%s1853_s1 + $0x20] sm:$0xff] (!%p140_p2)   ;;  %v1427_v7 = vld [vmem:[%s1853_s1 + $0x28] sm:$0xff] (!%p140_p2)  }
   0x7   : > { %614 = vmatpush1.bf16.msra.mxu0 (!%p140_p2), %v1422_v0  ;;  %1397 = vmatpush1.bf16.msra.mxu1 (!%p140_p2), %v1422_v0  ;;  %p165_p3 = scmp.lt.s32.totalorder (!%p140_p2), %s164_s16, 99  ;;  %v1428_v9 = vld [vmem:[%s1853_s1 + $0x30] sm:$0xff] (!%p140_p2)   ;;  %v1429_v10 = vld [vmem:[%s1853_s1 + $0x38] sm:$0xff] (!%p140_p2)   ;;  %v1430_v11 = vld [vmem:[%s1853_s1 + $0x40] sm:$0xff] (!%p140_p2)  }
   0x8   : > { %615 = vmatprep.subr.bf16.mxu0 (!%p140_p2), %v1521_v1  ;;  %1382 = vmatprep.subr.bf16.mxu1 (!%p140_p2), %v1521_v1  ;;  %v1431_v12 = vld [vmem:[%s1853_s1 + $0x48] sm:$0xff] (!%p140_p2)   ;;  %v1432_v13 = vld [vmem:[%s1853_s1 + $0x50] sm:$0xff] (!%p140_p2)   ;;  %v1433_v14 = vld [vmem:[%s1853_s1 + $0x58] sm:$0xff] (!%p140_p2)  }
   0x9   : > { %v1434_v15 = vld [vmem:[%s1853_s1 + $0x60] sm:$0xff] (!%p140_p2)   ;;  %v1435_v16 = vld [vmem:[%s1853_s1 + $0x68] sm:$0xff] (!%p140_p2)   ;;  %v1436_v17 = vld [vmem:[%s1853_s1 + $0x70] sm:$0xff] (!%p140_p2)  }
   0xa   : > { %v1437_v18 = vld [vmem:[%s1853_s1 + $0x78] sm:$0xff] (!%p140_p2)  }
   0xb   : > { %616 = vmatpush1.bf16.msra.mxu0 (!%p140_p2), %v1423_v2  ;;  %1398 = vmatpush1.bf16.msra.mxu1 (!%p140_p2), %v1423_v2 }
   0xc   : > { %617 = vmatprep.subr.bf16.mxu0 (!%p140_p2), %v1521_v1  ;;  %1383 = vmatprep.subr.bf16.mxu1 (!%p140_p2), %v1521_v1 }
   0xd   : > { %s1857_s16 = smov (!%p165_p3, %s164_s16), 99 }
   0xe   : > { %s1330_s23 = sshll.u32 %s1857_s16, 3  ;;  %s1210_s29 = sshll.u32 %s1857_s16, 2 }
   0xf   : > { %618 = vmatpush1.bf16.msra.mxu0 %v1424_v3  ;;  %1399 = vmatpush1.bf16.msra.mxu1 %v1424_v3  ;;  %s1579_s28 = scalar_lea.vmem %s1852_s0, %s1330_s23  ;;  %v1691_v3 = vld [vmem:[%s1854_s2] ss:$0 sm:$0xff]  ;;  %s1701_s16 = scalar_lea.vmem %s1855_s3, %s1210_s29 }
  0x10   : > { %619 = vmatprep.subr.bf16.mxu0 %v1521_v1  ;;  %1384 = vmatprep.subr.bf16.mxu1 %v1521_v1  ;;  %v1440_v6 = vld [vmem:[%s1579_s28 + $0x4] ss:$8 sps:$4 sm:$0xff]   ;;  %v1443_v8 = vld [vmem:[%s1579_s28 + $0xd4] ss:$8 sps:$4 sm:$0xff]   ;;  %v1438_v19 = vld [vmem:[%s1579_s28] ss:$8 sps:$4 sm:$0xff]  }
  0x11   : > { %645 = vmatprep.mubr.bf16.mxu0 %v1440_v6  ;;  %749 = vmatprep.mubr.bf16.mxu1 %v1443_v8  ;;  %v1441_v20 = vld [vmem:[%s1579_s28 + $0xd0] ss:$8 sps:$4 sm:$0xff]   ;;  %v1444_v21 = vld [vmem:[%s1579_s28 + $0x14] ss:$8 sps:$4 sm:$0xff]   ;;  %v1447_v22 = vld [vmem:[%s1579_s28 + $0xe4] ss:$8 sps:$4 sm:$0xff]  }
  0x12   : > { %v1446_v23 = vld [vmem:[%s1579_s28 + $0x10] ss:$8 sps:$4 sm:$0xff]   ;;  %v1449_v24 = vld [vmem:[%s1579_s28 + $0xe0] ss:$8 sps:$4 sm:$0xff]   ;;  %v1450_v25 = vld [vmem:[%s1579_s28 + $0x24] ss:$8 sps:$4 sm:$0xff]  }
  0x13   : > { %620 = vmatpush1.bf16.msra.mxu0 %v1425_v4  ;;  %1400 = vmatpush1.bf16.msra.mxu1 %v1425_v4  ;;  %v1453_v26 = vld [vmem:[%s1579_s28 + $0xf4] ss:$8 sps:$4 sm:$0xff]   ;;  %v1452_v27 = vld [vmem:[%s1579_s28 + $0x20] ss:$8 sps:$4 sm:$0xff]   ;;  %v1455_v28 = vld [vmem:[%s1579_s28 + $0xf0] ss:$8 sps:$4 sm:$0xff]  }
  0x14   : > { %621 = vmatprep.subr.bf16.mxu0 %v1521_v1  ;;  %1385 = vmatprep.subr.bf16.mxu1 %v1521_v1  ;;  %v1456_v29 = vld [vmem:[%s1579_s28 + $0x34] ss:$8 sps:$4 sm:$0xff]   ;;  %v1459_v30 = vld [vmem:[%s1579_s28 + $0x104] ss:$8 sps:$4 sm:$0xff]   ;;  %v1458_v31 = vld [vmem:[%s1579_s28 + $0x30] ss:$8 sps:$4 sm:$0xff]  }
  0x15   : > { %v1461_v32 = vld [vmem:[%s1579_s28 + $0x100] ss:$8 sps:$4 sm:$0xff]   ;;  %v1462_v33 = vld [vmem:[%s1579_s28 + $0x44] ss:$8 sps:$4 sm:$0xff]   ;;  %v1465_v34 = vld [vmem:[%s1579_s28 + $0x114] ss:$8 sps:$4 sm:$0xff]  }
  0x16   : > { %v1464_v35 = vld [vmem:[%s1579_s28 + $0x40] ss:$8 sps:$4 sm:$0xff]   ;;  %v1467_v36 = vld [vmem:[%s1579_s28 + $0x110] ss:$8 sps:$4 sm:$0xff]   ;;  %v1468_v37 = vld [vmem:[%s1579_s28 + $0x54] ss:$8 sps:$4 sm:$0xff]  }
  0x17   : > { %622 = vmatpush1.bf16.msra.mxu0 %v1426_v5  ;;  %1401 = vmatpush1.bf16.msra.mxu1 %v1426_v5  ;;  %v1471_v38 = vld [vmem:[%s1579_s28 + $0x124] ss:$8 sps:$4 sm:$0xff]   ;;  %v1470_v39 = vld [vmem:[%s1579_s28 + $0x50] ss:$8 sps:$4 sm:$0xff]   ;;  %v1473_v40 = vld [vmem:[%s1579_s28 + $0x120] ss:$8 sps:$4 sm:$0xff]  }
  0x18   : > { %623 = vmatprep.subr.bf16.mxu0 %v1521_v1  ;;  %1386 = vmatprep.subr.bf16.mxu1 %v1521_v1  ;;  %v1474_v41 = vld [vmem:[%s1579_s28 + $0x64] ss:$8 sps:$4 sm:$0xff]   ;;  %v1477_v42 = vld [vmem:[%s1579_s28 + $0x134] ss:$8 sps:$4 sm:$0xff]   ;;  %v1476_v43 = vld [vmem:[%s1579_s28 + $0x60] ss:$8 sps:$4 sm:$0xff]  }
  0x19   : > { %v1479_v44 = vld [vmem:[%s1579_s28 + $0x130] ss:$8 sps:$4 sm:$0xff]   ;;  %v1480_v45 = vld [vmem:[%s1579_s28 + $0x74] ss:$8 sps:$4 sm:$0xff]   ;;  %v1483_v46 = vld [vmem:[%s1579_s28 + $0x144] ss:$8 sps:$4 sm:$0xff]  }
  0x1a   : > { %v1482_v47 = vld [vmem:[%s1579_s28 + $0x70] ss:$8 sps:$4 sm:$0xff]   ;;  %v1485_v48 = vld [vmem:[%s1579_s28 + $0x140] ss:$8 sps:$4 sm:$0xff]   ;;  %v1486_v49 = vld [vmem:[%s1579_s28 + $0x84] ss:$8 sps:$4 sm:$0xff]  }
  0x1b   : > { %624 = vmatpush1.bf16.msra.mxu0 %v1427_v7  ;;  %1402 = vmatpush1.bf16.msra.mxu1 %v1427_v7  ;;  %v1489_v50 = vld [vmem:[%s1579_s28 + $0x154] ss:$8 sps:$4 sm:$0xff]   ;;  %v1488_v51 = vld [vmem:[%s1579_s28 + $0x80] ss:$8 sps:$4 sm:$0xff]   ;;  %v1491_v52 = vld [vmem:[%s1579_s28 + $0x150] ss:$8 sps:$4 sm:$0xff]  }
  0x1c   : > { %625 = vmatprep.subr.bf16.mxu0 %v1521_v1  ;;  %1387 = vmatprep.subr.bf16.mxu1 %v1521_v1  ;;  %v1492_v53 = vld [vmem:[%s1579_s28 + $0x94] ss:$8 sps:$4 sm:$0xff]   ;;  %v1495_v54 = vld [vmem:[%s1579_s28 + $0x164] ss:$8 sps:$4 sm:$0xff]   ;;  %v1494_v55 = vld [vmem:[%s1579_s28 + $0x90] ss:$8 sps:$4 sm:$0xff]  }
  0x1d   : > { %v1497_v56 = vld [vmem:[%s1579_s28 + $0x160] ss:$8 sps:$4 sm:$0xff]   ;;  %v1498_v57 = vld [vmem:[%s1579_s28 + $0xa4] ss:$8 sps:$4 sm:$0xff]   ;;  %v1501_v58 = vld [vmem:[%s1579_s28 + $0x174] ss:$8 sps:$4 sm:$0xff]  }
  0x1e   : > { %v1500_v59 = vld [vmem:[%s1579_s28 + $0xa0] ss:$8 sps:$4 sm:$0xff]   ;;  %v1503_v60 = vld [vmem:[%s1579_s28 + $0x170] ss:$8 sps:$4 sm:$0xff]   ;;  %v1504_v61 = vld [vmem:[%s1579_s28 + $0xb4] ss:$8 sps:$4 sm:$0xff]  }
  0x1f   : > { %626 = vmatpush1.bf16.msra.mxu0 %v1428_v9  ;;  %1403 = vmatpush1.bf16.msra.mxu1 %v1428_v9  ;;  %v1507_v62 = vld [vmem:[%s1579_s28 + $0x184] ss:$8 sps:$4 sm:$0xff]   ;;  %v1506_v63 = vld [vmem:[%s1579_s28 + $0xb0] ss:$8 sps:$4 sm:$0xff]   ;;  %v1509_v0 = vld [vmem:[%s1579_s28 + $0x180] ss:$8 sps:$4 sm:$0xff]  }
  0x20   : > { %627 = vmatprep.subr.bf16.mxu0 %v1521_v1  ;;  %1388 = vmatprep.subr.bf16.mxu1 %v1521_v1  ;;  %v1512_v2 = vld [vmem:[%s1579_s28 + $0xc0] ss:$8 sps:$4 sm:$0xff]  }
  0x23   : > { %628 = vmatpush1.bf16.msra.mxu0 %v1429_v10  ;;  %1404 = vmatpush1.bf16.msra.mxu1 %v1429_v10 }
  0x24   : > { %629 = vmatprep.subr.bf16.mxu0 %v1521_v1  ;;  %1389 = vmatprep.subr.bf16.mxu1 %v1521_v1 }
  0x27   : > { %630 = vmatpush1.bf16.msra.mxu0 %v1430_v11  ;;  %1405 = vmatpush1.bf16.msra.mxu1 %v1430_v11 }
  0x28   : > { %631 = vmatprep.subr.bf16.mxu0 %v1521_v1  ;;  %1390 = vmatprep.subr.bf16.mxu1 %v1521_v1 }
  0x2b   : > { %632 = vmatpush1.bf16.msra.mxu0 %v1431_v12  ;;  %1406 = vmatpush1.bf16.msra.mxu1 %v1431_v12 }
  0x2c   : > { %633 = vmatprep.subr.bf16.mxu0 %v1521_v1  ;;  %1391 = vmatprep.subr.bf16.mxu1 %v1521_v1 }
  0x2f   : > { %634 = vmatpush1.bf16.msra.mxu0 %v1432_v13  ;;  %1407 = vmatpush1.bf16.msra.mxu1 %v1432_v13 }
  0x30   : > { %635 = vmatprep.subr.bf16.mxu0 %v1521_v1  ;;  %1392 = vmatprep.subr.bf16.mxu1 %v1521_v1 }
  0x33   : > { %636 = vmatpush1.bf16.msra.mxu0 %v1433_v14  ;;  %1408 = vmatpush1.bf16.msra.mxu1 %v1433_v14 }
  0x34   : > { %637 = vmatprep.subr.bf16.mxu0 %v1521_v1  ;;  %1393 = vmatprep.subr.bf16.mxu1 %v1521_v1 }
  0x37   : > { %638 = vmatpush1.bf16.msra.mxu0 %v1434_v15  ;;  %1409 = vmatpush1.bf16.msra.mxu1 %v1434_v15 }
  0x38   : > { %639 = vmatprep.subr.bf16.mxu0 %v1521_v1  ;;  %1394 = vmatprep.subr.bf16.mxu1 %v1521_v1 }
  0x3b   : > { %640 = vmatpush1.bf16.msra.mxu0 %v1435_v16  ;;  %1410 = vmatpush1.bf16.msra.mxu1 %v1435_v16 }
  0x3c   : > { %641 = vmatprep.subr.bf16.mxu0 %v1521_v1  ;;  %1395 = vmatprep.subr.bf16.mxu1 %v1521_v1 }
  0x3f   : > { %642 = vmatpush1.bf16.msra.mxu0 %v1436_v17  ;;  %1411 = vmatpush1.bf16.msra.mxu1 %v1436_v17 }
  0x40   : > { %643 = vmatprep.subr.bf16.mxu0 %v1521_v1  ;;  %1396 = vmatprep.subr.bf16.mxu1 %v1521_v1  ;;  %v1510_v1 = vld [vmem:[%s1579_s28 + $0xc4] ss:$8 sps:$4 sm:$0xff]  }
  0x43   : > { %644 = vmatpush1.bf16.msra.mxu0 %v1437_v18  ;;  %1412 = vmatpush1.bf16.msra.mxu1 %v1437_v18 }
  0x46   : > { %646 = vmatmul.mubr.bf16.vlgmr.msra.gmra.mrb[0].mxu0 %v1438_v19  ;;  %750 = vmatmul.mubr.bf16.vlgmr.msra.gmra.mrb[0].mxu1 %v1441_v20 }
  0x47   : > { %653 = vmatprep.mubr.bf16.mxu0 %v1444_v21  ;;  %757 = vmatprep.mubr.bf16.mxu1 %v1447_v22 }
  0x4e   : > { %654 = vmatmul.mubr.bf16.gmra.mrb[4].mxu0 %v1446_v23  ;;  %758 = vmatmul.mubr.bf16.gmra.mrb[4].mxu1 %v1449_v24 }
  0x4f   : > { %661 = vmatprep.mubr.bf16.mxu0 %v1450_v25  ;;  %765 = vmatprep.mubr.bf16.mxu1 %v1453_v26 }
  0x56   : > { %662 = vmatmul.mubr.bf16.gmra.mrb[8].mxu0 %v1452_v27  ;;  %766 = vmatmul.mubr.bf16.gmra.mrb[8].mxu1 %v1455_v28 }
  0x57   : > { %669 = vmatprep.mubr.bf16.mxu0 %v1456_v29  ;;  %773 = vmatprep.mubr.bf16.mxu1 %v1459_v30 }
  0x5e   : > { %670 = vmatmul.mubr.bf16.gmra.mrb[12].mxu0 %v1458_v31  ;;  %774 = vmatmul.mubr.bf16.gmra.mrb[12].mxu1 %v1461_v32 }
  0x5f   : > { %677 = vmatprep.mubr.bf16.mxu0 %v1462_v33  ;;  %781 = vmatprep.mubr.bf16.mxu1 %v1465_v34 }
  0x66   : > { %678 = vmatmul.mubr.bf16.gmra.mrb[16].mxu0 %v1464_v35  ;;  %782 = vmatmul.mubr.bf16.gmra.mrb[16].mxu1 %v1467_v36 }
  0x67   : > { %685 = vmatprep.mubr.bf16.mxu0 %v1468_v37  ;;  %789 = vmatprep.mubr.bf16.mxu1 %v1471_v38 }
  0x6e   : > { %686 = vmatmul.mubr.bf16.gmra.mrb[20].mxu0 %v1470_v39  ;;  %790 = vmatmul.mubr.bf16.gmra.mrb[20].mxu1 %v1473_v40 }
  0x6f   : > { %693 = vmatprep.mubr.bf16.mxu0 %v1474_v41  ;;  %797 = vmatprep.mubr.bf16.mxu1 %v1477_v42 }
  0x76   : > { %694 = vmatmul.mubr.bf16.gmra.mrb[24].mxu0 %v1476_v43  ;;  %798 = vmatmul.mubr.bf16.gmra.mrb[24].mxu1 %v1479_v44 }
  0x77   : > { %701 = vmatprep.mubr.bf16.mxu0 %v1480_v45  ;;  %805 = vmatprep.mubr.bf16.mxu1 %v1483_v46 }
  0x7e   : > { %702 = vmatmul.mubr.bf16.gmra.mrb[28].mxu0 %v1482_v47  ;;  %806 = vmatmul.mubr.bf16.gmra.mrb[28].mxu1 %v1485_v48 }
  0x7f   : > { %709 = vmatprep.mubr.bf16.mxu0 %v1486_v49  ;;  %813 = vmatprep.mubr.bf16.mxu1 %v1489_v50 }
  0x86   : > { %710 = vmatmul.mubr.bf16.gmra.mrb[32].mxu0 %v1488_v51  ;;  %814 = vmatmul.mubr.bf16.gmra.mrb[32].mxu1 %v1491_v52 }
  0x87   : > { %717 = vmatprep.mubr.bf16.mxu0 %v1492_v53  ;;  %821 = vmatprep.mubr.bf16.mxu1 %v1495_v54 }
  0x8e   : > { %718 = vmatmul.mubr.bf16.gmra.mrb[36].mxu0 %v1494_v55  ;;  %822 = vmatmul.mubr.bf16.gmra.mrb[36].mxu1 %v1497_v56 }
  0x8f   : > { %725 = vmatprep.mubr.bf16.mxu0 %v1498_v57  ;;  %829 = vmatprep.mubr.bf16.mxu1 %v1501_v58 }
  0x96   : > { %726 = vmatmul.mubr.bf16.gmra.mrb[40].mxu0 %v1500_v59  ;;  %830 = vmatmul.mubr.bf16.gmra.mrb[40].mxu1 %v1503_v60 }
  0x97   : > { %733 = vmatprep.mubr.bf16.mxu0 %v1504_v61  ;;  %837 = vmatprep.mubr.bf16.mxu1 %v1507_v62 }
  0x9e   : > { %734 = vmatmul.mubr.bf16.gmra.mrb[44].mxu0 %v1506_v63  ;;  %838 = vmatmul.mubr.bf16.gmra.mrb[44].mxu1 %v1509_v0 }
  0x9f   : > { %741 = vmatprep.mubr.bf16.mxu0 %v1510_v1 }
  0xa6   : > { %742 = vmatmul.mubr.bf16.gmra.mrb[48].mxu0 %v1512_v2 }
 0x119   : > { %v647_v4 = vpop.f32.mrb[0].mxu0  ;;  %v751_v5 = vpop.f32.mrb[0].mxu1 }
 0x11a   : > { %v648_v6 = vadd.f32 %v1691_v3, %v647_v4  ;;  %v649_v7 = vpop.f32.mrb[1].mxu0  ;;  %v752_v8 = vadd.f32 %v1691_v3, %v751_v5  ;;  %v753_v9 = vpop.f32.mrb[1].mxu1 }
 0x11b   : > { %v650_v10 = vpop.f32.mrb[2].mxu0  ;;  %v754_v11 = vpop.f32.mrb[2].mxu1 }
 0x11c   : > { %v846_v12 = vmax.f32 %v648_v6, 0.0  ;;  %v651_v13 = vadd.f32 %v1691_v3, %v650_v10  ;;  %v652_v14 = vpop.f32.mrb[3].mxu0  ;;  %v872_v15 = vmax.f32 %v752_v8, 0.0  ;;  %v755_v16 = vadd.f32 %v1691_v3, %v754_v11  ;;  %v756_v17 = vpop.f32.mrb[3].mxu1 }
 0x11e   : > { %v1331_v18 = vpack.c.bf16 %v846_v12, %v846_v12  ;;  %v847_v19 = vmax.f32 %v651_v13, 0.0  ;;  %v1357_v20 = vpack.c.bf16 %v872_v15, %v872_v15  ;;  %v873_v21 = vmax.f32 %v755_v16, 0.0 }
 0x120   : > { %1097 = vst.msk [vmem:[%s1701_s16] sm:$0xf] %vm1096_vm0, %v1331_v18  ;;  %v1332_v22 = vpack.c.bf16 %v847_v19, %v847_v19  ;;  %1123 = vst.msk [vmem:[%s1701_s16 + $0x68] sm:$0xf] %vm1096_vm0, %v1357_v20  ;;  %v1358_v23 = vpack.c.bf16 %v873_v21, %v873_v21 }
 0x121   : > { %v655_v24 = vpop.f32.mrb[4].mxu0  ;;  %v759_v25 = vpop.f32.mrb[4].mxu1 }
 0x122   : > { %1098 = vst.msk [vmem:[%s1701_s16 + $0x4] sm:$0xf] %vm1096_vm0, %v1332_v22  ;;  %1124 = vst.msk [vmem:[%s1701_s16 + $0x6c] sm:$0xf] %vm1096_vm0, %v1358_v23  ;;  %v656_v26 = vadd.f32 %v1691_v3, %v655_v24  ;;  %v657_v27 = vpop.f32.mrb[5].mxu0  ;;  %v760_v28 = vadd.f32 %v1691_v3, %v759_v25  ;;  %v761_v29 = vpop.f32.mrb[5].mxu1 }
 0x123   : > { %v658_v30 = vpop.f32.mrb[6].mxu0  ;;  %v762_v31 = vpop.f32.mrb[6].mxu1 }
 0x124   : > { %v848_v32 = vmax.f32 %v656_v26, 0.0  ;;  %v659_v33 = vadd.f32 %v1691_v3, %v658_v30  ;;  %v660_v34 = vpop.f32.mrb[7].mxu0  ;;  %v874_v35 = vmax.f32 %v760_v28, 0.0  ;;  %v763_v36 = vadd.f32 %v1691_v3, %v762_v31  ;;  %v764_v37 = vpop.f32.mrb[7].mxu1 }
 0x126   : > { %v1333_v38 = vpack.c.bf16 %v848_v32, %v848_v32  ;;  %v849_v39 = vmax.f32 %v659_v33, 0.0  ;;  %v1359_v40 = vpack.c.bf16 %v874_v35, %v874_v35  ;;  %v875_v41 = vmax.f32 %v763_v36, 0.0 }
 0x128   : > { %1099 = vst.msk [vmem:[%s1701_s16 + $0x8] sm:$0xf] %vm1096_vm0, %v1333_v38  ;;  %v1334_v42 = vpack.c.bf16 %v849_v39, %v849_v39  ;;  %1125 = vst.msk [vmem:[%s1701_s16 + $0x70] sm:$0xf] %vm1096_vm0, %v1359_v40  ;;  %v1360_v43 = vpack.c.bf16 %v875_v41, %v875_v41 }
 0x129   : > { %v663_v44 = vpop.f32.mrb[8].mxu0  ;;  %v767_v45 = vpop.f32.mrb[8].mxu1 }
 0x12a   : > { %1100 = vst.msk [vmem:[%s1701_s16 + $0xc] sm:$0xf] %vm1096_vm0, %v1334_v42  ;;  %1126 = vst.msk [vmem:[%s1701_s16 + $0x74] sm:$0xf] %vm1096_vm0, %v1360_v43  ;;  %v664_v46 = vadd.f32 %v1691_v3, %v663_v44  ;;  %v665_v47 = vpop.f32.mrb[9].mxu0  ;;  %v768_v48 = vadd.f32 %v1691_v3, %v767_v45  ;;  %v769_v49 = vpop.f32.mrb[9].mxu1 }
 0x12b   : > { %v666_v50 = vpop.f32.mrb[10].mxu0  ;;  %v770_v51 = vpop.f32.mrb[10].mxu1 }
 0x12c   : > { %v850_v52 = vmax.f32 %v664_v46, 0.0  ;;  %v667_v53 = vadd.f32 %v1691_v3, %v666_v50  ;;  %v668_v54 = vpop.f32.mrb[11].mxu0  ;;  %v876_v55 = vmax.f32 %v768_v48, 0.0  ;;  %v771_v56 = vadd.f32 %v1691_v3, %v770_v51  ;;  %v772_v57 = vpop.f32.mrb[11].mxu1 }
 0x12e   : > { %v1335_v58 = vpack.c.bf16 %v850_v52, %v850_v52  ;;  %v851_v59 = vmax.f32 %v667_v53, 0.0  ;;  %v1361_v60 = vpack.c.bf16 %v876_v55, %v876_v55  ;;  %v877_v61 = vmax.f32 %v771_v56, 0.0 }
 0x130   : > { %1101 = vst.msk [vmem:[%s1701_s16 + $0x10] sm:$0xf] %vm1096_vm0, %v1335_v58  ;;  %v1336_v62 = vpack.c.bf16 %v851_v59, %v851_v59  ;;  %1127 = vst.msk [vmem:[%s1701_s16 + $0x78] sm:$0xf] %vm1096_vm0, %v1361_v60  ;;  %v1362_v63 = vpack.c.bf16 %v877_v61, %v877_v61 }
 0x131   : > { %v671_v0 = vpop.f32.mrb[12].mxu0  ;;  %v775_v1 = vpop.f32.mrb[12].mxu1 }
 0x132   : > { %1102 = vst.msk [vmem:[%s1701_s16 + $0x14] sm:$0xf] %vm1096_vm0, %v1336_v62  ;;  %1128 = vst.msk [vmem:[%s1701_s16 + $0x7c] sm:$0xf] %vm1096_vm0, %v1362_v63  ;;  %v672_v2 = vadd.f32 %v1691_v3, %v671_v0  ;;  %v673_v4 = vpop.f32.mrb[13].mxu0  ;;  %v776_v5 = vadd.f32 %v1691_v3, %v775_v1  ;;  %v777_v6 = vpop.f32.mrb[13].mxu1 }
 0x133   : > { %v674_v7 = vpop.f32.mrb[14].mxu0  ;;  %v778_v8 = vpop.f32.mrb[14].mxu1 }
 0x134   : > { %v852_v9 = vmax.f32 %v672_v2, 0.0  ;;  %v675_v10 = vadd.f32 %v1691_v3, %v674_v7  ;;  %v676_v11 = vpop.f32.mrb[15].mxu0  ;;  %v878_v12 = vmax.f32 %v776_v5, 0.0  ;;  %v779_v13 = vadd.f32 %v1691_v3, %v778_v8  ;;  %v780_v14 = vpop.f32.mrb[15].mxu1 }
 0x136   : > { %v1337_v15 = vpack.c.bf16 %v852_v9, %v852_v9  ;;  %v853_v16 = vmax.f32 %v675_v10, 0.0  ;;  %v1363_v17 = vpack.c.bf16 %v878_v12, %v878_v12  ;;  %v879_v18 = vmax.f32 %v779_v13, 0.0 }
 0x138   : > { %1103 = vst.msk [vmem:[%s1701_s16 + $0x18] sm:$0xf] %vm1096_vm0, %v1337_v15  ;;  %v1338_v19 = vpack.c.bf16 %v853_v16, %v853_v16  ;;  %1129 = vst.msk [vmem:[%s1701_s16 + $0x80] sm:$0xf] %vm1096_vm0, %v1363_v17  ;;  %v1364_v20 = vpack.c.bf16 %v879_v18, %v879_v18 }
 0x139   : > { %v679_v21 = vpop.f32.mrb[16].mxu0  ;;  %v783_v22 = vpop.f32.mrb[16].mxu1 }
 0x13a   : > { %1104 = vst.msk [vmem:[%s1701_s16 + $0x1c] sm:$0xf] %vm1096_vm0, %v1338_v19  ;;  %1130 = vst.msk [vmem:[%s1701_s16 + $0x84] sm:$0xf] %vm1096_vm0, %v1364_v20  ;;  %v680_v23 = vadd.f32 %v1691_v3, %v679_v21  ;;  %v681_v24 = vpop.f32.mrb[17].mxu0  ;;  %v784_v25 = vadd.f32 %v1691_v3, %v783_v22  ;;  %v785_v26 = vpop.f32.mrb[17].mxu1 }
 0x13b   : > { %v682_v27 = vpop.f32.mrb[18].mxu0  ;;  %v786_v28 = vpop.f32.mrb[18].mxu1 }
 0x13c   : > { %v854_v29 = vmax.f32 %v680_v23, 0.0  ;;  %v683_v30 = vadd.f32 %v1691_v3, %v682_v27  ;;  %v684_v31 = vpop.f32.mrb[19].mxu0  ;;  %v880_v32 = vmax.f32 %v784_v25, 0.0  ;;  %v787_v33 = vadd.f32 %v1691_v3, %v786_v28  ;;  %v788_v34 = vpop.f32.mrb[19].mxu1 }
 0x13e   : > { %v1339_v35 = vpack.c.bf16 %v854_v29, %v854_v29  ;;  %v855_v36 = vmax.f32 %v683_v30, 0.0  ;;  %v1365_v37 = vpack.c.bf16 %v880_v32, %v880_v32  ;;  %v881_v38 = vmax.f32 %v787_v33, 0.0 }
 0x140   : > { %1105 = vst.msk [vmem:[%s1701_s16 + $0x20] sm:$0xf] %vm1096_vm0, %v1339_v35  ;;  %v1340_v39 = vpack.c.bf16 %v855_v36, %v855_v36  ;;  %1131 = vst.msk [vmem:[%s1701_s16 + $0x88] sm:$0xf] %vm1096_vm0, %v1365_v37  ;;  %v1366_v40 = vpack.c.bf16 %v881_v38, %v881_v38 }
 0x141   : > { %v687_v41 = vpop.f32.mrb[20].mxu0  ;;  %v791_v42 = vpop.f32.mrb[20].mxu1 }
 0x142   : > { %1106 = vst.msk [vmem:[%s1701_s16 + $0x24] sm:$0xf] %vm1096_vm0, %v1340_v39  ;;  %1132 = vst.msk [vmem:[%s1701_s16 + $0x8c] sm:$0xf] %vm1096_vm0, %v1366_v40  ;;  %v688_v43 = vadd.f32 %v1691_v3, %v687_v41  ;;  %v689_v44 = vpop.f32.mrb[21].mxu0  ;;  %v792_v45 = vadd.f32 %v1691_v3, %v791_v42  ;;  %v793_v46 = vpop.f32.mrb[21].mxu1 }
 0x143   : > { %v690_v47 = vpop.f32.mrb[22].mxu0  ;;  %v794_v48 = vpop.f32.mrb[22].mxu1 }
 0x144   : > { %v856_v49 = vmax.f32 %v688_v43, 0.0  ;;  %v691_v50 = vadd.f32 %v1691_v3, %v690_v47  ;;  %v692_v51 = vpop.f32.mrb[23].mxu0  ;;  %v882_v52 = vmax.f32 %v792_v45, 0.0  ;;  %v795_v53 = vadd.f32 %v1691_v3, %v794_v48  ;;  %v796_v54 = vpop.f32.mrb[23].mxu1 }
 0x146   : > { %v1341_v55 = vpack.c.bf16 %v856_v49, %v856_v49  ;;  %v857_v56 = vmax.f32 %v691_v50, 0.0  ;;  %v1367_v57 = vpack.c.bf16 %v882_v52, %v882_v52  ;;  %v883_v58 = vmax.f32 %v795_v53, 0.0 }
 0x148   : > { %1107 = vst.msk [vmem:[%s1701_s16 + $0x28] sm:$0xf] %vm1096_vm0, %v1341_v55  ;;  %v1342_v59 = vpack.c.bf16 %v857_v56, %v857_v56  ;;  %1133 = vst.msk [vmem:[%s1701_s16 + $0x90] sm:$0xf] %vm1096_vm0, %v1367_v57  ;;  %v1368_v60 = vpack.c.bf16 %v883_v58, %v883_v58 }
 0x149   : > { %v695_v61 = vpop.f32.mrb[24].mxu0  ;;  %v799_v62 = vpop.f32.mrb[24].mxu1 }
 0x14a   : > { %1108 = vst.msk [vmem:[%s1701_s16 + $0x2c] sm:$0xf] %vm1096_vm0, %v1342_v59  ;;  %1134 = vst.msk [vmem:[%s1701_s16 + $0x94] sm:$0xf] %vm1096_vm0, %v1368_v60  ;;  %v696_v63 = vadd.f32 %v1691_v3, %v695_v61  ;;  %v697_v0 = vpop.f32.mrb[25].mxu0  ;;  %v800_v1 = vadd.f32 %v1691_v3, %v799_v62  ;;  %v801_v2 = vpop.f32.mrb[25].mxu1 }
 0x14b   : > { %v698_v4 = vpop.f32.mrb[26].mxu0  ;;  %v802_v5 = vpop.f32.mrb[26].mxu1 }
 0x14c   : > { %v858_v6 = vmax.f32 %v696_v63, 0.0  ;;  %v699_v7 = vadd.f32 %v1691_v3, %v698_v4  ;;  %v700_v8 = vpop.f32.mrb[27].mxu0  ;;  %v884_v9 = vmax.f32 %v800_v1, 0.0  ;;  %v803_v10 = vadd.f32 %v1691_v3, %v802_v5  ;;  %v804_v11 = vpop.f32.mrb[27].mxu1 }
 0x14e   : > { %v1343_v12 = vpack.c.bf16 %v858_v6, %v858_v6  ;;  %v859_v13 = vmax.f32 %v699_v7, 0.0  ;;  %v1369_v14 = vpack.c.bf16 %v884_v9, %v884_v9  ;;  %v885_v15 = vmax.f32 %v803_v10, 0.0 }
 0x150   : > { %1109 = vst.msk [vmem:[%s1701_s16 + $0x30] sm:$0xf] %vm1096_vm0, %v1343_v12  ;;  %v1344_v16 = vpack.c.bf16 %v859_v13, %v859_v13  ;;  %1135 = vst.msk [vmem:[%s1701_s16 + $0x98] sm:$0xf] %vm1096_vm0, %v1369_v14  ;;  %v1370_v17 = vpack.c.bf16 %v885_v15, %v885_v15 }
 0x151   : > { %v703_v18 = vpop.f32.mrb[28].mxu0  ;;  %v807_v19 = vpop.f32.mrb[28].mxu1 }
 0x152   : > { %1110 = vst.msk [vmem:[%s1701_s16 + $0x34] sm:$0xf] %vm1096_vm0, %v1344_v16  ;;  %1136 = vst.msk [vmem:[%s1701_s16 + $0x9c] sm:$0xf] %vm1096_vm0, %v1370_v17  ;;  %v704_v20 = vadd.f32 %v1691_v3, %v703_v18  ;;  %v705_v21 = vpop.f32.mrb[29].mxu0  ;;  %v808_v22 = vadd.f32 %v1691_v3, %v807_v19  ;;  %v809_v23 = vpop.f32.mrb[29].mxu1 }
 0x153   : > { %v706_v24 = vpop.f32.mrb[30].mxu0  ;;  %v810_v25 = vpop.f32.mrb[30].mxu1 }
 0x154   : > { %v860_v26 = vmax.f32 %v704_v20, 0.0  ;;  %v707_v27 = vadd.f32 %v1691_v3, %v706_v24  ;;  %v708_v28 = vpop.f32.mrb[31].mxu0  ;;  %v886_v29 = vmax.f32 %v808_v22, 0.0  ;;  %v811_v30 = vadd.f32 %v1691_v3, %v810_v25  ;;  %v812_v31 = vpop.f32.mrb[31].mxu1 }
 0x156   : > { %v1345_v32 = vpack.c.bf16 %v860_v26, %v860_v26  ;;  %v861_v33 = vmax.f32 %v707_v27, 0.0  ;;  %v1371_v34 = vpack.c.bf16 %v886_v29, %v886_v29  ;;  %v887_v35 = vmax.f32 %v811_v30, 0.0 }
 0x158   : > { %1111 = vst.msk [vmem:[%s1701_s16 + $0x38] sm:$0xf] %vm1096_vm0, %v1345_v32  ;;  %v1346_v36 = vpack.c.bf16 %v861_v33, %v861_v33  ;;  %1137 = vst.msk [vmem:[%s1701_s16 + $0xa0] sm:$0xf] %vm1096_vm0, %v1371_v34  ;;  %v1372_v37 = vpack.c.bf16 %v887_v35, %v887_v35 }
 0x159   : > { %v711_v38 = vpop.f32.mrb[32].mxu0  ;;  %v815_v39 = vpop.f32.mrb[32].mxu1 }
 0x15a   : > { %1112 = vst.msk [vmem:[%s1701_s16 + $0x3c] sm:$0xf] %vm1096_vm0, %v1346_v36  ;;  %1138 = vst.msk [vmem:[%s1701_s16 + $0xa4] sm:$0xf] %vm1096_vm0, %v1372_v37  ;;  %v712_v40 = vadd.f32 %v1691_v3, %v711_v38  ;;  %v713_v41 = vpop.f32.mrb[33].mxu0  ;;  %v816_v42 = vadd.f32 %v1691_v3, %v815_v39  ;;  %v817_v43 = vpop.f32.mrb[33].mxu1 }
 0x15b   : > { %v714_v44 = vpop.f32.mrb[34].mxu0  ;;  %v818_v45 = vpop.f32.mrb[34].mxu1 }
 0x15c   : > { %v862_v46 = vmax.f32 %v712_v40, 0.0  ;;  %v715_v47 = vadd.f32 %v1691_v3, %v714_v44  ;;  %v716_v48 = vpop.f32.mrb[35].mxu0  ;;  %v888_v49 = vmax.f32 %v816_v42, 0.0  ;;  %v819_v50 = vadd.f32 %v1691_v3, %v818_v45  ;;  %v820_v51 = vpop.f32.mrb[35].mxu1 }
 0x15e   : > { %v1347_v52 = vpack.c.bf16 %v862_v46, %v862_v46  ;;  %v863_v53 = vmax.f32 %v715_v47, 0.0  ;;  %v1373_v54 = vpack.c.bf16 %v888_v49, %v888_v49  ;;  %v889_v55 = vmax.f32 %v819_v50, 0.0 }
 0x160   : > { %1113 = vst.msk [vmem:[%s1701_s16 + $0x40] sm:$0xf] %vm1096_vm0, %v1347_v52  ;;  %v1348_v56 = vpack.c.bf16 %v863_v53, %v863_v53  ;;  %1139 = vst.msk [vmem:[%s1701_s16 + $0xa8] sm:$0xf] %vm1096_vm0, %v1373_v54  ;;  %v1374_v57 = vpack.c.bf16 %v889_v55, %v889_v55 }
 0x161   : > { %v719_v58 = vpop.f32.mrb[36].mxu0  ;;  %v823_v59 = vpop.f32.mrb[36].mxu1 }
 0x162   : > { %1114 = vst.msk [vmem:[%s1701_s16 + $0x44] sm:$0xf] %vm1096_vm0, %v1348_v56  ;;  %1140 = vst.msk [vmem:[%s1701_s16 + $0xac] sm:$0xf] %vm1096_vm0, %v1374_v57  ;;  %v720_v60 = vadd.f32 %v1691_v3, %v719_v58  ;;  %v721_v61 = vpop.f32.mrb[37].mxu0  ;;  %v824_v62 = vadd.f32 %v1691_v3, %v823_v59  ;;  %v825_v63 = vpop.f32.mrb[37].mxu1 }
 0x163   : > { %v722_v0 = vpop.f32.mrb[38].mxu0  ;;  %v826_v1 = vpop.f32.mrb[38].mxu1 }
 0x164   : > { %v864_v2 = vmax.f32 %v720_v60, 0.0  ;;  %v723_v4 = vadd.f32 %v1691_v3, %v722_v0  ;;  %v724_v5 = vpop.f32.mrb[39].mxu0  ;;  %v890_v6 = vmax.f32 %v824_v62, 0.0  ;;  %v827_v7 = vadd.f32 %v1691_v3, %v826_v1  ;;  %v828_v8 = vpop.f32.mrb[39].mxu1 }
 0x166   : > { %v1349_v9 = vpack.c.bf16 %v864_v2, %v864_v2  ;;  %v865_v10 = vmax.f32 %v723_v4, 0.0  ;;  %v1375_v11 = vpack.c.bf16 %v890_v6, %v890_v6  ;;  %v891_v12 = vmax.f32 %v827_v7, 0.0 }
 0x168   : > { %1115 = vst.msk [vmem:[%s1701_s16 + $0x48] sm:$0xf] %vm1096_vm0, %v1349_v9  ;;  %v1350_v13 = vpack.c.bf16 %v865_v10, %v865_v10  ;;  %1141 = vst.msk [vmem:[%s1701_s16 + $0xb0] sm:$0xf] %vm1096_vm0, %v1375_v11  ;;  %v1376_v14 = vpack.c.bf16 %v891_v12, %v891_v12 }
 0x169   : > { %v727_v15 = vpop.f32.mrb[40].mxu0  ;;  %v831_v16 = vpop.f32.mrb[40].mxu1 }
 0x16a   : > { %1116 = vst.msk [vmem:[%s1701_s16 + $0x4c] sm:$0xf] %vm1096_vm0, %v1350_v13  ;;  %1142 = vst.msk [vmem:[%s1701_s16 + $0xb4] sm:$0xf] %vm1096_vm0, %v1376_v14  ;;  %v728_v17 = vadd.f32 %v1691_v3, %v727_v15  ;;  %v729_v18 = vpop.f32.mrb[41].mxu0  ;;  %v832_v19 = vadd.f32 %v1691_v3, %v831_v16  ;;  %v833_v20 = vpop.f32.mrb[41].mxu1 }
 0x16b   : > { %v730_v21 = vpop.f32.mrb[42].mxu0  ;;  %v834_v22 = vpop.f32.mrb[42].mxu1 }
 0x16c   : > { %v866_v23 = vmax.f32 %v728_v17, 0.0  ;;  %v731_v24 = vadd.f32 %v1691_v3, %v730_v21  ;;  %v732_v25 = vpop.f32.mrb[43].mxu0  ;;  %v892_v26 = vmax.f32 %v832_v19, 0.0  ;;  %v835_v27 = vadd.f32 %v1691_v3, %v834_v22  ;;  %v836_v28 = vpop.f32.mrb[43].mxu1 }
 0x16e   : > { %v1351_v29 = vpack.c.bf16 %v866_v23, %v866_v23  ;;  %v867_v30 = vmax.f32 %v731_v24, 0.0  ;;  %v1377_v31 = vpack.c.bf16 %v892_v26, %v892_v26  ;;  %v893_v32 = vmax.f32 %v835_v27, 0.0 }
 0x170   : > { %1117 = vst.msk [vmem:[%s1701_s16 + $0x50] sm:$0xf] %vm1096_vm0, %v1351_v29  ;;  %v1352_v33 = vpack.c.bf16 %v867_v30, %v867_v30  ;;  %1143 = vst.msk [vmem:[%s1701_s16 + $0xb8] sm:$0xf] %vm1096_vm0, %v1377_v31  ;;  %v1378_v34 = vpack.c.bf16 %v893_v32, %v893_v32 }
 0x171   : > { %v735_v35 = vpop.f32.mrb[44].mxu0  ;;  %v839_v36 = vpop.f32.mrb[44].mxu1 }
 0x172   : > { %1118 = vst.msk [vmem:[%s1701_s16 + $0x54] sm:$0xf] %vm1096_vm0, %v1352_v33  ;;  %1144 = vst.msk [vmem:[%s1701_s16 + $0xbc] sm:$0xf] %vm1096_vm0, %v1378_v34  ;;  %v736_v37 = vadd.f32 %v1691_v3, %v735_v35  ;;  %v737_v38 = vpop.f32.mrb[45].mxu0  ;;  %v840_v39 = vadd.f32 %v1691_v3, %v839_v36  ;;  %v841_v40 = vpop.f32.mrb[45].mxu1 }
 0x173   : > { %v738_v41 = vpop.f32.mrb[46].mxu0  ;;  %v842_v42 = vpop.f32.mrb[46].mxu1 }
 0x174   : > { %v868_v43 = vmax.f32 %v736_v37, 0.0  ;;  %v739_v44 = vadd.f32 %v1691_v3, %v738_v41  ;;  %v740_v45 = vpop.f32.mrb[47].mxu0  ;;  %v894_v46 = vmax.f32 %v840_v39, 0.0  ;;  %v843_v47 = vadd.f32 %v1691_v3, %v842_v42  ;;  %v844_v48 = vpop.f32.mrb[47].mxu1 }
 0x176   : > { %v1353_v49 = vpack.c.bf16 %v868_v43, %v868_v43  ;;  %v869_v50 = vmax.f32 %v739_v44, 0.0  ;;  %v1379_v51 = vpack.c.bf16 %v894_v46, %v894_v46  ;;  %v895_v52 = vmax.f32 %v843_v47, 0.0 }
 0x178   : > { %1119 = vst.msk [vmem:[%s1701_s16 + $0x58] sm:$0xf] %vm1096_vm0, %v1353_v49  ;;  %v1354_v53 = vpack.c.bf16 %v869_v50, %v869_v50  ;;  %1145 = vst.msk [vmem:[%s1701_s16 + $0xc0] sm:$0xf] %vm1096_vm0, %v1379_v51  ;;  %v1380_v54 = vpack.c.bf16 %v895_v52, %v895_v52 }
 0x179   : > { %v743_v55 = vpop.f32.mrb[48].mxu0 }
 0x17a   : > { %1120 = vst.msk [vmem:[%s1701_s16 + $0x5c] sm:$0xf] %vm1096_vm0, %v1354_v53  ;;  %1146 = vst.msk [vmem:[%s1701_s16 + $0xc4] sm:$0xf] %vm1096_vm0, %v1380_v54  ;;  %v744_v56 = vadd.f32 %v1691_v3, %v743_v55  ;;  %v745_v57 = vpop.f32.mrb[49].mxu0 }
 0x17b   : > { %v746_v58 = vpop.f32.mrb[50].mxu0 }
 0x17c   : > { %v870_v59 = vmax.f32 %v744_v56, 0.0  ;;  %v747_v60 = vadd.f32 %v1691_v3, %v746_v58  ;;  %v748_v61 = vpop.f32.mrb[51].mxu0 }
 0x17e   : > { %v1355_v62 = vpack.c.bf16 %v870_v59, %v870_v59  ;;  %v871_v63 = vmax.f32 %v747_v60, 0.0 }
 0x180   : > { %1121 = vst.msk [vmem:[%s1701_s16 + $0x60] sm:$0xf] %vm1096_vm0, %v1355_v62  ;;  %v1356_v0 = vpack.c.bf16 %v871_v63, %v871_v63 }
 0x182   : > { %1122 = vst.msk [vmem:[%s1701_s16 + $0x64] sm:$0xf] %vm1096_vm0, %v1356_v0 }
 0x183 PF: > { %s13_s12 = sadd.s32 1, %s1519_s12  }
 0x184   : > { %p10_p4 = scmp.ge.s32.totalorder %s13_s12, 4  }
 0x186   :  { %12 = sbr.rel (!%p10_p4) target bundleno = 1 (0x1), region = 62 }

// kernel: dqn_forward.4
= control target key start
LH: loop header
LB: loop body
LE: loop exit
PB: predicated region body
PF: predicated region fallthrough
CT: control target
= control target key end

     0   :  { %s1578_s12 = smov 0   ;;  %s1580_s13 = smov 0   ;;  %s1840_s0 = inlined_call_operand.vmem [shape: bf16[162,512], index: 0, kind: input, shape index: {}]   ;;  %s1841_s1 = inlined_call_operand.vmem [shape: bf16[512,64], index: 1, kind: input, shape index: {}]   ;;  %s1842_s2 = inlined_call_operand.vmem [shape: f32[1,64], index: 2, kind: input, shape index: {}]   ;;  %s1843_s3 = inlined_call_operand.vmem [shape: bf16[162,64], index: 3, kind: output, shape index: {}]  }
   0x1   :  { %s1582_s14 = smov 0  }
   0x2 LB: > { %s1591_s15 = sadd.s32 4294967295, %s1524_s14   ;;  %s1593_s16 = sadd.s32 1, %s1524_s14   ;;  %s1524_s14 = sphi %s1582_s14, %s1850_s14   ;;  %s1520_s13 = sphi %s1580_s13, %s1849_s13   ;;  %s1516_s12 = sphi %s1578_s12, %s1848_s12  }
   0x3   : > { %s85_s17 = ssub.s32 %s1524_s14, %s1593_s16  ;;  %s88_s18 = sadd.s32 1, %s1520_s13 }
   0x4   : > { %p86_p0 = scmp.eq.s32.totalorder %s85_s17, 0  ;;  %p98_p1 = scmp.ne.s32.totalorder %s1520_s13, %s1516_s12 }
   0x5   : > { %p99_p2 = scmp.eq.s32.totalorder %s1591_s15, 1  ;;  %p1106_p3 = scmp.ge.s32.totalorder %s1524_s14, 1 }
   0x6   : > { %s1601_s19 = scalar_select %p86_p0, %s1520_s13, %s88_s18  }
   0x7   : > { %p1603_p4 = por %p99_p2, %p98_p1  ;;  %p149_p5 = scmp.lt.s32.totalorder %s1524_s14, 3 }
   0x9   : > { %p150_p6 = pnand %p1106_p3, %p149_p5 }
   0xa   : > { %v1398_v0 = vld [vmem:[%s1841_s1 + $0x40] sm:$0xff] (!%p150_p6)   ;;  %v1402_v4 = vld [vmem:[%s1841_s1 + $0x48] sm:$0xff] (!%p150_p6)   ;;  %v1406_v8 = vld [vmem:[%s1841_s1 + $0x50] sm:$0xff] (!%p150_p6)   ;;  %s1653_s30 = smul.u32 (!%p150_p6), 12, %s1591_s15  ;;  %s175_s5 = sand.u32 (!%p150_p6), 1, %s1516_s12   ;;  %vm830_vm0 = vcmask (!%p150_p6), 519168  }
   0xb   : > { %153 = sbr.rel (%p150_p6) target bundleno = 379 (0x17b), region = 32  ;;  %v1399_v1 = vld [vmem:[%s1841_s1 + $0xc0] sm:$0xff] (!%p150_p6)   ;;  %1204 = vmatprep.subr.bf16.mxu0 (!%p150_p6), %v1398_v0  ;;  %v1403_v5 = vld [vmem:[%s1841_s1 + $0xc8] sm:$0xff] (!%p150_p6)   ;;  %v1407_v9 = vld [vmem:[%s1841_s1 + $0xd0] sm:$0xff] (!%p150_p6)  }
   0xc   : > { %v1400_v2 = vld [vmem:[%s1841_s1] sm:$0xff] (!%p150_p6)   ;;  %1256 = vmatprep.subr.bf16.mxu1 (!%p150_p6), %v1399_v1  ;;  %v1404_v6 = vld [vmem:[%s1841_s1 + $0x8] sm:$0xff] (!%p150_p6)   ;;  %v1408_v10 = vld [vmem:[%s1841_s1 + $0x10] sm:$0xff] (!%p150_p6)   ;;  %p184_p7 = scmp.lt.s32.totalorder (!%p150_p6), %s1653_s30, 20  ;;  %s1308_s6 = smul.u32 (!%p150_p6), 48, %s175_s5 }
   0xd   : > { %v1401_v3 = vld [vmem:[%s1841_s1 + $0x80] sm:$0xff] (!%p150_p6)   ;;  %1205 = vmatpush3.bf16.msra.mxu0 (!%p150_p6), %v1400_v2  ;;  %v1405_v7 = vld [vmem:[%s1841_s1 + $0x88] sm:$0xff] (!%p150_p6)   ;;  %v1409_v11 = vld [vmem:[%s1841_s1 + $0x90] sm:$0xff] (!%p150_p6)  }
   0xe   : > { %1257 = vmatpush3.bf16.msra.mxu1 (!%p150_p6), %v1401_v3  ;;  %1206 = vmatprep.subr.bf16.mxu0 (!%p150_p6), %v1402_v4  ;;  %v1410_v12 = vld [vmem:[%s1841_s1 + $0x58] sm:$0xff] (!%p150_p6)   ;;  %v1414_v16 = vld [vmem:[%s1841_s1 + $0x60] sm:$0xff] (!%p150_p6)   ;;  %v1418_v20 = vld [vmem:[%s1841_s1 + $0x68] sm:$0xff] (!%p150_p6)   ;;  %s1745_s12 = scalar_lea.vmem (!%p150_p6), [#allocation2], %s1308_s6  }
   0xf   : > { %1258 = vmatprep.subr.bf16.mxu1 (!%p150_p6), %v1403_v5  ;;  %v1411_v13 = vld [vmem:[%s1841_s1 + $0xd8] sm:$0xff] (!%p150_p6)   ;;  %v1415_v17 = vld [vmem:[%s1841_s1 + $0xe0] sm:$0xff] (!%p150_p6)   ;;  %v1419_v21 = vld [vmem:[%s1841_s1 + $0xe8] sm:$0xff] (!%p150_p6)  }
  0x10   : > { %v1412_v14 = vld [vmem:[%s1841_s1 + $0x18] sm:$0xff] (!%p150_p6)   ;;  %v1416_v18 = vld [vmem:[%s1841_s1 + $0x20] sm:$0xff] (!%p150_p6)   ;;  %v1420_v22 = vld [vmem:[%s1841_s1 + $0x28] sm:$0xff] (!%p150_p6)  }
  0x11   : > { %1207 = vmatpush3.bf16.msra.mxu0 (!%p150_p6), %v1404_v6  ;;  %v1413_v15 = vld [vmem:[%s1841_s1 + $0x98] sm:$0xff] (!%p150_p6)   ;;  %v1417_v19 = vld [vmem:[%s1841_s1 + $0xa0] sm:$0xff] (!%p150_p6)   ;;  %v1421_v23 = vld [vmem:[%s1841_s1 + $0xa8] sm:$0xff] (!%p150_p6)  }
  0x12   : > { %1259 = vmatpush3.bf16.msra.mxu1 %v1405_v7  ;;  %1208 = vmatprep.subr.bf16.mxu0 %v1406_v8  ;;  %s185_s26 = scalar_select %p184_p7, %s1653_s30, 20  ;;  %v1422_v24 = vld [vmem:[%s1841_s1 + $0x70] sm:$0xff]   ;;  %v1426_v28 = vld [vmem:[%s1841_s1 + $0x78] sm:$0xff]   ;;  %v1740_v58 = vld [vmem:[%s1842_s2] ss:$0 sm:$0xff] }
  0x13   : > { %1260 = vmatprep.subr.bf16.mxu1 %v1407_v9  ;;  %v1423_v25 = vld [vmem:[%s1841_s1 + $0xf0] sm:$0xff]   ;;  %v1427_v29 = vld [vmem:[%s1841_s1 + $0xf8] sm:$0xff]   ;;  %s851_s7 = ssub.s32 (%p1603_p4), 21, %s1653_s30  ;;  %s1203_s8 = smul.u32 (%p1603_p4), 48, %s1591_s15 }
  0x14   : > { %v1424_v26 = vld [vmem:[%s1841_s1 + $0x30] sm:$0xff]   ;;  %s1190_s9 = sshll.u32 %s185_s26, 4  ;;  %v1428_v30 = vld [vmem:[%s1841_s1 + $0x38] sm:$0xff]   ;;  %p852_p8 = scmp.lt.s32.totalorder (%p1603_p4), %s851_s7, 12 }
  0x15   : > { %1209 = vmatpush3.bf16.msra.mxu0 %v1408_v10  ;;  %v1425_v27 = vld [vmem:[%s1841_s1 + $0xb0] sm:$0xff]   ;;  %s1705_s24 = scalar_lea.vmem %s1840_s0, %s1190_s9  ;;  %v1429_v31 = vld [vmem:[%s1841_s1 + $0xb8] sm:$0xff]   ;;  %s1788_s11 = scalar_lea.vmem (%p1603_p4), %s1843_s3, %s1203_s8  }
  0x16   : > { %1261 = vmatpush3.bf16.msra.mxu1 %v1409_v11  ;;  %1210 = vmatprep.subr.bf16.mxu0 %v1410_v12  ;;  %v1430_v32 = vld [vmem:[%s1705_s24] ss:$16 sps:$4 sm:$0xff]   ;;  %v1432_v33 = vld [vmem:[%s1705_s24 + $0x4] ss:$16 sps:$4 sm:$0xff]   ;;  %v1433_v34 = vld [vmem:[%s1705_s24 + $0x8] ss:$16 sps:$4 sm:$0xff]  }
  0x17   : > { %1262 = vmatprep.subr.bf16.mxu1 %v1411_v13  ;;  %v1435_v35 = vld [vmem:[%s1705_s24 + $0xc] ss:$16 sps:$4 sm:$0xff]   ;;  %640 = vmatprep.mubr.bf16.mxu0 %v1432_v33  ;;  %v1436_v36 = vld [vmem:[%s1705_s24 + $0x24] ss:$16 sps:$4 sm:$0xff]   ;;  %v1440_v38 = vld [vmem:[%s1705_s24 + $0x20] ss:$16 sps:$4 sm:$0xff]  }
  0x18   : > { %721 = vmatprep.mubr.bf16.mxu1 %v1435_v35  ;;  %v1438_v37 = vld [vmem:[%s1705_s24 + $0x2c] ss:$16 sps:$4 sm:$0xff]   ;;  %v1441_v39 = vld [vmem:[%s1705_s24 + $0x28] ss:$16 sps:$4 sm:$0xff]   ;;  %v1442_v40 = vld [vmem:[%s1705_s24 + $0x44] ss:$16 sps:$4 sm:$0xff]  }
  0x19   : > { %1211 = vmatpush3.bf16.msra.mxu0 %v1412_v14  ;;  %v1444_v41 = vld [vmem:[%s1705_s24 + $0x4c] ss:$16 sps:$4 sm:$0xff]   ;;  %v1446_v42 = vld [vmem:[%s1705_s24 + $0x40] ss:$16 sps:$4 sm:$0xff]   ;;  %v1447_v43 = vld [vmem:[%s1705_s24 + $0x48] ss:$16 sps:$4 sm:$0xff]  }
  0x1a   : > { %1263 = vmatpush3.bf16.msra.mxu1 %v1413_v15  ;;  %1212 = vmatprep.subr.bf16.mxu0 %v1414_v16  ;;  %v1448_v44 = vld [vmem:[%s1705_s24 + $0x64] ss:$16 sps:$4 sm:$0xff]   ;;  %v1450_v45 = vld [vmem:[%s1705_s24 + $0x6c] ss:$16 sps:$4 sm:$0xff]   ;;  %v1452_v46 = vld [vmem:[%s1705_s24 + $0x60] ss:$16 sps:$4 sm:$0xff]  }
  0x1b   : > { %1264 = vmatprep.subr.bf16.mxu1 %v1415_v17  ;;  %v1453_v47 = vld [vmem:[%s1705_s24 + $0x68] ss:$16 sps:$4 sm:$0xff]   ;;  %v1454_v48 = vld [vmem:[%s1705_s24 + $0x84] ss:$16 sps:$4 sm:$0xff]   ;;  %v1456_v49 = vld [vmem:[%s1705_s24 + $0x8c] ss:$16 sps:$4 sm:$0xff]  }
  0x1c   : > { %v1458_v50 = vld [vmem:[%s1705_s24 + $0x80] ss:$16 sps:$4 sm:$0xff]   ;;  %v1459_v51 = vld [vmem:[%s1705_s24 + $0x88] ss:$16 sps:$4 sm:$0xff]   ;;  %v1460_v52 = vld [vmem:[%s1705_s24 + $0xa4] ss:$16 sps:$4 sm:$0xff]  }
  0x1d   : > { %1213 = vmatpush3.bf16.msra.mxu0 %v1416_v18  ;;  %v1462_v53 = vld [vmem:[%s1705_s24 + $0xac] ss:$16 sps:$4 sm:$0xff]   ;;  %v1464_v54 = vld [vmem:[%s1705_s24 + $0xa0] ss:$16 sps:$4 sm:$0xff]   ;;  %v1465_v55 = vld [vmem:[%s1705_s24 + $0xa8] ss:$16 sps:$4 sm:$0xff]  }
  0x1e   : > { %1265 = vmatpush3.bf16.msra.mxu1 %v1417_v19  ;;  %1214 = vmatprep.subr.bf16.mxu0 %v1418_v20 }
  0x1f   : > { %1266 = vmatprep.subr.bf16.mxu1 %v1419_v21 }
  0x21   : > { %1215 = vmatpush3.bf16.msra.mxu0 %v1420_v22 }
  0x22   : > { %1267 = vmatpush3.bf16.msra.mxu1 %v1421_v23  ;;  %1216 = vmatprep.subr.bf16.mxu0 %v1422_v24 }
  0x23   : > { %1268 = vmatprep.subr.bf16.mxu1 %v1423_v25 }
  0x25   : > { %1217 = vmatpush3.bf16.msra.mxu0 %v1424_v26 }
  0x26   : > { %1269 = vmatpush3.bf16.msra.mxu1 %v1425_v27  ;;  %1218 = vmatprep.subr.bf16.mxu0 %v1426_v28 }
  0x27   : > { %1270 = vmatprep.subr.bf16.mxu1 %v1427_v29 }
  0x29   : > { %1219 = vmatpush3.bf16.msra.mxu0 %v1428_v30 }
  0x2a   : > { %1271 = vmatpush3.bf16.msra.mxu1 %v1429_v31 }
  0x2c   : > { %641 = vmatmul.mubr.bf16.vlgmr.msra.gmra.mrb[0].mxu0 %v1430_v32 }
  0x2d   : > { %722 = vmatmul.mubr.bf16.vlgmr.msra.gmra.mrb[0].mxu1 %v1433_v34  ;;  %648 = vmatprep.mubr.bf16.mxu0 %v1436_v36 }
  0x2e   : > { %729 = vmatprep.mubr.bf16.mxu1 %v1438_v37 }
  0x34   : > { %649 = vmatmul.mubr.bf16.gmra.mrb[4].mxu0 %v1440_v38 }
  0x35   : > { %730 = vmatmul.mubr.bf16.gmra.mrb[4].mxu1 %v1441_v39  ;;  %656 = vmatprep.mubr.bf16.mxu0 %v1442_v40 }
  0x36   : > { %737 = vmatprep.mubr.bf16.mxu1 %v1444_v41 }
  0x3c   : > { %657 = vmatmul.mubr.bf16.gmra.mrb[8].mxu0 %v1446_v42 }
  0x3d   : > { %738 = vmatmul.mubr.bf16.gmra.mrb[8].mxu1 %v1447_v43  ;;  %664 = vmatprep.mubr.bf16.mxu0 %v1448_v44 }
  0x3e   : > { %745 = vmatprep.mubr.bf16.mxu1 %v1450_v45 }
  0x44   : > { %665 = vmatmul.mubr.bf16.gmra.mrb[12].mxu0 %v1452_v46 }
  0x45   : > { %746 = vmatmul.mubr.bf16.gmra.mrb[12].mxu1 %v1453_v47  ;;  %672 = vmatprep.mubr.bf16.mxu0 %v1454_v48 }
  0x46   : > { %753 = vmatprep.mubr.bf16.mxu1 %v1456_v49 }
  0x4c   : > { %673 = vmatmul.mubr.bf16.gmra.mrb[16].mxu0 %v1458_v50 }
  0x4d   : > { %754 = vmatmul.mubr.bf16.gmra.mrb[16].mxu1 %v1459_v51  ;;  %680 = vmatprep.mubr.bf16.mxu0 %v1460_v52 }
  0x4e   : > { %761 = vmatprep.mubr.bf16.mxu1 %v1462_v53 }
  0x54   : > { %681 = vmatmul.mubr.bf16.gmra.mrb[20].mxu0 %v1464_v54 }
  0x55   : > { %762 = vmatmul.mubr.bf16.gmra.mrb[20].mxu1 %v1465_v55 }
  0xff   : > { %v1220_v56 = vpop.f32.mrb[0].mxu0 }
 0x100   : > { %v1272_v57 = vpop.f32.mrb[0].mxu1  ;;  %v1221_v59 = vpop.f32.mrb[1].mxu0 }
 0x101   : > { %v1222_v60 = vadd.f32 %v1221_v59, %v1220_v56  ;;  %v1273_v61 = vpop.f32.mrb[1].mxu1  ;;  %v1223_v62 = vpop.f32.mrb[2].mxu0 }
 0x102   : > { %v1274_v63 = vadd.f32 %v1273_v61, %v1272_v57  ;;  %v1275_v0 = vpop.f32.mrb[2].mxu1  ;;  %v1224_v1 = vpop.f32.mrb[3].mxu0 }
 0x103   : > { %v643_v2 = vadd.f32 %v1222_v60, %v1740_v58  ;;  %v1225_v3 = vadd.f32 %v1224_v1, %v1223_v62  ;;  %v1276_v4 = vpop.f32.mrb[3].mxu1 }
 0x104   : > { %v1277_v5 = vadd.f32 %v1276_v4, %v1275_v0 }
 0x105   : > { %v724_v6 = vadd.f32 %v1274_v63, %v643_v2  ;;  %v646_v7 = vadd.f32 %v1225_v3, %v1740_v58 }
 0x107   : > { %v770_v8 = vmax.f32 %v724_v6, 0.0  ;;  %v727_v9 = vadd.f32 %v1277_v5, %v646_v7  ;;  %v1226_v10 = vpop.f32.mrb[4].mxu0 }
 0x108   : > { %v1278_v11 = vpop.f32.mrb[4].mxu1  ;;  %v1227_v12 = vpop.f32.mrb[5].mxu0 }
 0x109   : > { %v1191_v13 = vpack.c.bf16 %v770_v8, %v770_v8  ;;  %v771_v14 = vmax.f32 %v727_v9, 0.0  ;;  %v1228_v15 = vadd.f32 %v1227_v12, %v1226_v10  ;;  %v1279_v16 = vpop.f32.mrb[5].mxu1  ;;  %v1229_v17 = vpop.f32.mrb[6].mxu0 }
 0x10a   : > { %v1280_v18 = vadd.f32 %v1279_v16, %v1278_v11  ;;  %v1281_v19 = vpop.f32.mrb[6].mxu1  ;;  %v1230_v20 = vpop.f32.mrb[7].mxu0 }
 0x10b   : > { %831 = vst.msk [vmem:[%s1745_s12] sm:$0xf] %vm830_vm0, %v1191_v13  ;;  %v1192_v21 = vpack.c.bf16 %v771_v14, %v771_v14  ;;  %v651_v22 = vadd.f32 %v1228_v15, %v1740_v58  ;;  %v1231_v23 = vadd.f32 %v1230_v20, %v1229_v17  ;;  %v1282_v24 = vpop.f32.mrb[7].mxu1 }
 0x10c   : > { %v1283_v25 = vadd.f32 %v1282_v24, %v1281_v19 }
 0x10d   : > { %832 = vst.msk [vmem:[%s1745_s12 + $0x4] sm:$0xf] %vm830_vm0, %v1192_v21  ;;  %v732_v26 = vadd.f32 %v1280_v18, %v651_v22  ;;  %v654_v27 = vadd.f32 %v1231_v23, %v1740_v58 }
 0x10f   : > { %v772_v28 = vmax.f32 %v732_v26, 0.0  ;;  %v735_v29 = vadd.f32 %v1283_v25, %v654_v27  ;;  %v1232_v30 = vpop.f32.mrb[8].mxu0 }
 0x110   : > { %v1284_v31 = vpop.f32.mrb[8].mxu1  ;;  %v1233_v32 = vpop.f32.mrb[9].mxu0 }
 0x111   : > { %v1193_v33 = vpack.c.bf16 %v772_v28, %v772_v28  ;;  %v773_v34 = vmax.f32 %v735_v29, 0.0  ;;  %v1234_v35 = vadd.f32 %v1233_v32, %v1232_v30  ;;  %v1285_v36 = vpop.f32.mrb[9].mxu1  ;;  %v1235_v37 = vpop.f32.mrb[10].mxu0 }
 0x112   : > { %v1286_v38 = vadd.f32 %v1285_v36, %v1284_v31  ;;  %v1287_v39 = vpop.f32.mrb[10].mxu1  ;;  %v1236_v40 = vpop.f32.mrb[11].mxu0 }
 0x113   : > { %833 = vst.msk [vmem:[%s1745_s12 + $0x8] sm:$0xf] %vm830_vm0, %v1193_v33  ;;  %v1194_v41 = vpack.c.bf16 %v773_v34, %v773_v34  ;;  %v659_v42 = vadd.f32 %v1234_v35, %v1740_v58  ;;  %v1237_v43 = vadd.f32 %v1236_v40, %v1235_v37  ;;  %v1288_v44 = vpop.f32.mrb[11].mxu1 }
 0x114   : > { %v1289_v45 = vadd.f32 %v1288_v44, %v1287_v39 }
 0x115   : > { %834 = vst.msk [vmem:[%s1745_s12 + $0xc] sm:$0xf] %vm830_vm0, %v1194_v41  ;;  %v740_v46 = vadd.f32 %v1286_v38, %v659_v42  ;;  %v662_v47 = vadd.f32 %v1237_v43, %v1740_v58 }
 0x117   : > { %v774_v48 = vmax.f32 %v740_v46, 0.0  ;;  %v743_v49 = vadd.f32 %v1289_v45, %v662_v47  ;;  %v1238_v50 = vpop.f32.mrb[12].mxu0 }
 0x118   : > { %v1290_v51 = vpop.f32.mrb[12].mxu1  ;;  %v1239_v52 = vpop.f32.mrb[13].mxu0 }
 0x119   : > { %v1195_v53 = vpack.c.bf16 %v774_v48, %v774_v48  ;;  %v775_v54 = vmax.f32 %v743_v49, 0.0  ;;  %v1240_v55 = vadd.f32 %v1239_v52, %v1238_v50  ;;  %v1291_v56 = vpop.f32.mrb[13].mxu1  ;;  %v1241_v57 = vpop.f32.mrb[14].mxu0 }
 0x11a   : > { %v1292_v59 = vadd.f32 %v1291_v56, %v1290_v51  ;;  %v1293_v60 = vpop.f32.mrb[14].mxu1  ;;  %v1242_v61 = vpop.f32.mrb[15].mxu0 }
 0x11b   : > { %835 = vst.msk [vmem:[%s1745_s12 + $0x10] sm:$0xf] %vm830_vm0, %v1195_v53  ;;  %v1196_v62 = vpack.c.bf16 %v775_v54, %v775_v54  ;;  %v667_v63 = vadd.f32 %v1240_v55, %v1740_v58  ;;  %v1243_v0 = vadd.f32 %v1242_v61, %v1241_v57  ;;  %v1294_v1 = vpop.f32.mrb[15].mxu1 }
 0x11c   : > { %v1295_v2 = vadd.f32 %v1294_v1, %v1293_v60 }
 0x11d   : > { %836 = vst.msk [vmem:[%s1745_s12 + $0x14] sm:$0xf] %vm830_vm0, %v1196_v62  ;;  %v748_v3 = vadd.f32 %v1292_v59, %v667_v63  ;;  %v670_v4 = vadd.f32 %v1243_v0, %v1740_v58 }
 0x11f   : > { %v776_v5 = vmax.f32 %v748_v3, 0.0  ;;  %v751_v6 = vadd.f32 %v1295_v2, %v670_v4  ;;  %v1244_v7 = vpop.f32.mrb[16].mxu0 }
 0x120   : > { %v1296_v8 = vpop.f32.mrb[16].mxu1  ;;  %v1245_v9 = vpop.f32.mrb[17].mxu0 }
 0x121   : > { %v1197_v10 = vpack.c.bf16 %v776_v5, %v776_v5  ;;  %v777_v11 = vmax.f32 %v751_v6, 0.0  ;;  %v1246_v12 = vadd.f32 %v1245_v9, %v1244_v7  ;;  %v1297_v13 = vpop.f32.mrb[17].mxu1  ;;  %v1247_v14 = vpop.f32.mrb[18].mxu0 }
 0x122   : > { %v1298_v15 = vadd.f32 %v1297_v13, %v1296_v8  ;;  %v1299_v16 = vpop.f32.mrb[18].mxu1  ;;  %v1248_v17 = vpop.f32.mrb[19].mxu0 }
 0x123   : > { %837 = vst.msk [vmem:[%s1745_s12 + $0x18] sm:$0xf] %vm830_vm0, %v1197_v10  ;;  %v1198_v18 = vpack.c.bf16 %v777_v11, %v777_v11  ;;  %v675_v19 = vadd.f32 %v1246_v12, %v1740_v58  ;;  %v1249_v20 = vadd.f32 %v1248_v17, %v1247_v14  ;;  %v1300_v21 = vpop.f32.mrb[19].mxu1 }
 0x124   : > { %v1301_v22 = vadd.f32 %v1300_v21, %v1299_v16 }
 0x125   : > { %838 = vst.msk [vmem:[%s1745_s12 + $0x1c] sm:$0xf] %vm830_vm0, %v1198_v18  ;;  %v756_v23 = vadd.f32 %v1298_v15, %v675_v19  ;;  %v678_v24 = vadd.f32 %v1249_v20, %v1740_v58 }
 0x127   : > { %v778_v25 = vmax.f32 %v756_v23, 0.0  ;;  %v759_v26 = vadd.f32 %v1301_v22, %v678_v24  ;;  %v1250_v27 = vpop.f32.mrb[20].mxu0 }
 0x128   : > { %v1302_v28 = vpop.f32.mrb[20].mxu1  ;;  %v1251_v29 = vpop.f32.mrb[21].mxu0 }
 0x129   : > { %v1199_v30 = vpack.c.bf16 %v778_v25, %v778_v25  ;;  %v779_v31 = vmax.f32 %v759_v26, 0.0  ;;  %v1252_v32 = vadd.f32 %v1251_v29, %v1250_v27  ;;  %v1303_v33 = vpop.f32.mrb[21].mxu1  ;;  %v1253_v34 = vpop.f32.mrb[22].mxu0 }
 0x12a   : > { %v1304_v35 = vadd.f32 %v1303_v33, %v1302_v28  ;;  %v1305_v36 = vpop.f32.mrb[22].mxu1  ;;  %v1254_v37 = vpop.f32.mrb[23].mxu0 }
 0x12b   : > { %839 = vst.msk [vmem:[%s1745_s12 + $0x20] sm:$0xf] %vm830_vm0, %v1199_v30  ;;  %v1200_v38 = vpack.c.bf16 %v779_v31, %v779_v31  ;;  %v683_v39 = vadd.f32 %v1252_v32, %v1740_v58  ;;  %v1255_v40 = vadd.f32 %v1254_v37, %v1253_v34  ;;  %v1306_v41 = vpop.f32.mrb[23].mxu1 }
 0x12c   : > { %v1307_v42 = vadd.f32 %v1306_v41, %v1305_v36 }
 0x12d   : > { %840 = vst.msk [vmem:[%s1745_s12 + $0x24] sm:$0xf] %vm830_vm0, %v1200_v38  ;;  %v764_v43 = vadd.f32 %v1304_v35, %v683_v39  ;;  %v686_v44 = vadd.f32 %v1255_v40, %v1740_v58 }
 0x12f   : > { %v780_v45 = vmax.f32 %v764_v43, 0.0  ;;  %v767_v46 = vadd.f32 %v1307_v42, %v686_v44  ;;  %849 = sbr.rel (!%p1603_p4) target bundleno = 379 (0x17b), region = 36 }
 0x131   : > { %v1201_v47 = vpack.c.bf16 %v780_v45, %v780_v45  ;;  %v781_v48 = vmax.f32 %v767_v46, 0.0 }
 0x133   : > { %841 = vst.msk [vmem:[%s1745_s12 + $0x28] sm:$0xf] %vm830_vm0, %v1201_v47  ;;  %v1202_v49 = vpack.c.bf16 %v781_v48, %v781_v48 }
 0x135   : > { %842 = vst.msk [vmem:[%s1745_s12 + $0x2c] sm:$0xf] %vm830_vm0, %v1202_v49 }
 0x136   : > { %s1852_s7 = smov (!%p852_p8, %s851_s7), 12 }
 0x137   : > { %s1178_s14 = sshll.u32 %s1852_s7, 6 }
 0x138   : > { %p1181_p9 = scmp.eq.s32.totalorder %s1178_s14, 0 }
 0x139   : > { %1466 = sdivrem.u32 (!%p1181_p9), %s1852_s7, 12 }
 0x13a   : > { %860 = sbr.rel (%p1181_p9) target bundleno = 379 (0x17b), region = 40 }
 0x142   : > { %s1794_s20 = spop.drf %1466 }
 0x143   : > { %p1182_p10 = scmp.le.s32.totalorder %s1794_s20, 0 }
 0x144   : > { %s1845_s15 = smov (!%p1182_p10), %s1788_s11  ;;  %s1846_s30 = smov (!%p1182_p10), %s1745_s12 }
 0x145   : > { %1059 = sbr.rel (%p1182_p10) target bundleno = 350 (0x15e), region = 112  ;;  %s1803_s17 = smov (!%p1182_p10), 0  }
 0x146   : > { %s1805_s18 = smov (!%p1182_p10), 0  }
 0x14c LB: >> { %v877_v58 = vld [vmem:[%s1532_s30] sm:$0xf]  ;;  %v879_v50 = vld [vmem:[%s1532_s30 + $0x4] sm:$0xf]  ;;  %v881_v51 = vld [vmem:[%s1532_s30 + $0x8] sm:$0xf]  ;;  %s1540_s18 = sphi %s1805_s18, %s871_s18   ;;  %s1536_s17 = sphi %s1803_s17, %s1847_s17   ;;  %s1532_s30 = sphi %s1846_s30, %s906_s30   ;;  %s1528_s15 = sphi %s1845_s15, %s907_s15  }
 0x14d   : >> { %878 = vst [vmem:[%s1528_s15] sm:$0xf] %v877_v58  ;;  %880 = vst [vmem:[%s1528_s15 + $0x4] sm:$0xf] %v879_v50  ;;  %v883_v52 = vld [vmem:[%s1532_s30 + $0xc] sm:$0xf]  ;;  %s901_s21 = sadd.s32 1, %s1536_s17 }
 0x14e   : >> { %882 = vst [vmem:[%s1528_s15 + $0x8] sm:$0xf] %v881_v51  ;;  %v885_v53 = vld [vmem:[%s1532_s30 + $0x10] sm:$0xf]  ;;  %v887_v54 = vld [vmem:[%s1532_s30 + $0x14] sm:$0xf]  ;;  %p902_p11 = scmp.ge.s32.totalorder %s901_s21, %s1794_s20 }
 0x14f   : >> { %884 = vst [vmem:[%s1528_s15 + $0xc] sm:$0xf] %v883_v52  ;;  %886 = vst [vmem:[%s1528_s15 + $0x10] sm:$0xf] %v885_v53  ;;  %v889_v55 = vld [vmem:[%s1532_s30 + $0x18] sm:$0xf] }
 0x150   : >> { %888 = vst [vmem:[%s1528_s15 + $0x14] sm:$0xf] %v887_v54  ;;  %v891_v56 = vld [vmem:[%s1532_s30 + $0x1c] sm:$0xf]  ;;  %v893_v57 = vld [vmem:[%s1532_s30 + $0x20] sm:$0xf] }
 0x151   : >> { %890 = vst [vmem:[%s1528_s15 + $0x18] sm:$0xf] %v889_v55  ;;  %892 = vst [vmem:[%s1528_s15 + $0x1c] sm:$0xf] %v891_v56  ;;  %v895_v59 = vld [vmem:[%s1532_s30 + $0x24] sm:$0xf] }
 0x152   : >> { %894 = vst [vmem:[%s1528_s15 + $0x20] sm:$0xf] %v893_v57  ;;  %v897_v60 = vld [vmem:[%s1532_s30 + $0x28] sm:$0xf]  ;;  %v899_v61 = vld [vmem:[%s1532_s30 + $0x2c] sm:$0xf] }
 0x153   : >> { %896 = vst [vmem:[%s1528_s15 + $0x24] sm:$0xf] %v895_v59  ;;  %898 = vst [vmem:[%s1528_s15 + $0x28] sm:$0xf] %v897_v60  ;;  %s1854_s21 = smov (%p902_p11, %s901_s21), 0  ;;  %s871_s18 = sadd.s32 1, %s1540_s18  }
 0x154   : >> { %900 = vst [vmem:[%s1528_s15 + $0x2c] sm:$0xf] %v899_v61  ;;  %s904_s22 = smul.u32 48, %s1854_s21  ;;  %p870_p12 = scmp.ge.s32.totalorder %s871_s18, %s1794_s20 }
 0x155   : >> { %s1847_s17 = smov %s1854_s21 }
 0x156   : >> { %s906_s30 = scalar_lea.vmem %s1745_s12, %s904_s22 [#allocation2]   ;;  %s907_s15 = scalar_lea.vmem %s1788_s11, %s904_s22  }
 0x157   : > { %873 = sbr.rel (!%p870_p12) target bundleno = 332 (0x14c), region = 118 }
 0x15e PF: > { %1468 = sdivrem.u32 %s1852_s7, 12 }
 0x15f   : > { %s1183_s23 = smul.u32 48, %s1794_s20 }
 0x161   : > { %s912_s24 = scalar_lea.vmem %s1745_s12, %s1183_s23 [#allocation2]   ;;  %s914_s25 = scalar_lea.vmem %s1788_s11, %s1183_s23  }
 0x167   : > { %s1469_s26 = spop.drf %1468 }
 0x168   : > { %p1185_p13 = scmp.le.s32.totalorder %s1469_s26, 0 }
 0x169   : > { %s1542_s27 = smov (!%p1185_p13), %s914_s25   ;;  %s1546_s28 = smov (!%p1185_p13), %s912_s24  }
 0x16a   : > { %1073 = sbr.rel (%p1185_p13) target bundleno = 379 (0x17b), region = 123  ;;  %s1550_s29 = smov (!%p1185_p13), 0  }
 0x16b   : > { %s1554_s4 = smov (!%p1185_p13), 0  }
 0x171 LB: >> { %v924_v62 = vld [vmem:[%s1548_s28] sm:$0xf]  ;;  %s926_s5 = sadd.s32 1, %s1552_s29  ;;  %s918_s4 = sadd.s32 1, %s1556_s4   ;;  %s1556_s4 = sphi %s1554_s4, %s918_s4   ;;  %s1552_s29 = sphi %s1550_s29, %s1551_s29   ;;  %s1548_s28 = sphi %s1546_s28, %s931_s28   ;;  %s1544_s27 = sphi %s1542_s27, %s932_s27  }
 0x172   : >> { %925 = vst [vmem:[%s1544_s27] sm:$0xf] %v924_v62  ;;  %p927_p0 = scmp.ge.s32.totalorder %s926_s5, %s1469_s26  ;;  %p917_p1 = scmp.ge.s32.totalorder %s918_s4, %s1469_s26 }
 0x174   : >> { %s1856_s5 = smov (%p927_p0, %s926_s5), 0  ;;  %920 = sbr.rel (!%p917_p1) target bundleno = 369 (0x171), region = 129 }
 0x175   : >> { %s1186_s6 = sshll.u32 %s1856_s5, 2  ;;  %s1551_s29 = smov %s1856_s5  }
 0x176   : >> { %s931_s28 = scalar_lea.vmem %s912_s24, %s1186_s6 [#allocation2]   ;;  %s932_s27 = scalar_lea.vmem %s914_s25, %s1186_s6  }
 0x17b PF: > { %p10_p2 = scmp.ge.s32.totalorder %s1593_s16, 4   ;;  %s1848_s12 = smov %s1520_s13 }
 0x17c   : > { %s1849_s13 = smov %s1601_s19  ;;  %s1850_s14 = smov %s1593_s16 }
 0x17d   :  { %12 = sbr.rel (!%p10_p2) target bundleno = 2 (0x2), region = 140 }

// kernel: dqn_forward.5
= control target key start
LH: loop header
LB: loop body
LE: loop exit
PB: predicated region body
PF: predicated region fallthrough
CT: control target
= control target key end

     0   :  { %v1326_v36 = vlaneseq  ;;  %v13776_v37 = vmov 1966171168   ;;  %s18047_s0 = inlined_call_operand.vmem [shape: bf16[2,5184], index: 0, kind: input, shape index: {}]   ;;  %s18048_s1 = inlined_call_operand.vmem [shape: bf16[5184,512], index: 1, kind: input, shape index: {}]   ;;  %s18049_s2 = inlined_call_operand.vmem [shape: f32[1,512], index: 2, kind: input, shape index: {}]   ;;  %s18050_s3 = inlined_call_operand.vmem [shape: bf16[512,18], index: 3, kind: input, shape index: {}]   ;;  %s18051_s4 = inlined_call_operand.vmem [shape: f32[1,18], index: 4, kind: input, shape index: {}]   ;;  %s18052_s5 = inlined_call_operand.hbm [shape: f32[2,18], index: 5, kind: output, shape index: {}]  }
   0x1   :  { %v11767_v0 = vld [vmem:[%s18048_s1 + $0x4] ss:$16 sps:$4 sm:$0xff]   ;;  %v11769_v1 = vld [vmem:[%s18048_s1 + $0xc] ss:$16 sps:$4 sm:$0xff]   ;;  %v11771_v2 = vld [vmem:[%s18048_s1] ss:$16 sps:$4 sm:$0xff]   ;;  %v1354_v38 = vunpack.c.l.s4 %v13776_v37 }
   0x2   :  { %8135 = vmatprep.subr.bf16.mxu0 %v11767_v0  ;;  %v11772_v3 = vld [vmem:[%s18048_s1 + $0x8] ss:$16 sps:$4 sm:$0xff]   ;;  %8996 = vmatprep.subr.bf16.mxu1 %v11769_v1  ;;  %v11773_v4 = vld [vmem:[%s18048_s1 + $0x24] ss:$16 sps:$4 sm:$0xff]   ;;  %v11775_v5 = vld [vmem:[%s18048_s1 + $0x2c] ss:$16 sps:$4 sm:$0xff]  }
   0x3   :  { %8136 = vmatpush1.bf16.msra.mxu0 %v11771_v2  ;;  %8997 = vmatpush1.bf16.msra.mxu1 %v11772_v3  ;;  %v11777_v6 = vld [vmem:[%s18048_s1 + $0x20] ss:$16 sps:$4 sm:$0xff]   ;;  %v11778_v7 = vld [vmem:[%s18048_s1 + $0x28] ss:$16 sps:$4 sm:$0xff]   ;;  %v11779_v8 = vld [vmem:[%s18048_s1 + $0x44] ss:$16 sps:$4 sm:$0xff]   ;;  %v1355_v43 = vunpack.c.0.s8 %v1354_v38 }
   0x4   :  { %8137 = vmatprep.subr.bf16.mxu0 %v11773_v4  ;;  %8998 = vmatprep.subr.bf16.mxu1 %v11775_v5  ;;  %v11781_v9 = vld [vmem:[%s18048_s1 + $0x4c] ss:$16 sps:$4 sm:$0xff]   ;;  %v11783_v10 = vld [vmem:[%s18048_s1 + $0x40] ss:$16 sps:$4 sm:$0xff]   ;;  %v11784_v11 = vld [vmem:[%s18048_s1 + $0x48] ss:$16 sps:$4 sm:$0xff]  }
   0x5   :  { %v11785_v12 = vld [vmem:[%s18048_s1 + $0x64] ss:$16 sps:$4 sm:$0xff]   ;;  %v11787_v13 = vld [vmem:[%s18048_s1 + $0x6c] ss:$16 sps:$4 sm:$0xff]   ;;  %v11789_v14 = vld [vmem:[%s18048_s1 + $0x60] ss:$16 sps:$4 sm:$0xff]  }
   0x6   :  { %v11790_v15 = vld [vmem:[%s18048_s1 + $0x68] ss:$16 sps:$4 sm:$0xff]   ;;  %v11791_v16 = vld [vmem:[%s18048_s1 + $0x84] ss:$16 sps:$4 sm:$0xff]   ;;  %v11793_v17 = vld [vmem:[%s18048_s1 + $0x8c] ss:$16 sps:$4 sm:$0xff]  }
   0x7   :  { %8138 = vmatpush1.bf16.msra.mxu0 %v11777_v6  ;;  %8999 = vmatpush1.bf16.msra.mxu1 %v11778_v7  ;;  %v11795_v18 = vld [vmem:[%s18048_s1 + $0x80] ss:$16 sps:$4 sm:$0xff]   ;;  %v11796_v19 = vld [vmem:[%s18048_s1 + $0x88] ss:$16 sps:$4 sm:$0xff]   ;;  %v11797_v20 = vld [vmem:[%s18048_s1 + $0xa4] ss:$16 sps:$4 sm:$0xff]  }
   0x8   :  { %8139 = vmatprep.subr.bf16.mxu0 %v11779_v8  ;;  %9000 = vmatprep.subr.bf16.mxu1 %v11781_v9  ;;  %v11799_v21 = vld [vmem:[%s18048_s1 + $0xac] ss:$16 sps:$4 sm:$0xff]   ;;  %v11801_v22 = vld [vmem:[%s18048_s1 + $0xa0] ss:$16 sps:$4 sm:$0xff]   ;;  %v11802_v23 = vld [vmem:[%s18048_s1 + $0xa8] ss:$16 sps:$4 sm:$0xff]  }
   0x9   :  { %v11803_v24 = vld [vmem:[%s18048_s1 + $0xc4] ss:$16 sps:$4 sm:$0xff]   ;;  %v11805_v25 = vld [vmem:[%s18048_s1 + $0xcc] ss:$16 sps:$4 sm:$0xff]   ;;  %v11807_v26 = vld [vmem:[%s18048_s1 + $0xc0] ss:$16 sps:$4 sm:$0xff]  }
   0xa   :  { %v11808_v27 = vld [vmem:[%s18048_s1 + $0xc8] ss:$16 sps:$4 sm:$0xff]   ;;  %v11809_v28 = vld [vmem:[%s18048_s1 + $0xe4] ss:$16 sps:$4 sm:$0xff]   ;;  %v11811_v29 = vld [vmem:[%s18048_s1 + $0xec] ss:$16 sps:$4 sm:$0xff]  }
   0xb   :  { %8140 = vmatpush1.bf16.msra.mxu0 %v11783_v10  ;;  %9001 = vmatpush1.bf16.msra.mxu1 %v11784_v11  ;;  %v11813_v30 = vld [vmem:[%s18048_s1 + $0xe0] ss:$16 sps:$4 sm:$0xff]   ;;  %v11814_v31 = vld [vmem:[%s18048_s1 + $0xe8] ss:$16 sps:$4 sm:$0xff]   ;;  %v11815_v32 = vld [vmem:[%s18048_s1 + $0x104] ss:$16 sps:$4 sm:$0xff]  }
   0xc   :  { %8141 = vmatprep.subr.bf16.mxu0 %v11785_v12  ;;  %9002 = vmatprep.subr.bf16.mxu1 %v11787_v13  ;;  %v11817_v33 = vld [vmem:[%s18048_s1 + $0x10c] ss:$16 sps:$4 sm:$0xff]   ;;  %v11819_v34 = vld [vmem:[%s18048_s1 + $0x100] ss:$16 sps:$4 sm:$0xff]   ;;  %v11820_v35 = vld [vmem:[%s18048_s1 + $0x108] ss:$16 sps:$4 sm:$0xff]  }
   0xd   :  { %v11821_v39 = vld [vmem:[%s18048_s1 + $0x124] ss:$16 sps:$4 sm:$0xff]   ;;  %v11823_v40 = vld [vmem:[%s18048_s1 + $0x12c] ss:$16 sps:$4 sm:$0xff]   ;;  %v11825_v41 = vld [vmem:[%s18048_s1 + $0x120] ss:$16 sps:$4 sm:$0xff]  }
   0xe   :  { %v13926_v42 = vshrl.u32 %v1326_v36, 7  ;;  %v11826_v44 = vld [vmem:[%s18048_s1 + $0x128] ss:$16 sps:$4 sm:$0xff]   ;;  %v11827_v45 = vld [vmem:[%s18048_s1 + $0x144] ss:$16 sps:$4 sm:$0xff]  }
   0xf   :  { %8142 = vmatpush1.bf16.msra.mxu0 %v11789_v14  ;;  %9003 = vmatpush1.bf16.msra.mxu1 %v11790_v15  ;;  %v11829_v46 = vld [vmem:[%s18048_s1 + $0x14c] ss:$16 sps:$4 sm:$0xff]   ;;  %v11831_v47 = vld [vmem:[%s18048_s1 + $0x140] ss:$16 sps:$4 sm:$0xff]   ;;  %v11832_v48 = vld [vmem:[%s18048_s1 + $0x148] ss:$16 sps:$4 sm:$0xff]  }
  0x10   :  { %8143 = vmatprep.subr.bf16.mxu0 %v11791_v16  ;;  %9004 = vmatprep.subr.bf16.mxu1 %v11793_v17  ;;  %v13944_v49 = vsub.s32 %v1355_v43, %v13926_v42  ;;  %v11833_v50 = vld [vmem:[%s18048_s1 + $0x164] ss:$16 sps:$4 sm:$0xff]   ;;  %v11835_v51 = vld [vmem:[%s18048_s1 + $0x16c] ss:$16 sps:$4 sm:$0xff]   ;;  %v11837_v53 = vld [vmem:[%s18048_s1 + $0x160] ss:$16 sps:$4 sm:$0xff]  }
  0x11   :  { %v13955_v52 = vld [vmem:[%s18047_s0] sm:$0xff]  ;;  %v11838_v55 = vld [vmem:[%s18048_s1 + $0x168] ss:$16 sps:$4 sm:$0xff]   ;;  %v11841_v57 = vld [vmem:[%s18048_s1 + $0x18c] ss:$16 sps:$4 sm:$0xff]  }
  0x12   :  { %v1359_v54 = vrot.slane %v13955_v52, %v13944_v49  ;;  %v11839_v56 = vld [vmem:[%s18048_s1 + $0x184] ss:$16 sps:$4 sm:$0xff]   ;;  %v11843_v59 = vld [vmem:[%s18048_s1 + $0x180] ss:$16 sps:$4 sm:$0xff]   ;;  %v11844_v61 = vld [vmem:[%s18048_s1 + $0x188] ss:$16 sps:$4 sm:$0xff]  }
  0x13   :  { %8144 = vmatpush1.bf16.msra.mxu0 %v11795_v18  ;;  %9005 = vmatpush1.bf16.msra.mxu1 %v11796_v19  ;;  %v11845_v62 = vld [vmem:[%s18048_s1 + $0x1a4] ss:$16 sps:$4 sm:$0xff]   ;;  %v11847_v63 = vld [vmem:[%s18048_s1 + $0x1ac] ss:$16 sps:$4 sm:$0xff]   ;;  %v11849_v0 = vld [vmem:[%s18048_s1 + $0x1a0] ss:$16 sps:$4 sm:$0xff]  }
  0x14   :  { %8145 = vmatprep.subr.bf16.mxu0 %v11797_v20  ;;  %9006 = vmatprep.subr.bf16.mxu1 %v11799_v21  ;;  %v1367_v58 = vcombine.high %v1359_v54, %v1359_v54  ;;  %v11850_v1 = vld [vmem:[%s18048_s1 + $0x1a8] ss:$16 sps:$4 sm:$0xff]   ;;  %v11851_v2 = vld [vmem:[%s18048_s1 + $0x1c4] ss:$16 sps:$4 sm:$0xff]   ;;  %v11853_v3 = vld [vmem:[%s18048_s1 + $0x1cc] ss:$16 sps:$4 sm:$0xff]   ;;  %v14024_v13 = vrot.slane %v1359_v54, %v13944_v49 }
  0x15   :  { %v11855_v4 = vld [vmem:[%s18048_s1 + $0x1c0] ss:$16 sps:$4 sm:$0xff]   ;;  %v11856_v5 = vld [vmem:[%s18048_s1 + $0x1c8] ss:$16 sps:$4 sm:$0xff]   ;;  %v11857_v6 = vld [vmem:[%s18048_s1 + $0x1e4] ss:$16 sps:$4 sm:$0xff]  }
  0x16   :  { %v1389_v60 = vrot.slane %v1367_v58, %v13944_v49  ;;  %v11859_v7 = vld [vmem:[%s18048_s1 + $0x1ec] ss:$16 sps:$4 sm:$0xff]   ;;  %v11861_v8 = vld [vmem:[%s18048_s1 + $0x1e0] ss:$16 sps:$4 sm:$0xff]   ;;  %v11862_v9 = vld [vmem:[%s18048_s1 + $0x1e8] ss:$16 sps:$4 sm:$0xff]  }
  0x17   :  { %8146 = vmatpush1.bf16.msra.mxu0 %v11801_v22  ;;  %9007 = vmatpush1.bf16.msra.mxu1 %v11802_v23  ;;  %v11865_v10 = vld [vmem:[%s18048_s1 + $0x204] ss:$16 sps:$4 sm:$0xff]   ;;  %v11868_v11 = vld [vmem:[%s18048_s1 + $0x20c] ss:$16 sps:$4 sm:$0xff]   ;;  %v11863_v12 = vld [vmem:[%s18048_s1 + $0x200] ss:$16 sps:$4 sm:$0xff]  }
  0x18   :  { %8147 = vmatprep.subr.bf16.mxu0 %v11803_v24  ;;  %9008 = vmatprep.subr.bf16.mxu1 %v11805_v25  ;;  %v11866_v14 = vld [vmem:[%s18048_s1 + $0x208] ss:$16 sps:$4 sm:$0xff]   ;;  %v11871_v15 = vld [vmem:[%s18048_s1 + $0x224] ss:$16 sps:$4 sm:$0xff]   ;;  %v11874_v16 = vld [vmem:[%s18048_s1 + $0x22c] ss:$16 sps:$4 sm:$0xff]   ;;  %v1399_v17 = vcombine.high %v1389_v60, %v1389_v60 }
  0x19   :  { %8167 = vmatprep.mubr.bf16.mxu0 %v1389_v60  ;;  %9028 = vmatprep.mubr.bf16.mxu1 %v1389_v60  ;;  %v11869_v18 = vld [vmem:[%s18048_s1 + $0x220] ss:$16 sps:$4 sm:$0xff]   ;;  %v11872_v19 = vld [vmem:[%s18048_s1 + $0x228] ss:$16 sps:$4 sm:$0xff]   ;;  %v11877_v20 = vld [vmem:[%s18048_s1 + $0x244] ss:$16 sps:$4 sm:$0xff]  }
  0x1a   :  { %v11880_v21 = vld [vmem:[%s18048_s1 + $0x24c] ss:$16 sps:$4 sm:$0xff]   ;;  %v11875_v22 = vld [vmem:[%s18048_s1 + $0x240] ss:$16 sps:$4 sm:$0xff]   ;;  %v11878_v23 = vld [vmem:[%s18048_s1 + $0x248] ss:$16 sps:$4 sm:$0xff]  }
  0x1b   :  { %8148 = vmatpush1.bf16.msra.mxu0 %v11807_v26  ;;  %9009 = vmatpush1.bf16.msra.mxu1 %v11808_v27  ;;  %v11883_v24 = vld [vmem:[%s18048_s1 + $0x264] ss:$16 sps:$4 sm:$0xff]   ;;  %v11886_v25 = vld [vmem:[%s18048_s1 + $0x26c] ss:$16 sps:$4 sm:$0xff]   ;;  %v11881_v26 = vld [vmem:[%s18048_s1 + $0x260] ss:$16 sps:$4 sm:$0xff]  }
  0x1c   :  { %8149 = vmatprep.subr.bf16.mxu0 %v11809_v28  ;;  %9010 = vmatprep.subr.bf16.mxu1 %v11811_v29  ;;  %v11884_v27 = vld [vmem:[%s18048_s1 + $0x268] ss:$16 sps:$4 sm:$0xff]   ;;  %v11889_v28 = vld [vmem:[%s18048_s1 + $0x284] ss:$16 sps:$4 sm:$0xff]   ;;  %v11892_v29 = vld [vmem:[%s18048_s1 + $0x28c] ss:$16 sps:$4 sm:$0xff]  }
  0x1d   :  { %v11901_v36 = vld [vmem:[%s18048_s1 + $0x2c4] ss:$16 sps:$4 sm:$0xff]   ;;  %v11904_v37 = vld [vmem:[%s18048_s1 + $0x2cc] ss:$16 sps:$4 sm:$0xff]   ;;  %v11899_v38 = vld [vmem:[%s18048_s1 + $0x2c0] ss:$16 sps:$4 sm:$0xff]  }
  0x1e   :  { %v11905_v43 = vld [vmem:[%s18048_s1 + $0x2e0] ss:$16 sps:$4 sm:$0xff]   ;;  %v11920_v54 = vld [vmem:[%s18048_s1 + $0x328] ss:$16 sps:$4 sm:$0xff]   ;;  %v11934_v60 = vld [vmem:[%s18048_s1 + $0x36c] ss:$16 sps:$4 sm:$0xff]  }
  0x1f   :  { %8150 = vmatpush1.bf16.msra.mxu0 %v11813_v30  ;;  %9011 = vmatpush1.bf16.msra.mxu1 %v11814_v31  ;;  %v11887_v30 = vld [vmem:[%s18048_s1 + $0x280] ss:$16 sps:$4 sm:$0xff]   ;;  %v11890_v31 = vld [vmem:[%s18048_s1 + $0x288] ss:$16 sps:$4 sm:$0xff]  }
  0x20   :  { %8151 = vmatprep.subr.bf16.mxu0 %v11815_v32  ;;  %9012 = vmatprep.subr.bf16.mxu1 %v11817_v33  ;;  %v11895_v32 = vld [vmem:[%s18048_s1 + $0x2a4] ss:$16 sps:$4 sm:$0xff]   ;;  %v11898_v33 = vld [vmem:[%s18048_s1 + $0x2ac] ss:$16 sps:$4 sm:$0xff]   ;;  %v11926_v58 = vld [vmem:[%s18048_s1 + $0x348] ss:$16 sps:$4 sm:$0xff]  }
  0x23   :  { %8152 = vmatpush1.bf16.msra.mxu0 %v11819_v34  ;;  %9013 = vmatpush1.bf16.msra.mxu1 %v11820_v35  ;;  %v11893_v34 = vld [vmem:[%s18048_s1 + $0x2a0] ss:$16 sps:$4 sm:$0xff]   ;;  %v11896_v35 = vld [vmem:[%s18048_s1 + $0x2a8] ss:$16 sps:$4 sm:$0xff]  }
  0x24   :  { %8153 = vmatprep.subr.bf16.mxu0 %v11821_v39  ;;  %9014 = vmatprep.subr.bf16.mxu1 %v11823_v40  ;;  %v11902_v39 = vld [vmem:[%s18048_s1 + $0x2c8] ss:$16 sps:$4 sm:$0xff]   ;;  %v11907_v40 = vld [vmem:[%s18048_s1 + $0x2e4] ss:$16 sps:$4 sm:$0xff]  }
  0x27   :  { %8154 = vmatpush1.bf16.msra.mxu0 %v11825_v41  ;;  %9015 = vmatpush1.bf16.msra.mxu1 %v11826_v44  ;;  %v11910_v41 = vld [vmem:[%s18048_s1 + $0x2ec] ss:$16 sps:$4 sm:$0xff]   ;;  %v11908_v44 = vld [vmem:[%s18048_s1 + $0x2e8] ss:$16 sps:$4 sm:$0xff]  }
  0x28   :  { %8155 = vmatprep.subr.bf16.mxu0 %v11827_v45  ;;  %9016 = vmatprep.subr.bf16.mxu1 %v11829_v46  ;;  %v11913_v45 = vld [vmem:[%s18048_s1 + $0x304] ss:$16 sps:$4 sm:$0xff]   ;;  %v11916_v46 = vld [vmem:[%s18048_s1 + $0x30c] ss:$16 sps:$4 sm:$0xff]  }
  0x2b   :  { %8156 = vmatpush1.bf16.msra.mxu0 %v11831_v47  ;;  %9017 = vmatpush1.bf16.msra.mxu1 %v11832_v48  ;;  %v11911_v47 = vld [vmem:[%s18048_s1 + $0x300] ss:$16 sps:$4 sm:$0xff]   ;;  %v11914_v48 = vld [vmem:[%s18048_s1 + $0x308] ss:$16 sps:$4 sm:$0xff]  }
  0x2c   :  { %8157 = vmatprep.subr.bf16.mxu0 %v11833_v50  ;;  %9018 = vmatprep.subr.bf16.mxu1 %v11835_v51  ;;  %v11919_v50 = vld [vmem:[%s18048_s1 + $0x324] ss:$16 sps:$4 sm:$0xff]   ;;  %v11922_v51 = vld [vmem:[%s18048_s1 + $0x32c] ss:$16 sps:$4 sm:$0xff]  }
  0x2f   :  { %8158 = vmatpush1.bf16.msra.mxu0 %v11837_v53  ;;  %9019 = vmatpush1.bf16.msra.mxu1 %v11838_v55  ;;  %v11917_v53 = vld [vmem:[%s18048_s1 + $0x320] ss:$16 sps:$4 sm:$0xff]   ;;  %v11925_v55 = vld [vmem:[%s18048_s1 + $0x344] ss:$16 sps:$4 sm:$0xff]  }
  0x30   :  { %8159 = vmatprep.subr.bf16.mxu0 %v11839_v56  ;;  %9020 = vmatprep.subr.bf16.mxu1 %v11841_v57  ;;  %v11928_v56 = vld [vmem:[%s18048_s1 + $0x34c] ss:$16 sps:$4 sm:$0xff]   ;;  %v11923_v57 = vld [vmem:[%s18048_s1 + $0x340] ss:$16 sps:$4 sm:$0xff]  }
  0x33   :  { %8160 = vmatpush1.bf16.msra.mxu0 %v11843_v59  ;;  %9021 = vmatpush1.bf16.msra.mxu1 %v11844_v61  ;;  %v11931_v59 = vld [vmem:[%s18048_s1 + $0x364] ss:$16 sps:$4 sm:$0xff]   ;;  %v11929_v61 = vld [vmem:[%s18048_s1 + $0x360] ss:$16 sps:$4 sm:$0xff]  }
  0x34   :  { %8161 = vmatprep.subr.bf16.mxu0 %v11845_v62  ;;  %9022 = vmatprep.subr.bf16.mxu1 %v11847_v63  ;;  %v11932_v62 = vld [vmem:[%s18048_s1 + $0x368] ss:$16 sps:$4 sm:$0xff]   ;;  %v11937_v63 = vld [vmem:[%s18048_s1 + $0x384] ss:$16 sps:$4 sm:$0xff]  }
  0x37   :  { %8162 = vmatpush1.bf16.msra.mxu0 %v11849_v0  ;;  %9023 = vmatpush1.bf16.msra.mxu1 %v11850_v1  ;;  %v11940_v0 = vld [vmem:[%s18048_s1 + $0x38c] ss:$16 sps:$4 sm:$0xff]   ;;  %v11935_v1 = vld [vmem:[%s18048_s1 + $0x380] ss:$16 sps:$4 sm:$0xff]  }
  0x38   :  { %8163 = vmatprep.subr.bf16.mxu0 %v11851_v2  ;;  %9024 = vmatprep.subr.bf16.mxu1 %v11853_v3  ;;  %v11938_v2 = vld [vmem:[%s18048_s1 + $0x388] ss:$16 sps:$4 sm:$0xff]   ;;  %v11943_v3 = vld [vmem:[%s18048_s1 + $0x3a4] ss:$16 sps:$4 sm:$0xff]  }
  0x3b   :  { %8164 = vmatpush1.bf16.msra.mxu0 %v11855_v4  ;;  %9025 = vmatpush1.bf16.msra.mxu1 %v11856_v5  ;;  %v11946_v4 = vld [vmem:[%s18048_s1 + $0x3ac] ss:$16 sps:$4 sm:$0xff]   ;;  %v11941_v5 = vld [vmem:[%s18048_s1 + $0x3a0] ss:$16 sps:$4 sm:$0xff]  }
  0x3c   :  { %8165 = vmatprep.subr.bf16.mxu0 %v11857_v6  ;;  %9026 = vmatprep.subr.bf16.mxu1 %v11859_v7  ;;  %v11944_v6 = vld [vmem:[%s18048_s1 + $0x3a8] ss:$16 sps:$4 sm:$0xff]   ;;  %v11949_v7 = vld [vmem:[%s18048_s1 + $0x3c4] ss:$16 sps:$4 sm:$0xff]  }
  0x3f   :  { %8166 = vmatpush1.bf16.msra.mxu0 %v11861_v8  ;;  %9027 = vmatpush1.bf16.msra.mxu1 %v11862_v9  ;;  %v11952_v8 = vld [vmem:[%s18048_s1 + $0x3cc] ss:$16 sps:$4 sm:$0xff]   ;;  %v1352_v9 = vcombine.high %v13955_v52, %v13955_v52 }
  0x40   :  { %8176 = vmatprep.subr.bf16.mxu0 %v11865_v10  ;;  %9037 = vmatprep.subr.bf16.mxu1 %v11868_v11  ;;  %v11947_v10 = vld [vmem:[%s18048_s1 + $0x3c0] ss:$16 sps:$4 sm:$0xff]   ;;  %v11950_v11 = vld [vmem:[%s18048_s1 + $0x3c8] ss:$16 sps:$4 sm:$0xff]   ;;  %v11958_v52 = vld [vmem:[%s18048_s1 + $0x3ec] ss:$16 sps:$4 sm:$0xff]  }
  0x42   :  { %8168 = vmatmul.mubr.bf16.vlgmr.msra.gmra.mrb[0].mxu0 %v14024_v13  ;;  %9029 = vmatmul.mubr.bf16.vlgmr.msra.gmra.mrb[0].mxu1 %v14024_v13 }
  0x43   :  { %8177 = vmatpush1.bf16.msra.mxu0 %v11863_v12  ;;  %9038 = vmatpush1.bf16.msra.mxu1 %v11866_v14  ;;  %v11955_v12 = vld [vmem:[%s18048_s1 + $0x3e4] ss:$16 sps:$4 sm:$0xff]   ;;  %v14208_v14 = vrot.slane %v1352_v9, %v13944_v49  ;;  %v12034_v9 = vld [vmem:[%s18048_s1 + $0x588] ss:$16 sps:$4 sm:$0xff]  }
  0x44   :  { %8178 = vmatprep.subr.bf16.mxu0 %v11871_v15  ;;  %9039 = vmatprep.subr.bf16.mxu1 %v11874_v16  ;;  %v11953_v15 = vld [vmem:[%s18048_s1 + $0x3e0] ss:$16 sps:$4 sm:$0xff]   ;;  %v11956_v16 = vld [vmem:[%s18048_s1 + $0x3e8] ss:$16 sps:$4 sm:$0xff]  }
  0x45   :  { %8208 = vmatprep.mubr.bf16.mxu0 %v1399_v17  ;;  %9069 = vmatprep.mubr.bf16.mxu1 %v1399_v17  ;;  %v11961_v17 = vld [vmem:[%s18048_s1 + $0x404] ss:$16 sps:$4 sm:$0xff]  }
  0x47   :  { %8179 = vmatpush1.bf16.msra.mxu0 %v11869_v18  ;;  %9040 = vmatpush1.bf16.msra.mxu1 %v11872_v19  ;;  %v11964_v18 = vld [vmem:[%s18048_s1 + $0x40c] ss:$16 sps:$4 sm:$0xff]   ;;  %v1368_v19 = vcombine.high %v14208_v14, %v14208_v14 }
  0x48   :  { %8180 = vmatprep.subr.bf16.mxu0 %v11877_v20  ;;  %9041 = vmatprep.subr.bf16.mxu1 %v11880_v21  ;;  %v11959_v20 = vld [vmem:[%s18048_s1 + $0x400] ss:$16 sps:$4 sm:$0xff]   ;;  %v1397_v21 = vcombine.high %v14024_v13, %v14024_v13 }
  0x49   :  { %v11965_v13 = vld [vmem:[%s18048_s1 + $0x420] ss:$16 sps:$4 sm:$0xff]  }
  0x4b   :  { %8181 = vmatpush1.bf16.msra.mxu0 %v11875_v22  ;;  %9042 = vmatpush1.bf16.msra.mxu1 %v11878_v23  ;;  %v11962_v22 = vld [vmem:[%s18048_s1 + $0x408] ss:$16 sps:$4 sm:$0xff]   ;;  %v11967_v23 = vld [vmem:[%s18048_s1 + $0x424] ss:$16 sps:$4 sm:$0xff]  }
  0x4c   :  { %8182 = vmatprep.subr.bf16.mxu0 %v11883_v24  ;;  %9043 = vmatprep.subr.bf16.mxu1 %v11886_v25  ;;  %v11970_v24 = vld [vmem:[%s18048_s1 + $0x42c] ss:$16 sps:$4 sm:$0xff]   ;;  %v14239_v25 = vrot.slane %v1368_v19, %v13944_v49  ;;  %v12051_v19 = vld [vmem:[%s18048_s1 + $0x5e4] ss:$16 sps:$4 sm:$0xff]  }
  0x4f   :  { %8183 = vmatpush1.bf16.msra.mxu0 %v11881_v26  ;;  %9044 = vmatpush1.bf16.msra.mxu1 %v11884_v27  ;;  %v11968_v26 = vld [vmem:[%s18048_s1 + $0x428] ss:$16 sps:$4 sm:$0xff]   ;;  %v11973_v27 = vld [vmem:[%s18048_s1 + $0x444] ss:$16 sps:$4 sm:$0xff]  }
  0x50   :  { %8184 = vmatprep.subr.bf16.mxu0 %v11889_v28  ;;  %9045 = vmatprep.subr.bf16.mxu1 %v11892_v29  ;;  %v11976_v28 = vld [vmem:[%s18048_s1 + $0x44c] ss:$16 sps:$4 sm:$0xff]   ;;  %v11971_v29 = vld [vmem:[%s18048_s1 + $0x440] ss:$16 sps:$4 sm:$0xff]  }
  0x53   :  { %8185 = vmatpush1.bf16.msra.mxu0 %v11887_v30  ;;  %9046 = vmatpush1.bf16.msra.mxu1 %v11890_v31  ;;  %v11974_v30 = vld [vmem:[%s18048_s1 + $0x448] ss:$16 sps:$4 sm:$0xff]   ;;  %v11979_v31 = vld [vmem:[%s18048_s1 + $0x464] ss:$16 sps:$4 sm:$0xff]  }
  0x54   :  { %8186 = vmatprep.subr.bf16.mxu0 %v11895_v32  ;;  %9047 = vmatprep.subr.bf16.mxu1 %v11898_v33  ;;  %v11982_v32 = vld [vmem:[%s18048_s1 + $0x46c] ss:$16 sps:$4 sm:$0xff]   ;;  %v11977_v33 = vld [vmem:[%s18048_s1 + $0x460] ss:$16 sps:$4 sm:$0xff]  }
  0x57   :  { %8187 = vmatpush1.bf16.msra.mxu0 %v11893_v34  ;;  %9048 = vmatpush1.bf16.msra.mxu1 %v11896_v35  ;;  %v11980_v34 = vld [vmem:[%s18048_s1 + $0x468] ss:$16 sps:$4 sm:$0xff]   ;;  %v11985_v35 = vld [vmem:[%s18048_s1 + $0x484] ss:$16 sps:$4 sm:$0xff]  }
  0x58   :  { %8188 = vmatprep.subr.bf16.mxu0 %v11901_v36  ;;  %9049 = vmatprep.subr.bf16.mxu1 %v11904_v37  ;;  %v11988_v36 = vld [vmem:[%s18048_s1 + $0x48c] ss:$16 sps:$4 sm:$0xff]   ;;  %v11983_v37 = vld [vmem:[%s18048_s1 + $0x480] ss:$16 sps:$4 sm:$0xff]  }
  0x5b   :  { %8189 = vmatpush1.bf16.msra.mxu0 %v11899_v38  ;;  %9050 = vmatpush1.bf16.msra.mxu1 %v11902_v39  ;;  %v11986_v38 = vld [vmem:[%s18048_s1 + $0x488] ss:$16 sps:$4 sm:$0xff]   ;;  %v11991_v39 = vld [vmem:[%s18048_s1 + $0x4a4] ss:$16 sps:$4 sm:$0xff]  }
  0x5c   :  { %8190 = vmatprep.subr.bf16.mxu0 %v11907_v40  ;;  %9051 = vmatprep.subr.bf16.mxu1 %v11910_v41  ;;  %v11994_v40 = vld [vmem:[%s18048_s1 + $0x4ac] ss:$16 sps:$4 sm:$0xff]   ;;  %v11989_v41 = vld [vmem:[%s18048_s1 + $0x4a0] ss:$16 sps:$4 sm:$0xff]  }
  0x5f   :  { %8191 = vmatpush1.bf16.msra.mxu0 %v11905_v43  ;;  %9052 = vmatpush1.bf16.msra.mxu1 %v11908_v44  ;;  %v11992_v43 = vld [vmem:[%s18048_s1 + $0x4a8] ss:$16 sps:$4 sm:$0xff]   ;;  %v11997_v44 = vld [vmem:[%s18048_s1 + $0x4c4] ss:$16 sps:$4 sm:$0xff]  }
  0x60   :  { %8192 = vmatprep.subr.bf16.mxu0 %v11913_v45  ;;  %9053 = vmatprep.subr.bf16.mxu1 %v11916_v46  ;;  %v12000_v45 = vld [vmem:[%s18048_s1 + $0x4cc] ss:$16 sps:$4 sm:$0xff]   ;;  %v11995_v46 = vld [vmem:[%s18048_s1 + $0x4c0] ss:$16 sps:$4 sm:$0xff]  }
  0x63   :  { %8193 = vmatpush1.bf16.msra.mxu0 %v11911_v47  ;;  %9054 = vmatpush1.bf16.msra.mxu1 %v11914_v48  ;;  %v11998_v47 = vld [vmem:[%s18048_s1 + $0x4c8] ss:$16 sps:$4 sm:$0xff]   ;;  %v12003_v48 = vld [vmem:[%s18048_s1 + $0x4e4] ss:$16 sps:$4 sm:$0xff]  }
  0x64   :  { %8194 = vmatprep.subr.bf16.mxu0 %v11919_v50  ;;  %9055 = vmatprep.subr.bf16.mxu1 %v11922_v51  ;;  %v12006_v50 = vld [vmem:[%s18048_s1 + $0x4ec] ss:$16 sps:$4 sm:$0xff]   ;;  %v12001_v51 = vld [vmem:[%s18048_s1 + $0x4e0] ss:$16 sps:$4 sm:$0xff]  }
  0x67   :  { %8195 = vmatpush1.bf16.msra.mxu0 %v11917_v53  ;;  %9056 = vmatpush1.bf16.msra.mxu1 %v11920_v54  ;;  %v12004_v53 = vld [vmem:[%s18048_s1 + $0x4e8] ss:$16 sps:$4 sm:$0xff]   ;;  %v12009_v54 = vld [vmem:[%s18048_s1 + $0x504] ss:$16 sps:$4 sm:$0xff]  }
  0x68   :  { %8196 = vmatprep.subr.bf16.mxu0 %v11925_v55  ;;  %9057 = vmatprep.subr.bf16.mxu1 %v11928_v56  ;;  %v12012_v55 = vld [vmem:[%s18048_s1 + $0x50c] ss:$16 sps:$4 sm:$0xff]   ;;  %v12007_v56 = vld [vmem:[%s18048_s1 + $0x500] ss:$16 sps:$4 sm:$0xff]  }
  0x6b   :  { %8197 = vmatpush1.bf16.msra.mxu0 %v11923_v57  ;;  %9058 = vmatpush1.bf16.msra.mxu1 %v11926_v58  ;;  %v12010_v57 = vld [vmem:[%s18048_s1 + $0x508] ss:$16 sps:$4 sm:$0xff]   ;;  %v12015_v58 = vld [vmem:[%s18048_s1 + $0x524] ss:$16 sps:$4 sm:$0xff]  }
  0x6c   :  { %8198 = vmatprep.subr.bf16.mxu0 %v11931_v59  ;;  %9059 = vmatprep.subr.bf16.mxu1 %v11934_v60  ;;  %v12018_v59 = vld [vmem:[%s18048_s1 + $0x52c] ss:$16 sps:$4 sm:$0xff]   ;;  %v12013_v60 = vld [vmem:[%s18048_s1 + $0x520] ss:$16 sps:$4 sm:$0xff]  }
  0x6f   :  { %8199 = vmatpush1.bf16.msra.mxu0 %v11929_v61  ;;  %9060 = vmatpush1.bf16.msra.mxu1 %v11932_v62  ;;  %v12016_v61 = vld [vmem:[%s18048_s1 + $0x528] ss:$16 sps:$4 sm:$0xff]   ;;  %v12021_v62 = vld [vmem:[%s18048_s1 + $0x544] ss:$16 sps:$4 sm:$0xff]  }
  0x70   :  { %8200 = vmatprep.subr.bf16.mxu0 %v11937_v63  ;;  %9061 = vmatprep.subr.bf16.mxu1 %v11940_v0  ;;  %v12024_v63 = vld [vmem:[%s18048_s1 + $0x54c] ss:$16 sps:$4 sm:$0xff]   ;;  %v12019_v0 = vld [vmem:[%s18048_s1 + $0x540] ss:$16 sps:$4 sm:$0xff]  }
  0x73   :  { %8201 = vmatpush1.bf16.msra.mxu0 %v11935_v1  ;;  %9062 = vmatpush1.bf16.msra.mxu1 %v11938_v2  ;;  %v12022_v1 = vld [vmem:[%s18048_s1 + $0x548] ss:$16 sps:$4 sm:$0xff]   ;;  %v12027_v2 = vld [vmem:[%s18048_s1 + $0x564] ss:$16 sps:$4 sm:$0xff]  }
  0x74   :  { %8202 = vmatprep.subr.bf16.mxu0 %v11943_v3  ;;  %9063 = vmatprep.subr.bf16.mxu1 %v11946_v4  ;;  %v12030_v3 = vld [vmem:[%s18048_s1 + $0x56c] ss:$16 sps:$4 sm:$0xff]   ;;  %v12025_v4 = vld [vmem:[%s18048_s1 + $0x560] ss:$16 sps:$4 sm:$0xff]  }
  0x77   :  { %8203 = vmatpush1.bf16.msra.mxu0 %v11941_v5  ;;  %9064 = vmatpush1.bf16.msra.mxu1 %v11944_v6  ;;  %v12028_v5 = vld [vmem:[%s18048_s1 + $0x568] ss:$16 sps:$4 sm:$0xff]   ;;  %v12033_v6 = vld [vmem:[%s18048_s1 + $0x584] ss:$16 sps:$4 sm:$0xff]  }
  0x78   :  { %8204 = vmatprep.subr.bf16.mxu0 %v11949_v7  ;;  %9065 = vmatprep.subr.bf16.mxu1 %v11952_v8  ;;  %v12036_v7 = vld [vmem:[%s18048_s1 + $0x58c] ss:$16 sps:$4 sm:$0xff]   ;;  %v12031_v8 = vld [vmem:[%s18048_s1 + $0x580] ss:$16 sps:$4 sm:$0xff]  }
  0x7b   :  { %8205 = vmatpush1.bf16.msra.mxu0 %v11947_v10  ;;  %9066 = vmatpush1.bf16.msra.mxu1 %v11950_v11  ;;  %v12039_v10 = vld [vmem:[%s18048_s1 + $0x5a4] ss:$16 sps:$4 sm:$0xff]   ;;  %v12042_v11 = vld [vmem:[%s18048_s1 + $0x5ac] ss:$16 sps:$4 sm:$0xff]  }
  0x7c   :  { %8206 = vmatprep.subr.bf16.mxu0 %v11955_v12  ;;  %9067 = vmatprep.subr.bf16.mxu1 %v11958_v52  ;;  %v12037_v12 = vld [vmem:[%s18048_s1 + $0x5a0] ss:$16 sps:$4 sm:$0xff]   ;;  %v12040_v52 = vld [vmem:[%s18048_s1 + $0x5a8] ss:$16 sps:$4 sm:$0xff]  }
  0x7f   :  { %8207 = vmatpush1.bf16.msra.mxu0 %v11953_v15  ;;  %9068 = vmatpush1.bf16.msra.mxu1 %v11956_v16  ;;  %v12045_v15 = vld [vmem:[%s18048_s1 + $0x5c4] ss:$16 sps:$4 sm:$0xff]   ;;  %v12048_v16 = vld [vmem:[%s18048_s1 + $0x5cc] ss:$16 sps:$4 sm:$0xff]  }
  0x80   :  { %8217 = vmatprep.subr.bf16.mxu0 %v11961_v17  ;;  %9078 = vmatprep.subr.bf16.mxu1 %v11964_v18  ;;  %v12043_v17 = vld [vmem:[%s18048_s1 + $0x5c0] ss:$16 sps:$4 sm:$0xff]   ;;  %v12046_v18 = vld [vmem:[%s18048_s1 + $0x5c8] ss:$16 sps:$4 sm:$0xff]  }
  0x82   :  { %8209 = vmatmul.mubr.bf16.vlgmr.msra.gmra.mrb[0].mxu0 %v1397_v21  ;;  %9070 = vmatmul.mubr.bf16.vlgmr.msra.gmra.mrb[0].mxu1 %v1397_v21  ;;  %v12049_v21 = vld [vmem:[%s18048_s1 + $0x5e0] ss:$16 sps:$4 sm:$0xff]  }
  0x83   :  { %8218 = vmatpush1.bf16.msra.mxu0 %v11959_v20  ;;  %9079 = vmatpush1.bf16.msra.mxu1 %v11962_v22  ;;  %v12054_v20 = vld [vmem:[%s18048_s1 + $0x5ec] ss:$16 sps:$4 sm:$0xff]   ;;  %v12052_v22 = vld [vmem:[%s18048_s1 + $0x5e8] ss:$16 sps:$4 sm:$0xff]  }
  0x84   :  { %8219 = vmatprep.subr.bf16.mxu0 %v11967_v23  ;;  %9080 = vmatprep.subr.bf16.mxu1 %v11970_v24  ;;  %v12058_v23 = vld [vmem:[%s18048_s1 + $0x604] ss:$16 sps:$4 sm:$0xff]   ;;  %v12061_v24 = vld [vmem:[%s18048_s1 + $0x60c] ss:$16 sps:$4 sm:$0xff]  }
  0x85   :  { %8249 = vmatprep.mubr.bf16.mxu0 %v14239_v25  ;;  %9110 = vmatprep.mubr.bf16.mxu1 %v14239_v25 }
  0x87   :  { %8220 = vmatpush1.bf16.msra.mxu0 %v11965_v13  ;;  %9081 = vmatpush1.bf16.msra.mxu1 %v11968_v26  ;;  %v12056_v13 = vld [vmem:[%s18048_s1 + $0x600] ss:$16 sps:$4 sm:$0xff]   ;;  %v14428_v26 = vrot.slane %v14208_v14, %v13944_v49  ;;  %v1400_v14 = vcombine.high %v14239_v25, %v14239_v25  ;;  %v12070_v25 = vld [vmem:[%s18048_s1 + $0x644] ss:$16 sps:$4 sm:$0xff]  }
  0x88   :  { %8221 = vmatprep.subr.bf16.mxu0 %v11973_v27  ;;  %9082 = vmatprep.subr.bf16.mxu1 %v11976_v28  ;;  %v12059_v27 = vld [vmem:[%s18048_s1 + $0x608] ss:$16 sps:$4 sm:$0xff]   ;;  %v12064_v28 = vld [vmem:[%s18048_s1 + $0x624] ss:$16 sps:$4 sm:$0xff]  }
  0x8b   :  { %8222 = vmatpush1.bf16.msra.mxu0 %v11971_v29  ;;  %9083 = vmatpush1.bf16.msra.mxu1 %v11974_v30  ;;  %v12067_v29 = vld [vmem:[%s18048_s1 + $0x62c] ss:$16 sps:$4 sm:$0xff]   ;;  %v12062_v30 = vld [vmem:[%s18048_s1 + $0x620] ss:$16 sps:$4 sm:$0xff]  }
  0x8c   :  { %8223 = vmatprep.subr.bf16.mxu0 %v11979_v31  ;;  %9084 = vmatprep.subr.bf16.mxu1 %v11982_v32  ;;  %v12065_v31 = vld [vmem:[%s18048_s1 + $0x628] ss:$16 sps:$4 sm:$0xff]   ;;  %v12073_v32 = vld [vmem:[%s18048_s1 + $0x64c] ss:$16 sps:$4 sm:$0xff]  }
  0x8f   :  { %8224 = vmatpush1.bf16.msra.mxu0 %v11977_v33  ;;  %9085 = vmatpush1.bf16.msra.mxu1 %v11980_v34  ;;  %v12068_v33 = vld [vmem:[%s18048_s1 + $0x640] ss:$16 sps:$4 sm:$0xff]   ;;  %v12071_v34 = vld [vmem:[%s18048_s1 + $0x648] ss:$16 sps:$4 sm:$0xff]  }
  0x90   :  { %8225 = vmatprep.subr.bf16.mxu0 %v11985_v35  ;;  %9086 = vmatprep.subr.bf16.mxu1 %v11988_v36  ;;  %v12076_v35 = vld [vmem:[%s18048_s1 + $0x664] ss:$16 sps:$4 sm:$0xff]   ;;  %v12079_v36 = vld [vmem:[%s18048_s1 + $0x66c] ss:$16 sps:$4 sm:$0xff]  }
  0x93   :  { %8226 = vmatpush1.bf16.msra.mxu0 %v11983_v37  ;;  %9087 = vmatpush1.bf16.msra.mxu1 %v11986_v38  ;;  %v12074_v37 = vld [vmem:[%s18048_s1 + $0x660] ss:$16 sps:$4 sm:$0xff]   ;;  %v12077_v38 = vld [vmem:[%s18048_s1 + $0x668] ss:$16 sps:$4 sm:$0xff]  }
  0x94   :  { %8227 = vmatprep.subr.bf16.mxu0 %v11991_v39  ;;  %9088 = vmatprep.subr.bf16.mxu1 %v11994_v40  ;;  %v12082_v39 = vld [vmem:[%s18048_s1 + $0x684] ss:$16 sps:$4 sm:$0xff]   ;;  %v12085_v40 = vld [vmem:[%s18048_s1 + $0x68c] ss:$16 sps:$4 sm:$0xff]  }
  0x97   :  { %8228 = vmatpush1.bf16.msra.mxu0 %v11989_v41  ;;  %9089 = vmatpush1.bf16.msra.mxu1 %v11992_v43  ;;  %v12080_v41 = vld [vmem:[%s18048_s1 + $0x680] ss:$16 sps:$4 sm:$0xff]   ;;  %v12083_v43 = vld [vmem:[%s18048_s1 + $0x688] ss:$16 sps:$4 sm:$0xff]  }
  0x98   :  { %8229 = vmatprep.subr.bf16.mxu0 %v11997_v44  ;;  %9090 = vmatprep.subr.bf16.mxu1 %v12000_v45  ;;  %v12088_v44 = vld [vmem:[%s18048_s1 + $0x6a4] ss:$16 sps:$4 sm:$0xff]   ;;  %v12091_v45 = vld [vmem:[%s18048_s1 + $0x6ac] ss:$16 sps:$4 sm:$0xff]  }
  0x9b   :  { %8230 = vmatpush1.bf16.msra.mxu0 %v11995_v46  ;;  %9091 = vmatpush1.bf16.msra.mxu1 %v11998_v47  ;;  %v12086_v46 = vld [vmem:[%s18048_s1 + $0x6a0] ss:$16 sps:$4 sm:$0xff]   ;;  %v12089_v47 = vld [vmem:[%s18048_s1 + $0x6a8] ss:$16 sps:$4 sm:$0xff]  }
  0x9c   :  { %8231 = vmatprep.subr.bf16.mxu0 %v12003_v48  ;;  %9092 = vmatprep.subr.bf16.mxu1 %v12006_v50  ;;  %v12094_v48 = vld [vmem:[%s18048_s1 + $0x6c4] ss:$16 sps:$4 sm:$0xff]   ;;  %v12097_v50 = vld [vmem:[%s18048_s1 + $0x6cc] ss:$16 sps:$4 sm:$0xff]  }
  0x9f   :  { %8232 = vmatpush1.bf16.msra.mxu0 %v12001_v51  ;;  %9093 = vmatpush1.bf16.msra.mxu1 %v12004_v53  ;;  %v12092_v51 = vld [vmem:[%s18048_s1 + $0x6c0] ss:$16 sps:$4 sm:$0xff]   ;;  %v12095_v53 = vld [vmem:[%s18048_s1 + $0x6c8] ss:$16 sps:$4 sm:$0xff]  }
  0xa0   :  { %8233 = vmatprep.subr.bf16.mxu0 %v12009_v54  ;;  %9094 = vmatprep.subr.bf16.mxu1 %v12012_v55  ;;  %v12100_v54 = vld [vmem:[%s18048_s1 + $0x6e4] ss:$16 sps:$4 sm:$0xff]   ;;  %v12103_v55 = vld [vmem:[%s18048_s1 + $0x6ec] ss:$16 sps:$4 sm:$0xff]  }
  0xa3   :  { %8234 = vmatpush1.bf16.msra.mxu0 %v12007_v56  ;;  %9095 = vmatpush1.bf16.msra.mxu1 %v12010_v57  ;;  %v12098_v56 = vld [vmem:[%s18048_s1 + $0x6e0] ss:$16 sps:$4 sm:$0xff]   ;;  %v12101_v57 = vld [vmem:[%s18048_s1 + $0x6e8] ss:$16 sps:$4 sm:$0xff]  }
  0xa4   :  { %8235 = vmatprep.subr.bf16.mxu0 %v12015_v58  ;;  %9096 = vmatprep.subr.bf16.mxu1 %v12018_v59  ;;  %v12106_v58 = vld [vmem:[%s18048_s1 + $0x704] ss:$16 sps:$4 sm:$0xff]   ;;  %v12109_v59 = vld [vmem:[%s18048_s1 + $0x70c] ss:$16 sps:$4 sm:$0xff]  }
  0xa7   :  { %8236 = vmatpush1.bf16.msra.mxu0 %v12013_v60  ;;  %9097 = vmatpush1.bf16.msra.mxu1 %v12016_v61  ;;  %v12104_v60 = vld [vmem:[%s18048_s1 + $0x700] ss:$16 sps:$4 sm:$0xff]   ;;  %v12107_v61 = vld [vmem:[%s18048_s1 + $0x708] ss:$16 sps:$4 sm:$0xff]  }
  0xa8   :  { %8237 = vmatprep.subr.bf16.mxu0 %v12021_v62  ;;  %9098 = vmatprep.subr.bf16.mxu1 %v12024_v63  ;;  %v12112_v62 = vld [vmem:[%s18048_s1 + $0x724] ss:$16 sps:$4 sm:$0xff]   ;;  %v12115_v63 = vld [vmem:[%s18048_s1 + $0x72c] ss:$16 sps:$4 sm:$0xff]  }
  0xab   :  { %8238 = vmatpush1.bf16.msra.mxu0 %v12019_v0  ;;  %9099 = vmatpush1.bf16.msra.mxu1 %v12022_v1  ;;  %v12110_v0 = vld [vmem:[%s18048_s1 + $0x720] ss:$16 sps:$4 sm:$0xff]   ;;  %v12113_v1 = vld [vmem:[%s18048_s1 + $0x728] ss:$16 sps:$4 sm:$0xff]  }
  0xac   :  { %8239 = vmatprep.subr.bf16.mxu0 %v12027_v2  ;;  %9100 = vmatprep.subr.bf16.mxu1 %v12030_v3  ;;  %v12118_v2 = vld [vmem:[%s18048_s1 + $0x744] ss:$16 sps:$4 sm:$0xff]   ;;  %v12121_v3 = vld [vmem:[%s18048_s1 + $0x74c] ss:$16 sps:$4 sm:$0xff]  }
  0xaf   :  { %8240 = vmatpush1.bf16.msra.mxu0 %v12025_v4  ;;  %9101 = vmatpush1.bf16.msra.mxu1 %v12028_v5  ;;  %v12116_v4 = vld [vmem:[%s18048_s1 + $0x740] ss:$16 sps:$4 sm:$0xff]   ;;  %v12119_v5 = vld [vmem:[%s18048_s1 + $0x748] ss:$16 sps:$4 sm:$0xff]  }
  0xb0   :  { %8241 = vmatprep.subr.bf16.mxu0 %v12033_v6  ;;  %9102 = vmatprep.subr.bf16.mxu1 %v12036_v7  ;;  %v12124_v6 = vld [vmem:[%s18048_s1 + $0x764] ss:$16 sps:$4 sm:$0xff]   ;;  %v12127_v7 = vld [vmem:[%s18048_s1 + $0x76c] ss:$16 sps:$4 sm:$0xff]  }
  0xb3   :  { %8242 = vmatpush1.bf16.msra.mxu0 %v12031_v8  ;;  %9103 = vmatpush1.bf16.msra.mxu1 %v12034_v9  ;;  %v12122_v8 = vld [vmem:[%s18048_s1 + $0x760] ss:$16 sps:$4 sm:$0xff]   ;;  %v12125_v9 = vld [vmem:[%s18048_s1 + $0x768] ss:$16 sps:$4 sm:$0xff]  }
  0xb4   :  { %8243 = vmatprep.subr.bf16.mxu0 %v12039_v10  ;;  %9104 = vmatprep.subr.bf16.mxu1 %v12042_v11  ;;  %v12130_v10 = vld [vmem:[%s18048_s1 + $0x784] ss:$16 sps:$4 sm:$0xff]   ;;  %v12133_v11 = vld [vmem:[%s18048_s1 + $0x78c] ss:$16 sps:$4 sm:$0xff]  }
  0xb7   :  { %8244 = vmatpush1.bf16.msra.mxu0 %v12037_v12  ;;  %9105 = vmatpush1.bf16.msra.mxu1 %v12040_v52  ;;  %v12128_v12 = vld [vmem:[%s18048_s1 + $0x780] ss:$16 sps:$4 sm:$0xff]   ;;  %v12131_v52 = vld [vmem:[%s18048_s1 + $0x788] ss:$16 sps:$4 sm:$0xff]  }
  0xb8   :  { %8245 = vmatprep.subr.bf16.mxu0 %v12045_v15  ;;  %9106 = vmatprep.subr.bf16.mxu1 %v12048_v16  ;;  %v12136_v15 = vld [vmem:[%s18048_s1 + $0x7a4] ss:$16 sps:$4 sm:$0xff]   ;;  %v12139_v16 = vld [vmem:[%s18048_s1 + $0x7ac] ss:$16 sps:$4 sm:$0xff]  }
  0xbb   :  { %8246 = vmatpush1.bf16.msra.mxu0 %v12043_v17  ;;  %9107 = vmatpush1.bf16.msra.mxu1 %v12046_v18  ;;  %v12134_v17 = vld [vmem:[%s18048_s1 + $0x7a0] ss:$16 sps:$4 sm:$0xff]   ;;  %v12137_v18 = vld [vmem:[%s18048_s1 + $0x7a8] ss:$16 sps:$4 sm:$0xff]  }
  0xbc   :  { %8247 = vmatprep.subr.bf16.mxu0 %v12051_v19  ;;  %9108 = vmatprep.subr.bf16.mxu1 %v12054_v20  ;;  %v12142_v19 = vld [vmem:[%s18048_s1 + $0x7c4] ss:$16 sps:$4 sm:$0xff]   ;;  %v12145_v20 = vld [vmem:[%s18048_s1 + $0x7cc] ss:$16 sps:$4 sm:$0xff]  }
  0xbf   :  { %8248 = vmatpush1.bf16.msra.mxu0 %v12049_v21  ;;  %9109 = vmatpush1.bf16.msra.mxu1 %v12052_v22  ;;  %v14602_v21 = vld.sshfl [vmem:[%s18047_s0 + $0x8] sm:$0xff pattern:$0x75316420]  ;;  %v12140_v22 = vld [vmem:[%s18048_s1 + $0x7c0] ss:$16 sps:$4 sm:$0xff]  }
  0xc0   :  { %8258 = vmatprep.subr.bf16.mxu0 %v12058_v23  ;;  %9119 = vmatprep.subr.bf16.mxu1 %v12061_v24  ;;  %v12143_v23 = vld [vmem:[%s18048_s1 + $0x7c8] ss:$16 sps:$4 sm:$0xff]   ;;  %v12148_v24 = vld [vmem:[%s18048_s1 + $0x7e4] ss:$16 sps:$4 sm:$0xff]  }
  0xc2   :  { %8250 = vmatmul.mubr.bf16.vlgmr.msra.gmra.mrb[0].mxu0 %v14428_v26  ;;  %9111 = vmatmul.mubr.bf16.vlgmr.msra.gmra.mrb[0].mxu1 %v14428_v26 }
  0xc3   :  { %8259 = vmatpush1.bf16.msra.mxu0 %v12056_v13  ;;  %9120 = vmatpush1.bf16.msra.mxu1 %v12059_v27  ;;  %v12151_v13 = vld [vmem:[%s18048_s1 + $0x7ec] ss:$16 sps:$4 sm:$0xff]   ;;  %v12146_v27 = vld [vmem:[%s18048_s1 + $0x7e0] ss:$16 sps:$4 sm:$0xff]  }
  0xc4   :  { %8260 = vmatprep.subr.bf16.mxu0 %v12064_v28  ;;  %9121 = vmatprep.subr.bf16.mxu1 %v12067_v29  ;;  %v12149_v28 = vld [vmem:[%s18048_s1 + $0x7e8] ss:$16 sps:$4 sm:$0xff]   ;;  %v12154_v29 = vld [vmem:[%s18048_s1 + $0x804] ss:$16 sps:$4 sm:$0xff]  }
  0xc5   :  { %8290 = vmatprep.mubr.bf16.mxu0 %v1400_v14  ;;  %9151 = vmatprep.mubr.bf16.mxu1 %v1400_v14  ;;  %v12157_v14 = vld [vmem:[%s18048_s1 + $0x80c] ss:$16 sps:$4 sm:$0xff]  }
  0xc7   :  { %8261 = vmatpush1.bf16.msra.mxu0 %v12062_v30  ;;  %9122 = vmatpush1.bf16.msra.mxu1 %v12065_v31  ;;  %v1416_v30 = vcombine.high %v14602_v21, %v14602_v21  ;;  %v1398_v31 = vcombine.high %v14428_v26, %v14428_v26  ;;  %v12163_v26 = vld [vmem:[%s18048_s1 + $0x82c] ss:$16 sps:$4 sm:$0xff]  }
  0xc8   :  { %8262 = vmatprep.subr.bf16.mxu0 %v12070_v25  ;;  %9123 = vmatprep.subr.bf16.mxu1 %v12073_v32  ;;  %v12152_v25 = vld [vmem:[%s18048_s1 + $0x800] ss:$16 sps:$4 sm:$0xff]   ;;  %v12155_v32 = vld [vmem:[%s18048_s1 + $0x808] ss:$16 sps:$4 sm:$0xff]  }
  0xcb   :  { %8263 = vmatpush1.bf16.msra.mxu0 %v12068_v33  ;;  %9124 = vmatpush1.bf16.msra.mxu1 %v12071_v34  ;;  %v12160_v33 = vld [vmem:[%s18048_s1 + $0x824] ss:$16 sps:$4 sm:$0xff]   ;;  %v14645_v34 = vrot.slane %v1416_v30, %v13944_v49 }
  0xcc   :  { %8264 = vmatprep.subr.bf16.mxu0 %v12076_v35  ;;  %9125 = vmatprep.subr.bf16.mxu1 %v12079_v36  ;;  %v12158_v35 = vld [vmem:[%s18048_s1 + $0x820] ss:$16 sps:$4 sm:$0xff]   ;;  %v12161_v36 = vld [vmem:[%s18048_s1 + $0x828] ss:$16 sps:$4 sm:$0xff]   ;;  %v12244_v30 = vld [vmem:[%s18048_s1 + $0x9e4] ss:$16 sps:$4 sm:$0xff]  }
  0xcf   :  { %8265 = vmatpush1.bf16.msra.mxu0 %v12074_v37  ;;  %9126 = vmatpush1.bf16.msra.mxu1 %v12077_v38  ;;  %v12166_v37 = vld [vmem:[%s18048_s1 + $0x844] ss:$16 sps:$4 sm:$0xff]   ;;  %v12169_v38 = vld [vmem:[%s18048_s1 + $0x84c] ss:$16 sps:$4 sm:$0xff]  }
  0xd0   :  { %8266 = vmatprep.subr.bf16.mxu0 %v12082_v39  ;;  %9127 = vmatprep.subr.bf16.mxu1 %v12085_v40  ;;  %v12164_v39 = vld [vmem:[%s18048_s1 + $0x840] ss:$16 sps:$4 sm:$0xff]   ;;  %v12167_v40 = vld [vmem:[%s18048_s1 + $0x848] ss:$16 sps:$4 sm:$0xff]  }
  0xd3   :  { %8267 = vmatpush1.bf16.msra.mxu0 %v12080_v41  ;;  %9128 = vmatpush1.bf16.msra.mxu1 %v12083_v43  ;;  %v12172_v41 = vld [vmem:[%s18048_s1 + $0x864] ss:$16 sps:$4 sm:$0xff]   ;;  %v12175_v43 = vld [vmem:[%s18048_s1 + $0x86c] ss:$16 sps:$4 sm:$0xff]  }
  0xd4   :  { %8268 = vmatprep.subr.bf16.mxu0 %v12088_v44  ;;  %9129 = vmatprep.subr.bf16.mxu1 %v12091_v45  ;;  %v12170_v44 = vld [vmem:[%s18048_s1 + $0x860] ss:$16 sps:$4 sm:$0xff]   ;;  %v12173_v45 = vld [vmem:[%s18048_s1 + $0x868] ss:$16 sps:$4 sm:$0xff]  }
  0xd7   :  { %8269 = vmatpush1.bf16.msra.mxu0 %v12086_v46  ;;  %9130 = vmatpush1.bf16.msra.mxu1 %v12089_v47  ;;  %v12178_v46 = vld [vmem:[%s18048_s1 + $0x884] ss:$16 sps:$4 sm:$0xff]   ;;  %v12181_v47 = vld [vmem:[%s18048_s1 + $0x88c] ss:$16 sps:$4 sm:$0xff]  }
  0xd8   :  { %8270 = vmatprep.subr.bf16.mxu0 %v12094_v48  ;;  %9131 = vmatprep.subr.bf16.mxu1 %v12097_v50  ;;  %v12176_v48 = vld [vmem:[%s18048_s1 + $0x880] ss:$16 sps:$4 sm:$0xff]   ;;  %v12179_v50 = vld [vmem:[%s18048_s1 + $0x888] ss:$16 sps:$4 sm:$0xff]  }
  0xdb   :  { %8271 = vmatpush1.bf16.msra.mxu0 %v12092_v51  ;;  %9132 = vmatpush1.bf16.msra.mxu1 %v12095_v53  ;;  %v12184_v51 = vld [vmem:[%s18048_s1 + $0x8a4] ss:$16 sps:$4 sm:$0xff]   ;;  %v12187_v53 = vld [vmem:[%s18048_s1 + $0x8ac] ss:$16 sps:$4 sm:$0xff]  }
  0xdc   :  { %8272 = vmatprep.subr.bf16.mxu0 %v12100_v54  ;;  %9133 = vmatprep.subr.bf16.mxu1 %v12103_v55  ;;  %v12182_v54 = vld [vmem:[%s18048_s1 + $0x8a0] ss:$16 sps:$4 sm:$0xff]   ;;  %v12185_v55 = vld [vmem:[%s18048_s1 + $0x8a8] ss:$16 sps:$4 sm:$0xff]  }
  0xdf   :  { %8273 = vmatpush1.bf16.msra.mxu0 %v12098_v56  ;;  %9134 = vmatpush1.bf16.msra.mxu1 %v12101_v57  ;;  %v12190_v56 = vld [vmem:[%s18048_s1 + $0x8c4] ss:$16 sps:$4 sm:$0xff]   ;;  %v12193_v57 = vld [vmem:[%s18048_s1 + $0x8cc] ss:$16 sps:$4 sm:$0xff]  }
  0xe0   :  { %8274 = vmatprep.subr.bf16.mxu0 %v12106_v58  ;;  %9135 = vmatprep.subr.bf16.mxu1 %v12109_v59  ;;  %v12188_v58 = vld [vmem:[%s18048_s1 + $0x8c0] ss:$16 sps:$4 sm:$0xff]   ;;  %v12191_v59 = vld [vmem:[%s18048_s1 + $0x8c8] ss:$16 sps:$4 sm:$0xff]  }
  0xe3   :  { %8275 = vmatpush1.bf16.msra.mxu0 %v12104_v60  ;;  %9136 = vmatpush1.bf16.msra.mxu1 %v12107_v61  ;;  %v12196_v60 = vld [vmem:[%s18048_s1 + $0x8e4] ss:$16 sps:$4 sm:$0xff]   ;;  %v12199_v61 = vld [vmem:[%s18048_s1 + $0x8ec] ss:$16 sps:$4 sm:$0xff]  }
  0xe4   :  { %8276 = vmatprep.subr.bf16.mxu0 %v12112_v62  ;;  %9137 = vmatprep.subr.bf16.mxu1 %v12115_v63  ;;  %v12194_v62 = vld [vmem:[%s18048_s1 + $0x8e0] ss:$16 sps:$4 sm:$0xff]   ;;  %v12197_v63 = vld [vmem:[%s18048_s1 + $0x8e8] ss:$16 sps:$4 sm:$0xff]  }
  0xe7   :  { %8277 = vmatpush1.bf16.msra.mxu0 %v12110_v0  ;;  %9138 = vmatpush1.bf16.msra.mxu1 %v12113_v1  ;;  %v12202_v0 = vld [vmem:[%s18048_s1 + $0x904] ss:$16 sps:$4 sm:$0xff]   ;;  %v12205_v1 = vld [vmem:[%s18048_s1 + $0x90c] ss:$16 sps:$4 sm:$0xff]  }
  0xe8   :  { %8278 = vmatprep.subr.bf16.mxu0 %v12118_v2  ;;  %9139 = vmatprep.subr.bf16.mxu1 %v12121_v3  ;;  %v12200_v2 = vld [vmem:[%s18048_s1 + $0x900] ss:$16 sps:$4 sm:$0xff]   ;;  %v12203_v3 = vld [vmem:[%s18048_s1 + $0x908] ss:$16 sps:$4 sm:$0xff]  }
  0xeb   :  { %8279 = vmatpush1.bf16.msra.mxu0 %v12116_v4  ;;  %9140 = vmatpush1.bf16.msra.mxu1 %v12119_v5  ;;  %v12208_v4 = vld [vmem:[%s18048_s1 + $0x924] ss:$16 sps:$4 sm:$0xff]   ;;  %v12211_v5 = vld [vmem:[%s18048_s1 + $0x92c] ss:$16 sps:$4 sm:$0xff]  }
  0xec   :  { %8280 = vmatprep.subr.bf16.mxu0 %v12124_v6  ;;  %9141 = vmatprep.subr.bf16.mxu1 %v12127_v7  ;;  %v12206_v6 = vld [vmem:[%s18048_s1 + $0x920] ss:$16 sps:$4 sm:$0xff]   ;;  %v12209_v7 = vld [vmem:[%s18048_s1 + $0x928] ss:$16 sps:$4 sm:$0xff]  }
  0xef   :  { %8281 = vmatpush1.bf16.msra.mxu0 %v12122_v8  ;;  %9142 = vmatpush1.bf16.msra.mxu1 %v12125_v9  ;;  %v12214_v8 = vld [vmem:[%s18048_s1 + $0x944] ss:$16 sps:$4 sm:$0xff]   ;;  %v12217_v9 = vld [vmem:[%s18048_s1 + $0x94c] ss:$16 sps:$4 sm:$0xff]  }
  0xf0   :  { %8282 = vmatprep.subr.bf16.mxu0 %v12130_v10  ;;  %9143 = vmatprep.subr.bf16.mxu1 %v12133_v11  ;;  %v12212_v10 = vld [vmem:[%s18048_s1 + $0x940] ss:$16 sps:$4 sm:$0xff]   ;;  %v12215_v11 = vld [vmem:[%s18048_s1 + $0x948] ss:$16 sps:$4 sm:$0xff]  }
  0xf3   :  { %8283 = vmatpush1.bf16.msra.mxu0 %v12128_v12  ;;  %9144 = vmatpush1.bf16.msra.mxu1 %v12131_v52  ;;  %v12220_v12 = vld [vmem:[%s18048_s1 + $0x964] ss:$16 sps:$4 sm:$0xff]   ;;  %v12223_v52 = vld [vmem:[%s18048_s1 + $0x96c] ss:$16 sps:$4 sm:$0xff]  }
  0xf4   :  { %8284 = vmatprep.subr.bf16.mxu0 %v12136_v15  ;;  %9145 = vmatprep.subr.bf16.mxu1 %v12139_v16  ;;  %v12218_v15 = vld [vmem:[%s18048_s1 + $0x960] ss:$16 sps:$4 sm:$0xff]   ;;  %v12221_v16 = vld [vmem:[%s18048_s1 + $0x968] ss:$16 sps:$4 sm:$0xff]  }
  0xf7   :  { %8285 = vmatpush1.bf16.msra.mxu0 %v12134_v17  ;;  %9146 = vmatpush1.bf16.msra.mxu1 %v12137_v18  ;;  %v12226_v17 = vld [vmem:[%s18048_s1 + $0x984] ss:$16 sps:$4 sm:$0xff]   ;;  %v12229_v18 = vld [vmem:[%s18048_s1 + $0x98c] ss:$16 sps:$4 sm:$0xff]  }
  0xf8   :  { %8286 = vmatprep.subr.bf16.mxu0 %v12142_v19  ;;  %9147 = vmatprep.subr.bf16.mxu1 %v12145_v20  ;;  %v12224_v19 = vld [vmem:[%s18048_s1 + $0x980] ss:$16 sps:$4 sm:$0xff]   ;;  %v12227_v20 = vld [vmem:[%s18048_s1 + $0x988] ss:$16 sps:$4 sm:$0xff]  }
  0xfb   :  { %8287 = vmatpush1.bf16.msra.mxu0 %v12140_v22  ;;  %9148 = vmatpush1.bf16.msra.mxu1 %v12143_v23  ;;  %v12232_v22 = vld [vmem:[%s18048_s1 + $0x9a4] ss:$16 sps:$4 sm:$0xff]   ;;  %v12235_v23 = vld [vmem:[%s18048_s1 + $0x9ac] ss:$16 sps:$4 sm:$0xff]  }
  0xfc   :  { %8288 = vmatprep.subr.bf16.mxu0 %v12148_v24  ;;  %9149 = vmatprep.subr.bf16.mxu1 %v12151_v13  ;;  %v12230_v24 = vld [vmem:[%s18048_s1 + $0x9a0] ss:$16 sps:$4 sm:$0xff]   ;;  %v12233_v13 = vld [vmem:[%s18048_s1 + $0x9a8] ss:$16 sps:$4 sm:$0xff]  }
  0xff   :  { %8289 = vmatpush1.bf16.msra.mxu0 %v12146_v27  ;;  %9150 = vmatpush1.bf16.msra.mxu1 %v12149_v28  ;;  %v12238_v27 = vld [vmem:[%s18048_s1 + $0x9c4] ss:$16 sps:$4 sm:$0xff]   ;;  %v12241_v28 = vld [vmem:[%s18048_s1 + $0x9cc] ss:$16 sps:$4 sm:$0xff]  }
 0x100   :  { %8299 = vmatprep.subr.bf16.mxu0 %v12154_v29  ;;  %9160 = vmatprep.subr.bf16.mxu1 %v12157_v14  ;;  %v12236_v29 = vld [vmem:[%s18048_s1 + $0x9c0] ss:$16 sps:$4 sm:$0xff]   ;;  %v12239_v14 = vld [vmem:[%s18048_s1 + $0x9c8] ss:$16 sps:$4 sm:$0xff]  }
 0x102   :  { %8291 = vmatmul.mubr.bf16.vlgmr.msra.gmra.mrb[0].mxu0 %v1398_v31  ;;  %9152 = vmatmul.mubr.bf16.vlgmr.msra.gmra.mrb[0].mxu1 %v1398_v31  ;;  %v12247_v31 = vld [vmem:[%s18048_s1 + $0x9ec] ss:$16 sps:$4 sm:$0xff]  }
 0x103   :  { %8300 = vmatpush1.bf16.msra.mxu0 %v12152_v25  ;;  %9161 = vmatpush1.bf16.msra.mxu1 %v12155_v32  ;;  %v12242_v25 = vld [vmem:[%s18048_s1 + $0x9e0] ss:$16 sps:$4 sm:$0xff]   ;;  %v12245_v32 = vld [vmem:[%s18048_s1 + $0x9e8] ss:$16 sps:$4 sm:$0xff]  }
 0x104   :  { %8301 = vmatprep.subr.bf16.mxu0 %v12160_v33  ;;  %9162 = vmatprep.subr.bf16.mxu1 %v12163_v26  ;;  %v12250_v33 = vld [vmem:[%s18048_s1 + $0xa04] ss:$16 sps:$4 sm:$0xff]   ;;  %v12253_v26 = vld [vmem:[%s18048_s1 + $0xa0c] ss:$16 sps:$4 sm:$0xff]  }
 0x105   :  { %8331 = vmatprep.mubr.bf16.mxu0 %v14645_v34  ;;  %9192 = vmatprep.mubr.bf16.mxu1 %v14645_v34 }
 0x107   :  { %8302 = vmatpush1.bf16.msra.mxu0 %v12158_v35  ;;  %9163 = vmatpush1.bf16.msra.mxu1 %v12161_v36  ;;  %v14831_v35 = vrot.slane %v14602_v21, %v13944_v49  ;;  %v12248_v36 = vld [vmem:[%s18048_s1 + $0xa00] ss:$16 sps:$4 sm:$0xff]   ;;  %v12259_v21 = vld [vmem:[%s18048_s1 + $0xa2c] ss:$16 sps:$4 sm:$0xff]  }
 0x108   :  { %8303 = vmatprep.subr.bf16.mxu0 %v12166_v37  ;;  %9164 = vmatprep.subr.bf16.mxu1 %v12169_v38  ;;  %v12251_v37 = vld [vmem:[%s18048_s1 + $0xa08] ss:$16 sps:$4 sm:$0xff]   ;;  %v12256_v38 = vld [vmem:[%s18048_s1 + $0xa24] ss:$16 sps:$4 sm:$0xff]  }
 0x10b   :  { %8304 = vmatpush1.bf16.msra.mxu0 %v12164_v39  ;;  %9165 = vmatpush1.bf16.msra.mxu1 %v12167_v40  ;;  %v1448_v39 = vcombine.high %v14645_v34, %v14645_v34  ;;  %v12254_v40 = vld [vmem:[%s18048_s1 + $0xa20] ss:$16 sps:$4 sm:$0xff]   ;;  %v12262_v34 = vld [vmem:[%s18048_s1 + $0xa44] ss:$16 sps:$4 sm:$0xff]  }
 0x10c   :  { %8305 = vmatprep.subr.bf16.mxu0 %v12172_v41  ;;  %9166 = vmatprep.subr.bf16.mxu1 %v12175_v43  ;;  %v12257_v41 = vld [vmem:[%s18048_s1 + $0xa28] ss:$16 sps:$4 sm:$0xff]   ;;  %v12265_v43 = vld [vmem:[%s18048_s1 + $0xa4c] ss:$16 sps:$4 sm:$0xff]  }
 0x10f   :  { %8306 = vmatpush1.bf16.msra.mxu0 %v12170_v44  ;;  %9167 = vmatpush1.bf16.msra.mxu1 %v12173_v45  ;;  %v12260_v44 = vld [vmem:[%s18048_s1 + $0xa40] ss:$16 sps:$4 sm:$0xff]   ;;  %v12263_v45 = vld [vmem:[%s18048_s1 + $0xa48] ss:$16 sps:$4 sm:$0xff]  }
 0x110   :  { %8307 = vmatprep.subr.bf16.mxu0 %v12178_v46  ;;  %9168 = vmatprep.subr.bf16.mxu1 %v12181_v47  ;;  %v12268_v46 = vld [vmem:[%s18048_s1 + $0xa64] ss:$16 sps:$4 sm:$0xff]   ;;  %v12271_v47 = vld [vmem:[%s18048_s1 + $0xa6c] ss:$16 sps:$4 sm:$0xff]  }
 0x113   :  { %8308 = vmatpush1.bf16.msra.mxu0 %v12176_v48  ;;  %9169 = vmatpush1.bf16.msra.mxu1 %v12179_v50  ;;  %v12266_v48 = vld [vmem:[%s18048_s1 + $0xa60] ss:$16 sps:$4 sm:$0xff]   ;;  %v12269_v50 = vld [vmem:[%s18048_s1 + $0xa68] ss:$16 sps:$4 sm:$0xff]  }
 0x114   :  { %8309 = vmatprep.subr.bf16.mxu0 %v12184_v51  ;;  %9170 = vmatprep.subr.bf16.mxu1 %v12187_v53  ;;  %v12274_v51 = vld [vmem:[%s18048_s1 + $0xa84] ss:$16 sps:$4 sm:$0xff]   ;;  %v12277_v53 = vld [vmem:[%s18048_s1 + $0xa8c] ss:$16 sps:$4 sm:$0xff]  }
 0x117   :  { %8310 = vmatpush1.bf16.msra.mxu0 %v12182_v54  ;;  %9171 = vmatpush1.bf16.msra.mxu1 %v12185_v55  ;;  %v12272_v54 = vld [vmem:[%s18048_s1 + $0xa80] ss:$16 sps:$4 sm:$0xff]   ;;  %v12275_v55 = vld [vmem:[%s18048_s1 + $0xa88] ss:$16 sps:$4 sm:$0xff]  }
 0x118   :  { %8311 = vmatprep.subr.bf16.mxu0 %v12190_v56  ;;  %9172 = vmatprep.subr.bf16.mxu1 %v12193_v57  ;;  %v12280_v56 = vld [vmem:[%s18048_s1 + $0xaa4] ss:$16 sps:$4 sm:$0xff]   ;;  %v12283_v57 = vld [vmem:[%s18048_s1 + $0xaac] ss:$16 sps:$4 sm:$0xff]  }
 0x11b   :  { %8312 = vmatpush1.bf16.msra.mxu0 %v12188_v58  ;;  %9173 = vmatpush1.bf16.msra.mxu1 %v12191_v59  ;;  %v12278_v58 = vld [vmem:[%s18048_s1 + $0xaa0] ss:$16 sps:$4 sm:$0xff]   ;;  %v12281_v59 = vld [vmem:[%s18048_s1 + $0xaa8] ss:$16 sps:$4 sm:$0xff]  }
 0x11c   :  { %8313 = vmatprep.subr.bf16.mxu0 %v12196_v60  ;;  %9174 = vmatprep.subr.bf16.mxu1 %v12199_v61  ;;  %v12286_v60 = vld [vmem:[%s18048_s1 + $0xac4] ss:$16 sps:$4 sm:$0xff]   ;;  %v12289_v61 = vld [vmem:[%s18048_s1 + $0xacc] ss:$16 sps:$4 sm:$0xff]  }
 0x11f   :  { %8314 = vmatpush1.bf16.msra.mxu0 %v12194_v62  ;;  %9175 = vmatpush1.bf16.msra.mxu1 %v12197_v63  ;;  %v12284_v62 = vld [vmem:[%s18048_s1 + $0xac0] ss:$16 sps:$4 sm:$0xff]   ;;  %v12287_v63 = vld [vmem:[%s18048_s1 + $0xac8] ss:$16 sps:$4 sm:$0xff]  }
 0x120   :  { %8315 = vmatprep.subr.bf16.mxu0 %v12202_v0  ;;  %9176 = vmatprep.subr.bf16.mxu1 %v12205_v1  ;;  %v12292_v0 = vld [vmem:[%s18048_s1 + $0xae4] ss:$16 sps:$4 sm:$0xff]   ;;  %v12295_v1 = vld [vmem:[%s18048_s1 + $0xaec] ss:$16 sps:$4 sm:$0xff]  }
 0x123   :  { %8316 = vmatpush1.bf16.msra.mxu0 %v12200_v2  ;;  %9177 = vmatpush1.bf16.msra.mxu1 %v12203_v3  ;;  %v12290_v2 = vld [vmem:[%s18048_s1 + $0xae0] ss:$16 sps:$4 sm:$0xff]   ;;  %v12293_v3 = vld [vmem:[%s18048_s1 + $0xae8] ss:$16 sps:$4 sm:$0xff]  }
 0x124   :  { %8317 = vmatprep.subr.bf16.mxu0 %v12208_v4  ;;  %9178 = vmatprep.subr.bf16.mxu1 %v12211_v5  ;;  %v12298_v4 = vld [vmem:[%s18048_s1 + $0xb04] ss:$16 sps:$4 sm:$0xff]   ;;  %v12301_v5 = vld [vmem:[%s18048_s1 + $0xb0c] ss:$16 sps:$4 sm:$0xff]  }
 0x127   :  { %8318 = vmatpush1.bf16.msra.mxu0 %v12206_v6  ;;  %9179 = vmatpush1.bf16.msra.mxu1 %v12209_v7  ;;  %v12296_v6 = vld [vmem:[%s18048_s1 + $0xb00] ss:$16 sps:$4 sm:$0xff]   ;;  %v12299_v7 = vld [vmem:[%s18048_s1 + $0xb08] ss:$16 sps:$4 sm:$0xff]  }
 0x128   :  { %8319 = vmatprep.subr.bf16.mxu0 %v12214_v8  ;;  %9180 = vmatprep.subr.bf16.mxu1 %v12217_v9  ;;  %v12304_v8 = vld [vmem:[%s18048_s1 + $0xb24] ss:$16 sps:$4 sm:$0xff]   ;;  %v12307_v9 = vld [vmem:[%s18048_s1 + $0xb2c] ss:$16 sps:$4 sm:$0xff]  }
 0x12b   :  { %8320 = vmatpush1.bf16.msra.mxu0 %v12212_v10  ;;  %9181 = vmatpush1.bf16.msra.mxu1 %v12215_v11  ;;  %v12302_v10 = vld [vmem:[%s18048_s1 + $0xb20] ss:$16 sps:$4 sm:$0xff]   ;;  %v12305_v11 = vld [vmem:[%s18048_s1 + $0xb28] ss:$16 sps:$4 sm:$0xff]  }
 0x12c   :  { %8321 = vmatprep.subr.bf16.mxu0 %v12220_v12  ;;  %9182 = vmatprep.subr.bf16.mxu1 %v12223_v52  ;;  %v12310_v12 = vld [vmem:[%s18048_s1 + $0xb44] ss:$16 sps:$4 sm:$0xff]   ;;  %v12313_v52 = vld [vmem:[%s18048_s1 + $0xb4c] ss:$16 sps:$4 sm:$0xff]  }
 0x12f   :  { %8322 = vmatpush1.bf16.msra.mxu0 %v12218_v15  ;;  %9183 = vmatpush1.bf16.msra.mxu1 %v12221_v16  ;;  %v12308_v15 = vld [vmem:[%s18048_s1 + $0xb40] ss:$16 sps:$4 sm:$0xff]   ;;  %v12311_v16 = vld [vmem:[%s18048_s1 + $0xb48] ss:$16 sps:$4 sm:$0xff]  }
 0x130   :  { %8323 = vmatprep.subr.bf16.mxu0 %v12226_v17  ;;  %9184 = vmatprep.subr.bf16.mxu1 %v12229_v18  ;;  %v12316_v17 = vld [vmem:[%s18048_s1 + $0xb64] ss:$16 sps:$4 sm:$0xff]   ;;  %v12319_v18 = vld [vmem:[%s18048_s1 + $0xb6c] ss:$16 sps:$4 sm:$0xff]  }
 0x133   :  { %8324 = vmatpush1.bf16.msra.mxu0 %v12224_v19  ;;  %9185 = vmatpush1.bf16.msra.mxu1 %v12227_v20  ;;  %v12314_v19 = vld [vmem:[%s18048_s1 + $0xb60] ss:$16 sps:$4 sm:$0xff]   ;;  %v12317_v20 = vld [vmem:[%s18048_s1 + $0xb68] ss:$16 sps:$4 sm:$0xff]  }
 0x134   :  { %8325 = vmatprep.subr.bf16.mxu0 %v12232_v22  ;;  %9186 = vmatprep.subr.bf16.mxu1 %v12235_v23  ;;  %v12322_v22 = vld [vmem:[%s18048_s1 + $0xb84] ss:$16 sps:$4 sm:$0xff]   ;;  %v12325_v23 = vld [vmem:[%s18048_s1 + $0xb8c] ss:$16 sps:$4 sm:$0xff]  }
 0x137   :  { %8326 = vmatpush1.bf16.msra.mxu0 %v12230_v24  ;;  %9187 = vmatpush1.bf16.msra.mxu1 %v12233_v13  ;;  %v12320_v24 = vld [vmem:[%s18048_s1 + $0xb80] ss:$16 sps:$4 sm:$0xff]   ;;  %v12323_v13 = vld [vmem:[%s18048_s1 + $0xb88] ss:$16 sps:$4 sm:$0xff]  }
 0x138   :  { %8327 = vmatprep.subr.bf16.mxu0 %v12238_v27  ;;  %9188 = vmatprep.subr.bf16.mxu1 %v12241_v28  ;;  %v12328_v27 = vld [vmem:[%s18048_s1 + $0xba4] ss:$16 sps:$4 sm:$0xff]   ;;  %v12331_v28 = vld [vmem:[%s18048_s1 + $0xbac] ss:$16 sps:$4 sm:$0xff]  }
 0x13b   :  { %8328 = vmatpush1.bf16.msra.mxu0 %v12236_v29  ;;  %9189 = vmatpush1.bf16.msra.mxu1 %v12239_v14  ;;  %v12326_v29 = vld [vmem:[%s18048_s1 + $0xba0] ss:$16 sps:$4 sm:$0xff]   ;;  %v12329_v14 = vld [vmem:[%s18048_s1 + $0xba8] ss:$16 sps:$4 sm:$0xff]  }
 0x13c   :  { %8329 = vmatprep.subr.bf16.mxu0 %v12244_v30  ;;  %9190 = vmatprep.subr.bf16.mxu1 %v12247_v31  ;;  %v12334_v30 = vld [vmem:[%s18048_s1 + $0xbc4] ss:$16 sps:$4 sm:$0xff]   ;;  %v12337_v31 = vld [vmem:[%s18048_s1 + $0xbcc] ss:$16 sps:$4 sm:$0xff]  }
 0x13f   :  { %8330 = vmatpush1.bf16.msra.mxu0 %v12242_v25  ;;  %9191 = vmatpush1.bf16.msra.mxu1 %v12245_v32  ;;  %v13748_v25 = vld [vmem:[%s18047_s0 + $0x8] sm:$0xff] }
 0x140   :  { %8340 = vmatprep.subr.bf16.mxu0 %v12250_v33  ;;  %9201 = vmatprep.subr.bf16.mxu1 %v12253_v26  ;;  %v1401_v32 = vcombine.high %v13748_v25, %v13748_v25  ;;  %v12332_v33 = vld [vmem:[%s18048_s1 + $0xbc0] ss:$16 sps:$4 sm:$0xff]   ;;  %v12335_v26 = vld [vmem:[%s18048_s1 + $0xbc8] ss:$16 sps:$4 sm:$0xff]  }
 0x141   :  { %v12416_v25 = vld [vmem:[%s18048_s1 + $0xd80] ss:$16 sps:$4 sm:$0xff]  }
 0x142   :  { %8332 = vmatmul.mubr.bf16.vlgmr.msra.gmra.mrb[0].mxu0 %v14831_v35  ;;  %9193 = vmatmul.mubr.bf16.vlgmr.msra.gmra.mrb[0].mxu1 %v14831_v35 }
 0x143   :  { %8341 = vmatpush1.bf16.msra.mxu0 %v12248_v36  ;;  %9202 = vmatpush1.bf16.msra.mxu1 %v12251_v37  ;;  %v12340_v36 = vld [vmem:[%s18048_s1 + $0xbe4] ss:$16 sps:$4 sm:$0xff]   ;;  %v12343_v37 = vld [vmem:[%s18048_s1 + $0xbec] ss:$16 sps:$4 sm:$0xff]  }
 0x144   :  { %8342 = vmatprep.subr.bf16.mxu0 %v12256_v38  ;;  %9203 = vmatprep.subr.bf16.mxu1 %v12259_v21  ;;  %v15021_v38 = vrot.slane %v1401_v32, %v13944_v49  ;;  %v12338_v21 = vld [vmem:[%s18048_s1 + $0xbe0] ss:$16 sps:$4 sm:$0xff]   ;;  %v12419_v32 = vld [vmem:[%s18048_s1 + $0xd88] ss:$16 sps:$4 sm:$0xff]  }
 0x145   :  { %8372 = vmatprep.mubr.bf16.mxu0 %v1448_v39  ;;  %9233 = vmatprep.mubr.bf16.mxu1 %v1448_v39  ;;  %v12341_v39 = vld [vmem:[%s18048_s1 + $0xbe8] ss:$16 sps:$4 sm:$0xff]  }
 0x147   :  { %8343 = vmatpush1.bf16.msra.mxu0 %v12254_v40  ;;  %9204 = vmatpush1.bf16.msra.mxu1 %v12257_v41  ;;  %v12346_v40 = vld [vmem:[%s18048_s1 + $0xc04] ss:$16 sps:$4 sm:$0xff]   ;;  %v12349_v41 = vld [vmem:[%s18048_s1 + $0xc0c] ss:$16 sps:$4 sm:$0xff]  }
 0x148   :  { %8344 = vmatprep.subr.bf16.mxu0 %v12262_v34  ;;  %9205 = vmatprep.subr.bf16.mxu1 %v12265_v43  ;;  %v1417_v34 = vcombine.high %v15021_v38, %v15021_v38  ;;  %v1446_v43 = vcombine.high %v14831_v35, %v14831_v35  ;;  %v12355_v35 = vld [vmem:[%s18048_s1 + $0xc2c] ss:$16 sps:$4 sm:$0xff]  }
 0x14b   :  { %8345 = vmatpush1.bf16.msra.mxu0 %v12260_v44  ;;  %9206 = vmatpush1.bf16.msra.mxu1 %v12263_v45  ;;  %v12344_v44 = vld [vmem:[%s18048_s1 + $0xc00] ss:$16 sps:$4 sm:$0xff]   ;;  %v12347_v45 = vld [vmem:[%s18048_s1 + $0xc08] ss:$16 sps:$4 sm:$0xff]  }
 0x14c   :  { %8346 = vmatprep.subr.bf16.mxu0 %v12268_v46  ;;  %9207 = vmatprep.subr.bf16.mxu1 %v12271_v47  ;;  %v12352_v46 = vld [vmem:[%s18048_s1 + $0xc24] ss:$16 sps:$4 sm:$0xff]   ;;  %v15052_v47 = vrot.slane %v1417_v34, %v13944_v49 }
 0x14d   :  { %v12436_v34 = vld [vmem:[%s18048_s1 + $0xde4] ss:$16 sps:$4 sm:$0xff]  }
 0x14f   :  { %8347 = vmatpush1.bf16.msra.mxu0 %v12266_v48  ;;  %9208 = vmatpush1.bf16.msra.mxu1 %v12269_v50  ;;  %v12350_v48 = vld [vmem:[%s18048_s1 + $0xc20] ss:$16 sps:$4 sm:$0xff]   ;;  %v12353_v50 = vld [vmem:[%s18048_s1 + $0xc28] ss:$16 sps:$4 sm:$0xff]  }
 0x150   :  { %8348 = vmatprep.subr.bf16.mxu0 %v12274_v51  ;;  %9209 = vmatprep.subr.bf16.mxu1 %v12277_v53  ;;  %v12358_v51 = vld [vmem:[%s18048_s1 + $0xc44] ss:$16 sps:$4 sm:$0xff]   ;;  %v12361_v53 = vld [vmem:[%s18048_s1 + $0xc4c] ss:$16 sps:$4 sm:$0xff]  }
 0x153   :  { %8349 = vmatpush1.bf16.msra.mxu0 %v12272_v54  ;;  %9210 = vmatpush1.bf16.msra.mxu1 %v12275_v55  ;;  %v12356_v54 = vld [vmem:[%s18048_s1 + $0xc40] ss:$16 sps:$4 sm:$0xff]   ;;  %v12359_v55 = vld [vmem:[%s18048_s1 + $0xc48] ss:$16 sps:$4 sm:$0xff]  }
 0x154   :  { %8350 = vmatprep.subr.bf16.mxu0 %v12280_v56  ;;  %9211 = vmatprep.subr.bf16.mxu1 %v12283_v57  ;;  %v12364_v56 = vld [vmem:[%s18048_s1 + $0xc64] ss:$16 sps:$4 sm:$0xff]   ;;  %v12367_v57 = vld [vmem:[%s18048_s1 + $0xc6c] ss:$16 sps:$4 sm:$0xff]  }
 0x157   :  { %8351 = vmatpush1.bf16.msra.mxu0 %v12278_v58  ;;  %9212 = vmatpush1.bf16.msra.mxu1 %v12281_v59  ;;  %v12362_v58 = vld [vmem:[%s18048_s1 + $0xc60] ss:$16 sps:$4 sm:$0xff]   ;;  %v12365_v59 = vld [vmem:[%s18048_s1 + $0xc68] ss:$16 sps:$4 sm:$0xff]  }
 0x158   :  { %8352 = vmatprep.subr.bf16.mxu0 %v12286_v60  ;;  %9213 = vmatprep.subr.bf16.mxu1 %v12289_v61  ;;  %v12370_v60 = vld [vmem:[%s18048_s1 + $0xc84] ss:$16 sps:$4 sm:$0xff]   ;;  %v12373_v61 = vld [vmem:[%s18048_s1 + $0xc8c] ss:$16 sps:$4 sm:$0xff]  }
 0x15b   :  { %8353 = vmatpush1.bf16.msra.mxu0 %v12284_v62  ;;  %9214 = vmatpush1.bf16.msra.mxu1 %v12287_v63  ;;  %v12368_v62 = vld [vmem:[%s18048_s1 + $0xc80] ss:$16 sps:$4 sm:$0xff]   ;;  %v12371_v63 = vld [vmem:[%s18048_s1 + $0xc88] ss:$16 sps:$4 sm:$0xff]  }
 0x15c   :  { %8354 = vmatprep.subr.bf16.mxu0 %v12292_v0  ;;  %9215 = vmatprep.subr.bf16.mxu1 %v12295_v1  ;;  %v12376_v0 = vld [vmem:[%s18048_s1 + $0xca4] ss:$16 sps:$4 sm:$0xff]   ;;  %v12379_v1 = vld [vmem:[%s18048_s1 + $0xcac] ss:$16 sps:$4 sm:$0xff]  }
 0x15f   :  { %8355 = vmatpush1.bf16.msra.mxu0 %v12290_v2  ;;  %9216 = vmatpush1.bf16.msra.mxu1 %v12293_v3  ;;  %v12374_v2 = vld [vmem:[%s18048_s1 + $0xca0] ss:$16 sps:$4 sm:$0xff]   ;;  %v12377_v3 = vld [vmem:[%s18048_s1 + $0xca8] ss:$16 sps:$4 sm:$0xff]  }
 0x160   :  { %8356 = vmatprep.subr.bf16.mxu0 %v12298_v4  ;;  %9217 = vmatprep.subr.bf16.mxu1 %v12301_v5  ;;  %v12382_v4 = vld [vmem:[%s18048_s1 + $0xcc4] ss:$16 sps:$4 sm:$0xff]   ;;  %v12385_v5 = vld [vmem:[%s18048_s1 + $0xccc] ss:$16 sps:$4 sm:$0xff]  }
 0x163   :  { %8357 = vmatpush1.bf16.msra.mxu0 %v12296_v6  ;;  %9218 = vmatpush1.bf16.msra.mxu1 %v12299_v7  ;;  %v12380_v6 = vld [vmem:[%s18048_s1 + $0xcc0] ss:$16 sps:$4 sm:$0xff]   ;;  %v12383_v7 = vld [vmem:[%s18048_s1 + $0xcc8] ss:$16 sps:$4 sm:$0xff]  }
 0x164   :  { %8358 = vmatprep.subr.bf16.mxu0 %v12304_v8  ;;  %9219 = vmatprep.subr.bf16.mxu1 %v12307_v9  ;;  %v12388_v8 = vld [vmem:[%s18048_s1 + $0xce4] ss:$16 sps:$4 sm:$0xff]   ;;  %v12391_v9 = vld [vmem:[%s18048_s1 + $0xcec] ss:$16 sps:$4 sm:$0xff]  }
 0x167   :  { %8359 = vmatpush1.bf16.msra.mxu0 %v12302_v10  ;;  %9220 = vmatpush1.bf16.msra.mxu1 %v12305_v11  ;;  %v12386_v10 = vld [vmem:[%s18048_s1 + $0xce0] ss:$16 sps:$4 sm:$0xff]   ;;  %v12389_v11 = vld [vmem:[%s18048_s1 + $0xce8] ss:$16 sps:$4 sm:$0xff]  }
 0x168   :  { %8360 = vmatprep.subr.bf16.mxu0 %v12310_v12  ;;  %9221 = vmatprep.subr.bf16.mxu1 %v12313_v52  ;;  %v12394_v12 = vld [vmem:[%s18048_s1 + $0xd04] ss:$16 sps:$4 sm:$0xff]   ;;  %v12397_v52 = vld [vmem:[%s18048_s1 + $0xd0c] ss:$16 sps:$4 sm:$0xff]  }
 0x16b   :  { %8361 = vmatpush1.bf16.msra.mxu0 %v12308_v15  ;;  %9222 = vmatpush1.bf16.msra.mxu1 %v12311_v16  ;;  %v12392_v15 = vld [vmem:[%s18048_s1 + $0xd00] ss:$16 sps:$4 sm:$0xff]   ;;  %v12395_v16 = vld [vmem:[%s18048_s1 + $0xd08] ss:$16 sps:$4 sm:$0xff]  }
 0x16c   :  { %8362 = vmatprep.subr.bf16.mxu0 %v12316_v17  ;;  %9223 = vmatprep.subr.bf16.mxu1 %v12319_v18  ;;  %v12400_v17 = vld [vmem:[%s18048_s1 + $0xd24] ss:$16 sps:$4 sm:$0xff]   ;;  %v12403_v18 = vld [vmem:[%s18048_s1 + $0xd2c] ss:$16 sps:$4 sm:$0xff]  }
 0x16f   :  { %8363 = vmatpush1.bf16.msra.mxu0 %v12314_v19  ;;  %9224 = vmatpush1.bf16.msra.mxu1 %v12317_v20  ;;  %v12398_v19 = vld [vmem:[%s18048_s1 + $0xd20] ss:$16 sps:$4 sm:$0xff]   ;;  %v12401_v20 = vld [vmem:[%s18048_s1 + $0xd28] ss:$16 sps:$4 sm:$0xff]  }
 0x170   :  { %8364 = vmatprep.subr.bf16.mxu0 %v12322_v22  ;;  %9225 = vmatprep.subr.bf16.mxu1 %v12325_v23  ;;  %v12406_v22 = vld [vmem:[%s18048_s1 + $0xd44] ss:$16 sps:$4 sm:$0xff]   ;;  %v12409_v23 = vld [vmem:[%s18048_s1 + $0xd4c] ss:$16 sps:$4 sm:$0xff]  }
 0x173   :  { %8365 = vmatpush1.bf16.msra.mxu0 %v12320_v24  ;;  %9226 = vmatpush1.bf16.msra.mxu1 %v12323_v13  ;;  %v12404_v24 = vld [vmem:[%s18048_s1 + $0xd40] ss:$16 sps:$4 sm:$0xff]   ;;  %v12407_v13 = vld [vmem:[%s18048_s1 + $0xd48] ss:$16 sps:$4 sm:$0xff]  }
 0x174   :  { %8366 = vmatprep.subr.bf16.mxu0 %v12328_v27  ;;  %9227 = vmatprep.subr.bf16.mxu1 %v12331_v28  ;;  %v12412_v27 = vld [vmem:[%s18048_s1 + $0xd64] ss:$16 sps:$4 sm:$0xff]   ;;  %v12415_v28 = vld [vmem:[%s18048_s1 + $0xd6c] ss:$16 sps:$4 sm:$0xff]  }
 0x177   :  { %8367 = vmatpush1.bf16.msra.mxu0 %v12326_v29  ;;  %9228 = vmatpush1.bf16.msra.mxu1 %v12329_v14  ;;  %v12410_v29 = vld [vmem:[%s18048_s1 + $0xd60] ss:$16 sps:$4 sm:$0xff]   ;;  %v12413_v14 = vld [vmem:[%s18048_s1 + $0xd68] ss:$16 sps:$4 sm:$0xff]  }
 0x178   :  { %8368 = vmatprep.subr.bf16.mxu0 %v12334_v30  ;;  %9229 = vmatprep.subr.bf16.mxu1 %v12337_v31  ;;  %v12418_v30 = vld [vmem:[%s18048_s1 + $0xd84] ss:$16 sps:$4 sm:$0xff]   ;;  %v12421_v31 = vld [vmem:[%s18048_s1 + $0xd8c] ss:$16 sps:$4 sm:$0xff]  }
 0x17b   :  { %8369 = vmatpush1.bf16.msra.mxu0 %v12332_v33  ;;  %9230 = vmatpush1.bf16.msra.mxu1 %v12335_v26  ;;  %v12424_v33 = vld [vmem:[%s18048_s1 + $0xda4] ss:$16 sps:$4 sm:$0xff]   ;;  %v12427_v26 = vld [vmem:[%s18048_s1 + $0xdac] ss:$16 sps:$4 sm:$0xff]  }
 0x17c   :  { %8370 = vmatprep.subr.bf16.mxu0 %v12340_v36  ;;  %9231 = vmatprep.subr.bf16.mxu1 %v12343_v37  ;;  %v12422_v36 = vld [vmem:[%s18048_s1 + $0xda0] ss:$16 sps:$4 sm:$0xff]   ;;  %v12425_v37 = vld [vmem:[%s18048_s1 + $0xda8] ss:$16 sps:$4 sm:$0xff]  }
 0x17f   :  { %8371 = vmatpush1.bf16.msra.mxu0 %v12338_v21  ;;  %9232 = vmatpush1.bf16.msra.mxu1 %v12341_v39  ;;  %v12430_v21 = vld [vmem:[%s18048_s1 + $0xdc4] ss:$16 sps:$4 sm:$0xff]   ;;  %v12433_v39 = vld [vmem:[%s18048_s1 + $0xdcc] ss:$16 sps:$4 sm:$0xff]  }
 0x180   :  { %8381 = vmatprep.subr.bf16.mxu0 %v12346_v40  ;;  %9242 = vmatprep.subr.bf16.mxu1 %v12349_v41  ;;  %v12428_v40 = vld [vmem:[%s18048_s1 + $0xdc0] ss:$16 sps:$4 sm:$0xff]   ;;  %v12431_v41 = vld [vmem:[%s18048_s1 + $0xdc8] ss:$16 sps:$4 sm:$0xff]  }
 0x182   :  { %8373 = vmatmul.mubr.bf16.vlgmr.msra.gmra.mrb[0].mxu0 %v1446_v43  ;;  %9234 = vmatmul.mubr.bf16.vlgmr.msra.gmra.mrb[0].mxu1 %v1446_v43  ;;  %v12439_v43 = vld [vmem:[%s18048_s1 + $0xdec] ss:$16 sps:$4 sm:$0xff]  }
 0x183   :  { %8382 = vmatpush1.bf16.msra.mxu0 %v12344_v44  ;;  %9243 = vmatpush1.bf16.msra.mxu1 %v12347_v45  ;;  %v12434_v44 = vld [vmem:[%s18048_s1 + $0xde0] ss:$16 sps:$4 sm:$0xff]   ;;  %v12437_v45 = vld [vmem:[%s18048_s1 + $0xde8] ss:$16 sps:$4 sm:$0xff]  }
 0x184   :  { %8383 = vmatprep.subr.bf16.mxu0 %v12352_v46  ;;  %9244 = vmatprep.subr.bf16.mxu1 %v12355_v35  ;;  %v12443_v46 = vld [vmem:[%s18048_s1 + $0xe04] ss:$16 sps:$4 sm:$0xff]   ;;  %v12446_v35 = vld [vmem:[%s18048_s1 + $0xe0c] ss:$16 sps:$4 sm:$0xff]  }
 0x185   :  { %8413 = vmatprep.mubr.bf16.mxu0 %v15052_v47  ;;  %9274 = vmatprep.mubr.bf16.mxu1 %v15052_v47 }
 0x187   :  { %8384 = vmatpush1.bf16.msra.mxu0 %v12350_v48  ;;  %9245 = vmatpush1.bf16.msra.mxu1 %v12353_v50  ;;  %v15238_v48 = vrot.slane %v15021_v38, %v13944_v49  ;;  %v12441_v50 = vld [vmem:[%s18048_s1 + $0xe00] ss:$16 sps:$4 sm:$0xff]   ;;  %v12452_v38 = vld [vmem:[%s18048_s1 + $0xe2c] ss:$16 sps:$4 sm:$0xff]  }
 0x188   :  { %8385 = vmatprep.subr.bf16.mxu0 %v12358_v51  ;;  %9246 = vmatprep.subr.bf16.mxu1 %v12361_v53  ;;  %v12444_v51 = vld [vmem:[%s18048_s1 + $0xe08] ss:$16 sps:$4 sm:$0xff]   ;;  %v12449_v53 = vld [vmem:[%s18048_s1 + $0xe24] ss:$16 sps:$4 sm:$0xff]  }
 0x18b   :  { %8386 = vmatpush1.bf16.msra.mxu0 %v12356_v54  ;;  %9247 = vmatpush1.bf16.msra.mxu1 %v12359_v55  ;;  %v1449_v54 = vcombine.high %v15052_v47, %v15052_v47  ;;  %v12447_v55 = vld [vmem:[%s18048_s1 + $0xe20] ss:$16 sps:$4 sm:$0xff]   ;;  %v12455_v47 = vld [vmem:[%s18048_s1 + $0xe44] ss:$16 sps:$4 sm:$0xff]  }
 0x18c   :  { %8387 = vmatprep.subr.bf16.mxu0 %v12364_v56  ;;  %9248 = vmatprep.subr.bf16.mxu1 %v12367_v57  ;;  %v12450_v56 = vld [vmem:[%s18048_s1 + $0xe28] ss:$16 sps:$4 sm:$0xff]   ;;  %v12458_v57 = vld [vmem:[%s18048_s1 + $0xe4c] ss:$16 sps:$4 sm:$0xff]  }
 0x18f   :  { %8388 = vmatpush1.bf16.msra.mxu0 %v12362_v58  ;;  %9249 = vmatpush1.bf16.msra.mxu1 %v12365_v59  ;;  %v12453_v58 = vld [vmem:[%s18048_s1 + $0xe40] ss:$16 sps:$4 sm:$0xff]   ;;  %v12456_v59 = vld [vmem:[%s18048_s1 + $0xe48] ss:$16 sps:$4 sm:$0xff]  }
 0x190   :  { %8389 = vmatprep.subr.bf16.mxu0 %v12370_v60  ;;  %9250 = vmatprep.subr.bf16.mxu1 %v12373_v61  ;;  %v12461_v60 = vld [vmem:[%s18048_s1 + $0xe64] ss:$16 sps:$4 sm:$0xff]   ;;  %v12464_v61 = vld [vmem:[%s18048_s1 + $0xe6c] ss:$16 sps:$4 sm:$0xff]  }
 0x193   :  { %8390 = vmatpush1.bf16.msra.mxu0 %v12368_v62  ;;  %9251 = vmatpush1.bf16.msra.mxu1 %v12371_v63  ;;  %v12459_v62 = vld [vmem:[%s18048_s1 + $0xe60] ss:$16 sps:$4 sm:$0xff]   ;;  %v12462_v63 = vld [vmem:[%s18048_s1 + $0xe68] ss:$16 sps:$4 sm:$0xff]  }
 0x194   :  { %8391 = vmatprep.subr.bf16.mxu0 %v12376_v0  ;;  %9252 = vmatprep.subr.bf16.mxu1 %v12379_v1  ;;  %v12467_v0 = vld [vmem:[%s18048_s1 + $0xe84] ss:$16 sps:$4 sm:$0xff]   ;;  %v12470_v1 = vld [vmem:[%s18048_s1 + $0xe8c] ss:$16 sps:$4 sm:$0xff]  }
 0x197   :  { %8392 = vmatpush1.bf16.msra.mxu0 %v12374_v2  ;;  %9253 = vmatpush1.bf16.msra.mxu1 %v12377_v3  ;;  %v12465_v2 = vld [vmem:[%s18048_s1 + $0xe80] ss:$16 sps:$4 sm:$0xff]   ;;  %v12468_v3 = vld [vmem:[%s18048_s1 + $0xe88] ss:$16 sps:$4 sm:$0xff]  }
 0x198   :  { %8393 = vmatprep.subr.bf16.mxu0 %v12382_v4  ;;  %9254 = vmatprep.subr.bf16.mxu1 %v12385_v5  ;;  %v12473_v4 = vld [vmem:[%s18048_s1 + $0xea4] ss:$16 sps:$4 sm:$0xff]   ;;  %v12476_v5 = vld [vmem:[%s18048_s1 + $0xeac] ss:$16 sps:$4 sm:$0xff]  }
 0x19b   :  { %8394 = vmatpush1.bf16.msra.mxu0 %v12380_v6  ;;  %9255 = vmatpush1.bf16.msra.mxu1 %v12383_v7  ;;  %v12471_v6 = vld [vmem:[%s18048_s1 + $0xea0] ss:$16 sps:$4 sm:$0xff]   ;;  %v12474_v7 = vld [vmem:[%s18048_s1 + $0xea8] ss:$16 sps:$4 sm:$0xff]  }
 0x19c   :  { %8395 = vmatprep.subr.bf16.mxu0 %v12388_v8  ;;  %9256 = vmatprep.subr.bf16.mxu1 %v12391_v9  ;;  %v12479_v8 = vld [vmem:[%s18048_s1 + $0xec4] ss:$16 sps:$4 sm:$0xff]   ;;  %v12482_v9 = vld [vmem:[%s18048_s1 + $0xecc] ss:$16 sps:$4 sm:$0xff]  }
 0x19f   :  { %8396 = vmatpush1.bf16.msra.mxu0 %v12386_v10  ;;  %9257 = vmatpush1.bf16.msra.mxu1 %v12389_v11  ;;  %v12477_v10 = vld [vmem:[%s18048_s1 + $0xec0] ss:$16 sps:$4 sm:$0xff]   ;;  %v12480_v11 = vld [vmem:[%s18048_s1 + $0xec8] ss:$16 sps:$4 sm:$0xff]  }
 0x1a0   :  { %8397 = vmatprep.subr.bf16.mxu0 %v12394_v12  ;;  %9258 = vmatprep.subr.bf16.mxu1 %v12397_v52  ;;  %v12485_v12 = vld [vmem:[%s18048_s1 + $0xee4] ss:$16 sps:$4 sm:$0xff]   ;;  %v12488_v52 = vld [vmem:[%s18048_s1 + $0xeec] ss:$16 sps:$4 sm:$0xff]  }
 0x1a3   :  { %8398 = vmatpush1.bf16.msra.mxu0 %v12392_v15  ;;  %9259 = vmatpush1.bf16.msra.mxu1 %v12395_v16  ;;  %v12483_v15 = vld [vmem:[%s18048_s1 + $0xee0] ss:$16 sps:$4 sm:$0xff]   ;;  %v12486_v16 = vld [vmem:[%s18048_s1 + $0xee8] ss:$16 sps:$4 sm:$0xff]  }
 0x1a4   :  { %8399 = vmatprep.subr.bf16.mxu0 %v12400_v17  ;;  %9260 = vmatprep.subr.bf16.mxu1 %v12403_v18  ;;  %v12491_v17 = vld [vmem:[%s18048_s1 + $0xf04] ss:$16 sps:$4 sm:$0xff]   ;;  %v12494_v18 = vld [vmem:[%s18048_s1 + $0xf0c] ss:$16 sps:$4 sm:$0xff]  }
 0x1a7   :  { %8400 = vmatpush1.bf16.msra.mxu0 %v12398_v19  ;;  %9261 = vmatpush1.bf16.msra.mxu1 %v12401_v20  ;;  %v12489_v19 = vld [vmem:[%s18048_s1 + $0xf00] ss:$16 sps:$4 sm:$0xff]   ;;  %v12492_v20 = vld [vmem:[%s18048_s1 + $0xf08] ss:$16 sps:$4 sm:$0xff]  }
 0x1a8   :  { %8401 = vmatprep.subr.bf16.mxu0 %v12406_v22  ;;  %9262 = vmatprep.subr.bf16.mxu1 %v12409_v23  ;;  %v12497_v22 = vld [vmem:[%s18048_s1 + $0xf24] ss:$16 sps:$4 sm:$0xff]   ;;  %v12500_v23 = vld [vmem:[%s18048_s1 + $0xf2c] ss:$16 sps:$4 sm:$0xff]  }
 0x1ab   :  { %8402 = vmatpush1.bf16.msra.mxu0 %v12404_v24  ;;  %9263 = vmatpush1.bf16.msra.mxu1 %v12407_v13  ;;  %v12495_v24 = vld [vmem:[%s18048_s1 + $0xf20] ss:$16 sps:$4 sm:$0xff]   ;;  %v12498_v13 = vld [vmem:[%s18048_s1 + $0xf28] ss:$16 sps:$4 sm:$0xff]  }
 0x1ac   :  { %8403 = vmatprep.subr.bf16.mxu0 %v12412_v27  ;;  %9264 = vmatprep.subr.bf16.mxu1 %v12415_v28  ;;  %v12503_v27 = vld [vmem:[%s18048_s1 + $0xf44] ss:$16 sps:$4 sm:$0xff]   ;;  %v12506_v28 = vld [vmem:[%s18048_s1 + $0xf4c] ss:$16 sps:$4 sm:$0xff]  }
 0x1af   :  { %8404 = vmatpush1.bf16.msra.mxu0 %v12410_v29  ;;  %9265 = vmatpush1.bf16.msra.mxu1 %v12413_v14  ;;  %v12501_v29 = vld [vmem:[%s18048_s1 + $0xf40] ss:$16 sps:$4 sm:$0xff]   ;;  %v12504_v14 = vld [vmem:[%s18048_s1 + $0xf48] ss:$16 sps:$4 sm:$0xff]  }
 0x1b0   :  { %8405 = vmatprep.subr.bf16.mxu0 %v12418_v30  ;;  %9266 = vmatprep.subr.bf16.mxu1 %v12421_v31  ;;  %v12509_v30 = vld [vmem:[%s18048_s1 + $0xf64] ss:$16 sps:$4 sm:$0xff]   ;;  %v12512_v31 = vld [vmem:[%s18048_s1 + $0xf6c] ss:$16 sps:$4 sm:$0xff]  }
 0x1b3   :  { %8406 = vmatpush1.bf16.msra.mxu0 %v12416_v25  ;;  %9267 = vmatpush1.bf16.msra.mxu1 %v12419_v32  ;;  %v12507_v25 = vld [vmem:[%s18048_s1 + $0xf60] ss:$16 sps:$4 sm:$0xff]   ;;  %v12510_v32 = vld [vmem:[%s18048_s1 + $0xf68] ss:$16 sps:$4 sm:$0xff]  }
 0x1b4   :  { %8407 = vmatprep.subr.bf16.mxu0 %v12424_v33  ;;  %9268 = vmatprep.subr.bf16.mxu1 %v12427_v26  ;;  %v12515_v33 = vld [vmem:[%s18048_s1 + $0xf84] ss:$16 sps:$4 sm:$0xff]   ;;  %v12518_v26 = vld [vmem:[%s18048_s1 + $0xf8c] ss:$16 sps:$4 sm:$0xff]  }
 0x1b7   :  { %8408 = vmatpush1.bf16.msra.mxu0 %v12422_v36  ;;  %9269 = vmatpush1.bf16.msra.mxu1 %v12425_v37  ;;  %v12513_v36 = vld [vmem:[%s18048_s1 + $0xf80] ss:$16 sps:$4 sm:$0xff]   ;;  %v12516_v37 = vld [vmem:[%s18048_s1 + $0xf88] ss:$16 sps:$4 sm:$0xff]  }
 0x1b8   :  { %8409 = vmatprep.subr.bf16.mxu0 %v12430_v21  ;;  %9270 = vmatprep.subr.bf16.mxu1 %v12433_v39  ;;  %v12521_v21 = vld [vmem:[%s18048_s1 + $0xfa4] ss:$16 sps:$4 sm:$0xff]   ;;  %v12524_v39 = vld [vmem:[%s18048_s1 + $0xfac] ss:$16 sps:$4 sm:$0xff]  }
 0x1bb   :  { %8410 = vmatpush1.bf16.msra.mxu0 %v12428_v40  ;;  %9271 = vmatpush1.bf16.msra.mxu1 %v12431_v41  ;;  %v12519_v40 = vld [vmem:[%s18048_s1 + $0xfa0] ss:$16 sps:$4 sm:$0xff]   ;;  %v12522_v41 = vld [vmem:[%s18048_s1 + $0xfa8] ss:$16 sps:$4 sm:$0xff]  }
 0x1bc   :  { %8411 = vmatprep.subr.bf16.mxu0 %v12436_v34  ;;  %9272 = vmatprep.subr.bf16.mxu1 %v12439_v43  ;;  %v12527_v34 = vld [vmem:[%s18048_s1 + $0xfc4] ss:$16 sps:$4 sm:$0xff]   ;;  %v12530_v43 = vld [vmem:[%s18048_s1 + $0xfcc] ss:$16 sps:$4 sm:$0xff]  }
 0x1bf   :  { %8412 = vmatpush1.bf16.msra.mxu0 %v12434_v44  ;;  %9273 = vmatpush1.bf16.msra.mxu1 %v12437_v45  ;;  %v15415_v44 = vld.sshfl [vmem:[%s18047_s0 + $0x10] sm:$0xff pattern:$0x75316420] }
 0x1c0   :  { %8422 = vmatprep.subr.bf16.mxu0 %v12443_v46  ;;  %9283 = vmatprep.subr.bf16.mxu1 %v12446_v35  ;;  %v12525_v45 = vld [vmem:[%s18048_s1 + $0xfc0] ss:$16 sps:$4 sm:$0xff]   ;;  %v12528_v46 = vld [vmem:[%s18048_s1 + $0xfc8] ss:$16 sps:$4 sm:$0xff]   ;;  %v12533_v35 = vld [vmem:[%s18048_s1 + $0xfe4] ss:$16 sps:$4 sm:$0xff]  }
 0x1c2   :  { %8414 = vmatmul.mubr.bf16.vlgmr.msra.gmra.mrb[0].mxu0 %v15238_v48  ;;  %9275 = vmatmul.mubr.bf16.vlgmr.msra.gmra.mrb[0].mxu1 %v15238_v48 }
 0x1c3   :  { %8423 = vmatpush1.bf16.msra.mxu0 %v12441_v50  ;;  %9284 = vmatpush1.bf16.msra.mxu1 %v12444_v51  ;;  %v12536_v50 = vld [vmem:[%s18048_s1 + $0xfec] ss:$16 sps:$4 sm:$0xff]   ;;  %v12531_v51 = vld [vmem:[%s18048_s1 + $0xfe0] ss:$16 sps:$4 sm:$0xff]  }
 0x1c4   :  { %8424 = vmatprep.subr.bf16.mxu0 %v12449_v53  ;;  %9285 = vmatprep.subr.bf16.mxu1 %v12452_v38  ;;  %v12534_v53 = vld [vmem:[%s18048_s1 + $0xfe8] ss:$16 sps:$4 sm:$0xff]   ;;  %v12539_v38 = vld [vmem:[%s18048_s1 + $0x1004] ss:$16 sps:$4 sm:$0xff]  }
 0x1c5   :  { %8454 = vmatprep.mubr.bf16.mxu0 %v1449_v54  ;;  %9315 = vmatprep.mubr.bf16.mxu1 %v1449_v54  ;;  %v12542_v54 = vld [vmem:[%s18048_s1 + $0x100c] ss:$16 sps:$4 sm:$0xff]  }
 0x1c7   :  { %8425 = vmatpush1.bf16.msra.mxu0 %v12447_v55  ;;  %9286 = vmatpush1.bf16.msra.mxu1 %v12450_v56  ;;  %v1465_v55 = vcombine.high %v15415_v44, %v15415_v44  ;;  %v1447_v56 = vcombine.high %v15238_v48, %v15238_v48  ;;  %v12548_v48 = vld [vmem:[%s18048_s1 + $0x102c] ss:$16 sps:$4 sm:$0xff]  }
 0x1c8   :  { %8426 = vmatprep.subr.bf16.mxu0 %v12455_v47  ;;  %9287 = vmatprep.subr.bf16.mxu1 %v12458_v57  ;;  %v12537_v47 = vld [vmem:[%s18048_s1 + $0x1000] ss:$16 sps:$4 sm:$0xff]   ;;  %v12540_v57 = vld [vmem:[%s18048_s1 + $0x1008] ss:$16 sps:$4 sm:$0xff]  }
 0x1cb   :  { %8427 = vmatpush1.bf16.msra.mxu0 %v12453_v58  ;;  %9288 = vmatpush1.bf16.msra.mxu1 %v12456_v59  ;;  %v12545_v58 = vld [vmem:[%s18048_s1 + $0x1024] ss:$16 sps:$4 sm:$0xff]   ;;  %v15458_v59 = vrot.slane %v1465_v55, %v13944_v49 }
 0x1cc   :  { %8428 = vmatprep.subr.bf16.mxu0 %v12461_v60  ;;  %9289 = vmatprep.subr.bf16.mxu1 %v12464_v61  ;;  %v12543_v60 = vld [vmem:[%s18048_s1 + $0x1020] ss:$16 sps:$4 sm:$0xff]   ;;  %v12546_v61 = vld [vmem:[%s18048_s1 + $0x1028] ss:$16 sps:$4 sm:$0xff]   ;;  %v12629_v55 = vld [vmem:[%s18048_s1 + $0x11e4] ss:$16 sps:$4 sm:$0xff]  }
 0x1cf   :  { %8429 = vmatpush1.bf16.msra.mxu0 %v12459_v62  ;;  %9290 = vmatpush1.bf16.msra.mxu1 %v12462_v63  ;;  %v12551_v62 = vld [vmem:[%s18048_s1 + $0x1044] ss:$16 sps:$4 sm:$0xff]   ;;  %v12554_v63 = vld [vmem:[%s18048_s1 + $0x104c] ss:$16 sps:$4 sm:$0xff]  }
 0x1d0   :  { %8430 = vmatprep.subr.bf16.mxu0 %v12467_v0  ;;  %9291 = vmatprep.subr.bf16.mxu1 %v12470_v1  ;;  %v12549_v0 = vld [vmem:[%s18048_s1 + $0x1040] ss:$16 sps:$4 sm:$0xff]   ;;  %v12552_v1 = vld [vmem:[%s18048_s1 + $0x1048] ss:$16 sps:$4 sm:$0xff]  }
 0x1d3   :  { %8431 = vmatpush1.bf16.msra.mxu0 %v12465_v2  ;;  %9292 = vmatpush1.bf16.msra.mxu1 %v12468_v3  ;;  %v12557_v2 = vld [vmem:[%s18048_s1 + $0x1064] ss:$16 sps:$4 sm:$0xff]   ;;  %v12560_v3 = vld [vmem:[%s18048_s1 + $0x106c] ss:$16 sps:$4 sm:$0xff]  }
 0x1d4   :  { %8432 = vmatprep.subr.bf16.mxu0 %v12473_v4  ;;  %9293 = vmatprep.subr.bf16.mxu1 %v12476_v5  ;;  %v12555_v4 = vld [vmem:[%s18048_s1 + $0x1060] ss:$16 sps:$4 sm:$0xff]   ;;  %v12558_v5 = vld [vmem:[%s18048_s1 + $0x1068] ss:$16 sps:$4 sm:$0xff]  }
 0x1d7   :  { %8433 = vmatpush1.bf16.msra.mxu0 %v12471_v6  ;;  %9294 = vmatpush1.bf16.msra.mxu1 %v12474_v7  ;;  %v12563_v6 = vld [vmem:[%s18048_s1 + $0x1084] ss:$16 sps:$4 sm:$0xff]   ;;  %v12566_v7 = vld [vmem:[%s18048_s1 + $0x108c] ss:$16 sps:$4 sm:$0xff]  }
 0x1d8   :  { %8434 = vmatprep.subr.bf16.mxu0 %v12479_v8  ;;  %9295 = vmatprep.subr.bf16.mxu1 %v12482_v9  ;;  %v12561_v8 = vld [vmem:[%s18048_s1 + $0x1080] ss:$16 sps:$4 sm:$0xff]   ;;  %v12564_v9 = vld [vmem:[%s18048_s1 + $0x1088] ss:$16 sps:$4 sm:$0xff]  }
 0x1db   :  { %8435 = vmatpush1.bf16.msra.mxu0 %v12477_v10  ;;  %9296 = vmatpush1.bf16.msra.mxu1 %v12480_v11  ;;  %v12569_v10 = vld [vmem:[%s18048_s1 + $0x10a4] ss:$16 sps:$4 sm:$0xff]   ;;  %v12572_v11 = vld [vmem:[%s18048_s1 + $0x10ac] ss:$16 sps:$4 sm:$0xff]  }
 0x1dc   :  { %8436 = vmatprep.subr.bf16.mxu0 %v12485_v12  ;;  %9297 = vmatprep.subr.bf16.mxu1 %v12488_v52  ;;  %v12567_v12 = vld [vmem:[%s18048_s1 + $0x10a0] ss:$16 sps:$4 sm:$0xff]   ;;  %v12570_v52 = vld [vmem:[%s18048_s1 + $0x10a8] ss:$16 sps:$4 sm:$0xff]  }
 0x1df   :  { %8437 = vmatpush1.bf16.msra.mxu0 %v12483_v15  ;;  %9298 = vmatpush1.bf16.msra.mxu1 %v12486_v16  ;;  %v12575_v15 = vld [vmem:[%s18048_s1 + $0x10c4] ss:$16 sps:$4 sm:$0xff]   ;;  %v12578_v16 = vld [vmem:[%s18048_s1 + $0x10cc] ss:$16 sps:$4 sm:$0xff]  }
 0x1e0   :  { %8438 = vmatprep.subr.bf16.mxu0 %v12491_v17  ;;  %9299 = vmatprep.subr.bf16.mxu1 %v12494_v18  ;;  %v12573_v17 = vld [vmem:[%s18048_s1 + $0x10c0] ss:$16 sps:$4 sm:$0xff]   ;;  %v12576_v18 = vld [vmem:[%s18048_s1 + $0x10c8] ss:$16 sps:$4 sm:$0xff]  }
 0x1e3   :  { %8439 = vmatpush1.bf16.msra.mxu0 %v12489_v19  ;;  %9300 = vmatpush1.bf16.msra.mxu1 %v12492_v20  ;;  %v12581_v19 = vld [vmem:[%s18048_s1 + $0x10e4] ss:$16 sps:$4 sm:$0xff]   ;;  %v12584_v20 = vld [vmem:[%s18048_s1 + $0x10ec] ss:$16 sps:$4 sm:$0xff]  }
 0x1e4   :  { %8440 = vmatprep.subr.bf16.mxu0 %v12497_v22  ;;  %9301 = vmatprep.subr.bf16.mxu1 %v12500_v23  ;;  %v12579_v22 = vld [vmem:[%s18048_s1 + $0x10e0] ss:$16 sps:$4 sm:$0xff]   ;;  %v12582_v23 = vld [vmem:[%s18048_s1 + $0x10e8] ss:$16 sps:$4 sm:$0xff]  }
 0x1e7   :  { %8441 = vmatpush1.bf16.msra.mxu0 %v12495_v24  ;;  %9302 = vmatpush1.bf16.msra.mxu1 %v12498_v13  ;;  %v12587_v24 = vld [vmem:[%s18048_s1 + $0x1104] ss:$16 sps:$4 sm:$0xff]   ;;  %v12590_v13 = vld [vmem:[%s18048_s1 + $0x110c] ss:$16 sps:$4 sm:$0xff]  }
 0x1e8   :  { %8442 = vmatprep.subr.bf16.mxu0 %v12503_v27  ;;  %9303 = vmatprep.subr.bf16.mxu1 %v12506_v28  ;;  %v12585_v27 = vld [vmem:[%s18048_s1 + $0x1100] ss:$16 sps:$4 sm:$0xff]   ;;  %v12588_v28 = vld [vmem:[%s18048_s1 + $0x1108] ss:$16 sps:$4 sm:$0xff]  }
 0x1eb   :  { %8443 = vmatpush1.bf16.msra.mxu0 %v12501_v29  ;;  %9304 = vmatpush1.bf16.msra.mxu1 %v12504_v14  ;;  %v12593_v29 = vld [vmem:[%s18048_s1 + $0x1124] ss:$16 sps:$4 sm:$0xff]   ;;  %v12596_v14 = vld [vmem:[%s18048_s1 + $0x112c] ss:$16 sps:$4 sm:$0xff]  }
 0x1ec   :  { %8444 = vmatprep.subr.bf16.mxu0 %v12509_v30  ;;  %9305 = vmatprep.subr.bf16.mxu1 %v12512_v31  ;;  %v12591_v30 = vld [vmem:[%s18048_s1 + $0x1120] ss:$16 sps:$4 sm:$0xff]   ;;  %v12594_v31 = vld [vmem:[%s18048_s1 + $0x1128] ss:$16 sps:$4 sm:$0xff]  }
 0x1ef   :  { %8445 = vmatpush1.bf16.msra.mxu0 %v12507_v25  ;;  %9306 = vmatpush1.bf16.msra.mxu1 %v12510_v32  ;;  %v12599_v25 = vld [vmem:[%s18048_s1 + $0x1144] ss:$16 sps:$4 sm:$0xff]   ;;  %v12602_v32 = vld [vmem:[%s18048_s1 + $0x114c] ss:$16 sps:$4 sm:$0xff]  }
 0x1f0   :  { %8446 = vmatprep.subr.bf16.mxu0 %v12515_v33  ;;  %9307 = vmatprep.subr.bf16.mxu1 %v12518_v26  ;;  %v12597_v33 = vld [vmem:[%s18048_s1 + $0x1140] ss:$16 sps:$4 sm:$0xff]   ;;  %v12600_v26 = vld [vmem:[%s18048_s1 + $0x1148] ss:$16 sps:$4 sm:$0xff]  }
 0x1f3   :  { %8447 = vmatpush1.bf16.msra.mxu0 %v12513_v36  ;;  %9308 = vmatpush1.bf16.msra.mxu1 %v12516_v37  ;;  %v12605_v36 = vld [vmem:[%s18048_s1 + $0x1164] ss:$16 sps:$4 sm:$0xff]   ;;  %v12608_v37 = vld [vmem:[%s18048_s1 + $0x116c] ss:$16 sps:$4 sm:$0xff]  }
 0x1f4   :  { %8448 = vmatprep.subr.bf16.mxu0 %v12521_v21  ;;  %9309 = vmatprep.subr.bf16.mxu1 %v12524_v39  ;;  %v12603_v21 = vld [vmem:[%s18048_s1 + $0x1160] ss:$16 sps:$4 sm:$0xff]   ;;  %v12606_v39 = vld [vmem:[%s18048_s1 + $0x1168] ss:$16 sps:$4 sm:$0xff]  }
 0x1f7   :  { %8449 = vmatpush1.bf16.msra.mxu0 %v12519_v40  ;;  %9310 = vmatpush1.bf16.msra.mxu1 %v12522_v41  ;;  %v12611_v40 = vld [vmem:[%s18048_s1 + $0x1184] ss:$16 sps:$4 sm:$0xff]   ;;  %v12614_v41 = vld [vmem:[%s18048_s1 + $0x118c] ss:$16 sps:$4 sm:$0xff]  }
 0x1f8   :  { %8450 = vmatprep.subr.bf16.mxu0 %v12527_v34  ;;  %9311 = vmatprep.subr.bf16.mxu1 %v12530_v43  ;;  %v12609_v34 = vld [vmem:[%s18048_s1 + $0x1180] ss:$16 sps:$4 sm:$0xff]   ;;  %v12612_v43 = vld [vmem:[%s18048_s1 + $0x1188] ss:$16 sps:$4 sm:$0xff]  }
 0x1fb   :  { %8451 = vmatpush1.bf16.msra.mxu0 %v12525_v45  ;;  %9312 = vmatpush1.bf16.msra.mxu1 %v12528_v46  ;;  %v12617_v45 = vld [vmem:[%s18048_s1 + $0x11a4] ss:$16 sps:$4 sm:$0xff]   ;;  %v12620_v46 = vld [vmem:[%s18048_s1 + $0x11ac] ss:$16 sps:$4 sm:$0xff]  }
 0x1fc   :  { %8452 = vmatprep.subr.bf16.mxu0 %v12533_v35  ;;  %9313 = vmatprep.subr.bf16.mxu1 %v12536_v50  ;;  %v12615_v35 = vld [vmem:[%s18048_s1 + $0x11a0] ss:$16 sps:$4 sm:$0xff]   ;;  %v12618_v50 = vld [vmem:[%s18048_s1 + $0x11a8] ss:$16 sps:$4 sm:$0xff]  }
 0x1ff   :  { %8453 = vmatpush1.bf16.msra.mxu0 %v12531_v51  ;;  %9314 = vmatpush1.bf16.msra.mxu1 %v12534_v53  ;;  %v12623_v51 = vld [vmem:[%s18048_s1 + $0x11c4] ss:$16 sps:$4 sm:$0xff]   ;;  %v12626_v53 = vld [vmem:[%s18048_s1 + $0x11cc] ss:$16 sps:$4 sm:$0xff]  }
 0x200   :  { %8463 = vmatprep.subr.bf16.mxu0 %v12539_v38  ;;  %9324 = vmatprep.subr.bf16.mxu1 %v12542_v54  ;;  %v12621_v38 = vld [vmem:[%s18048_s1 + $0x11c0] ss:$16 sps:$4 sm:$0xff]   ;;  %v12624_v54 = vld [vmem:[%s18048_s1 + $0x11c8] ss:$16 sps:$4 sm:$0xff]  }
 0x202   :  { %8455 = vmatmul.mubr.bf16.vlgmr.msra.gmra.mrb[0].mxu0 %v1447_v56  ;;  %9316 = vmatmul.mubr.bf16.vlgmr.msra.gmra.mrb[0].mxu1 %v1447_v56  ;;  %v12632_v56 = vld [vmem:[%s18048_s1 + $0x11ec] ss:$16 sps:$4 sm:$0xff]  }
 0x203   :  { %8464 = vmatpush1.bf16.msra.mxu0 %v12537_v47  ;;  %9325 = vmatpush1.bf16.msra.mxu1 %v12540_v57  ;;  %v12627_v47 = vld [vmem:[%s18048_s1 + $0x11e0] ss:$16 sps:$4 sm:$0xff]   ;;  %v12630_v57 = vld [vmem:[%s18048_s1 + $0x11e8] ss:$16 sps:$4 sm:$0xff]  }
 0x204   :  { %8465 = vmatprep.subr.bf16.mxu0 %v12545_v58  ;;  %9326 = vmatprep.subr.bf16.mxu1 %v12548_v48  ;;  %v12635_v58 = vld [vmem:[%s18048_s1 + $0x1204] ss:$16 sps:$4 sm:$0xff]   ;;  %v12638_v48 = vld [vmem:[%s18048_s1 + $0x120c] ss:$16 sps:$4 sm:$0xff]  }
 0x205   :  { %8495 = vmatprep.mubr.bf16.mxu0 %v15458_v59  ;;  %9356 = vmatprep.mubr.bf16.mxu1 %v15458_v59 }
 0x207   :  { %8466 = vmatpush1.bf16.msra.mxu0 %v12543_v60  ;;  %9327 = vmatpush1.bf16.msra.mxu1 %v12546_v61  ;;  %v15644_v60 = vrot.slane %v15415_v44, %v13944_v49  ;;  %v12633_v61 = vld [vmem:[%s18048_s1 + $0x1200] ss:$16 sps:$4 sm:$0xff]   ;;  %v12644_v44 = vld [vmem:[%s18048_s1 + $0x122c] ss:$16 sps:$4 sm:$0xff]  }
 0x208   :  { %8467 = vmatprep.subr.bf16.mxu0 %v12551_v62  ;;  %9328 = vmatprep.subr.bf16.mxu1 %v12554_v63  ;;  %v12636_v62 = vld [vmem:[%s18048_s1 + $0x1208] ss:$16 sps:$4 sm:$0xff]   ;;  %v12641_v63 = vld [vmem:[%s18048_s1 + $0x1224] ss:$16 sps:$4 sm:$0xff]  }
 0x20b   :  { %8468 = vmatpush1.bf16.msra.mxu0 %v12549_v0  ;;  %9329 = vmatpush1.bf16.msra.mxu1 %v12552_v1  ;;  %v1497_v0 = vcombine.high %v15458_v59, %v15458_v59  ;;  %v12639_v1 = vld [vmem:[%s18048_s1 + $0x1220] ss:$16 sps:$4 sm:$0xff]   ;;  %v12647_v59 = vld [vmem:[%s18048_s1 + $0x1244] ss:$16 sps:$4 sm:$0xff]  }
 0x20c   :  { %8469 = vmatprep.subr.bf16.mxu0 %v12557_v2  ;;  %9330 = vmatprep.subr.bf16.mxu1 %v12560_v3  ;;  %v12642_v2 = vld [vmem:[%s18048_s1 + $0x1228] ss:$16 sps:$4 sm:$0xff]   ;;  %v12650_v3 = vld [vmem:[%s18048_s1 + $0x124c] ss:$16 sps:$4 sm:$0xff]  }
 0x20f   :  { %8470 = vmatpush1.bf16.msra.mxu0 %v12555_v4  ;;  %9331 = vmatpush1.bf16.msra.mxu1 %v12558_v5  ;;  %v12645_v4 = vld [vmem:[%s18048_s1 + $0x1240] ss:$16 sps:$4 sm:$0xff]   ;;  %v12648_v5 = vld [vmem:[%s18048_s1 + $0x1248] ss:$16 sps:$4 sm:$0xff]  }
 0x210   :  { %8471 = vmatprep.subr.bf16.mxu0 %v12563_v6  ;;  %9332 = vmatprep.subr.bf16.mxu1 %v12566_v7  ;;  %v12653_v6 = vld [vmem:[%s18048_s1 + $0x1264] ss:$16 sps:$4 sm:$0xff]   ;;  %v12656_v7 = vld [vmem:[%s18048_s1 + $0x126c] ss:$16 sps:$4 sm:$0xff]  }
 0x213   :  { %8472 = vmatpush1.bf16.msra.mxu0 %v12561_v8  ;;  %9333 = vmatpush1.bf16.msra.mxu1 %v12564_v9  ;;  %v12651_v8 = vld [vmem:[%s18048_s1 + $0x1260] ss:$16 sps:$4 sm:$0xff]   ;;  %v12654_v9 = vld [vmem:[%s18048_s1 + $0x1268] ss:$16 sps:$4 sm:$0xff]  }
 0x214   :  { %8473 = vmatprep.subr.bf16.mxu0 %v12569_v10  ;;  %9334 = vmatprep.subr.bf16.mxu1 %v12572_v11  ;;  %v12659_v10 = vld [vmem:[%s18048_s1 + $0x1284] ss:$16 sps:$4 sm:$0xff]   ;;  %v12662_v11 = vld [vmem:[%s18048_s1 + $0x128c] ss:$16 sps:$4 sm:$0xff]  }
 0x217   :  { %8474 = vmatpush1.bf16.msra.mxu0 %v12567_v12  ;;  %9335 = vmatpush1.bf16.msra.mxu1 %v12570_v52  ;;  %v12657_v12 = vld [vmem:[%s18048_s1 + $0x1280] ss:$16 sps:$4 sm:$0xff]   ;;  %v12660_v52 = vld [vmem:[%s18048_s1 + $0x1288] ss:$16 sps:$4 sm:$0xff]  }
 0x218   :  { %8475 = vmatprep.subr.bf16.mxu0 %v12575_v15  ;;  %9336 = vmatprep.subr.bf16.mxu1 %v12578_v16  ;;  %v12665_v15 = vld [vmem:[%s18048_s1 + $0x12a4] ss:$16 sps:$4 sm:$0xff]   ;;  %v12668_v16 = vld [vmem:[%s18048_s1 + $0x12ac] ss:$16 sps:$4 sm:$0xff]  }
 0x21b   :  { %8476 = vmatpush1.bf16.msra.mxu0 %v12573_v17  ;;  %9337 = vmatpush1.bf16.msra.mxu1 %v12576_v18  ;;  %v12663_v17 = vld [vmem:[%s18048_s1 + $0x12a0] ss:$16 sps:$4 sm:$0xff]   ;;  %v12666_v18 = vld [vmem:[%s18048_s1 + $0x12a8] ss:$16 sps:$4 sm:$0xff]  }
 0x21c   :  { %8477 = vmatprep.subr.bf16.mxu0 %v12581_v19  ;;  %9338 = vmatprep.subr.bf16.mxu1 %v12584_v20  ;;  %v12671_v19 = vld [vmem:[%s18048_s1 + $0x12c4] ss:$16 sps:$4 sm:$0xff]   ;;  %v12674_v20 = vld [vmem:[%s18048_s1 + $0x12cc] ss:$16 sps:$4 sm:$0xff]  }
 0x21f   :  { %8478 = vmatpush1.bf16.msra.mxu0 %v12579_v22  ;;  %9339 = vmatpush1.bf16.msra.mxu1 %v12582_v23  ;;  %v12669_v22 = vld [vmem:[%s18048_s1 + $0x12c0] ss:$16 sps:$4 sm:$0xff]   ;;  %v12672_v23 = vld [vmem:[%s18048_s1 + $0x12c8] ss:$16 sps:$4 sm:$0xff]  }
 0x220   :  { %8479 = vmatprep.subr.bf16.mxu0 %v12587_v24  ;;  %9340 = vmatprep.subr.bf16.mxu1 %v12590_v13  ;;  %v12677_v24 = vld [vmem:[%s18048_s1 + $0x12e4] ss:$16 sps:$4 sm:$0xff]   ;;  %v12680_v13 = vld [vmem:[%s18048_s1 + $0x12ec] ss:$16 sps:$4 sm:$0xff]  }
 0x223   :  { %8480 = vmatpush1.bf16.msra.mxu0 %v12585_v27  ;;  %9341 = vmatpush1.bf16.msra.mxu1 %v12588_v28  ;;  %v12675_v27 = vld [vmem:[%s18048_s1 + $0x12e0] ss:$16 sps:$4 sm:$0xff]   ;;  %v12678_v28 = vld [vmem:[%s18048_s1 + $0x12e8] ss:$16 sps:$4 sm:$0xff]  }
 0x224   :  { %8481 = vmatprep.subr.bf16.mxu0 %v12593_v29  ;;  %9342 = vmatprep.subr.bf16.mxu1 %v12596_v14  ;;  %v12683_v29 = vld [vmem:[%s18048_s1 + $0x1304] ss:$16 sps:$4 sm:$0xff]   ;;  %v12686_v14 = vld [vmem:[%s18048_s1 + $0x130c] ss:$16 sps:$4 sm:$0xff]  }
 0x227   :  { %8482 = vmatpush1.bf16.msra.mxu0 %v12591_v30  ;;  %9343 = vmatpush1.bf16.msra.mxu1 %v12594_v31  ;;  %v12681_v30 = vld [vmem:[%s18048_s1 + $0x1300] ss:$16 sps:$4 sm:$0xff]   ;;  %v12684_v31 = vld [vmem:[%s18048_s1 + $0x1308] ss:$16 sps:$4 sm:$0xff]  }
 0x228   :  { %8483 = vmatprep.subr.bf16.mxu0 %v12599_v25  ;;  %9344 = vmatprep.subr.bf16.mxu1 %v12602_v32  ;;  %v12689_v25 = vld [vmem:[%s18048_s1 + $0x1324] ss:$16 sps:$4 sm:$0xff]   ;;  %v12692_v32 = vld [vmem:[%s18048_s1 + $0x132c] ss:$16 sps:$4 sm:$0xff]  }
 0x22b   :  { %8484 = vmatpush1.bf16.msra.mxu0 %v12597_v33  ;;  %9345 = vmatpush1.bf16.msra.mxu1 %v12600_v26  ;;  %v12687_v33 = vld [vmem:[%s18048_s1 + $0x1320] ss:$16 sps:$4 sm:$0xff]   ;;  %v12690_v26 = vld [vmem:[%s18048_s1 + $0x1328] ss:$16 sps:$4 sm:$0xff]  }
 0x22c   :  { %8485 = vmatprep.subr.bf16.mxu0 %v12605_v36  ;;  %9346 = vmatprep.subr.bf16.mxu1 %v12608_v37  ;;  %v12695_v36 = vld [vmem:[%s18048_s1 + $0x1344] ss:$16 sps:$4 sm:$0xff]   ;;  %v12698_v37 = vld [vmem:[%s18048_s1 + $0x134c] ss:$16 sps:$4 sm:$0xff]  }
 0x22f   :  { %8486 = vmatpush1.bf16.msra.mxu0 %v12603_v21  ;;  %9347 = vmatpush1.bf16.msra.mxu1 %v12606_v39  ;;  %v12693_v21 = vld [vmem:[%s18048_s1 + $0x1340] ss:$16 sps:$4 sm:$0xff]   ;;  %v12696_v39 = vld [vmem:[%s18048_s1 + $0x1348] ss:$16 sps:$4 sm:$0xff]  }
 0x230   :  { %8487 = vmatprep.subr.bf16.mxu0 %v12611_v40  ;;  %9348 = vmatprep.subr.bf16.mxu1 %v12614_v41  ;;  %v12701_v40 = vld [vmem:[%s18048_s1 + $0x1364] ss:$16 sps:$4 sm:$0xff]   ;;  %v12704_v41 = vld [vmem:[%s18048_s1 + $0x136c] ss:$16 sps:$4 sm:$0xff]  }
 0x233   :  { %8488 = vmatpush1.bf16.msra.mxu0 %v12609_v34  ;;  %9349 = vmatpush1.bf16.msra.mxu1 %v12612_v43  ;;  %v12699_v34 = vld [vmem:[%s18048_s1 + $0x1360] ss:$16 sps:$4 sm:$0xff]   ;;  %v12702_v43 = vld [vmem:[%s18048_s1 + $0x1368] ss:$16 sps:$4 sm:$0xff]  }
 0x234   :  { %8489 = vmatprep.subr.bf16.mxu0 %v12617_v45  ;;  %9350 = vmatprep.subr.bf16.mxu1 %v12620_v46  ;;  %v12707_v45 = vld [vmem:[%s18048_s1 + $0x1384] ss:$16 sps:$4 sm:$0xff]   ;;  %v12710_v46 = vld [vmem:[%s18048_s1 + $0x138c] ss:$16 sps:$4 sm:$0xff]  }
 0x237   :  { %8490 = vmatpush1.bf16.msra.mxu0 %v12615_v35  ;;  %9351 = vmatpush1.bf16.msra.mxu1 %v12618_v50  ;;  %v12705_v35 = vld [vmem:[%s18048_s1 + $0x1380] ss:$16 sps:$4 sm:$0xff]   ;;  %v12708_v50 = vld [vmem:[%s18048_s1 + $0x1388] ss:$16 sps:$4 sm:$0xff]  }
 0x238   :  { %8491 = vmatprep.subr.bf16.mxu0 %v12623_v51  ;;  %9352 = vmatprep.subr.bf16.mxu1 %v12626_v53  ;;  %v12713_v51 = vld [vmem:[%s18048_s1 + $0x13a4] ss:$16 sps:$4 sm:$0xff]   ;;  %v12716_v53 = vld [vmem:[%s18048_s1 + $0x13ac] ss:$16 sps:$4 sm:$0xff]  }
 0x23b   :  { %8492 = vmatpush1.bf16.msra.mxu0 %v12621_v38  ;;  %9353 = vmatpush1.bf16.msra.mxu1 %v12624_v54  ;;  %v12711_v38 = vld [vmem:[%s18048_s1 + $0x13a0] ss:$16 sps:$4 sm:$0xff]   ;;  %v12714_v54 = vld [vmem:[%s18048_s1 + $0x13a8] ss:$16 sps:$4 sm:$0xff]  }
 0x23c   :  { %8493 = vmatprep.subr.bf16.mxu0 %v12629_v55  ;;  %9354 = vmatprep.subr.bf16.mxu1 %v12632_v56  ;;  %v12719_v55 = vld [vmem:[%s18048_s1 + $0x13c4] ss:$16 sps:$4 sm:$0xff]   ;;  %v12722_v56 = vld [vmem:[%s18048_s1 + $0x13cc] ss:$16 sps:$4 sm:$0xff]  }
 0x23f   :  { %8494 = vmatpush1.bf16.msra.mxu0 %v12627_v47  ;;  %9355 = vmatpush1.bf16.msra.mxu1 %v12630_v57  ;;  %v13749_v47 = vld [vmem:[%s18047_s0 + $0x10] sm:$0xff] }
 0x240   :  { %8504 = vmatprep.subr.bf16.mxu0 %v12635_v58  ;;  %9365 = vmatprep.subr.bf16.mxu1 %v12638_v48  ;;  %v1450_v57 = vcombine.high %v13749_v47, %v13749_v47  ;;  %v12717_v58 = vld [vmem:[%s18048_s1 + $0x13c0] ss:$16 sps:$4 sm:$0xff]   ;;  %v12720_v48 = vld [vmem:[%s18048_s1 + $0x13c8] ss:$16 sps:$4 sm:$0xff]  }
 0x241   :  { %v12801_v47 = vld [vmem:[%s18048_s1 + $0x1580] ss:$16 sps:$4 sm:$0xff]  }
 0x242   :  { %8496 = vmatmul.mubr.bf16.vlgmr.msra.gmra.mrb[0].mxu0 %v15644_v60  ;;  %9357 = vmatmul.mubr.bf16.vlgmr.msra.gmra.mrb[0].mxu1 %v15644_v60 }
 0x243   :  { %8505 = vmatpush1.bf16.msra.mxu0 %v12633_v61  ;;  %9366 = vmatpush1.bf16.msra.mxu1 %v12636_v62  ;;  %v12725_v61 = vld [vmem:[%s18048_s1 + $0x13e4] ss:$16 sps:$4 sm:$0xff]   ;;  %v12728_v62 = vld [vmem:[%s18048_s1 + $0x13ec] ss:$16 sps:$4 sm:$0xff]  }
 0x244   :  { %8506 = vmatprep.subr.bf16.mxu0 %v12641_v63  ;;  %9367 = vmatprep.subr.bf16.mxu1 %v12644_v44  ;;  %v15834_v63 = vrot.slane %v1450_v57, %v13944_v49  ;;  %v12723_v44 = vld [vmem:[%s18048_s1 + $0x13e0] ss:$16 sps:$4 sm:$0xff]   ;;  %v12804_v57 = vld [vmem:[%s18048_s1 + $0x1588] ss:$16 sps:$4 sm:$0xff]  }
 0x245   :  { %8536 = vmatprep.mubr.bf16.mxu0 %v1497_v0  ;;  %9397 = vmatprep.mubr.bf16.mxu1 %v1497_v0  ;;  %v12726_v0 = vld [vmem:[%s18048_s1 + $0x13e8] ss:$16 sps:$4 sm:$0xff]  }
 0x247   :  { %8507 = vmatpush1.bf16.msra.mxu0 %v12639_v1  ;;  %9368 = vmatpush1.bf16.msra.mxu1 %v12642_v2  ;;  %v12731_v1 = vld [vmem:[%s18048_s1 + $0x1404] ss:$16 sps:$4 sm:$0xff]   ;;  %v12734_v2 = vld [vmem:[%s18048_s1 + $0x140c] ss:$16 sps:$4 sm:$0xff]  }
 0x248   :  { %8508 = vmatprep.subr.bf16.mxu0 %v12647_v59  ;;  %9369 = vmatprep.subr.bf16.mxu1 %v12650_v3  ;;  %v1466_v59 = vcombine.high %v15834_v63, %v15834_v63  ;;  %v1495_v3 = vcombine.high %v15644_v60, %v15644_v60  ;;  %v12740_v60 = vld [vmem:[%s18048_s1 + $0x142c] ss:$16 sps:$4 sm:$0xff]  }
 0x24b   :  { %8509 = vmatpush1.bf16.msra.mxu0 %v12645_v4  ;;  %9370 = vmatpush1.bf16.msra.mxu1 %v12648_v5  ;;  %v12729_v4 = vld [vmem:[%s18048_s1 + $0x1400] ss:$16 sps:$4 sm:$0xff]   ;;  %v12732_v5 = vld [vmem:[%s18048_s1 + $0x1408] ss:$16 sps:$4 sm:$0xff]  }
 0x24c   :  { %8510 = vmatprep.subr.bf16.mxu0 %v12653_v6  ;;  %9371 = vmatprep.subr.bf16.mxu1 %v12656_v7  ;;  %v12737_v6 = vld [vmem:[%s18048_s1 + $0x1424] ss:$16 sps:$4 sm:$0xff]   ;;  %v15865_v7 = vrot.slane %v1466_v59, %v13944_v49 }
 0x24d   :  { %v12821_v59 = vld [vmem:[%s18048_s1 + $0x15e4] ss:$16 sps:$4 sm:$0xff]  }
 0x24f   :  { %8511 = vmatpush1.bf16.msra.mxu0 %v12651_v8  ;;  %9372 = vmatpush1.bf16.msra.mxu1 %v12654_v9  ;;  %v12735_v8 = vld [vmem:[%s18048_s1 + $0x1420] ss:$16 sps:$4 sm:$0xff]   ;;  %v12738_v9 = vld [vmem:[%s18048_s1 + $0x1428] ss:$16 sps:$4 sm:$0xff]  }
 0x250   :  { %8512 = vmatprep.subr.bf16.mxu0 %v12659_v10  ;;  %9373 = vmatprep.subr.bf16.mxu1 %v12662_v11  ;;  %v12743_v10 = vld [vmem:[%s18048_s1 + $0x1444] ss:$16 sps:$4 sm:$0xff]   ;;  %v12746_v11 = vld [vmem:[%s18048_s1 + $0x144c] ss:$16 sps:$4 sm:$0xff]  }
 0x253   :  { %8513 = vmatpush1.bf16.msra.mxu0 %v12657_v12  ;;  %9374 = vmatpush1.bf16.msra.mxu1 %v12660_v52  ;;  %v12741_v12 = vld [vmem:[%s18048_s1 + $0x1440] ss:$16 sps:$4 sm:$0xff]   ;;  %v12744_v52 = vld [vmem:[%s18048_s1 + $0x1448] ss:$16 sps:$4 sm:$0xff]  }
 0x254   :  { %8514 = vmatprep.subr.bf16.mxu0 %v12665_v15  ;;  %9375 = vmatprep.subr.bf16.mxu1 %v12668_v16  ;;  %v12749_v15 = vld [vmem:[%s18048_s1 + $0x1464] ss:$16 sps:$4 sm:$0xff]   ;;  %v12752_v16 = vld [vmem:[%s18048_s1 + $0x146c] ss:$16 sps:$4 sm:$0xff]  }
 0x257   :  { %8515 = vmatpush1.bf16.msra.mxu0 %v12663_v17  ;;  %9376 = vmatpush1.bf16.msra.mxu1 %v12666_v18  ;;  %v12747_v17 = vld [vmem:[%s18048_s1 + $0x1460] ss:$16 sps:$4 sm:$0xff]   ;;  %v12750_v18 = vld [vmem:[%s18048_s1 + $0x1468] ss:$16 sps:$4 sm:$0xff]  }
 0x258   :  { %8516 = vmatprep.subr.bf16.mxu0 %v12671_v19  ;;  %9377 = vmatprep.subr.bf16.mxu1 %v12674_v20  ;;  %v12755_v19 = vld [vmem:[%s18048_s1 + $0x1484] ss:$16 sps:$4 sm:$0xff]   ;;  %v12758_v20 = vld [vmem:[%s18048_s1 + $0x148c] ss:$16 sps:$4 sm:$0xff]  }
 0x25b   :  { %8517 = vmatpush1.bf16.msra.mxu0 %v12669_v22  ;;  %9378 = vmatpush1.bf16.msra.mxu1 %v12672_v23  ;;  %v12753_v22 = vld [vmem:[%s18048_s1 + $0x1480] ss:$16 sps:$4 sm:$0xff]   ;;  %v12756_v23 = vld [vmem:[%s18048_s1 + $0x1488] ss:$16 sps:$4 sm:$0xff]  }
 0x25c   :  { %8518 = vmatprep.subr.bf16.mxu0 %v12677_v24  ;;  %9379 = vmatprep.subr.bf16.mxu1 %v12680_v13  ;;  %v12761_v24 = vld [vmem:[%s18048_s1 + $0x14a4] ss:$16 sps:$4 sm:$0xff]   ;;  %v12764_v13 = vld [vmem:[%s18048_s1 + $0x14ac] ss:$16 sps:$4 sm:$0xff]  }
 0x25f   :  { %8519 = vmatpush1.bf16.msra.mxu0 %v12675_v27  ;;  %9380 = vmatpush1.bf16.msra.mxu1 %v12678_v28  ;;  %v12759_v27 = vld [vmem:[%s18048_s1 + $0x14a0] ss:$16 sps:$4 sm:$0xff]   ;;  %v12762_v28 = vld [vmem:[%s18048_s1 + $0x14a8] ss:$16 sps:$4 sm:$0xff]  }
 0x260   :  { %8520 = vmatprep.subr.bf16.mxu0 %v12683_v29  ;;  %9381 = vmatprep.subr.bf16.mxu1 %v12686_v14  ;;  %v12767_v29 = vld [vmem:[%s18048_s1 + $0x14c4] ss:$16 sps:$4 sm:$0xff]   ;;  %v12770_v14 = vld [vmem:[%s18048_s1 + $0x14cc] ss:$16 sps:$4 sm:$0xff]  }
 0x263   :  { %8521 = vmatpush1.bf16.msra.mxu0 %v12681_v30  ;;  %9382 = vmatpush1.bf16.msra.mxu1 %v12684_v31  ;;  %v12765_v30 = vld [vmem:[%s18048_s1 + $0x14c0] ss:$16 sps:$4 sm:$0xff]   ;;  %v12768_v31 = vld [vmem:[%s18048_s1 + $0x14c8] ss:$16 sps:$4 sm:$0xff]  }
 0x264   :  { %8522 = vmatprep.subr.bf16.mxu0 %v12689_v25  ;;  %9383 = vmatprep.subr.bf16.mxu1 %v12692_v32  ;;  %v12773_v25 = vld [vmem:[%s18048_s1 + $0x14e4] ss:$16 sps:$4 sm:$0xff]   ;;  %v12776_v32 = vld [vmem:[%s18048_s1 + $0x14ec] ss:$16 sps:$4 sm:$0xff]  }
 0x267   :  { %8523 = vmatpush1.bf16.msra.mxu0 %v12687_v33  ;;  %9384 = vmatpush1.bf16.msra.mxu1 %v12690_v26  ;;  %v12771_v33 = vld [vmem:[%s18048_s1 + $0x14e0] ss:$16 sps:$4 sm:$0xff]   ;;  %v12774_v26 = vld [vmem:[%s18048_s1 + $0x14e8] ss:$16 sps:$4 sm:$0xff]  }
 0x268   :  { %8524 = vmatprep.subr.bf16.mxu0 %v12695_v36  ;;  %9385 = vmatprep.subr.bf16.mxu1 %v12698_v37  ;;  %v12779_v36 = vld [vmem:[%s18048_s1 + $0x1504] ss:$16 sps:$4 sm:$0xff]   ;;  %v12782_v37 = vld [vmem:[%s18048_s1 + $0x150c] ss:$16 sps:$4 sm:$0xff]  }
 0x26b   :  { %8525 = vmatpush1.bf16.msra.mxu0 %v12693_v21  ;;  %9386 = vmatpush1.bf16.msra.mxu1 %v12696_v39  ;;  %v12777_v21 = vld [vmem:[%s18048_s1 + $0x1500] ss:$16 sps:$4 sm:$0xff]   ;;  %v12780_v39 = vld [vmem:[%s18048_s1 + $0x1508] ss:$16 sps:$4 sm:$0xff]  }
 0x26c   :  { %8526 = vmatprep.subr.bf16.mxu0 %v12701_v40  ;;  %9387 = vmatprep.subr.bf16.mxu1 %v12704_v41  ;;  %v12785_v40 = vld [vmem:[%s18048_s1 + $0x1524] ss:$16 sps:$4 sm:$0xff]   ;;  %v12788_v41 = vld [vmem:[%s18048_s1 + $0x152c] ss:$16 sps:$4 sm:$0xff]  }
 0x26f   :  { %8527 = vmatpush1.bf16.msra.mxu0 %v12699_v34  ;;  %9388 = vmatpush1.bf16.msra.mxu1 %v12702_v43  ;;  %v12783_v34 = vld [vmem:[%s18048_s1 + $0x1520] ss:$16 sps:$4 sm:$0xff]   ;;  %v12786_v43 = vld [vmem:[%s18048_s1 + $0x1528] ss:$16 sps:$4 sm:$0xff]  }
 0x270   :  { %8528 = vmatprep.subr.bf16.mxu0 %v12707_v45  ;;  %9389 = vmatprep.subr.bf16.mxu1 %v12710_v46  ;;  %v12791_v45 = vld [vmem:[%s18048_s1 + $0x1544] ss:$16 sps:$4 sm:$0xff]   ;;  %v12794_v46 = vld [vmem:[%s18048_s1 + $0x154c] ss:$16 sps:$4 sm:$0xff]  }
 0x273   :  { %8529 = vmatpush1.bf16.msra.mxu0 %v12705_v35  ;;  %9390 = vmatpush1.bf16.msra.mxu1 %v12708_v50  ;;  %v12789_v35 = vld [vmem:[%s18048_s1 + $0x1540] ss:$16 sps:$4 sm:$0xff]   ;;  %v12792_v50 = vld [vmem:[%s18048_s1 + $0x1548] ss:$16 sps:$4 sm:$0xff]  }
 0x274   :  { %8530 = vmatprep.subr.bf16.mxu0 %v12713_v51  ;;  %9391 = vmatprep.subr.bf16.mxu1 %v12716_v53  ;;  %v12797_v51 = vld [vmem:[%s18048_s1 + $0x1564] ss:$16 sps:$4 sm:$0xff]   ;;  %v12800_v53 = vld [vmem:[%s18048_s1 + $0x156c] ss:$16 sps:$4 sm:$0xff]  }
 0x277   :  { %8531 = vmatpush1.bf16.msra.mxu0 %v12711_v38  ;;  %9392 = vmatpush1.bf16.msra.mxu1 %v12714_v54  ;;  %v12795_v38 = vld [vmem:[%s18048_s1 + $0x1560] ss:$16 sps:$4 sm:$0xff]   ;;  %v12798_v54 = vld [vmem:[%s18048_s1 + $0x1568] ss:$16 sps:$4 sm:$0xff]  }
 0x278   :  { %8532 = vmatprep.subr.bf16.mxu0 %v12719_v55  ;;  %9393 = vmatprep.subr.bf16.mxu1 %v12722_v56  ;;  %v12803_v55 = vld [vmem:[%s18048_s1 + $0x1584] ss:$16 sps:$4 sm:$0xff]   ;;  %v12806_v56 = vld [vmem:[%s18048_s1 + $0x158c] ss:$16 sps:$4 sm:$0xff]  }
 0x27b   :  { %8533 = vmatpush1.bf16.msra.mxu0 %v12717_v58  ;;  %9394 = vmatpush1.bf16.msra.mxu1 %v12720_v48  ;;  %v12809_v58 = vld [vmem:[%s18048_s1 + $0x15a4] ss:$16 sps:$4 sm:$0xff]   ;;  %v12812_v48 = vld [vmem:[%s18048_s1 + $0x15ac] ss:$16 sps:$4 sm:$0xff]  }
 0x27c   :  { %8534 = vmatprep.subr.bf16.mxu0 %v12725_v61  ;;  %9395 = vmatprep.subr.bf16.mxu1 %v12728_v62  ;;  %v12807_v61 = vld [vmem:[%s18048_s1 + $0x15a0] ss:$16 sps:$4 sm:$0xff]   ;;  %v12810_v62 = vld [vmem:[%s18048_s1 + $0x15a8] ss:$16 sps:$4 sm:$0xff]  }
 0x27f   :  { %8535 = vmatpush1.bf16.msra.mxu0 %v12723_v44  ;;  %9396 = vmatpush1.bf16.msra.mxu1 %v12726_v0  ;;  %v12815_v44 = vld [vmem:[%s18048_s1 + $0x15c4] ss:$16 sps:$4 sm:$0xff]   ;;  %v12818_v0 = vld [vmem:[%s18048_s1 + $0x15cc] ss:$16 sps:$4 sm:$0xff]  }
 0x280   :  { %8545 = vmatprep.subr.bf16.mxu0 %v12731_v1  ;;  %9406 = vmatprep.subr.bf16.mxu1 %v12734_v2  ;;  %v12813_v1 = vld [vmem:[%s18048_s1 + $0x15c0] ss:$16 sps:$4 sm:$0xff]   ;;  %v12816_v2 = vld [vmem:[%s18048_s1 + $0x15c8] ss:$16 sps:$4 sm:$0xff]  }
 0x282   :  { %8537 = vmatmul.mubr.bf16.vlgmr.msra.gmra.mrb[0].mxu0 %v1495_v3  ;;  %9398 = vmatmul.mubr.bf16.vlgmr.msra.gmra.mrb[0].mxu1 %v1495_v3  ;;  %v12824_v3 = vld [vmem:[%s18048_s1 + $0x15ec] ss:$16 sps:$4 sm:$0xff]  }
 0x283   :  { %8546 = vmatpush1.bf16.msra.mxu0 %v12729_v4  ;;  %9407 = vmatpush1.bf16.msra.mxu1 %v12732_v5  ;;  %v12819_v4 = vld [vmem:[%s18048_s1 + $0x15e0] ss:$16 sps:$4 sm:$0xff]   ;;  %v12822_v5 = vld [vmem:[%s18048_s1 + $0x15e8] ss:$16 sps:$4 sm:$0xff]  }
 0x284   :  { %8547 = vmatprep.subr.bf16.mxu0 %v12737_v6  ;;  %9408 = vmatprep.subr.bf16.mxu1 %v12740_v60  ;;  %v12828_v6 = vld [vmem:[%s18048_s1 + $0x1604] ss:$16 sps:$4 sm:$0xff]   ;;  %v12831_v60 = vld [vmem:[%s18048_s1 + $0x160c] ss:$16 sps:$4 sm:$0xff]  }
 0x285   :  { %8577 = vmatprep.mubr.bf16.mxu0 %v15865_v7  ;;  %9438 = vmatprep.mubr.bf16.mxu1 %v15865_v7 }
 0x287   :  { %8548 = vmatpush1.bf16.msra.mxu0 %v12735_v8  ;;  %9409 = vmatpush1.bf16.msra.mxu1 %v12738_v9  ;;  %v16051_v8 = vrot.slane %v15834_v63, %v13944_v49  ;;  %v12826_v9 = vld [vmem:[%s18048_s1 + $0x1600] ss:$16 sps:$4 sm:$0xff]   ;;  %v12837_v63 = vld [vmem:[%s18048_s1 + $0x162c] ss:$16 sps:$4 sm:$0xff]  }
 0x288   :  { %8549 = vmatprep.subr.bf16.mxu0 %v12743_v10  ;;  %9410 = vmatprep.subr.bf16.mxu1 %v12746_v11  ;;  %v12829_v10 = vld [vmem:[%s18048_s1 + $0x1608] ss:$16 sps:$4 sm:$0xff]   ;;  %v12834_v11 = vld [vmem:[%s18048_s1 + $0x1624] ss:$16 sps:$4 sm:$0xff]  }
 0x28b   :  { %8550 = vmatpush1.bf16.msra.mxu0 %v12741_v12  ;;  %9411 = vmatpush1.bf16.msra.mxu1 %v12744_v52  ;;  %v1498_v12 = vcombine.high %v15865_v7, %v15865_v7  ;;  %v12832_v52 = vld [vmem:[%s18048_s1 + $0x1620] ss:$16 sps:$4 sm:$0xff]   ;;  %v12840_v7 = vld [vmem:[%s18048_s1 + $0x1644] ss:$16 sps:$4 sm:$0xff]  }
 0x28c   :  { %8551 = vmatprep.subr.bf16.mxu0 %v12749_v15  ;;  %9412 = vmatprep.subr.bf16.mxu1 %v12752_v16  ;;  %v12835_v15 = vld [vmem:[%s18048_s1 + $0x1628] ss:$16 sps:$4 sm:$0xff]   ;;  %v12843_v16 = vld [vmem:[%s18048_s1 + $0x164c] ss:$16 sps:$4 sm:$0xff]  }
 0x28f   :  { %8552 = vmatpush1.bf16.msra.mxu0 %v12747_v17  ;;  %9413 = vmatpush1.bf16.msra.mxu1 %v12750_v18  ;;  %v12838_v17 = vld [vmem:[%s18048_s1 + $0x1640] ss:$16 sps:$4 sm:$0xff]   ;;  %v12841_v18 = vld [vmem:[%s18048_s1 + $0x1648] ss:$16 sps:$4 sm:$0xff]  }
 0x290   :  { %8553 = vmatprep.subr.bf16.mxu0 %v12755_v19  ;;  %9414 = vmatprep.subr.bf16.mxu1 %v12758_v20  ;;  %v12846_v19 = vld [vmem:[%s18048_s1 + $0x1664] ss:$16 sps:$4 sm:$0xff]   ;;  %v12849_v20 = vld [vmem:[%s18048_s1 + $0x166c] ss:$16 sps:$4 sm:$0xff]  }
 0x293   :  { %8554 = vmatpush1.bf16.msra.mxu0 %v12753_v22  ;;  %9415 = vmatpush1.bf16.msra.mxu1 %v12756_v23  ;;  %v12844_v22 = vld [vmem:[%s18048_s1 + $0x1660] ss:$16 sps:$4 sm:$0xff]   ;;  %v12847_v23 = vld [vmem:[%s18048_s1 + $0x1668] ss:$16 sps:$4 sm:$0xff]  }
 0x294   :  { %8555 = vmatprep.subr.bf16.mxu0 %v12761_v24  ;;  %9416 = vmatprep.subr.bf16.mxu1 %v12764_v13  ;;  %v12852_v24 = vld [vmem:[%s18048_s1 + $0x1684] ss:$16 sps:$4 sm:$0xff]   ;;  %v12855_v13 = vld [vmem:[%s18048_s1 + $0x168c] ss:$16 sps:$4 sm:$0xff]  }
 0x297   :  { %8556 = vmatpush1.bf16.msra.mxu0 %v12759_v27  ;;  %9417 = vmatpush1.bf16.msra.mxu1 %v12762_v28  ;;  %v12850_v27 = vld [vmem:[%s18048_s1 + $0x1680] ss:$16 sps:$4 sm:$0xff]   ;;  %v12853_v28 = vld [vmem:[%s18048_s1 + $0x1688] ss:$16 sps:$4 sm:$0xff]  }
 0x298   :  { %8557 = vmatprep.subr.bf16.mxu0 %v12767_v29  ;;  %9418 = vmatprep.subr.bf16.mxu1 %v12770_v14  ;;  %v12858_v29 = vld [vmem:[%s18048_s1 + $0x16a4] ss:$16 sps:$4 sm:$0xff]   ;;  %v12861_v14 = vld [vmem:[%s18048_s1 + $0x16ac] ss:$16 sps:$4 sm:$0xff]  }
 0x29b   :  { %8558 = vmatpush1.bf16.msra.mxu0 %v12765_v30  ;;  %9419 = vmatpush1.bf16.msra.mxu1 %v12768_v31  ;;  %v12856_v30 = vld [vmem:[%s18048_s1 + $0x16a0] ss:$16 sps:$4 sm:$0xff]   ;;  %v12859_v31 = vld [vmem:[%s18048_s1 + $0x16a8] ss:$16 sps:$4 sm:$0xff]  }
 0x29c   :  { %8559 = vmatprep.subr.bf16.mxu0 %v12773_v25  ;;  %9420 = vmatprep.subr.bf16.mxu1 %v12776_v32  ;;  %v12864_v25 = vld [vmem:[%s18048_s1 + $0x16c4] ss:$16 sps:$4 sm:$0xff]   ;;  %v12867_v32 = vld [vmem:[%s18048_s1 + $0x16cc] ss:$16 sps:$4 sm:$0xff]  }
 0x29f   :  { %8560 = vmatpush1.bf16.msra.mxu0 %v12771_v33  ;;  %9421 = vmatpush1.bf16.msra.mxu1 %v12774_v26  ;;  %v12862_v33 = vld [vmem:[%s18048_s1 + $0x16c0] ss:$16 sps:$4 sm:$0xff]   ;;  %v12865_v26 = vld [vmem:[%s18048_s1 + $0x16c8] ss:$16 sps:$4 sm:$0xff]  }
 0x2a0   :  { %8561 = vmatprep.subr.bf16.mxu0 %v12779_v36  ;;  %9422 = vmatprep.subr.bf16.mxu1 %v12782_v37  ;;  %v12870_v36 = vld [vmem:[%s18048_s1 + $0x16e4] ss:$16 sps:$4 sm:$0xff]   ;;  %v12873_v37 = vld [vmem:[%s18048_s1 + $0x16ec] ss:$16 sps:$4 sm:$0xff]  }
 0x2a3   :  { %8562 = vmatpush1.bf16.msra.mxu0 %v12777_v21  ;;  %9423 = vmatpush1.bf16.msra.mxu1 %v12780_v39  ;;  %v12868_v21 = vld [vmem:[%s18048_s1 + $0x16e0] ss:$16 sps:$4 sm:$0xff]   ;;  %v12871_v39 = vld [vmem:[%s18048_s1 + $0x16e8] ss:$16 sps:$4 sm:$0xff]  }
 0x2a4   :  { %8563 = vmatprep.subr.bf16.mxu0 %v12785_v40  ;;  %9424 = vmatprep.subr.bf16.mxu1 %v12788_v41  ;;  %v12876_v40 = vld [vmem:[%s18048_s1 + $0x1704] ss:$16 sps:$4 sm:$0xff]   ;;  %v12879_v41 = vld [vmem:[%s18048_s1 + $0x170c] ss:$16 sps:$4 sm:$0xff]  }
 0x2a7   :  { %8564 = vmatpush1.bf16.msra.mxu0 %v12783_v34  ;;  %9425 = vmatpush1.bf16.msra.mxu1 %v12786_v43  ;;  %v12874_v34 = vld [vmem:[%s18048_s1 + $0x1700] ss:$16 sps:$4 sm:$0xff]   ;;  %v12877_v43 = vld [vmem:[%s18048_s1 + $0x1708] ss:$16 sps:$4 sm:$0xff]  }
 0x2a8   :  { %8565 = vmatprep.subr.bf16.mxu0 %v12791_v45  ;;  %9426 = vmatprep.subr.bf16.mxu1 %v12794_v46  ;;  %v12882_v45 = vld [vmem:[%s18048_s1 + $0x1724] ss:$16 sps:$4 sm:$0xff]   ;;  %v12885_v46 = vld [vmem:[%s18048_s1 + $0x172c] ss:$16 sps:$4 sm:$0xff]  }
 0x2ab   :  { %8566 = vmatpush1.bf16.msra.mxu0 %v12789_v35  ;;  %9427 = vmatpush1.bf16.msra.mxu1 %v12792_v50  ;;  %v12880_v35 = vld [vmem:[%s18048_s1 + $0x1720] ss:$16 sps:$4 sm:$0xff]   ;;  %v12883_v50 = vld [vmem:[%s18048_s1 + $0x1728] ss:$16 sps:$4 sm:$0xff]  }
 0x2ac   :  { %8567 = vmatprep.subr.bf16.mxu0 %v12797_v51  ;;  %9428 = vmatprep.subr.bf16.mxu1 %v12800_v53  ;;  %v12888_v51 = vld [vmem:[%s18048_s1 + $0x1744] ss:$16 sps:$4 sm:$0xff]   ;;  %v12891_v53 = vld [vmem:[%s18048_s1 + $0x174c] ss:$16 sps:$4 sm:$0xff]  }
 0x2af   :  { %8568 = vmatpush1.bf16.msra.mxu0 %v12795_v38  ;;  %9429 = vmatpush1.bf16.msra.mxu1 %v12798_v54  ;;  %v12886_v38 = vld [vmem:[%s18048_s1 + $0x1740] ss:$16 sps:$4 sm:$0xff]   ;;  %v12889_v54 = vld [vmem:[%s18048_s1 + $0x1748] ss:$16 sps:$4 sm:$0xff]  }
 0x2b0   :  { %8569 = vmatprep.subr.bf16.mxu0 %v12803_v55  ;;  %9430 = vmatprep.subr.bf16.mxu1 %v12806_v56  ;;  %v12894_v55 = vld [vmem:[%s18048_s1 + $0x1764] ss:$16 sps:$4 sm:$0xff]   ;;  %v12897_v56 = vld [vmem:[%s18048_s1 + $0x176c] ss:$16 sps:$4 sm:$0xff]  }
 0x2b3   :  { %8570 = vmatpush1.bf16.msra.mxu0 %v12801_v47  ;;  %9431 = vmatpush1.bf16.msra.mxu1 %v12804_v57 }
 0x2b4   :  { %8571 = vmatprep.subr.bf16.mxu0 %v12809_v58  ;;  %9432 = vmatprep.subr.bf16.mxu1 %v12812_v48 }
 0x2b7   :  { %8572 = vmatpush1.bf16.msra.mxu0 %v12807_v61  ;;  %9433 = vmatpush1.bf16.msra.mxu1 %v12810_v62 }
 0x2b8   :  { %8573 = vmatprep.subr.bf16.mxu0 %v12815_v44  ;;  %9434 = vmatprep.subr.bf16.mxu1 %v12818_v0 }
 0x2bb   :  { %8574 = vmatpush1.bf16.msra.mxu0 %v12813_v1  ;;  %9435 = vmatpush1.bf16.msra.mxu1 %v12816_v2 }
 0x2bc   :  { %8575 = vmatprep.subr.bf16.mxu0 %v12821_v59  ;;  %9436 = vmatprep.subr.bf16.mxu1 %v12824_v3 }
 0x2bf   :  { %8576 = vmatpush1.bf16.msra.mxu0 %v12819_v4  ;;  %9437 = vmatpush1.bf16.msra.mxu1 %v12822_v5 }
 0x2c0   :  { %8586 = vmatprep.subr.bf16.mxu0 %v12828_v6  ;;  %9447 = vmatprep.subr.bf16.mxu1 %v12831_v60 }
 0x2c2   :  { %8578 = vmatmul.mubr.bf16.vlgmr.msra.gmra.mrb[0].mxu0 %v16051_v8  ;;  %9439 = vmatmul.mubr.bf16.vlgmr.msra.gmra.mrb[0].mxu1 %v16051_v8 }
 0x2c3   :  { %8587 = vmatpush1.bf16.msra.mxu0 %v12826_v9  ;;  %9448 = vmatpush1.bf16.msra.mxu1 %v12829_v10 }
 0x2c4   :  { %8588 = vmatprep.subr.bf16.mxu0 %v12834_v11  ;;  %9449 = vmatprep.subr.bf16.mxu1 %v12837_v63 }
 0x2c5   :  { %8618 = vmatprep.mubr.bf16.mxu0 %v1498_v12  ;;  %9479 = vmatprep.mubr.bf16.mxu1 %v1498_v12 }
 0x2c7   :  { %8589 = vmatpush1.bf16.msra.mxu0 %v12832_v52  ;;  %9450 = vmatpush1.bf16.msra.mxu1 %v12835_v15 }
 0x2c8   :  { %8590 = vmatprep.subr.bf16.mxu0 %v12840_v7  ;;  %9451 = vmatprep.subr.bf16.mxu1 %v12843_v16 }
 0x2cb   :  { %8591 = vmatpush1.bf16.msra.mxu0 %v12838_v17  ;;  %9452 = vmatpush1.bf16.msra.mxu1 %v12841_v18 }
 0x2cc   :  { %8592 = vmatprep.subr.bf16.mxu0 %v12846_v19  ;;  %9453 = vmatprep.subr.bf16.mxu1 %v12849_v20 }
 0x2cf   :  { %8593 = vmatpush1.bf16.msra.mxu0 %v12844_v22  ;;  %9454 = vmatpush1.bf16.msra.mxu1 %v12847_v23 }
 0x2d0   :  { %8594 = vmatprep.subr.bf16.mxu0 %v12852_v24  ;;  %9455 = vmatprep.subr.bf16.mxu1 %v12855_v13 }
 0x2d3   :  { %8595 = vmatpush1.bf16.msra.mxu0 %v12850_v27  ;;  %9456 = vmatpush1.bf16.msra.mxu1 %v12853_v28 }
 0x2d4   :  { %8596 = vmatprep.subr.bf16.mxu0 %v12858_v29  ;;  %9457 = vmatprep.subr.bf16.mxu1 %v12861_v14 }
 0x2d7   :  { %8597 = vmatpush1.bf16.msra.mxu0 %v12856_v30  ;;  %9458 = vmatpush1.bf16.msra.mxu1 %v12859_v31 }
 0x2d8   :  { %8598 = vmatprep.subr.bf16.mxu0 %v12864_v25  ;;  %9459 = vmatprep.subr.bf16.mxu1 %v12867_v32 }
 0x2db   :  { %8599 = vmatpush1.bf16.msra.mxu0 %v12862_v33  ;;  %9460 = vmatpush1.bf16.msra.mxu1 %v12865_v26 }
 0x2dc   :  { %8600 = vmatprep.subr.bf16.mxu0 %v12870_v36  ;;  %9461 = vmatprep.subr.bf16.mxu1 %v12873_v37 }
 0x2df   :  { %8601 = vmatpush1.bf16.msra.mxu0 %v12868_v21  ;;  %9462 = vmatpush1.bf16.msra.mxu1 %v12871_v39 }
 0x2e0   :  { %8602 = vmatprep.subr.bf16.mxu0 %v12876_v40  ;;  %9463 = vmatprep.subr.bf16.mxu1 %v12879_v41 }
 0x2e3   :  { %8603 = vmatpush1.bf16.msra.mxu0 %v12874_v34  ;;  %9464 = vmatpush1.bf16.msra.mxu1 %v12877_v43 }
 0x2e4   :  { %8604 = vmatprep.subr.bf16.mxu0 %v12882_v45  ;;  %9465 = vmatprep.subr.bf16.mxu1 %v12885_v46 }
 0x2e7   :  { %8605 = vmatpush1.bf16.msra.mxu0 %v12880_v35  ;;  %9466 = vmatpush1.bf16.msra.mxu1 %v12883_v50 }
 0x2e8   :  { %8606 = vmatprep.subr.bf16.mxu0 %v12888_v51  ;;  %9467 = vmatprep.subr.bf16.mxu1 %v12891_v53 }
 0x2e9   :  { %10 = vsyncpa [#allocation3], 0  ;;  %v12892_v47 = vld [vmem:[%s18048_s1 + $0x1760] ss:$16 sps:$4 sm:$0xff]   ;;  %v12895_v57 = vld [vmem:[%s18048_s1 + $0x1768] ss:$16 sps:$4 sm:$0xff]   ;;  %v1496_v7 = vcombine.high %v16051_v8, %v16051_v8 }
 0x2ea   :  { %v12900_v58 = vld [vmem:[%s18048_s1 + $0x1784] ss:$16 sps:$4 sm:$0xff]   ;;  %v12903_v48 = vld [vmem:[%s18048_s1 + $0x178c] ss:$16 sps:$4 sm:$0xff]   ;;  %v12898_v61 = vld [vmem:[%s18048_s1 + $0x1780] ss:$16 sps:$4 sm:$0xff]  }
 0x2eb   :  { %8607 = vmatpush1.bf16.msra.mxu0 %v12886_v38  ;;  %9468 = vmatpush1.bf16.msra.mxu1 %v12889_v54  ;;  %v12901_v62 = vld [vmem:[%s18048_s1 + $0x1788] ss:$16 sps:$4 sm:$0xff]   ;;  %v12906_v44 = vld [vmem:[%s18048_s1 + $0x17a4] ss:$16 sps:$4 sm:$0xff]   ;;  %v12909_v0 = vld [vmem:[%s18048_s1 + $0x17ac] ss:$16 sps:$4 sm:$0xff]  }
 0x2ec   :  { %8608 = vmatprep.subr.bf16.mxu0 %v12894_v55  ;;  %9469 = vmatprep.subr.bf16.mxu1 %v12897_v56  ;;  %v12904_v1 = vld [vmem:[%s18048_s1 + $0x17a0] ss:$16 sps:$4 sm:$0xff]   ;;  %v12907_v2 = vld [vmem:[%s18048_s1 + $0x17a8] ss:$16 sps:$4 sm:$0xff]   ;;  %v12912_v59 = vld [vmem:[%s18048_s1 + $0x17c4] ss:$16 sps:$4 sm:$0xff]  }
 0x2ed   :  { %v12915_v3 = vld [vmem:[%s18048_s1 + $0x17cc] ss:$16 sps:$4 sm:$0xff]   ;;  %v12910_v5 = vld [vmem:[%s18048_s1 + $0x17c0] ss:$16 sps:$4 sm:$0xff]   ;;  %v12913_v6 = vld [vmem:[%s18048_s1 + $0x17c8] ss:$16 sps:$4 sm:$0xff]  }
 0x2ee   :  { %v16228_v4 = vld [vmem:[%s18047_s0 + $0x18] sm:$0xff]  ;;  %v12918_v60 = vld [vmem:[%s18048_s1 + $0x17e4] ss:$16 sps:$4 sm:$0xff]   ;;  %v12916_v11 = vld [vmem:[%s18048_s1 + $0x17e0] ss:$16 sps:$4 sm:$0xff]   ;;  %vm8131_vm0 = vcmask 523264  }
 0x2ef   :  { %8609 = vmatpush1.bf16.msra.mxu0 %v12892_v47  ;;  %9470 = vmatpush1.bf16.msra.mxu1 %v12895_v57  ;;  %v12921_v9 = vld [vmem:[%s18048_s1 + $0x17ec] ss:$16 sps:$4 sm:$0xff]   ;;  %v16244_v10 = vrot.slane %v16228_v4, %v13944_v49  ;;  %v12919_v63 = vld [vmem:[%s18048_s1 + $0x17e8] ss:$16 sps:$4 sm:$0xff]   ;;  %v12924_v12 = vld [vmem:[%s18048_s1 + $0x1804] ss:$16 sps:$4 sm:$0xff]  }
 0x2f0   :  { %8610 = vmatprep.subr.bf16.mxu0 %v12900_v58  ;;  %9471 = vmatprep.subr.bf16.mxu1 %v12903_v48  ;;  %v12927_v52 = vld [vmem:[%s18048_s1 + $0x180c] ss:$16 sps:$4 sm:$0xff]   ;;  %v12922_v16 = vld [vmem:[%s18048_s1 + $0x1800] ss:$16 sps:$4 sm:$0xff]   ;;  %v12925_v17 = vld [vmem:[%s18048_s1 + $0x1808] ss:$16 sps:$4 sm:$0xff]  }
 0x2f1   :  { %v1514_v15 = vcombine.high %v16244_v10, %v16244_v10  ;;  %v12930_v18 = vld [vmem:[%s18048_s1 + $0x1824] ss:$16 sps:$4 sm:$0xff]   ;;  %v12933_v8 = vld [vmem:[%s18048_s1 + $0x182c] ss:$16 sps:$4 sm:$0xff]   ;;  %v12928_v20 = vld [vmem:[%s18048_s1 + $0x1820] ss:$16 sps:$4 sm:$0xff]  }
 0x2f2   :  { %v12931_v22 = vld [vmem:[%s18048_s1 + $0x1828] ss:$16 sps:$4 sm:$0xff]   ;;  %v12936_v23 = vld [vmem:[%s18048_s1 + $0x1844] ss:$16 sps:$4 sm:$0xff]   ;;  %v12939_v24 = vld [vmem:[%s18048_s1 + $0x184c] ss:$16 sps:$4 sm:$0xff]  }
 0x2f3   :  { %8611 = vmatpush1.bf16.msra.mxu0 %v12898_v61  ;;  %9472 = vmatpush1.bf16.msra.mxu1 %v12901_v62  ;;  %v16275_v19 = vrot.slane %v1514_v15, %v13944_v49  ;;  %v12934_v13 = vld [vmem:[%s18048_s1 + $0x1840] ss:$16 sps:$4 sm:$0xff]   ;;  %v12937_v27 = vld [vmem:[%s18048_s1 + $0x1848] ss:$16 sps:$4 sm:$0xff]   ;;  %v12942_v28 = vld [vmem:[%s18048_s1 + $0x1864] ss:$16 sps:$4 sm:$0xff]  }
 0x2f4   :  { %8612 = vmatprep.subr.bf16.mxu0 %v12906_v44  ;;  %9473 = vmatprep.subr.bf16.mxu1 %v12909_v0  ;;  %v12945_v29 = vld [vmem:[%s18048_s1 + $0x186c] ss:$16 sps:$4 sm:$0xff]   ;;  %v12940_v14 = vld [vmem:[%s18048_s1 + $0x1860] ss:$16 sps:$4 sm:$0xff]   ;;  %v12943_v30 = vld [vmem:[%s18048_s1 + $0x1868] ss:$16 sps:$4 sm:$0xff]  }
 0x2f5   :  { %v12948_v31 = vld [vmem:[%s18048_s1 + $0x1884] ss:$16 sps:$4 sm:$0xff]   ;;  %v12951_v25 = vld [vmem:[%s18048_s1 + $0x188c] ss:$16 sps:$4 sm:$0xff]   ;;  %v12946_v32 = vld [vmem:[%s18048_s1 + $0x1880] ss:$16 sps:$4 sm:$0xff]  }
 0x2f6   :  { %v12949_v33 = vld [vmem:[%s18048_s1 + $0x1888] ss:$16 sps:$4 sm:$0xff]   ;;  %v12954_v26 = vld [vmem:[%s18048_s1 + $0x18a4] ss:$16 sps:$4 sm:$0xff]   ;;  %v12957_v36 = vld [vmem:[%s18048_s1 + $0x18ac] ss:$16 sps:$4 sm:$0xff]  }
 0x2f7   :  { %8613 = vmatpush1.bf16.msra.mxu0 %v12904_v1  ;;  %9474 = vmatpush1.bf16.msra.mxu1 %v12907_v2  ;;  %v12952_v37 = vld [vmem:[%s18048_s1 + $0x18a0] ss:$16 sps:$4 sm:$0xff]   ;;  %v12955_v21 = vld [vmem:[%s18048_s1 + $0x18a8] ss:$16 sps:$4 sm:$0xff]   ;;  %v12960_v39 = vld [vmem:[%s18048_s1 + $0x18c4] ss:$16 sps:$4 sm:$0xff]  }
 0x2f8   :  { %8614 = vmatprep.subr.bf16.mxu0 %v12912_v59  ;;  %9475 = vmatprep.subr.bf16.mxu1 %v12915_v3  ;;  %v12963_v40 = vld [vmem:[%s18048_s1 + $0x18cc] ss:$16 sps:$4 sm:$0xff]   ;;  %v12958_v41 = vld [vmem:[%s18048_s1 + $0x18c0] ss:$16 sps:$4 sm:$0xff]   ;;  %v12961_v34 = vld [vmem:[%s18048_s1 + $0x18c8] ss:$16 sps:$4 sm:$0xff]  }
 0x2f9   :  { %v12966_v43 = vld [vmem:[%s18048_s1 + $0x18e4] ss:$16 sps:$4 sm:$0xff]   ;;  %v12969_v45 = vld [vmem:[%s18048_s1 + $0x18ec] ss:$16 sps:$4 sm:$0xff]   ;;  %v12964_v46 = vld [vmem:[%s18048_s1 + $0x18e0] ss:$16 sps:$4 sm:$0xff]  }
 0x2fa   :  { %v12967_v35 = vld [vmem:[%s18048_s1 + $0x18e8] ss:$16 sps:$4 sm:$0xff]   ;;  %v12972_v50 = vld [vmem:[%s18048_s1 + $0x1904] ss:$16 sps:$4 sm:$0xff]   ;;  %v12975_v51 = vld [vmem:[%s18048_s1 + $0x190c] ss:$16 sps:$4 sm:$0xff]  }
 0x2fb   :  { %8615 = vmatpush1.bf16.msra.mxu0 %v12910_v5  ;;  %9476 = vmatpush1.bf16.msra.mxu1 %v12913_v6  ;;  %v12970_v53 = vld [vmem:[%s18048_s1 + $0x1900] ss:$16 sps:$4 sm:$0xff]   ;;  %v12973_v38 = vld [vmem:[%s18048_s1 + $0x1908] ss:$16 sps:$4 sm:$0xff]   ;;  %v12978_v54 = vld [vmem:[%s18048_s1 + $0x1924] ss:$16 sps:$4 sm:$0xff]  }
 0x2fc   :  { %8616 = vmatprep.subr.bf16.mxu0 %v12918_v60  ;;  %9477 = vmatprep.subr.bf16.mxu1 %v12921_v9  ;;  %v12981_v55 = vld [vmem:[%s18048_s1 + $0x192c] ss:$16 sps:$4 sm:$0xff]   ;;  %v12976_v56 = vld [vmem:[%s18048_s1 + $0x1920] ss:$16 sps:$4 sm:$0xff]   ;;  %v12979_v47 = vld [vmem:[%s18048_s1 + $0x1928] ss:$16 sps:$4 sm:$0xff]  }
 0x2fd   :  { %v12984_v57 = vld [vmem:[%s18048_s1 + $0x1944] ss:$16 sps:$4 sm:$0xff]   ;;  %v12987_v58 = vld [vmem:[%s18048_s1 + $0x194c] ss:$16 sps:$4 sm:$0xff]   ;;  %v12982_v48 = vld [vmem:[%s18048_s1 + $0x1940] ss:$16 sps:$4 sm:$0xff]  }
 0x2fe   :  { %v12985_v61 = vld [vmem:[%s18048_s1 + $0x1948] ss:$16 sps:$4 sm:$0xff]   ;;  %v12990_v62 = vld [vmem:[%s18048_s1 + $0x1964] ss:$16 sps:$4 sm:$0xff]   ;;  %v12993_v44 = vld [vmem:[%s18048_s1 + $0x196c] ss:$16 sps:$4 sm:$0xff]  }
 0x2ff   :  { %8617 = vmatpush1.bf16.msra.mxu0 %v12916_v11  ;;  %9478 = vmatpush1.bf16.msra.mxu1 %v12919_v63  ;;  %v12988_v0 = vld [vmem:[%s18048_s1 + $0x1960] ss:$16 sps:$4 sm:$0xff]   ;;  %v12991_v1 = vld [vmem:[%s18048_s1 + $0x1968] ss:$16 sps:$4 sm:$0xff]   ;;  %v12996_v2 = vld [vmem:[%s18048_s1 + $0x1984] ss:$16 sps:$4 sm:$0xff]  }
 0x300   :  { %8627 = vmatprep.subr.bf16.mxu0 %v12924_v12  ;;  %9488 = vmatprep.subr.bf16.mxu1 %v12927_v52  ;;  %v12999_v59 = vld [vmem:[%s18048_s1 + $0x198c] ss:$16 sps:$4 sm:$0xff]   ;;  %v12994_v3 = vld [vmem:[%s18048_s1 + $0x1980] ss:$16 sps:$4 sm:$0xff]   ;;  %v12997_v5 = vld [vmem:[%s18048_s1 + $0x1988] ss:$16 sps:$4 sm:$0xff]  }
 0x301   :  { %v13002_v6 = vld [vmem:[%s18048_s1 + $0x19a4] ss:$16 sps:$4 sm:$0xff]   ;;  %v13005_v60 = vld [vmem:[%s18048_s1 + $0x19ac] ss:$16 sps:$4 sm:$0xff]   ;;  %v13000_v9 = vld [vmem:[%s18048_s1 + $0x19a0] ss:$16 sps:$4 sm:$0xff]  }
 0x302   :  { %8619 = vmatmul.mubr.bf16.vlgmr.msra.gmra.mrb[0].mxu0 %v1496_v7  ;;  %9480 = vmatmul.mubr.bf16.vlgmr.msra.gmra.mrb[0].mxu1 %v1496_v7  ;;  %v13003_v11 = vld [vmem:[%s18048_s1 + $0x19a8] ss:$16 sps:$4 sm:$0xff]   ;;  %v13008_v63 = vld [vmem:[%s18048_s1 + $0x19c4] ss:$16 sps:$4 sm:$0xff]   ;;  %v13011_v12 = vld [vmem:[%s18048_s1 + $0x19cc] ss:$16 sps:$4 sm:$0xff]  }
 0x303   :  { %8628 = vmatpush1.bf16.msra.mxu0 %v12922_v16  ;;  %9489 = vmatpush1.bf16.msra.mxu1 %v12925_v17  ;;  %v13006_v52 = vld [vmem:[%s18048_s1 + $0x19c0] ss:$16 sps:$4 sm:$0xff]   ;;  %v13009_v15 = vld [vmem:[%s18048_s1 + $0x19c8] ss:$16 sps:$4 sm:$0xff]   ;;  %v13014_v7 = vld [vmem:[%s18048_s1 + $0x19e4] ss:$16 sps:$4 sm:$0xff]  }
 0x304   :  { %8629 = vmatprep.subr.bf16.mxu0 %v12930_v18  ;;  %9490 = vmatprep.subr.bf16.mxu1 %v12933_v8  ;;  %v13017_v16 = vld [vmem:[%s18048_s1 + $0x19ec] ss:$16 sps:$4 sm:$0xff]   ;;  %v13012_v17 = vld [vmem:[%s18048_s1 + $0x19e0] ss:$16 sps:$4 sm:$0xff]   ;;  %v13015_v18 = vld [vmem:[%s18048_s1 + $0x19e8] ss:$16 sps:$4 sm:$0xff]  }
 0x305   :  { %8659 = vmatprep.mubr.bf16.mxu0 %v16275_v19  ;;  %9520 = vmatprep.mubr.bf16.mxu1 %v16275_v19  ;;  %v13020_v8 = vld [vmem:[%s18048_s1 + $0x1a04] ss:$16 sps:$4 sm:$0xff]   ;;  %s13778_s11 = smov [#allocation2]   ;;  %vm10208_vm1 = vcmask 140288  }
 0x306   :  { %s10216_s12 = sshll.u32 %s13778_s11, 4  ;;  %s10217_s12 = int_to_ptr.vmem [resolvable:$true] %s10216_s12 }
 0x307   :  { %8630 = vmatpush1.bf16.msra.mxu0 %v12928_v20  ;;  %9491 = vmatpush1.bf16.msra.mxu1 %v12931_v22  ;;  %v13023_v20 = vld [vmem:[%s18048_s1 + $0x1a0c] ss:$16 sps:$4 sm:$0xff]   ;;  %v16461_v22 = vrot.slane %v16244_v10, %v13944_v49  ;;  %s13752_s13 = scalar_lea.vmem %s10217_s12, 32  ;;  %p13757_p1 = scmp.lt.s32.totalorder %s10217_s12, %s10217_s12 }
 0x308   :  { %8631 = vmatprep.subr.bf16.mxu0 %v12936_v23  ;;  %9492 = vmatprep.subr.bf16.mxu1 %v12939_v24  ;;  %v13018_v23 = vld [vmem:[%s18048_s1 + $0x1a00] ss:$16 sps:$4 sm:$0xff]   ;;  %v13021_v24 = vld [vmem:[%s18048_s1 + $0x1a08] ss:$16 sps:$4 sm:$0xff]   ;;  %v13029_v10 = vld [vmem:[%s18048_s1 + $0x1a2c] ss:$16 sps:$4 sm:$0xff]   ;;  %p13753_p0 = scmp.ne.s32.totalorder %s10217_s12, %s13752_s13  ;;  %p13758_p2 = scmp.lt.s32.totalorder %s13752_s13, %s13752_s13 }
 0x30a   :  { %p13759_p3 = por %p13758_p2, %p13757_p1 }
 0x30b   :  { %8632 = vmatpush1.bf16.msra.mxu0 %v12934_v13  ;;  %9493 = vmatpush1.bf16.msra.mxu1 %v12937_v27  ;;  %v13026_v13 = vld [vmem:[%s18048_s1 + $0x1a24] ss:$16 sps:$4 sm:$0xff]   ;;  %v1546_v27 = vcombine.high %v16275_v19, %v16275_v19 }
 0x30c   :  { %8633 = vmatprep.subr.bf16.mxu0 %v12942_v28  ;;  %9494 = vmatprep.subr.bf16.mxu1 %v12945_v29  ;;  %v13024_v28 = vld [vmem:[%s18048_s1 + $0x1a20] ss:$16 sps:$4 sm:$0xff]   ;;  %v13027_v29 = vld [vmem:[%s18048_s1 + $0x1a28] ss:$16 sps:$4 sm:$0xff]   ;;  %v13032_v19 = vld [vmem:[%s18048_s1 + $0x1a44] ss:$16 sps:$4 sm:$0xff]   ;;  %p13760_p4 = pnand %p13759_p3, %p13753_p0 }
 0x30f   :  { %8634 = vmatpush1.bf16.msra.mxu0 %v12940_v14  ;;  %9495 = vmatpush1.bf16.msra.mxu1 %v12943_v30  ;;  %v13035_v14 = vld [vmem:[%s18048_s1 + $0x1a4c] ss:$16 sps:$4 sm:$0xff]   ;;  %v13030_v30 = vld [vmem:[%s18048_s1 + $0x1a40] ss:$16 sps:$4 sm:$0xff]  }
 0x310   :  { %8635 = vmatprep.subr.bf16.mxu0 %v12948_v31  ;;  %9496 = vmatprep.subr.bf16.mxu1 %v12951_v25  ;;  %v13033_v31 = vld [vmem:[%s18048_s1 + $0x1a48] ss:$16 sps:$4 sm:$0xff]   ;;  %v13038_v25 = vld [vmem:[%s18048_s1 + $0x1a64] ss:$16 sps:$4 sm:$0xff]  }
 0x313   :  { %8636 = vmatpush1.bf16.msra.mxu0 %v12946_v32  ;;  %9497 = vmatpush1.bf16.msra.mxu1 %v12949_v33  ;;  %v13041_v32 = vld [vmem:[%s18048_s1 + $0x1a6c] ss:$16 sps:$4 sm:$0xff]   ;;  %v13036_v33 = vld [vmem:[%s18048_s1 + $0x1a60] ss:$16 sps:$4 sm:$0xff]  }
 0x314   :  { %8637 = vmatprep.subr.bf16.mxu0 %v12954_v26  ;;  %9498 = vmatprep.subr.bf16.mxu1 %v12957_v36  ;;  %v13039_v26 = vld [vmem:[%s18048_s1 + $0x1a68] ss:$16 sps:$4 sm:$0xff]   ;;  %v13044_v36 = vld [vmem:[%s18048_s1 + $0x1a84] ss:$16 sps:$4 sm:$0xff]  }
 0x317   :  { %8638 = vmatpush1.bf16.msra.mxu0 %v12952_v37  ;;  %9499 = vmatpush1.bf16.msra.mxu1 %v12955_v21  ;;  %v13047_v37 = vld [vmem:[%s18048_s1 + $0x1a8c] ss:$16 sps:$4 sm:$0xff]   ;;  %v13042_v21 = vld [vmem:[%s18048_s1 + $0x1a80] ss:$16 sps:$4 sm:$0xff]  }
 0x318   :  { %8639 = vmatprep.subr.bf16.mxu0 %v12960_v39  ;;  %9500 = vmatprep.subr.bf16.mxu1 %v12963_v40  ;;  %v13045_v39 = vld [vmem:[%s18048_s1 + $0x1a88] ss:$16 sps:$4 sm:$0xff]   ;;  %v13050_v40 = vld [vmem:[%s18048_s1 + $0x1aa4] ss:$16 sps:$4 sm:$0xff]  }
 0x31b   :  { %8640 = vmatpush1.bf16.msra.mxu0 %v12958_v41  ;;  %9501 = vmatpush1.bf16.msra.mxu1 %v12961_v34  ;;  %v13053_v41 = vld [vmem:[%s18048_s1 + $0x1aac] ss:$16 sps:$4 sm:$0xff]   ;;  %v13048_v34 = vld [vmem:[%s18048_s1 + $0x1aa0] ss:$16 sps:$4 sm:$0xff]  }
 0x31c   :  { %8641 = vmatprep.subr.bf16.mxu0 %v12966_v43  ;;  %9502 = vmatprep.subr.bf16.mxu1 %v12969_v45  ;;  %v13051_v43 = vld [vmem:[%s18048_s1 + $0x1aa8] ss:$16 sps:$4 sm:$0xff]   ;;  %v13056_v45 = vld [vmem:[%s18048_s1 + $0x1ac4] ss:$16 sps:$4 sm:$0xff]  }
 0x31f   :  { %8642 = vmatpush1.bf16.msra.mxu0 %v12964_v46  ;;  %9503 = vmatpush1.bf16.msra.mxu1 %v12967_v35  ;;  %v13059_v46 = vld [vmem:[%s18048_s1 + $0x1acc] ss:$16 sps:$4 sm:$0xff]   ;;  %v13054_v35 = vld [vmem:[%s18048_s1 + $0x1ac0] ss:$16 sps:$4 sm:$0xff]  }
 0x320   :  { %8643 = vmatprep.subr.bf16.mxu0 %v12972_v50  ;;  %9504 = vmatprep.subr.bf16.mxu1 %v12975_v51  ;;  %v13057_v50 = vld [vmem:[%s18048_s1 + $0x1ac8] ss:$16 sps:$4 sm:$0xff]   ;;  %v13062_v51 = vld [vmem:[%s18048_s1 + $0x1ae4] ss:$16 sps:$4 sm:$0xff]  }
 0x323   :  { %8644 = vmatpush1.bf16.msra.mxu0 %v12970_v53  ;;  %9505 = vmatpush1.bf16.msra.mxu1 %v12973_v38  ;;  %v13065_v53 = vld [vmem:[%s18048_s1 + $0x1aec] ss:$16 sps:$4 sm:$0xff]   ;;  %v13060_v38 = vld [vmem:[%s18048_s1 + $0x1ae0] ss:$16 sps:$4 sm:$0xff]  }
 0x324   :  { %8645 = vmatprep.subr.bf16.mxu0 %v12978_v54  ;;  %9506 = vmatprep.subr.bf16.mxu1 %v12981_v55  ;;  %v13063_v54 = vld [vmem:[%s18048_s1 + $0x1ae8] ss:$16 sps:$4 sm:$0xff]   ;;  %v13068_v55 = vld [vmem:[%s18048_s1 + $0x1b04] ss:$16 sps:$4 sm:$0xff]  }
 0x327   :  { %8646 = vmatpush1.bf16.msra.mxu0 %v12976_v56  ;;  %9507 = vmatpush1.bf16.msra.mxu1 %v12979_v47  ;;  %v13071_v56 = vld [vmem:[%s18048_s1 + $0x1b0c] ss:$16 sps:$4 sm:$0xff]   ;;  %v13066_v47 = vld [vmem:[%s18048_s1 + $0x1b00] ss:$16 sps:$4 sm:$0xff]  }
 0x328   :  { %8647 = vmatprep.subr.bf16.mxu0 %v12984_v57  ;;  %9508 = vmatprep.subr.bf16.mxu1 %v12987_v58  ;;  %v13069_v57 = vld [vmem:[%s18048_s1 + $0x1b08] ss:$16 sps:$4 sm:$0xff]   ;;  %v13074_v58 = vld [vmem:[%s18048_s1 + $0x1b24] ss:$16 sps:$4 sm:$0xff]  }
 0x32b   :  { %8648 = vmatpush1.bf16.msra.mxu0 %v12982_v48  ;;  %9509 = vmatpush1.bf16.msra.mxu1 %v12985_v61  ;;  %v13077_v48 = vld [vmem:[%s18048_s1 + $0x1b2c] ss:$16 sps:$4 sm:$0xff]   ;;  %v13072_v61 = vld [vmem:[%s18048_s1 + $0x1b20] ss:$16 sps:$4 sm:$0xff]  }
 0x32c   :  { %8649 = vmatprep.subr.bf16.mxu0 %v12990_v62  ;;  %9510 = vmatprep.subr.bf16.mxu1 %v12993_v44  ;;  %v13075_v62 = vld [vmem:[%s18048_s1 + $0x1b28] ss:$16 sps:$4 sm:$0xff]   ;;  %v13080_v44 = vld [vmem:[%s18048_s1 + $0x1b44] ss:$16 sps:$4 sm:$0xff]  }
 0x32f   :  { %8650 = vmatpush1.bf16.msra.mxu0 %v12988_v0  ;;  %9511 = vmatpush1.bf16.msra.mxu1 %v12991_v1  ;;  %v13083_v0 = vld [vmem:[%s18048_s1 + $0x1b4c] ss:$16 sps:$4 sm:$0xff]   ;;  %v13078_v1 = vld [vmem:[%s18048_s1 + $0x1b40] ss:$16 sps:$4 sm:$0xff]  }
 0x330   :  { %8651 = vmatprep.subr.bf16.mxu0 %v12996_v2  ;;  %9512 = vmatprep.subr.bf16.mxu1 %v12999_v59  ;;  %v13081_v2 = vld [vmem:[%s18048_s1 + $0x1b48] ss:$16 sps:$4 sm:$0xff]   ;;  %v13086_v59 = vld [vmem:[%s18048_s1 + $0x1b64] ss:$16 sps:$4 sm:$0xff]  }
 0x333   :  { %8652 = vmatpush1.bf16.msra.mxu0 %v12994_v3  ;;  %9513 = vmatpush1.bf16.msra.mxu1 %v12997_v5  ;;  %v13089_v3 = vld [vmem:[%s18048_s1 + $0x1b6c] ss:$16 sps:$4 sm:$0xff]   ;;  %v13084_v5 = vld [vmem:[%s18048_s1 + $0x1b60] ss:$16 sps:$4 sm:$0xff]  }
 0x334   :  { %8653 = vmatprep.subr.bf16.mxu0 %v13002_v6  ;;  %9514 = vmatprep.subr.bf16.mxu1 %v13005_v60  ;;  %v13087_v6 = vld [vmem:[%s18048_s1 + $0x1b68] ss:$16 sps:$4 sm:$0xff]   ;;  %v13092_v60 = vld [vmem:[%s18048_s1 + $0x1b84] ss:$16 sps:$4 sm:$0xff]  }
 0x337   :  { %8654 = vmatpush1.bf16.msra.mxu0 %v13000_v9  ;;  %9515 = vmatpush1.bf16.msra.mxu1 %v13003_v11  ;;  %v13095_v9 = vld [vmem:[%s18048_s1 + $0x1b8c] ss:$16 sps:$4 sm:$0xff]   ;;  %v13090_v11 = vld [vmem:[%s18048_s1 + $0x1b80] ss:$16 sps:$4 sm:$0xff]  }
 0x338   :  { %8655 = vmatprep.subr.bf16.mxu0 %v13008_v63  ;;  %9516 = vmatprep.subr.bf16.mxu1 %v13011_v12  ;;  %v13093_v63 = vld [vmem:[%s18048_s1 + $0x1b88] ss:$16 sps:$4 sm:$0xff]   ;;  %v13098_v12 = vld [vmem:[%s18048_s1 + $0x1ba4] ss:$16 sps:$4 sm:$0xff]  }
 0x33b   :  { %8656 = vmatpush1.bf16.msra.mxu0 %v13006_v52  ;;  %9517 = vmatpush1.bf16.msra.mxu1 %v13009_v15  ;;  %v13101_v52 = vld [vmem:[%s18048_s1 + $0x1bac] ss:$16 sps:$4 sm:$0xff]   ;;  %v13096_v15 = vld [vmem:[%s18048_s1 + $0x1ba0] ss:$16 sps:$4 sm:$0xff]  }
 0x33c   :  { %8657 = vmatprep.subr.bf16.mxu0 %v13014_v7  ;;  %9518 = vmatprep.subr.bf16.mxu1 %v13017_v16  ;;  %v13099_v7 = vld [vmem:[%s18048_s1 + $0x1ba8] ss:$16 sps:$4 sm:$0xff]   ;;  %v13104_v16 = vld [vmem:[%s18048_s1 + $0x1bc4] ss:$16 sps:$4 sm:$0xff]  }
 0x33f   :  { %8658 = vmatpush1.bf16.msra.mxu0 %v13012_v17  ;;  %9519 = vmatpush1.bf16.msra.mxu1 %v13015_v18  ;;  %v13107_v17 = vld [vmem:[%s18048_s1 + $0x1bcc] ss:$16 sps:$4 sm:$0xff]   ;;  %v1499_v18 = vcombine.high %v16228_v4, %v16228_v4 }
 0x340   :  { %8668 = vmatprep.subr.bf16.mxu0 %v13020_v8  ;;  %9529 = vmatprep.subr.bf16.mxu1 %v13023_v20  ;;  %v13102_v8 = vld [vmem:[%s18048_s1 + $0x1bc0] ss:$16 sps:$4 sm:$0xff]   ;;  %v13105_v20 = vld [vmem:[%s18048_s1 + $0x1bc8] ss:$16 sps:$4 sm:$0xff]   ;;  %v13113_v4 = vld [vmem:[%s18048_s1 + $0x1bec] ss:$16 sps:$4 sm:$0xff]  }
 0x342   :  { %8660 = vmatmul.mubr.bf16.vlgmr.msra.gmra.mrb[0].mxu0 %v16461_v22  ;;  %9521 = vmatmul.mubr.bf16.vlgmr.msra.gmra.mrb[0].mxu1 %v16461_v22 }
 0x343   :  { %8669 = vmatpush1.bf16.msra.mxu0 %v13018_v23  ;;  %9530 = vmatpush1.bf16.msra.mxu1 %v13021_v24  ;;  %v13110_v23 = vld [vmem:[%s18048_s1 + $0x1be4] ss:$16 sps:$4 sm:$0xff]   ;;  %v16650_v24 = vrot.slane %v1499_v18, %v13944_v49  ;;  %v13189_v18 = vld [vmem:[%s18048_s1 + $0x1d88] ss:$16 sps:$4 sm:$0xff]  }
 0x344   :  { %8670 = vmatprep.subr.bf16.mxu0 %v13026_v13  ;;  %9531 = vmatprep.subr.bf16.mxu1 %v13029_v10  ;;  %v13108_v13 = vld [vmem:[%s18048_s1 + $0x1be0] ss:$16 sps:$4 sm:$0xff]   ;;  %v13111_v10 = vld [vmem:[%s18048_s1 + $0x1be8] ss:$16 sps:$4 sm:$0xff]  }
 0x345   :  { %8700 = vmatprep.mubr.bf16.mxu0 %v1546_v27  ;;  %9561 = vmatprep.mubr.bf16.mxu1 %v1546_v27  ;;  %v13116_v27 = vld [vmem:[%s18048_s1 + $0x1c04] ss:$16 sps:$4 sm:$0xff]  }
 0x347   :  { %8671 = vmatpush1.bf16.msra.mxu0 %v13024_v28  ;;  %9532 = vmatpush1.bf16.msra.mxu1 %v13027_v29  ;;  %v13119_v28 = vld [vmem:[%s18048_s1 + $0x1c0c] ss:$16 sps:$4 sm:$0xff]   ;;  %v1515_v29 = vcombine.high %v16650_v24, %v16650_v24 }
 0x348   :  { %8672 = vmatprep.subr.bf16.mxu0 %v13032_v19  ;;  %9533 = vmatprep.subr.bf16.mxu1 %v13035_v14  ;;  %v1544_v19 = vcombine.high %v16461_v22, %v16461_v22  ;;  %v13114_v14 = vld [vmem:[%s18048_s1 + $0x1c00] ss:$16 sps:$4 sm:$0xff]   ;;  %v13125_v22 = vld [vmem:[%s18048_s1 + $0x1c2c] ss:$16 sps:$4 sm:$0xff]  }
 0x34b   :  { %8673 = vmatpush1.bf16.msra.mxu0 %v13030_v30  ;;  %9534 = vmatpush1.bf16.msra.mxu1 %v13033_v31  ;;  %v13117_v30 = vld [vmem:[%s18048_s1 + $0x1c08] ss:$16 sps:$4 sm:$0xff]   ;;  %v13122_v31 = vld [vmem:[%s18048_s1 + $0x1c24] ss:$16 sps:$4 sm:$0xff]  }
 0x34c   :  { %8674 = vmatprep.subr.bf16.mxu0 %v13038_v25  ;;  %9535 = vmatprep.subr.bf16.mxu1 %v13041_v32  ;;  %v16681_v25 = vrot.slane %v1515_v29, %v13944_v49  ;;  %v13120_v32 = vld [vmem:[%s18048_s1 + $0x1c20] ss:$16 sps:$4 sm:$0xff]   ;;  %v13206_v29 = vld [vmem:[%s18048_s1 + $0x1de4] ss:$16 sps:$4 sm:$0xff]  }
 0x34f   :  { %8675 = vmatpush1.bf16.msra.mxu0 %v13036_v33  ;;  %9536 = vmatpush1.bf16.msra.mxu1 %v13039_v26  ;;  %v13123_v33 = vld [vmem:[%s18048_s1 + $0x1c28] ss:$16 sps:$4 sm:$0xff]   ;;  %v13128_v26 = vld [vmem:[%s18048_s1 + $0x1c44] ss:$16 sps:$4 sm:$0xff]  }
 0x350   :  { %8676 = vmatprep.subr.bf16.mxu0 %v13044_v36  ;;  %9537 = vmatprep.subr.bf16.mxu1 %v13047_v37  ;;  %v13131_v36 = vld [vmem:[%s18048_s1 + $0x1c4c] ss:$16 sps:$4 sm:$0xff]   ;;  %v13126_v37 = vld [vmem:[%s18048_s1 + $0x1c40] ss:$16 sps:$4 sm:$0xff]  }
 0x353   :  { %8677 = vmatpush1.bf16.msra.mxu0 %v13042_v21  ;;  %9538 = vmatpush1.bf16.msra.mxu1 %v13045_v39  ;;  %v13129_v21 = vld [vmem:[%s18048_s1 + $0x1c48] ss:$16 sps:$4 sm:$0xff]   ;;  %v13134_v39 = vld [vmem:[%s18048_s1 + $0x1c64] ss:$16 sps:$4 sm:$0xff]  }
 0x354   :  { %8678 = vmatprep.subr.bf16.mxu0 %v13050_v40  ;;  %9539 = vmatprep.subr.bf16.mxu1 %v13053_v41  ;;  %v13137_v40 = vld [vmem:[%s18048_s1 + $0x1c6c] ss:$16 sps:$4 sm:$0xff]   ;;  %v13132_v41 = vld [vmem:[%s18048_s1 + $0x1c60] ss:$16 sps:$4 sm:$0xff]  }
 0x357   :  { %8679 = vmatpush1.bf16.msra.mxu0 %v13048_v34  ;;  %9540 = vmatpush1.bf16.msra.mxu1 %v13051_v43  ;;  %v13135_v34 = vld [vmem:[%s18048_s1 + $0x1c68] ss:$16 sps:$4 sm:$0xff]   ;;  %v13140_v43 = vld [vmem:[%s18048_s1 + $0x1c84] ss:$16 sps:$4 sm:$0xff]  }
 0x358   :  { %8680 = vmatprep.subr.bf16.mxu0 %v13056_v45  ;;  %9541 = vmatprep.subr.bf16.mxu1 %v13059_v46  ;;  %v13143_v45 = vld [vmem:[%s18048_s1 + $0x1c8c] ss:$16 sps:$4 sm:$0xff]   ;;  %v13138_v46 = vld [vmem:[%s18048_s1 + $0x1c80] ss:$16 sps:$4 sm:$0xff]  }
 0x35b   :  { %8681 = vmatpush1.bf16.msra.mxu0 %v13054_v35  ;;  %9542 = vmatpush1.bf16.msra.mxu1 %v13057_v50  ;;  %v13141_v35 = vld [vmem:[%s18048_s1 + $0x1c88] ss:$16 sps:$4 sm:$0xff]   ;;  %v13146_v50 = vld [vmem:[%s18048_s1 + $0x1ca4] ss:$16 sps:$4 sm:$0xff]  }
 0x35c   :  { %8682 = vmatprep.subr.bf16.mxu0 %v13062_v51  ;;  %9543 = vmatprep.subr.bf16.mxu1 %v13065_v53  ;;  %v13149_v51 = vld [vmem:[%s18048_s1 + $0x1cac] ss:$16 sps:$4 sm:$0xff]   ;;  %v13144_v53 = vld [vmem:[%s18048_s1 + $0x1ca0] ss:$16 sps:$4 sm:$0xff]  }
 0x35f   :  { %8683 = vmatpush1.bf16.msra.mxu0 %v13060_v38  ;;  %9544 = vmatpush1.bf16.msra.mxu1 %v13063_v54  ;;  %v13147_v38 = vld [vmem:[%s18048_s1 + $0x1ca8] ss:$16 sps:$4 sm:$0xff]   ;;  %v13152_v54 = vld [vmem:[%s18048_s1 + $0x1cc4] ss:$16 sps:$4 sm:$0xff]  }
 0x360   :  { %8684 = vmatprep.subr.bf16.mxu0 %v13068_v55  ;;  %9545 = vmatprep.subr.bf16.mxu1 %v13071_v56  ;;  %v13155_v55 = vld [vmem:[%s18048_s1 + $0x1ccc] ss:$16 sps:$4 sm:$0xff]   ;;  %v13150_v56 = vld [vmem:[%s18048_s1 + $0x1cc0] ss:$16 sps:$4 sm:$0xff]  }
 0x363   :  { %8685 = vmatpush1.bf16.msra.mxu0 %v13066_v47  ;;  %9546 = vmatpush1.bf16.msra.mxu1 %v13069_v57  ;;  %v13153_v47 = vld [vmem:[%s18048_s1 + $0x1cc8] ss:$16 sps:$4 sm:$0xff]   ;;  %v13158_v57 = vld [vmem:[%s18048_s1 + $0x1ce4] ss:$16 sps:$4 sm:$0xff]  }
 0x364   :  { %8686 = vmatprep.subr.bf16.mxu0 %v13074_v58  ;;  %9547 = vmatprep.subr.bf16.mxu1 %v13077_v48  ;;  %v13161_v58 = vld [vmem:[%s18048_s1 + $0x1cec] ss:$16 sps:$4 sm:$0xff]   ;;  %v13156_v48 = vld [vmem:[%s18048_s1 + $0x1ce0] ss:$16 sps:$4 sm:$0xff]  }
 0x367   :  { %8687 = vmatpush1.bf16.msra.mxu0 %v13072_v61  ;;  %9548 = vmatpush1.bf16.msra.mxu1 %v13075_v62  ;;  %v13159_v61 = vld [vmem:[%s18048_s1 + $0x1ce8] ss:$16 sps:$4 sm:$0xff]   ;;  %v13164_v62 = vld [vmem:[%s18048_s1 + $0x1d04] ss:$16 sps:$4 sm:$0xff]  }
 0x368   :  { %8688 = vmatprep.subr.bf16.mxu0 %v13080_v44  ;;  %9549 = vmatprep.subr.bf16.mxu1 %v13083_v0  ;;  %v13167_v44 = vld [vmem:[%s18048_s1 + $0x1d0c] ss:$16 sps:$4 sm:$0xff]   ;;  %v13162_v0 = vld [vmem:[%s18048_s1 + $0x1d00] ss:$16 sps:$4 sm:$0xff]  }
 0x36b   :  { %8689 = vmatpush1.bf16.msra.mxu0 %v13078_v1  ;;  %9550 = vmatpush1.bf16.msra.mxu1 %v13081_v2  ;;  %v13165_v1 = vld [vmem:[%s18048_s1 + $0x1d08] ss:$16 sps:$4 sm:$0xff]   ;;  %v13170_v2 = vld [vmem:[%s18048_s1 + $0x1d24] ss:$16 sps:$4 sm:$0xff]  }
 0x36c   :  { %8690 = vmatprep.subr.bf16.mxu0 %v13086_v59  ;;  %9551 = vmatprep.subr.bf16.mxu1 %v13089_v3  ;;  %v13173_v59 = vld [vmem:[%s18048_s1 + $0x1d2c] ss:$16 sps:$4 sm:$0xff]   ;;  %v13168_v3 = vld [vmem:[%s18048_s1 + $0x1d20] ss:$16 sps:$4 sm:$0xff]  }
 0x36f   :  { %8691 = vmatpush1.bf16.msra.mxu0 %v13084_v5  ;;  %9552 = vmatpush1.bf16.msra.mxu1 %v13087_v6  ;;  %v13171_v5 = vld [vmem:[%s18048_s1 + $0x1d28] ss:$16 sps:$4 sm:$0xff]   ;;  %v13176_v6 = vld [vmem:[%s18048_s1 + $0x1d44] ss:$16 sps:$4 sm:$0xff]  }
 0x370   :  { %8692 = vmatprep.subr.bf16.mxu0 %v13092_v60  ;;  %9553 = vmatprep.subr.bf16.mxu1 %v13095_v9  ;;  %v13179_v60 = vld [vmem:[%s18048_s1 + $0x1d4c] ss:$16 sps:$4 sm:$0xff]   ;;  %v13174_v9 = vld [vmem:[%s18048_s1 + $0x1d40] ss:$16 sps:$4 sm:$0xff]  }
 0x373   :  { %8693 = vmatpush1.bf16.msra.mxu0 %v13090_v11  ;;  %9554 = vmatpush1.bf16.msra.mxu1 %v13093_v63  ;;  %v13177_v11 = vld [vmem:[%s18048_s1 + $0x1d48] ss:$16 sps:$4 sm:$0xff]   ;;  %v13182_v63 = vld [vmem:[%s18048_s1 + $0x1d64] ss:$16 sps:$4 sm:$0xff]  }
 0x374   :  { %8694 = vmatprep.subr.bf16.mxu0 %v13098_v12  ;;  %9555 = vmatprep.subr.bf16.mxu1 %v13101_v52  ;;  %v13185_v12 = vld [vmem:[%s18048_s1 + $0x1d6c] ss:$16 sps:$4 sm:$0xff]   ;;  %v13180_v52 = vld [vmem:[%s18048_s1 + $0x1d60] ss:$16 sps:$4 sm:$0xff]  }
 0x377   :  { %8695 = vmatpush1.bf16.msra.mxu0 %v13096_v15  ;;  %9556 = vmatpush1.bf16.msra.mxu1 %v13099_v7  ;;  %v13183_v15 = vld [vmem:[%s18048_s1 + $0x1d68] ss:$16 sps:$4 sm:$0xff]   ;;  %v13188_v7 = vld [vmem:[%s18048_s1 + $0x1d84] ss:$16 sps:$4 sm:$0xff]  }
 0x378   :  { %8696 = vmatprep.subr.bf16.mxu0 %v13104_v16  ;;  %9557 = vmatprep.subr.bf16.mxu1 %v13107_v17  ;;  %v13191_v16 = vld [vmem:[%s18048_s1 + $0x1d8c] ss:$16 sps:$4 sm:$0xff]   ;;  %v13186_v17 = vld [vmem:[%s18048_s1 + $0x1d80] ss:$16 sps:$4 sm:$0xff]  }
 0x37b   :  { %8697 = vmatpush1.bf16.msra.mxu0 %v13102_v8  ;;  %9558 = vmatpush1.bf16.msra.mxu1 %v13105_v20  ;;  %v13194_v8 = vld [vmem:[%s18048_s1 + $0x1da4] ss:$16 sps:$4 sm:$0xff]   ;;  %v13197_v20 = vld [vmem:[%s18048_s1 + $0x1dac] ss:$16 sps:$4 sm:$0xff]  }
 0x37c   :  { %8698 = vmatprep.subr.bf16.mxu0 %v13110_v23  ;;  %9559 = vmatprep.subr.bf16.mxu1 %v13113_v4  ;;  %v13192_v23 = vld [vmem:[%s18048_s1 + $0x1da0] ss:$16 sps:$4 sm:$0xff]   ;;  %v13195_v4 = vld [vmem:[%s18048_s1 + $0x1da8] ss:$16 sps:$4 sm:$0xff]  }
 0x37f   :  { %8699 = vmatpush1.bf16.msra.mxu0 %v13108_v13  ;;  %9560 = vmatpush1.bf16.msra.mxu1 %v13111_v10  ;;  %v13200_v13 = vld [vmem:[%s18048_s1 + $0x1dc4] ss:$16 sps:$4 sm:$0xff]   ;;  %v13203_v10 = vld [vmem:[%s18048_s1 + $0x1dcc] ss:$16 sps:$4 sm:$0xff]  }
 0x380   :  { %8709 = vmatprep.subr.bf16.mxu0 %v13116_v27  ;;  %9570 = vmatprep.subr.bf16.mxu1 %v13119_v28  ;;  %v13198_v27 = vld [vmem:[%s18048_s1 + $0x1dc0] ss:$16 sps:$4 sm:$0xff]   ;;  %v13201_v28 = vld [vmem:[%s18048_s1 + $0x1dc8] ss:$16 sps:$4 sm:$0xff]  }
 0x382   :  { %8701 = vmatmul.mubr.bf16.vlgmr.msra.gmra.mrb[0].mxu0 %v1544_v19  ;;  %9562 = vmatmul.mubr.bf16.vlgmr.msra.gmra.mrb[0].mxu1 %v1544_v19  ;;  %v13209_v19 = vld [vmem:[%s18048_s1 + $0x1dec] ss:$16 sps:$4 sm:$0xff]  }
 0x383   :  { %8710 = vmatpush1.bf16.msra.mxu0 %v13114_v14  ;;  %9571 = vmatpush1.bf16.msra.mxu1 %v13117_v30  ;;  %v13204_v14 = vld [vmem:[%s18048_s1 + $0x1de0] ss:$16 sps:$4 sm:$0xff]   ;;  %v13207_v30 = vld [vmem:[%s18048_s1 + $0x1de8] ss:$16 sps:$4 sm:$0xff]  }
 0x384   :  { %8711 = vmatprep.subr.bf16.mxu0 %v13122_v31  ;;  %9572 = vmatprep.subr.bf16.mxu1 %v13125_v22  ;;  %v13213_v31 = vld [vmem:[%s18048_s1 + $0x1e04] ss:$16 sps:$4 sm:$0xff]   ;;  %v13216_v22 = vld [vmem:[%s18048_s1 + $0x1e0c] ss:$16 sps:$4 sm:$0xff]  }
 0x385   :  { %8741 = vmatprep.mubr.bf16.mxu0 %v16681_v25  ;;  %9602 = vmatprep.mubr.bf16.mxu1 %v16681_v25 }
 0x387   :  { %8712 = vmatpush1.bf16.msra.mxu0 %v13120_v32  ;;  %9573 = vmatpush1.bf16.msra.mxu1 %v13123_v33  ;;  %v16867_v32 = vrot.slane %v16650_v24, %v13944_v49  ;;  %v13211_v33 = vld [vmem:[%s18048_s1 + $0x1e00] ss:$16 sps:$4 sm:$0xff]   ;;  %v13222_v24 = vld [vmem:[%s18048_s1 + $0x1e2c] ss:$16 sps:$4 sm:$0xff]  }
 0x388   :  { %8713 = vmatprep.subr.bf16.mxu0 %v13128_v26  ;;  %9574 = vmatprep.subr.bf16.mxu1 %v13131_v36  ;;  %v13214_v26 = vld [vmem:[%s18048_s1 + $0x1e08] ss:$16 sps:$4 sm:$0xff]   ;;  %v13219_v36 = vld [vmem:[%s18048_s1 + $0x1e24] ss:$16 sps:$4 sm:$0xff]  }
 0x38b   :  { %8714 = vmatpush1.bf16.msra.mxu0 %v13126_v37  ;;  %9575 = vmatpush1.bf16.msra.mxu1 %v13129_v21  ;;  %v1547_v37 = vcombine.high %v16681_v25, %v16681_v25  ;;  %v13217_v21 = vld [vmem:[%s18048_s1 + $0x1e20] ss:$16 sps:$4 sm:$0xff]   ;;  %v13225_v25 = vld [vmem:[%s18048_s1 + $0x1e44] ss:$16 sps:$4 sm:$0xff]  }
 0x38c   :  { %8715 = vmatprep.subr.bf16.mxu0 %v13134_v39  ;;  %9576 = vmatprep.subr.bf16.mxu1 %v13137_v40  ;;  %v13220_v39 = vld [vmem:[%s18048_s1 + $0x1e28] ss:$16 sps:$4 sm:$0xff]   ;;  %v13228_v40 = vld [vmem:[%s18048_s1 + $0x1e4c] ss:$16 sps:$4 sm:$0xff]  }
 0x38f   :  { %8716 = vmatpush1.bf16.msra.mxu0 %v13132_v41  ;;  %9577 = vmatpush1.bf16.msra.mxu1 %v13135_v34  ;;  %v13223_v41 = vld [vmem:[%s18048_s1 + $0x1e40] ss:$16 sps:$4 sm:$0xff]   ;;  %v13226_v34 = vld [vmem:[%s18048_s1 + $0x1e48] ss:$16 sps:$4 sm:$0xff]  }
 0x390   :  { %8717 = vmatprep.subr.bf16.mxu0 %v13140_v43  ;;  %9578 = vmatprep.subr.bf16.mxu1 %v13143_v45  ;;  %v13231_v43 = vld [vmem:[%s18048_s1 + $0x1e64] ss:$16 sps:$4 sm:$0xff]   ;;  %v13234_v45 = vld [vmem:[%s18048_s1 + $0x1e6c] ss:$16 sps:$4 sm:$0xff]  }
 0x393   :  { %8718 = vmatpush1.bf16.msra.mxu0 %v13138_v46  ;;  %9579 = vmatpush1.bf16.msra.mxu1 %v13141_v35  ;;  %v13229_v46 = vld [vmem:[%s18048_s1 + $0x1e60] ss:$16 sps:$4 sm:$0xff]   ;;  %v13232_v35 = vld [vmem:[%s18048_s1 + $0x1e68] ss:$16 sps:$4 sm:$0xff]  }
 0x394   :  { %8719 = vmatprep.subr.bf16.mxu0 %v13146_v50  ;;  %9580 = vmatprep.subr.bf16.mxu1 %v13149_v51  ;;  %v13237_v50 = vld [vmem:[%s18048_s1 + $0x1e84] ss:$16 sps:$4 sm:$0xff]   ;;  %v13240_v51 = vld [vmem:[%s18048_s1 + $0x1e8c] ss:$16 sps:$4 sm:$0xff]  }
 0x397   :  { %8720 = vmatpush1.bf16.msra.mxu0 %v13144_v53  ;;  %9581 = vmatpush1.bf16.msra.mxu1 %v13147_v38  ;;  %v13235_v53 = vld [vmem:[%s18048_s1 + $0x1e80] ss:$16 sps:$4 sm:$0xff]   ;;  %v13238_v38 = vld [vmem:[%s18048_s1 + $0x1e88] ss:$16 sps:$4 sm:$0xff]  }
 0x398   :  { %8721 = vmatprep.subr.bf16.mxu0 %v13152_v54  ;;  %9582 = vmatprep.subr.bf16.mxu1 %v13155_v55  ;;  %v13243_v54 = vld [vmem:[%s18048_s1 + $0x1ea4] ss:$16 sps:$4 sm:$0xff]   ;;  %v13246_v55 = vld [vmem:[%s18048_s1 + $0x1eac] ss:$16 sps:$4 sm:$0xff]  }
 0x39b   :  { %8722 = vmatpush1.bf16.msra.mxu0 %v13150_v56  ;;  %9583 = vmatpush1.bf16.msra.mxu1 %v13153_v47  ;;  %v13241_v56 = vld [vmem:[%s18048_s1 + $0x1ea0] ss:$16 sps:$4 sm:$0xff]   ;;  %v13244_v47 = vld [vmem:[%s18048_s1 + $0x1ea8] ss:$16 sps:$4 sm:$0xff]  }
 0x39c   :  { %8723 = vmatprep.subr.bf16.mxu0 %v13158_v57  ;;  %9584 = vmatprep.subr.bf16.mxu1 %v13161_v58  ;;  %v13249_v57 = vld [vmem:[%s18048_s1 + $0x1ec4] ss:$16 sps:$4 sm:$0xff]   ;;  %v13252_v58 = vld [vmem:[%s18048_s1 + $0x1ecc] ss:$16 sps:$4 sm:$0xff]  }
 0x39f   :  { %8724 = vmatpush1.bf16.msra.mxu0 %v13156_v48  ;;  %9585 = vmatpush1.bf16.msra.mxu1 %v13159_v61  ;;  %v13247_v48 = vld [vmem:[%s18048_s1 + $0x1ec0] ss:$16 sps:$4 sm:$0xff]   ;;  %v13250_v61 = vld [vmem:[%s18048_s1 + $0x1ec8] ss:$16 sps:$4 sm:$0xff]  }
 0x3a0   :  { %8725 = vmatprep.subr.bf16.mxu0 %v13164_v62  ;;  %9586 = vmatprep.subr.bf16.mxu1 %v13167_v44  ;;  %v13255_v62 = vld [vmem:[%s18048_s1 + $0x1ee4] ss:$16 sps:$4 sm:$0xff]   ;;  %v13258_v44 = vld [vmem:[%s18048_s1 + $0x1eec] ss:$16 sps:$4 sm:$0xff]  }
 0x3a3   :  { %8726 = vmatpush1.bf16.msra.mxu0 %v13162_v0  ;;  %9587 = vmatpush1.bf16.msra.mxu1 %v13165_v1  ;;  %v13253_v0 = vld [vmem:[%s18048_s1 + $0x1ee0] ss:$16 sps:$4 sm:$0xff]   ;;  %v13256_v1 = vld [vmem:[%s18048_s1 + $0x1ee8] ss:$16 sps:$4 sm:$0xff]  }
 0x3a4   :  { %8727 = vmatprep.subr.bf16.mxu0 %v13170_v2  ;;  %9588 = vmatprep.subr.bf16.mxu1 %v13173_v59  ;;  %v13261_v2 = vld [vmem:[%s18048_s1 + $0x1f04] ss:$16 sps:$4 sm:$0xff]   ;;  %v13264_v59 = vld [vmem:[%s18048_s1 + $0x1f0c] ss:$16 sps:$4 sm:$0xff]  }
 0x3a7   :  { %8728 = vmatpush1.bf16.msra.mxu0 %v13168_v3  ;;  %9589 = vmatpush1.bf16.msra.mxu1 %v13171_v5  ;;  %v13259_v3 = vld [vmem:[%s18048_s1 + $0x1f00] ss:$16 sps:$4 sm:$0xff]   ;;  %v13262_v5 = vld [vmem:[%s18048_s1 + $0x1f08] ss:$16 sps:$4 sm:$0xff]  }
 0x3a8   :  { %8729 = vmatprep.subr.bf16.mxu0 %v13176_v6  ;;  %9590 = vmatprep.subr.bf16.mxu1 %v13179_v60  ;;  %v13267_v6 = vld [vmem:[%s18048_s1 + $0x1f24] ss:$16 sps:$4 sm:$0xff]   ;;  %v13270_v60 = vld [vmem:[%s18048_s1 + $0x1f2c] ss:$16 sps:$4 sm:$0xff]  }
 0x3ab   :  { %8730 = vmatpush1.bf16.msra.mxu0 %v13174_v9  ;;  %9591 = vmatpush1.bf16.msra.mxu1 %v13177_v11  ;;  %v13265_v9 = vld [vmem:[%s18048_s1 + $0x1f20] ss:$16 sps:$4 sm:$0xff]   ;;  %v13268_v11 = vld [vmem:[%s18048_s1 + $0x1f28] ss:$16 sps:$4 sm:$0xff]  }
 0x3ac   :  { %8731 = vmatprep.subr.bf16.mxu0 %v13182_v63  ;;  %9592 = vmatprep.subr.bf16.mxu1 %v13185_v12  ;;  %v13273_v63 = vld [vmem:[%s18048_s1 + $0x1f44] ss:$16 sps:$4 sm:$0xff]   ;;  %v13276_v12 = vld [vmem:[%s18048_s1 + $0x1f4c] ss:$16 sps:$4 sm:$0xff]  }
 0x3af   :  { %8732 = vmatpush1.bf16.msra.mxu0 %v13180_v52  ;;  %9593 = vmatpush1.bf16.msra.mxu1 %v13183_v15  ;;  %v13271_v52 = vld [vmem:[%s18048_s1 + $0x1f40] ss:$16 sps:$4 sm:$0xff]   ;;  %v13274_v15 = vld [vmem:[%s18048_s1 + $0x1f48] ss:$16 sps:$4 sm:$0xff]  }
 0x3b0   :  { %8733 = vmatprep.subr.bf16.mxu0 %v13188_v7  ;;  %9594 = vmatprep.subr.bf16.mxu1 %v13191_v16  ;;  %v13279_v7 = vld [vmem:[%s18048_s1 + $0x1f64] ss:$16 sps:$4 sm:$0xff]   ;;  %v13282_v16 = vld [vmem:[%s18048_s1 + $0x1f6c] ss:$16 sps:$4 sm:$0xff]  }
 0x3b3   :  { %8734 = vmatpush1.bf16.msra.mxu0 %v13186_v17  ;;  %9595 = vmatpush1.bf16.msra.mxu1 %v13189_v18  ;;  %v13277_v17 = vld [vmem:[%s18048_s1 + $0x1f60] ss:$16 sps:$4 sm:$0xff]   ;;  %v13280_v18 = vld [vmem:[%s18048_s1 + $0x1f68] ss:$16 sps:$4 sm:$0xff]  }
 0x3b4   :  { %8735 = vmatprep.subr.bf16.mxu0 %v13194_v8  ;;  %9596 = vmatprep.subr.bf16.mxu1 %v13197_v20  ;;  %v13285_v8 = vld [vmem:[%s18048_s1 + $0x1f84] ss:$16 sps:$4 sm:$0xff]   ;;  %v13288_v20 = vld [vmem:[%s18048_s1 + $0x1f8c] ss:$16 sps:$4 sm:$0xff]  }
 0x3b7   :  { %8736 = vmatpush1.bf16.msra.mxu0 %v13192_v23  ;;  %9597 = vmatpush1.bf16.msra.mxu1 %v13195_v4  ;;  %v13283_v23 = vld [vmem:[%s18048_s1 + $0x1f80] ss:$16 sps:$4 sm:$0xff]   ;;  %v13286_v4 = vld [vmem:[%s18048_s1 + $0x1f88] ss:$16 sps:$4 sm:$0xff]  }
 0x3b8   :  { %8737 = vmatprep.subr.bf16.mxu0 %v13200_v13  ;;  %9598 = vmatprep.subr.bf16.mxu1 %v13203_v10  ;;  %v13291_v13 = vld [vmem:[%s18048_s1 + $0x1fa4] ss:$16 sps:$4 sm:$0xff]   ;;  %v13294_v10 = vld [vmem:[%s18048_s1 + $0x1fac] ss:$16 sps:$4 sm:$0xff]  }
 0x3bb   :  { %8738 = vmatpush1.bf16.msra.mxu0 %v13198_v27  ;;  %9599 = vmatpush1.bf16.msra.mxu1 %v13201_v28  ;;  %v13289_v27 = vld [vmem:[%s18048_s1 + $0x1fa0] ss:$16 sps:$4 sm:$0xff]   ;;  %v13292_v28 = vld [vmem:[%s18048_s1 + $0x1fa8] ss:$16 sps:$4 sm:$0xff]  }
 0x3bc   :  { %8739 = vmatprep.subr.bf16.mxu0 %v13206_v29  ;;  %9600 = vmatprep.subr.bf16.mxu1 %v13209_v19  ;;  %v13297_v29 = vld [vmem:[%s18048_s1 + $0x1fc4] ss:$16 sps:$4 sm:$0xff]   ;;  %v13300_v19 = vld [vmem:[%s18048_s1 + $0x1fcc] ss:$16 sps:$4 sm:$0xff]  }
 0x3bf   :  { %8740 = vmatpush1.bf16.msra.mxu0 %v13204_v14  ;;  %9601 = vmatpush1.bf16.msra.mxu1 %v13207_v30  ;;  %v17044_v14 = vld [vmem:[%s18047_s0 + $0x20] sm:$0xff] }
 0x3c0   :  { %8750 = vmatprep.subr.bf16.mxu0 %v13213_v31  ;;  %9611 = vmatprep.subr.bf16.mxu1 %v13216_v22  ;;  %v13295_v30 = vld [vmem:[%s18048_s1 + $0x1fc0] ss:$16 sps:$4 sm:$0xff]   ;;  %v13298_v31 = vld [vmem:[%s18048_s1 + $0x1fc8] ss:$16 sps:$4 sm:$0xff]   ;;  %v13303_v22 = vld [vmem:[%s18048_s1 + $0x1fe4] ss:$16 sps:$4 sm:$0xff]  }
 0x3c2   :  { %8742 = vmatmul.mubr.bf16.vlgmr.msra.gmra.mrb[0].mxu0 %v16867_v32  ;;  %9603 = vmatmul.mubr.bf16.vlgmr.msra.gmra.mrb[0].mxu1 %v16867_v32 }
 0x3c3   :  { %8751 = vmatpush1.bf16.msra.mxu0 %v13211_v33  ;;  %9612 = vmatpush1.bf16.msra.mxu1 %v13214_v26  ;;  %v13306_v33 = vld [vmem:[%s18048_s1 + $0x1fec] ss:$16 sps:$4 sm:$0xff]   ;;  %v17060_v26 = vrot.slane %v17044_v14, %v13944_v49 }
 0x3c4   :  { %8752 = vmatprep.subr.bf16.mxu0 %v13219_v36  ;;  %9613 = vmatprep.subr.bf16.mxu1 %v13222_v24  ;;  %v13301_v36 = vld [vmem:[%s18048_s1 + $0x1fe0] ss:$16 sps:$4 sm:$0xff]   ;;  %v13304_v24 = vld [vmem:[%s18048_s1 + $0x1fe8] ss:$16 sps:$4 sm:$0xff]  }
 0x3c5   :  { %8782 = vmatprep.mubr.bf16.mxu0 %v1547_v37  ;;  %9643 = vmatprep.mubr.bf16.mxu1 %v1547_v37  ;;  %v13309_v37 = vld [vmem:[%s18048_s1 + $0x2004] ss:$16 sps:$4 sm:$0xff]  }
 0x3c7   :  { %8753 = vmatpush1.bf16.msra.mxu0 %v13217_v21  ;;  %9614 = vmatpush1.bf16.msra.mxu1 %v13220_v39  ;;  %v13312_v21 = vld [vmem:[%s18048_s1 + $0x200c] ss:$16 sps:$4 sm:$0xff]   ;;  %v1563_v39 = vcombine.high %v17060_v26, %v17060_v26 }
 0x3c8   :  { %8754 = vmatprep.subr.bf16.mxu0 %v13225_v25  ;;  %9615 = vmatprep.subr.bf16.mxu1 %v13228_v40  ;;  %v1545_v25 = vcombine.high %v16867_v32, %v16867_v32  ;;  %v13307_v40 = vld [vmem:[%s18048_s1 + $0x2000] ss:$16 sps:$4 sm:$0xff]   ;;  %v13318_v32 = vld [vmem:[%s18048_s1 + $0x202c] ss:$16 sps:$4 sm:$0xff]  }
 0x3cb   :  { %8755 = vmatpush1.bf16.msra.mxu0 %v13223_v41  ;;  %9616 = vmatpush1.bf16.msra.mxu1 %v13226_v34  ;;  %v13310_v41 = vld [vmem:[%s18048_s1 + $0x2008] ss:$16 sps:$4 sm:$0xff]   ;;  %v13315_v34 = vld [vmem:[%s18048_s1 + $0x2024] ss:$16 sps:$4 sm:$0xff]  }
 0x3cc   :  { %8756 = vmatprep.subr.bf16.mxu0 %v13231_v43  ;;  %9617 = vmatprep.subr.bf16.mxu1 %v13234_v45  ;;  %v17091_v43 = vrot.slane %v1563_v39, %v13944_v49  ;;  %v13313_v45 = vld [vmem:[%s18048_s1 + $0x2020] ss:$16 sps:$4 sm:$0xff]   ;;  %v13394_v39 = vld [vmem:[%s18048_s1 + $0x21c8] ss:$16 sps:$4 sm:$0xff]  }
 0x3cf   :  { %8757 = vmatpush1.bf16.msra.mxu0 %v13229_v46  ;;  %9618 = vmatpush1.bf16.msra.mxu1 %v13232_v35  ;;  %v13316_v46 = vld [vmem:[%s18048_s1 + $0x2028] ss:$16 sps:$4 sm:$0xff]   ;;  %v13321_v35 = vld [vmem:[%s18048_s1 + $0x2044] ss:$16 sps:$4 sm:$0xff]  }
 0x3d0   :  { %8758 = vmatprep.subr.bf16.mxu0 %v13237_v50  ;;  %9619 = vmatprep.subr.bf16.mxu1 %v13240_v51  ;;  %v13324_v50 = vld [vmem:[%s18048_s1 + $0x204c] ss:$16 sps:$4 sm:$0xff]   ;;  %v13319_v51 = vld [vmem:[%s18048_s1 + $0x2040] ss:$16 sps:$4 sm:$0xff]  }
 0x3d3   :  { %8759 = vmatpush1.bf16.msra.mxu0 %v13235_v53  ;;  %9620 = vmatpush1.bf16.msra.mxu1 %v13238_v38  ;;  %v13322_v53 = vld [vmem:[%s18048_s1 + $0x2048] ss:$16 sps:$4 sm:$0xff]   ;;  %v13327_v38 = vld [vmem:[%s18048_s1 + $0x2064] ss:$16 sps:$4 sm:$0xff]  }
 0x3d4   :  { %8760 = vmatprep.subr.bf16.mxu0 %v13243_v54  ;;  %9621 = vmatprep.subr.bf16.mxu1 %v13246_v55  ;;  %v13330_v54 = vld [vmem:[%s18048_s1 + $0x206c] ss:$16 sps:$4 sm:$0xff]   ;;  %v13325_v55 = vld [vmem:[%s18048_s1 + $0x2060] ss:$16 sps:$4 sm:$0xff]  }
 0x3d7   :  { %8761 = vmatpush1.bf16.msra.mxu0 %v13241_v56  ;;  %9622 = vmatpush1.bf16.msra.mxu1 %v13244_v47  ;;  %v13328_v56 = vld [vmem:[%s18048_s1 + $0x2068] ss:$16 sps:$4 sm:$0xff]   ;;  %v13333_v47 = vld [vmem:[%s18048_s1 + $0x2084] ss:$16 sps:$4 sm:$0xff]  }
 0x3d8   :  { %8762 = vmatprep.subr.bf16.mxu0 %v13249_v57  ;;  %9623 = vmatprep.subr.bf16.mxu1 %v13252_v58  ;;  %v13336_v57 = vld [vmem:[%s18048_s1 + $0x208c] ss:$16 sps:$4 sm:$0xff]   ;;  %v13331_v58 = vld [vmem:[%s18048_s1 + $0x2080] ss:$16 sps:$4 sm:$0xff]  }
 0x3db   :  { %8763 = vmatpush1.bf16.msra.mxu0 %v13247_v48  ;;  %9624 = vmatpush1.bf16.msra.mxu1 %v13250_v61  ;;  %v13334_v48 = vld [vmem:[%s18048_s1 + $0x2088] ss:$16 sps:$4 sm:$0xff]   ;;  %v13339_v61 = vld [vmem:[%s18048_s1 + $0x20a4] ss:$16 sps:$4 sm:$0xff]  }
 0x3dc   :  { %8764 = vmatprep.subr.bf16.mxu0 %v13255_v62  ;;  %9625 = vmatprep.subr.bf16.mxu1 %v13258_v44  ;;  %v13342_v62 = vld [vmem:[%s18048_s1 + $0x20ac] ss:$16 sps:$4 sm:$0xff]   ;;  %v13337_v44 = vld [vmem:[%s18048_s1 + $0x20a0] ss:$16 sps:$4 sm:$0xff]  }
 0x3df   :  { %8765 = vmatpush1.bf16.msra.mxu0 %v13253_v0  ;;  %9626 = vmatpush1.bf16.msra.mxu1 %v13256_v1  ;;  %v13340_v0 = vld [vmem:[%s18048_s1 + $0x20a8] ss:$16 sps:$4 sm:$0xff]   ;;  %v13345_v1 = vld [vmem:[%s18048_s1 + $0x20c4] ss:$16 sps:$4 sm:$0xff]  }
 0x3e0   :  { %8766 = vmatprep.subr.bf16.mxu0 %v13261_v2  ;;  %9627 = vmatprep.subr.bf16.mxu1 %v13264_v59  ;;  %v13348_v2 = vld [vmem:[%s18048_s1 + $0x20cc] ss:$16 sps:$4 sm:$0xff]   ;;  %v13343_v59 = vld [vmem:[%s18048_s1 + $0x20c0] ss:$16 sps:$4 sm:$0xff]  }
 0x3e3   :  { %8767 = vmatpush1.bf16.msra.mxu0 %v13259_v3  ;;  %9628 = vmatpush1.bf16.msra.mxu1 %v13262_v5  ;;  %v13346_v3 = vld [vmem:[%s18048_s1 + $0x20c8] ss:$16 sps:$4 sm:$0xff]   ;;  %v13351_v5 = vld [vmem:[%s18048_s1 + $0x20e4] ss:$16 sps:$4 sm:$0xff]  }
 0x3e4   :  { %8768 = vmatprep.subr.bf16.mxu0 %v13267_v6  ;;  %9629 = vmatprep.subr.bf16.mxu1 %v13270_v60  ;;  %v13354_v6 = vld [vmem:[%s18048_s1 + $0x20ec] ss:$16 sps:$4 sm:$0xff]   ;;  %v13349_v60 = vld [vmem:[%s18048_s1 + $0x20e0] ss:$16 sps:$4 sm:$0xff]  }
 0x3e7   :  { %8769 = vmatpush1.bf16.msra.mxu0 %v13265_v9  ;;  %9630 = vmatpush1.bf16.msra.mxu1 %v13268_v11  ;;  %v13352_v9 = vld [vmem:[%s18048_s1 + $0x20e8] ss:$16 sps:$4 sm:$0xff]   ;;  %v13357_v11 = vld [vmem:[%s18048_s1 + $0x2104] ss:$16 sps:$4 sm:$0xff]  }
 0x3e8   :  { %8770 = vmatprep.subr.bf16.mxu0 %v13273_v63  ;;  %9631 = vmatprep.subr.bf16.mxu1 %v13276_v12  ;;  %v13360_v63 = vld [vmem:[%s18048_s1 + $0x210c] ss:$16 sps:$4 sm:$0xff]   ;;  %v13355_v12 = vld [vmem:[%s18048_s1 + $0x2100] ss:$16 sps:$4 sm:$0xff]  }
 0x3eb   :  { %8771 = vmatpush1.bf16.msra.mxu0 %v13271_v52  ;;  %9632 = vmatpush1.bf16.msra.mxu1 %v13274_v15  ;;  %v13358_v52 = vld [vmem:[%s18048_s1 + $0x2108] ss:$16 sps:$4 sm:$0xff]   ;;  %v13363_v15 = vld [vmem:[%s18048_s1 + $0x2124] ss:$16 sps:$4 sm:$0xff]  }
 0x3ec   :  { %8772 = vmatprep.subr.bf16.mxu0 %v13279_v7  ;;  %9633 = vmatprep.subr.bf16.mxu1 %v13282_v16  ;;  %v13366_v7 = vld [vmem:[%s18048_s1 + $0x212c] ss:$16 sps:$4 sm:$0xff]   ;;  %v13361_v16 = vld [vmem:[%s18048_s1 + $0x2120] ss:$16 sps:$4 sm:$0xff]  }
 0x3ef   :  { %8773 = vmatpush1.bf16.msra.mxu0 %v13277_v17  ;;  %9634 = vmatpush1.bf16.msra.mxu1 %v13280_v18  ;;  %v13364_v17 = vld [vmem:[%s18048_s1 + $0x2128] ss:$16 sps:$4 sm:$0xff]   ;;  %v13369_v18 = vld [vmem:[%s18048_s1 + $0x2144] ss:$16 sps:$4 sm:$0xff]  }
 0x3f0   :  { %8774 = vmatprep.subr.bf16.mxu0 %v13285_v8  ;;  %9635 = vmatprep.subr.bf16.mxu1 %v13288_v20  ;;  %v13372_v8 = vld [vmem:[%s18048_s1 + $0x214c] ss:$16 sps:$4 sm:$0xff]   ;;  %v13367_v20 = vld [vmem:[%s18048_s1 + $0x2140] ss:$16 sps:$4 sm:$0xff]  }
 0x3f3   :  { %8775 = vmatpush1.bf16.msra.mxu0 %v13283_v23  ;;  %9636 = vmatpush1.bf16.msra.mxu1 %v13286_v4  ;;  %v13370_v23 = vld [vmem:[%s18048_s1 + $0x2148] ss:$16 sps:$4 sm:$0xff]   ;;  %v13375_v4 = vld [vmem:[%s18048_s1 + $0x2164] ss:$16 sps:$4 sm:$0xff]  }
 0x3f4   :  { %8776 = vmatprep.subr.bf16.mxu0 %v13291_v13  ;;  %9637 = vmatprep.subr.bf16.mxu1 %v13294_v10  ;;  %v13378_v13 = vld [vmem:[%s18048_s1 + $0x216c] ss:$16 sps:$4 sm:$0xff]   ;;  %v13373_v10 = vld [vmem:[%s18048_s1 + $0x2160] ss:$16 sps:$4 sm:$0xff]  }
 0x3f7   :  { %8777 = vmatpush1.bf16.msra.mxu0 %v13289_v27  ;;  %9638 = vmatpush1.bf16.msra.mxu1 %v13292_v28  ;;  %v13376_v27 = vld [vmem:[%s18048_s1 + $0x2168] ss:$16 sps:$4 sm:$0xff]   ;;  %v13381_v28 = vld [vmem:[%s18048_s1 + $0x2184] ss:$16 sps:$4 sm:$0xff]  }
 0x3f8   :  { %8778 = vmatprep.subr.bf16.mxu0 %v13297_v29  ;;  %9639 = vmatprep.subr.bf16.mxu1 %v13300_v19  ;;  %v13384_v29 = vld [vmem:[%s18048_s1 + $0x218c] ss:$16 sps:$4 sm:$0xff]   ;;  %v13379_v19 = vld [vmem:[%s18048_s1 + $0x2180] ss:$16 sps:$4 sm:$0xff]  }
 0x3fb   :  { %8779 = vmatpush1.bf16.msra.mxu0 %v13295_v30  ;;  %9640 = vmatpush1.bf16.msra.mxu1 %v13298_v31  ;;  %v13382_v30 = vld [vmem:[%s18048_s1 + $0x2188] ss:$16 sps:$4 sm:$0xff]   ;;  %v13387_v31 = vld [vmem:[%s18048_s1 + $0x21a4] ss:$16 sps:$4 sm:$0xff]  }
 0x3fc   :  { %8780 = vmatprep.subr.bf16.mxu0 %v13303_v22  ;;  %9641 = vmatprep.subr.bf16.mxu1 %v13306_v33  ;;  %v13390_v22 = vld [vmem:[%s18048_s1 + $0x21ac] ss:$16 sps:$4 sm:$0xff]   ;;  %v13385_v33 = vld [vmem:[%s18048_s1 + $0x21a0] ss:$16 sps:$4 sm:$0xff]  }
 0x3ff   :  { %8781 = vmatpush1.bf16.msra.mxu0 %v13301_v36  ;;  %9642 = vmatpush1.bf16.msra.mxu1 %v13304_v24  ;;  %v13388_v36 = vld [vmem:[%s18048_s1 + $0x21a8] ss:$16 sps:$4 sm:$0xff]   ;;  %v13393_v24 = vld [vmem:[%s18048_s1 + $0x21c4] ss:$16 sps:$4 sm:$0xff]  }
 0x400   :  { %8791 = vmatprep.subr.bf16.mxu0 %v13309_v37  ;;  %9652 = vmatprep.subr.bf16.mxu1 %v13312_v21  ;;  %v13396_v37 = vld [vmem:[%s18048_s1 + $0x21cc] ss:$16 sps:$4 sm:$0xff]   ;;  %v13391_v21 = vld [vmem:[%s18048_s1 + $0x21c0] ss:$16 sps:$4 sm:$0xff]  }
 0x402   :  { %8783 = vmatmul.mubr.bf16.vlgmr.msra.gmra.mrb[0].mxu0 %v1545_v25  ;;  %9644 = vmatmul.mubr.bf16.vlgmr.msra.gmra.mrb[0].mxu1 %v1545_v25  ;;  %v13399_v25 = vld [vmem:[%s18048_s1 + $0x21e4] ss:$16 sps:$4 sm:$0xff]  }
 0x403   :  { %8792 = vmatpush1.bf16.msra.mxu0 %v13307_v40  ;;  %9653 = vmatpush1.bf16.msra.mxu1 %v13310_v41  ;;  %v13402_v40 = vld [vmem:[%s18048_s1 + $0x21ec] ss:$16 sps:$4 sm:$0xff]   ;;  %v13397_v41 = vld [vmem:[%s18048_s1 + $0x21e0] ss:$16 sps:$4 sm:$0xff]  }
 0x404   :  { %8793 = vmatprep.subr.bf16.mxu0 %v13315_v34  ;;  %9654 = vmatprep.subr.bf16.mxu1 %v13318_v32  ;;  %v13400_v34 = vld [vmem:[%s18048_s1 + $0x21e8] ss:$16 sps:$4 sm:$0xff]   ;;  %v13405_v32 = vld [vmem:[%s18048_s1 + $0x2204] ss:$16 sps:$4 sm:$0xff]  }
 0x405   :  { %8823 = vmatprep.mubr.bf16.mxu0 %v17091_v43  ;;  %9684 = vmatprep.mubr.bf16.mxu1 %v17091_v43 }
 0x407   :  { %8794 = vmatpush1.bf16.msra.mxu0 %v13313_v45  ;;  %9655 = vmatpush1.bf16.msra.mxu1 %v13316_v46  ;;  %v13408_v45 = vld [vmem:[%s18048_s1 + $0x220c] ss:$16 sps:$4 sm:$0xff]   ;;  %v17277_v46 = vrot.slane %v17060_v26, %v13944_v49 }
 0x408   :  { %8795 = vmatprep.subr.bf16.mxu0 %v13321_v35  ;;  %9656 = vmatprep.subr.bf16.mxu1 %v13324_v50  ;;  %v13403_v35 = vld [vmem:[%s18048_s1 + $0x2200] ss:$16 sps:$4 sm:$0xff]   ;;  %v13406_v50 = vld [vmem:[%s18048_s1 + $0x2208] ss:$16 sps:$4 sm:$0xff]   ;;  %v13414_v26 = vld [vmem:[%s18048_s1 + $0x222c] ss:$16 sps:$4 sm:$0xff]  }
 0x40b   :  { %8796 = vmatpush1.bf16.msra.mxu0 %v13319_v51  ;;  %9657 = vmatpush1.bf16.msra.mxu1 %v13322_v53  ;;  %v13411_v51 = vld [vmem:[%s18048_s1 + $0x2224] ss:$16 sps:$4 sm:$0xff]   ;;  %v1595_v53 = vcombine.high %v17091_v43, %v17091_v43 }
 0x40c   :  { %8797 = vmatprep.subr.bf16.mxu0 %v13327_v38  ;;  %9658 = vmatprep.subr.bf16.mxu1 %v13330_v54  ;;  %v13409_v38 = vld [vmem:[%s18048_s1 + $0x2220] ss:$16 sps:$4 sm:$0xff]   ;;  %v13412_v54 = vld [vmem:[%s18048_s1 + $0x2228] ss:$16 sps:$4 sm:$0xff]   ;;  %v13417_v43 = vld [vmem:[%s18048_s1 + $0x2244] ss:$16 sps:$4 sm:$0xff]  }
 0x40f   :  { %8798 = vmatpush1.bf16.msra.mxu0 %v13325_v55  ;;  %9659 = vmatpush1.bf16.msra.mxu1 %v13328_v56  ;;  %v13420_v55 = vld [vmem:[%s18048_s1 + $0x224c] ss:$16 sps:$4 sm:$0xff]   ;;  %v13415_v56 = vld [vmem:[%s18048_s1 + $0x2240] ss:$16 sps:$4 sm:$0xff]  }
 0x410   :  { %8799 = vmatprep.subr.bf16.mxu0 %v13333_v47  ;;  %9660 = vmatprep.subr.bf16.mxu1 %v13336_v57  ;;  %v13418_v47 = vld [vmem:[%s18048_s1 + $0x2248] ss:$16 sps:$4 sm:$0xff]   ;;  %v13423_v57 = vld [vmem:[%s18048_s1 + $0x2264] ss:$16 sps:$4 sm:$0xff]  }
 0x413   :  { %8800 = vmatpush1.bf16.msra.mxu0 %v13331_v58  ;;  %9661 = vmatpush1.bf16.msra.mxu1 %v13334_v48  ;;  %v13426_v58 = vld [vmem:[%s18048_s1 + $0x226c] ss:$16 sps:$4 sm:$0xff]   ;;  %v13421_v48 = vld [vmem:[%s18048_s1 + $0x2260] ss:$16 sps:$4 sm:$0xff]  }
 0x414   :  { %8801 = vmatprep.subr.bf16.mxu0 %v13339_v61  ;;  %9662 = vmatprep.subr.bf16.mxu1 %v13342_v62  ;;  %v13424_v61 = vld [vmem:[%s18048_s1 + $0x2268] ss:$16 sps:$4 sm:$0xff]   ;;  %v13429_v62 = vld [vmem:[%s18048_s1 + $0x2284] ss:$16 sps:$4 sm:$0xff]  }
 0x417   :  { %8802 = vmatpush1.bf16.msra.mxu0 %v13337_v44  ;;  %9663 = vmatpush1.bf16.msra.mxu1 %v13340_v0  ;;  %v13432_v44 = vld [vmem:[%s18048_s1 + $0x228c] ss:$16 sps:$4 sm:$0xff]   ;;  %v13427_v0 = vld [vmem:[%s18048_s1 + $0x2280] ss:$16 sps:$4 sm:$0xff]  }
 0x418   :  { %8803 = vmatprep.subr.bf16.mxu0 %v13345_v1  ;;  %9664 = vmatprep.subr.bf16.mxu1 %v13348_v2  ;;  %v13430_v1 = vld [vmem:[%s18048_s1 + $0x2288] ss:$16 sps:$4 sm:$0xff]   ;;  %v13435_v2 = vld [vmem:[%s18048_s1 + $0x22a4] ss:$16 sps:$4 sm:$0xff]  }
 0x41b   :  { %8804 = vmatpush1.bf16.msra.mxu0 %v13343_v59  ;;  %9665 = vmatpush1.bf16.msra.mxu1 %v13346_v3  ;;  %v13438_v59 = vld [vmem:[%s18048_s1 + $0x22ac] ss:$16 sps:$4 sm:$0xff]   ;;  %v13433_v3 = vld [vmem:[%s18048_s1 + $0x22a0] ss:$16 sps:$4 sm:$0xff]  }
 0x41c   :  { %8805 = vmatprep.subr.bf16.mxu0 %v13351_v5  ;;  %9666 = vmatprep.subr.bf16.mxu1 %v13354_v6  ;;  %v13436_v5 = vld [vmem:[%s18048_s1 + $0x22a8] ss:$16 sps:$4 sm:$0xff]   ;;  %v13441_v6 = vld [vmem:[%s18048_s1 + $0x22c4] ss:$16 sps:$4 sm:$0xff]  }
 0x41f   :  { %8806 = vmatpush1.bf16.msra.mxu0 %v13349_v60  ;;  %9667 = vmatpush1.bf16.msra.mxu1 %v13352_v9  ;;  %v13444_v60 = vld [vmem:[%s18048_s1 + $0x22cc] ss:$16 sps:$4 sm:$0xff]   ;;  %v13439_v9 = vld [vmem:[%s18048_s1 + $0x22c0] ss:$16 sps:$4 sm:$0xff]  }
 0x420   :  { %8807 = vmatprep.subr.bf16.mxu0 %v13357_v11  ;;  %9668 = vmatprep.subr.bf16.mxu1 %v13360_v63  ;;  %v13442_v11 = vld [vmem:[%s18048_s1 + $0x22c8] ss:$16 sps:$4 sm:$0xff]   ;;  %v13447_v63 = vld [vmem:[%s18048_s1 + $0x22e4] ss:$16 sps:$4 sm:$0xff]  }
 0x423   :  { %8808 = vmatpush1.bf16.msra.mxu0 %v13355_v12  ;;  %9669 = vmatpush1.bf16.msra.mxu1 %v13358_v52  ;;  %v13450_v12 = vld [vmem:[%s18048_s1 + $0x22ec] ss:$16 sps:$4 sm:$0xff]   ;;  %v13445_v52 = vld [vmem:[%s18048_s1 + $0x22e0] ss:$16 sps:$4 sm:$0xff]  }
 0x424   :  { %8809 = vmatprep.subr.bf16.mxu0 %v13363_v15  ;;  %9670 = vmatprep.subr.bf16.mxu1 %v13366_v7  ;;  %v13448_v15 = vld [vmem:[%s18048_s1 + $0x22e8] ss:$16 sps:$4 sm:$0xff]   ;;  %v13453_v7 = vld [vmem:[%s18048_s1 + $0x2304] ss:$16 sps:$4 sm:$0xff]  }
 0x427   :  { %8810 = vmatpush1.bf16.msra.mxu0 %v13361_v16  ;;  %9671 = vmatpush1.bf16.msra.mxu1 %v13364_v17  ;;  %v13456_v16 = vld [vmem:[%s18048_s1 + $0x230c] ss:$16 sps:$4 sm:$0xff]   ;;  %v13451_v17 = vld [vmem:[%s18048_s1 + $0x2300] ss:$16 sps:$4 sm:$0xff]  }
 0x428   :  { %8811 = vmatprep.subr.bf16.mxu0 %v13369_v18  ;;  %9672 = vmatprep.subr.bf16.mxu1 %v13372_v8  ;;  %v13454_v18 = vld [vmem:[%s18048_s1 + $0x2308] ss:$16 sps:$4 sm:$0xff]   ;;  %v13459_v8 = vld [vmem:[%s18048_s1 + $0x2324] ss:$16 sps:$4 sm:$0xff]  }
 0x42b   :  { %8812 = vmatpush1.bf16.msra.mxu0 %v13367_v20  ;;  %9673 = vmatpush1.bf16.msra.mxu1 %v13370_v23  ;;  %v13462_v20 = vld [vmem:[%s18048_s1 + $0x232c] ss:$16 sps:$4 sm:$0xff]   ;;  %v13457_v23 = vld [vmem:[%s18048_s1 + $0x2320] ss:$16 sps:$4 sm:$0xff]  }
 0x42c   :  { %8813 = vmatprep.subr.bf16.mxu0 %v13375_v4  ;;  %9674 = vmatprep.subr.bf16.mxu1 %v13378_v13  ;;  %v13460_v4 = vld [vmem:[%s18048_s1 + $0x2328] ss:$16 sps:$4 sm:$0xff]   ;;  %v13465_v13 = vld [vmem:[%s18048_s1 + $0x2344] ss:$16 sps:$4 sm:$0xff]  }
 0x42f   :  { %8814 = vmatpush1.bf16.msra.mxu0 %v13373_v10  ;;  %9675 = vmatpush1.bf16.msra.mxu1 %v13376_v27  ;;  %v13468_v10 = vld [vmem:[%s18048_s1 + $0x234c] ss:$16 sps:$4 sm:$0xff]   ;;  %v13463_v27 = vld [vmem:[%s18048_s1 + $0x2340] ss:$16 sps:$4 sm:$0xff]  }
 0x430   :  { %8815 = vmatprep.subr.bf16.mxu0 %v13381_v28  ;;  %9676 = vmatprep.subr.bf16.mxu1 %v13384_v29  ;;  %v13466_v28 = vld [vmem:[%s18048_s1 + $0x2348] ss:$16 sps:$4 sm:$0xff]   ;;  %v13471_v29 = vld [vmem:[%s18048_s1 + $0x2364] ss:$16 sps:$4 sm:$0xff]  }
 0x433   :  { %8816 = vmatpush1.bf16.msra.mxu0 %v13379_v19  ;;  %9677 = vmatpush1.bf16.msra.mxu1 %v13382_v30  ;;  %v13474_v19 = vld [vmem:[%s18048_s1 + $0x236c] ss:$16 sps:$4 sm:$0xff]   ;;  %v13469_v30 = vld [vmem:[%s18048_s1 + $0x2360] ss:$16 sps:$4 sm:$0xff]  }
 0x434   :  { %8817 = vmatprep.subr.bf16.mxu0 %v13387_v31  ;;  %9678 = vmatprep.subr.bf16.mxu1 %v13390_v22  ;;  %v13472_v31 = vld [vmem:[%s18048_s1 + $0x2368] ss:$16 sps:$4 sm:$0xff]   ;;  %v13477_v22 = vld [vmem:[%s18048_s1 + $0x2384] ss:$16 sps:$4 sm:$0xff]  }
 0x437   :  { %8818 = vmatpush1.bf16.msra.mxu0 %v13385_v33  ;;  %9679 = vmatpush1.bf16.msra.mxu1 %v13388_v36  ;;  %v13480_v33 = vld [vmem:[%s18048_s1 + $0x238c] ss:$16 sps:$4 sm:$0xff]   ;;  %v13475_v36 = vld [vmem:[%s18048_s1 + $0x2380] ss:$16 sps:$4 sm:$0xff]  }
 0x438   :  { %8819 = vmatprep.subr.bf16.mxu0 %v13393_v24  ;;  %9680 = vmatprep.subr.bf16.mxu1 %v13396_v37  ;;  %v13478_v24 = vld [vmem:[%s18048_s1 + $0x2388] ss:$16 sps:$4 sm:$0xff]   ;;  %v13483_v37 = vld [vmem:[%s18048_s1 + $0x23a4] ss:$16 sps:$4 sm:$0xff]  }
 0x43b   :  { %8820 = vmatpush1.bf16.msra.mxu0 %v13391_v21  ;;  %9681 = vmatpush1.bf16.msra.mxu1 %v13394_v39  ;;  %v13486_v21 = vld [vmem:[%s18048_s1 + $0x23ac] ss:$16 sps:$4 sm:$0xff]   ;;  %v13481_v39 = vld [vmem:[%s18048_s1 + $0x23a0] ss:$16 sps:$4 sm:$0xff]  }
 0x43c   :  { %8821 = vmatprep.subr.bf16.mxu0 %v13399_v25  ;;  %9682 = vmatprep.subr.bf16.mxu1 %v13402_v40  ;;  %v13484_v25 = vld [vmem:[%s18048_s1 + $0x23a8] ss:$16 sps:$4 sm:$0xff]   ;;  %v13489_v40 = vld [vmem:[%s18048_s1 + $0x23c4] ss:$16 sps:$4 sm:$0xff]  }
 0x43f   :  { %8822 = vmatpush1.bf16.msra.mxu0 %v13397_v41  ;;  %9683 = vmatpush1.bf16.msra.mxu1 %v13400_v34  ;;  %v13492_v41 = vld [vmem:[%s18048_s1 + $0x23cc] ss:$16 sps:$4 sm:$0xff]   ;;  %v1548_v34 = vcombine.high %v17044_v14, %v17044_v14 }
 0x440   :  { %8832 = vmatprep.subr.bf16.mxu0 %v13405_v32  ;;  %9693 = vmatprep.subr.bf16.mxu1 %v13408_v45  ;;  %v13487_v32 = vld [vmem:[%s18048_s1 + $0x23c0] ss:$16 sps:$4 sm:$0xff]   ;;  %v13490_v45 = vld [vmem:[%s18048_s1 + $0x23c8] ss:$16 sps:$4 sm:$0xff]   ;;  %v13498_v14 = vld [vmem:[%s18048_s1 + $0x23ec] ss:$16 sps:$4 sm:$0xff]  }
 0x442   :  { %8824 = vmatmul.mubr.bf16.vlgmr.msra.gmra.mrb[0].mxu0 %v17277_v46  ;;  %9685 = vmatmul.mubr.bf16.vlgmr.msra.gmra.mrb[0].mxu1 %v17277_v46 }
 0x443   :  { %8833 = vmatpush1.bf16.msra.mxu0 %v13403_v35  ;;  %9694 = vmatpush1.bf16.msra.mxu1 %v13406_v50  ;;  %v13495_v35 = vld [vmem:[%s18048_s1 + $0x23e4] ss:$16 sps:$4 sm:$0xff]   ;;  %v17466_v50 = vrot.slane %v1548_v34, %v13944_v49  ;;  %v13574_v34 = vld [vmem:[%s18048_s1 + $0x2588] ss:$16 sps:$4 sm:$0xff]  }
 0x444   :  { %8834 = vmatprep.subr.bf16.mxu0 %v13411_v51  ;;  %9695 = vmatprep.subr.bf16.mxu1 %v13414_v26  ;;  %v13493_v51 = vld [vmem:[%s18048_s1 + $0x23e0] ss:$16 sps:$4 sm:$0xff]   ;;  %v13496_v26 = vld [vmem:[%s18048_s1 + $0x23e8] ss:$16 sps:$4 sm:$0xff]  }
 0x445   :  { %8864 = vmatprep.mubr.bf16.mxu0 %v1595_v53  ;;  %9725 = vmatprep.mubr.bf16.mxu1 %v1595_v53  ;;  %v13501_v53 = vld [vmem:[%s18048_s1 + $0x2404] ss:$16 sps:$4 sm:$0xff]  }
 0x447   :  { %8835 = vmatpush1.bf16.msra.mxu0 %v13409_v38  ;;  %9696 = vmatpush1.bf16.msra.mxu1 %v13412_v54  ;;  %v13504_v38 = vld [vmem:[%s18048_s1 + $0x240c] ss:$16 sps:$4 sm:$0xff]   ;;  %v1564_v54 = vcombine.high %v17466_v50, %v17466_v50 }
 0x448   :  { %8836 = vmatprep.subr.bf16.mxu0 %v13417_v43  ;;  %9697 = vmatprep.subr.bf16.mxu1 %v13420_v55  ;;  %v1593_v43 = vcombine.high %v17277_v46, %v17277_v46  ;;  %v13499_v55 = vld [vmem:[%s18048_s1 + $0x2400] ss:$16 sps:$4 sm:$0xff]   ;;  %v13510_v46 = vld [vmem:[%s18048_s1 + $0x242c] ss:$16 sps:$4 sm:$0xff]  }
 0x44b   :  { %8837 = vmatpush1.bf16.msra.mxu0 %v13415_v56  ;;  %9698 = vmatpush1.bf16.msra.mxu1 %v13418_v47  ;;  %v13502_v56 = vld [vmem:[%s18048_s1 + $0x2408] ss:$16 sps:$4 sm:$0xff]   ;;  %v13507_v47 = vld [vmem:[%s18048_s1 + $0x2424] ss:$16 sps:$4 sm:$0xff]  }
 0x44c   :  { %8838 = vmatprep.subr.bf16.mxu0 %v13423_v57  ;;  %9699 = vmatprep.subr.bf16.mxu1 %v13426_v58  ;;  %v17497_v57 = vrot.slane %v1564_v54, %v13944_v49  ;;  %v13505_v58 = vld [vmem:[%s18048_s1 + $0x2420] ss:$16 sps:$4 sm:$0xff]   ;;  %v13591_v54 = vld [vmem:[%s18048_s1 + $0x25e4] ss:$16 sps:$4 sm:$0xff]  }
 0x44f   :  { %8839 = vmatpush1.bf16.msra.mxu0 %v13421_v48  ;;  %9700 = vmatpush1.bf16.msra.mxu1 %v13424_v61  ;;  %v13508_v48 = vld [vmem:[%s18048_s1 + $0x2428] ss:$16 sps:$4 sm:$0xff]   ;;  %v13513_v61 = vld [vmem:[%s18048_s1 + $0x2444] ss:$16 sps:$4 sm:$0xff]  }
 0x450   :  { %8840 = vmatprep.subr.bf16.mxu0 %v13429_v62  ;;  %9701 = vmatprep.subr.bf16.mxu1 %v13432_v44  ;;  %v13516_v62 = vld [vmem:[%s18048_s1 + $0x244c] ss:$16 sps:$4 sm:$0xff]   ;;  %v13511_v44 = vld [vmem:[%s18048_s1 + $0x2440] ss:$16 sps:$4 sm:$0xff]  }
 0x453   :  { %8841 = vmatpush1.bf16.msra.mxu0 %v13427_v0  ;;  %9702 = vmatpush1.bf16.msra.mxu1 %v13430_v1  ;;  %v13514_v0 = vld [vmem:[%s18048_s1 + $0x2448] ss:$16 sps:$4 sm:$0xff]   ;;  %v13519_v1 = vld [vmem:[%s18048_s1 + $0x2464] ss:$16 sps:$4 sm:$0xff]  }
 0x454   :  { %8842 = vmatprep.subr.bf16.mxu0 %v13435_v2  ;;  %9703 = vmatprep.subr.bf16.mxu1 %v13438_v59  ;;  %v13522_v2 = vld [vmem:[%s18048_s1 + $0x246c] ss:$16 sps:$4 sm:$0xff]   ;;  %v13517_v59 = vld [vmem:[%s18048_s1 + $0x2460] ss:$16 sps:$4 sm:$0xff]  }
 0x457   :  { %8843 = vmatpush1.bf16.msra.mxu0 %v13433_v3  ;;  %9704 = vmatpush1.bf16.msra.mxu1 %v13436_v5  ;;  %v13520_v3 = vld [vmem:[%s18048_s1 + $0x2468] ss:$16 sps:$4 sm:$0xff]   ;;  %v13525_v5 = vld [vmem:[%s18048_s1 + $0x2484] ss:$16 sps:$4 sm:$0xff]  }
 0x458   :  { %8844 = vmatprep.subr.bf16.mxu0 %v13441_v6  ;;  %9705 = vmatprep.subr.bf16.mxu1 %v13444_v60  ;;  %v13528_v6 = vld [vmem:[%s18048_s1 + $0x248c] ss:$16 sps:$4 sm:$0xff]   ;;  %v13523_v60 = vld [vmem:[%s18048_s1 + $0x2480] ss:$16 sps:$4 sm:$0xff]  }
 0x45b   :  { %8845 = vmatpush1.bf16.msra.mxu0 %v13439_v9  ;;  %9706 = vmatpush1.bf16.msra.mxu1 %v13442_v11  ;;  %v13526_v9 = vld [vmem:[%s18048_s1 + $0x2488] ss:$16 sps:$4 sm:$0xff]   ;;  %v13531_v11 = vld [vmem:[%s18048_s1 + $0x24a4] ss:$16 sps:$4 sm:$0xff]  }
 0x45c   :  { %8846 = vmatprep.subr.bf16.mxu0 %v13447_v63  ;;  %9707 = vmatprep.subr.bf16.mxu1 %v13450_v12  ;;  %v13534_v63 = vld [vmem:[%s18048_s1 + $0x24ac] ss:$16 sps:$4 sm:$0xff]   ;;  %v13529_v12 = vld [vmem:[%s18048_s1 + $0x24a0] ss:$16 sps:$4 sm:$0xff]  }
 0x45f   :  { %8847 = vmatpush1.bf16.msra.mxu0 %v13445_v52  ;;  %9708 = vmatpush1.bf16.msra.mxu1 %v13448_v15  ;;  %v13532_v52 = vld [vmem:[%s18048_s1 + $0x24a8] ss:$16 sps:$4 sm:$0xff]   ;;  %v13537_v15 = vld [vmem:[%s18048_s1 + $0x24c4] ss:$16 sps:$4 sm:$0xff]  }
 0x460   :  { %8848 = vmatprep.subr.bf16.mxu0 %v13453_v7  ;;  %9709 = vmatprep.subr.bf16.mxu1 %v13456_v16  ;;  %v13540_v7 = vld [vmem:[%s18048_s1 + $0x24cc] ss:$16 sps:$4 sm:$0xff]   ;;  %v13535_v16 = vld [vmem:[%s18048_s1 + $0x24c0] ss:$16 sps:$4 sm:$0xff]  }
 0x463   :  { %8849 = vmatpush1.bf16.msra.mxu0 %v13451_v17  ;;  %9710 = vmatpush1.bf16.msra.mxu1 %v13454_v18  ;;  %v13538_v17 = vld [vmem:[%s18048_s1 + $0x24c8] ss:$16 sps:$4 sm:$0xff]   ;;  %v13543_v18 = vld [vmem:[%s18048_s1 + $0x24e4] ss:$16 sps:$4 sm:$0xff]  }
 0x464   :  { %8850 = vmatprep.subr.bf16.mxu0 %v13459_v8  ;;  %9711 = vmatprep.subr.bf16.mxu1 %v13462_v20  ;;  %v13546_v8 = vld [vmem:[%s18048_s1 + $0x24ec] ss:$16 sps:$4 sm:$0xff]   ;;  %v13541_v20 = vld [vmem:[%s18048_s1 + $0x24e0] ss:$16 sps:$4 sm:$0xff]  }
 0x467   :  { %8851 = vmatpush1.bf16.msra.mxu0 %v13457_v23  ;;  %9712 = vmatpush1.bf16.msra.mxu1 %v13460_v4  ;;  %v13544_v23 = vld [vmem:[%s18048_s1 + $0x24e8] ss:$16 sps:$4 sm:$0xff]   ;;  %v13549_v4 = vld [vmem:[%s18048_s1 + $0x2504] ss:$16 sps:$4 sm:$0xff]  }
 0x468   :  { %8852 = vmatprep.subr.bf16.mxu0 %v13465_v13  ;;  %9713 = vmatprep.subr.bf16.mxu1 %v13468_v10  ;;  %v13552_v13 = vld [vmem:[%s18048_s1 + $0x250c] ss:$16 sps:$4 sm:$0xff]   ;;  %v13547_v10 = vld [vmem:[%s18048_s1 + $0x2500] ss:$16 sps:$4 sm:$0xff]  }
 0x46b   :  { %8853 = vmatpush1.bf16.msra.mxu0 %v13463_v27  ;;  %9714 = vmatpush1.bf16.msra.mxu1 %v13466_v28  ;;  %v13550_v27 = vld [vmem:[%s18048_s1 + $0x2508] ss:$16 sps:$4 sm:$0xff]   ;;  %v13555_v28 = vld [vmem:[%s18048_s1 + $0x2524] ss:$16 sps:$4 sm:$0xff]  }
 0x46c   :  { %8854 = vmatprep.subr.bf16.mxu0 %v13471_v29  ;;  %9715 = vmatprep.subr.bf16.mxu1 %v13474_v19  ;;  %v13558_v29 = vld [vmem:[%s18048_s1 + $0x252c] ss:$16 sps:$4 sm:$0xff]   ;;  %v13553_v19 = vld [vmem:[%s18048_s1 + $0x2520] ss:$16 sps:$4 sm:$0xff]  }
 0x46f   :  { %8855 = vmatpush1.bf16.msra.mxu0 %v13469_v30  ;;  %9716 = vmatpush1.bf16.msra.mxu1 %v13472_v31  ;;  %v13556_v30 = vld [vmem:[%s18048_s1 + $0x2528] ss:$16 sps:$4 sm:$0xff]   ;;  %v13561_v31 = vld [vmem:[%s18048_s1 + $0x2544] ss:$16 sps:$4 sm:$0xff]  }
 0x470   :  { %8856 = vmatprep.subr.bf16.mxu0 %v13477_v22  ;;  %9717 = vmatprep.subr.bf16.mxu1 %v13480_v33  ;;  %v13564_v22 = vld [vmem:[%s18048_s1 + $0x254c] ss:$16 sps:$4 sm:$0xff]   ;;  %v13559_v33 = vld [vmem:[%s18048_s1 + $0x2540] ss:$16 sps:$4 sm:$0xff]  }
 0x473   :  { %8857 = vmatpush1.bf16.msra.mxu0 %v13475_v36  ;;  %9718 = vmatpush1.bf16.msra.mxu1 %v13478_v24  ;;  %v13562_v36 = vld [vmem:[%s18048_s1 + $0x2548] ss:$16 sps:$4 sm:$0xff]   ;;  %v13567_v24 = vld [vmem:[%s18048_s1 + $0x2564] ss:$16 sps:$4 sm:$0xff]  }
 0x474   :  { %8858 = vmatprep.subr.bf16.mxu0 %v13483_v37  ;;  %9719 = vmatprep.subr.bf16.mxu1 %v13486_v21  ;;  %v13570_v37 = vld [vmem:[%s18048_s1 + $0x256c] ss:$16 sps:$4 sm:$0xff]   ;;  %v13565_v21 = vld [vmem:[%s18048_s1 + $0x2560] ss:$16 sps:$4 sm:$0xff]  }
 0x477   :  { %8859 = vmatpush1.bf16.msra.mxu0 %v13481_v39  ;;  %9720 = vmatpush1.bf16.msra.mxu1 %v13484_v25  ;;  %v13568_v39 = vld [vmem:[%s18048_s1 + $0x2568] ss:$16 sps:$4 sm:$0xff]   ;;  %v13573_v25 = vld [vmem:[%s18048_s1 + $0x2584] ss:$16 sps:$4 sm:$0xff]  }
 0x478   :  { %8860 = vmatprep.subr.bf16.mxu0 %v13489_v40  ;;  %9721 = vmatprep.subr.bf16.mxu1 %v13492_v41  ;;  %v13576_v40 = vld [vmem:[%s18048_s1 + $0x258c] ss:$16 sps:$4 sm:$0xff]   ;;  %v13571_v41 = vld [vmem:[%s18048_s1 + $0x2580] ss:$16 sps:$4 sm:$0xff]  }
 0x47b   :  { %8861 = vmatpush1.bf16.msra.mxu0 %v13487_v32  ;;  %9722 = vmatpush1.bf16.msra.mxu1 %v13490_v45  ;;  %v13579_v32 = vld [vmem:[%s18048_s1 + $0x25a4] ss:$16 sps:$4 sm:$0xff]   ;;  %v13582_v45 = vld [vmem:[%s18048_s1 + $0x25ac] ss:$16 sps:$4 sm:$0xff]  }
 0x47c   :  { %8862 = vmatprep.subr.bf16.mxu0 %v13495_v35  ;;  %9723 = vmatprep.subr.bf16.mxu1 %v13498_v14  ;;  %v13577_v35 = vld [vmem:[%s18048_s1 + $0x25a0] ss:$16 sps:$4 sm:$0xff]   ;;  %v13580_v14 = vld [vmem:[%s18048_s1 + $0x25a8] ss:$16 sps:$4 sm:$0xff]  }
 0x47f   :  { %8863 = vmatpush1.bf16.msra.mxu0 %v13493_v51  ;;  %9724 = vmatpush1.bf16.msra.mxu1 %v13496_v26  ;;  %v13585_v51 = vld [vmem:[%s18048_s1 + $0x25c4] ss:$16 sps:$4 sm:$0xff]   ;;  %v13588_v26 = vld [vmem:[%s18048_s1 + $0x25cc] ss:$16 sps:$4 sm:$0xff]  }
 0x480   :  { %8873 = vmatprep.subr.bf16.mxu0 %v13501_v53  ;;  %9734 = vmatprep.subr.bf16.mxu1 %v13504_v38  ;;  %v13583_v53 = vld [vmem:[%s18048_s1 + $0x25c0] ss:$16 sps:$4 sm:$0xff]   ;;  %v13586_v38 = vld [vmem:[%s18048_s1 + $0x25c8] ss:$16 sps:$4 sm:$0xff]  }
 0x482   :  { %8865 = vmatmul.mubr.bf16.vlgmr.msra.gmra.mrb[0].mxu0 %v1593_v43  ;;  %9726 = vmatmul.mubr.bf16.vlgmr.msra.gmra.mrb[0].mxu1 %v1593_v43  ;;  %v13594_v43 = vld [vmem:[%s18048_s1 + $0x25ec] ss:$16 sps:$4 sm:$0xff]  }
 0x483   :  { %8874 = vmatpush1.bf16.msra.mxu0 %v13499_v55  ;;  %9735 = vmatpush1.bf16.msra.mxu1 %v13502_v56  ;;  %v13589_v55 = vld [vmem:[%s18048_s1 + $0x25e0] ss:$16 sps:$4 sm:$0xff]   ;;  %v13592_v56 = vld [vmem:[%s18048_s1 + $0x25e8] ss:$16 sps:$4 sm:$0xff]  }
 0x484   :  { %8875 = vmatprep.subr.bf16.mxu0 %v13507_v47  ;;  %9736 = vmatprep.subr.bf16.mxu1 %v13510_v46  ;;  %v13598_v47 = vld [vmem:[%s18048_s1 + $0x2604] ss:$16 sps:$4 sm:$0xff]   ;;  %v13601_v46 = vld [vmem:[%s18048_s1 + $0x260c] ss:$16 sps:$4 sm:$0xff]  }
 0x485   :  { %8905 = vmatprep.mubr.bf16.mxu0 %v17497_v57  ;;  %9766 = vmatprep.mubr.bf16.mxu1 %v17497_v57 }
 0x487   :  { %8876 = vmatpush1.bf16.msra.mxu0 %v13505_v58  ;;  %9737 = vmatpush1.bf16.msra.mxu1 %v13508_v48  ;;  %v17683_v58 = vrot.slane %v17466_v50, %v13944_v49  ;;  %v13596_v48 = vld [vmem:[%s18048_s1 + $0x2600] ss:$16 sps:$4 sm:$0xff]   ;;  %v13607_v50 = vld [vmem:[%s18048_s1 + $0x262c] ss:$16 sps:$4 sm:$0xff]  }
 0x488   :  { %8877 = vmatprep.subr.bf16.mxu0 %v13513_v61  ;;  %9738 = vmatprep.subr.bf16.mxu1 %v13516_v62  ;;  %v13599_v61 = vld [vmem:[%s18048_s1 + $0x2608] ss:$16 sps:$4 sm:$0xff]   ;;  %v13604_v62 = vld [vmem:[%s18048_s1 + $0x2624] ss:$16 sps:$4 sm:$0xff]  }
 0x48b   :  { %8878 = vmatpush1.bf16.msra.mxu0 %v13511_v44  ;;  %9739 = vmatpush1.bf16.msra.mxu1 %v13514_v0  ;;  %v1596_v44 = vcombine.high %v17497_v57, %v17497_v57  ;;  %v13602_v0 = vld [vmem:[%s18048_s1 + $0x2620] ss:$16 sps:$4 sm:$0xff]   ;;  %v13610_v57 = vld [vmem:[%s18048_s1 + $0x2644] ss:$16 sps:$4 sm:$0xff]  }
 0x48c   :  { %8879 = vmatprep.subr.bf16.mxu0 %v13519_v1  ;;  %9740 = vmatprep.subr.bf16.mxu1 %v13522_v2  ;;  %v13605_v1 = vld [vmem:[%s18048_s1 + $0x2628] ss:$16 sps:$4 sm:$0xff]   ;;  %v13613_v2 = vld [vmem:[%s18048_s1 + $0x264c] ss:$16 sps:$4 sm:$0xff]  }
 0x48f   :  { %8880 = vmatpush1.bf16.msra.mxu0 %v13517_v59  ;;  %9741 = vmatpush1.bf16.msra.mxu1 %v13520_v3  ;;  %v13608_v59 = vld [vmem:[%s18048_s1 + $0x2640] ss:$16 sps:$4 sm:$0xff]   ;;  %v13611_v3 = vld [vmem:[%s18048_s1 + $0x2648] ss:$16 sps:$4 sm:$0xff]  }
 0x490   :  { %8881 = vmatprep.subr.bf16.mxu0 %v13525_v5  ;;  %9742 = vmatprep.subr.bf16.mxu1 %v13528_v6  ;;  %v13616_v5 = vld [vmem:[%s18048_s1 + $0x2664] ss:$16 sps:$4 sm:$0xff]   ;;  %v13619_v6 = vld [vmem:[%s18048_s1 + $0x266c] ss:$16 sps:$4 sm:$0xff]  }
 0x493   :  { %8882 = vmatpush1.bf16.msra.mxu0 %v13523_v60  ;;  %9743 = vmatpush1.bf16.msra.mxu1 %v13526_v9  ;;  %v13614_v60 = vld [vmem:[%s18048_s1 + $0x2660] ss:$16 sps:$4 sm:$0xff]   ;;  %v13617_v9 = vld [vmem:[%s18048_s1 + $0x2668] ss:$16 sps:$4 sm:$0xff]  }
 0x494   :  { %8883 = vmatprep.subr.bf16.mxu0 %v13531_v11  ;;  %9744 = vmatprep.subr.bf16.mxu1 %v13534_v63  ;;  %v13622_v11 = vld [vmem:[%s18048_s1 + $0x2684] ss:$16 sps:$4 sm:$0xff]   ;;  %v13625_v63 = vld [vmem:[%s18048_s1 + $0x268c] ss:$16 sps:$4 sm:$0xff]  }
 0x497   :  { %8884 = vmatpush1.bf16.msra.mxu0 %v13529_v12  ;;  %9745 = vmatpush1.bf16.msra.mxu1 %v13532_v52  ;;  %v13620_v12 = vld [vmem:[%s18048_s1 + $0x2680] ss:$16 sps:$4 sm:$0xff]   ;;  %v13623_v52 = vld [vmem:[%s18048_s1 + $0x2688] ss:$16 sps:$4 sm:$0xff]  }
 0x498   :  { %8885 = vmatprep.subr.bf16.mxu0 %v13537_v15  ;;  %9746 = vmatprep.subr.bf16.mxu1 %v13540_v7  ;;  %v13628_v15 = vld [vmem:[%s18048_s1 + $0x26a4] ss:$16 sps:$4 sm:$0xff]   ;;  %v13631_v7 = vld [vmem:[%s18048_s1 + $0x26ac] ss:$16 sps:$4 sm:$0xff]  }
 0x49b   :  { %8886 = vmatpush1.bf16.msra.mxu0 %v13535_v16  ;;  %9747 = vmatpush1.bf16.msra.mxu1 %v13538_v17  ;;  %v13626_v16 = vld [vmem:[%s18048_s1 + $0x26a0] ss:$16 sps:$4 sm:$0xff]   ;;  %v13629_v17 = vld [vmem:[%s18048_s1 + $0x26a8] ss:$16 sps:$4 sm:$0xff]  }
 0x49c   :  { %8887 = vmatprep.subr.bf16.mxu0 %v13543_v18  ;;  %9748 = vmatprep.subr.bf16.mxu1 %v13546_v8  ;;  %v13634_v18 = vld [vmem:[%s18048_s1 + $0x26c4] ss:$16 sps:$4 sm:$0xff]   ;;  %v13637_v8 = vld [vmem:[%s18048_s1 + $0x26cc] ss:$16 sps:$4 sm:$0xff]  }
 0x49f   :  { %8888 = vmatpush1.bf16.msra.mxu0 %v13541_v20  ;;  %9749 = vmatpush1.bf16.msra.mxu1 %v13544_v23  ;;  %v13632_v20 = vld [vmem:[%s18048_s1 + $0x26c0] ss:$16 sps:$4 sm:$0xff]   ;;  %v13635_v23 = vld [vmem:[%s18048_s1 + $0x26c8] ss:$16 sps:$4 sm:$0xff]  }
 0x4a0   :  { %8889 = vmatprep.subr.bf16.mxu0 %v13549_v4  ;;  %9750 = vmatprep.subr.bf16.mxu1 %v13552_v13  ;;  %v13640_v4 = vld [vmem:[%s18048_s1 + $0x26e4] ss:$16 sps:$4 sm:$0xff]   ;;  %v13643_v13 = vld [vmem:[%s18048_s1 + $0x26ec] ss:$16 sps:$4 sm:$0xff]  }
 0x4a3   :  { %8890 = vmatpush1.bf16.msra.mxu0 %v13547_v10  ;;  %9751 = vmatpush1.bf16.msra.mxu1 %v13550_v27  ;;  %v13638_v10 = vld [vmem:[%s18048_s1 + $0x26e0] ss:$16 sps:$4 sm:$0xff]   ;;  %v13641_v27 = vld [vmem:[%s18048_s1 + $0x26e8] ss:$16 sps:$4 sm:$0xff]  }
 0x4a4   :  { %8891 = vmatprep.subr.bf16.mxu0 %v13555_v28  ;;  %9752 = vmatprep.subr.bf16.mxu1 %v13558_v29  ;;  %v13646_v28 = vld [vmem:[%s18048_s1 + $0x2704] ss:$16 sps:$4 sm:$0xff]   ;;  %v13649_v29 = vld [vmem:[%s18048_s1 + $0x270c] ss:$16 sps:$4 sm:$0xff]  }
 0x4a7   :  { %8892 = vmatpush1.bf16.msra.mxu0 %v13553_v19  ;;  %9753 = vmatpush1.bf16.msra.mxu1 %v13556_v30  ;;  %v13644_v19 = vld [vmem:[%s18048_s1 + $0x2700] ss:$16 sps:$4 sm:$0xff]   ;;  %v13647_v30 = vld [vmem:[%s18048_s1 + $0x2708] ss:$16 sps:$4 sm:$0xff]  }
 0x4a8   :  { %8893 = vmatprep.subr.bf16.mxu0 %v13561_v31  ;;  %9754 = vmatprep.subr.bf16.mxu1 %v13564_v22  ;;  %v13652_v31 = vld [vmem:[%s18048_s1 + $0x2724] ss:$16 sps:$4 sm:$0xff]   ;;  %v13655_v22 = vld [vmem:[%s18048_s1 + $0x272c] ss:$16 sps:$4 sm:$0xff]  }
 0x4ab   :  { %8894 = vmatpush1.bf16.msra.mxu0 %v13559_v33  ;;  %9755 = vmatpush1.bf16.msra.mxu1 %v13562_v36  ;;  %v13650_v33 = vld [vmem:[%s18048_s1 + $0x2720] ss:$16 sps:$4 sm:$0xff]   ;;  %v13653_v36 = vld [vmem:[%s18048_s1 + $0x2728] ss:$16 sps:$4 sm:$0xff]  }
 0x4ac   :  { %8895 = vmatprep.subr.bf16.mxu0 %v13567_v24  ;;  %9756 = vmatprep.subr.bf16.mxu1 %v13570_v37  ;;  %v13658_v24 = vld [vmem:[%s18048_s1 + $0x2744] ss:$16 sps:$4 sm:$0xff]   ;;  %v13661_v37 = vld [vmem:[%s18048_s1 + $0x274c] ss:$16 sps:$4 sm:$0xff]  }
 0x4af   :  { %8896 = vmatpush1.bf16.msra.mxu0 %v13565_v21  ;;  %9757 = vmatpush1.bf16.msra.mxu1 %v13568_v39  ;;  %v13656_v21 = vld [vmem:[%s18048_s1 + $0x2740] ss:$16 sps:$4 sm:$0xff]   ;;  %v13659_v39 = vld [vmem:[%s18048_s1 + $0x2748] ss:$16 sps:$4 sm:$0xff]  }
 0x4b0   :  { %8897 = vmatprep.subr.bf16.mxu0 %v13573_v25  ;;  %9758 = vmatprep.subr.bf16.mxu1 %v13576_v40  ;;  %v13664_v25 = vld [vmem:[%s18048_s1 + $0x2764] ss:$16 sps:$4 sm:$0xff]   ;;  %v13667_v40 = vld [vmem:[%s18048_s1 + $0x276c] ss:$16 sps:$4 sm:$0xff]  }
 0x4b3   :  { %8898 = vmatpush1.bf16.msra.mxu0 %v13571_v41  ;;  %9759 = vmatpush1.bf16.msra.mxu1 %v13574_v34  ;;  %v13662_v41 = vld [vmem:[%s18048_s1 + $0x2760] ss:$16 sps:$4 sm:$0xff]   ;;  %v13665_v34 = vld [vmem:[%s18048_s1 + $0x2768] ss:$16 sps:$4 sm:$0xff]  }
 0x4b4   :  { %8899 = vmatprep.subr.bf16.mxu0 %v13579_v32  ;;  %9760 = vmatprep.subr.bf16.mxu1 %v13582_v45  ;;  %v13670_v32 = vld [vmem:[%s18048_s1 + $0x2784] ss:$16 sps:$4 sm:$0xff]   ;;  %v13673_v45 = vld [vmem:[%s18048_s1 + $0x278c] ss:$16 sps:$4 sm:$0xff]  }
 0x4b7   :  { %8900 = vmatpush1.bf16.msra.mxu0 %v13577_v35  ;;  %9761 = vmatpush1.bf16.msra.mxu1 %v13580_v14  ;;  %v13668_v35 = vld [vmem:[%s18048_s1 + $0x2780] ss:$16 sps:$4 sm:$0xff]   ;;  %v13671_v14 = vld [vmem:[%s18048_s1 + $0x2788] ss:$16 sps:$4 sm:$0xff]  }
 0x4b8   :  { %8901 = vmatprep.subr.bf16.mxu0 %v13585_v51  ;;  %9762 = vmatprep.subr.bf16.mxu1 %v13588_v26  ;;  %v13676_v51 = vld [vmem:[%s18048_s1 + $0x27a4] ss:$16 sps:$4 sm:$0xff]   ;;  %v13679_v26 = vld [vmem:[%s18048_s1 + $0x27ac] ss:$16 sps:$4 sm:$0xff]  }
 0x4bb   :  { %8902 = vmatpush1.bf16.msra.mxu0 %v13583_v53  ;;  %9763 = vmatpush1.bf16.msra.mxu1 %v13586_v38  ;;  %v13674_v53 = vld [vmem:[%s18048_s1 + $0x27a0] ss:$16 sps:$4 sm:$0xff]   ;;  %v13677_v38 = vld [vmem:[%s18048_s1 + $0x27a8] ss:$16 sps:$4 sm:$0xff]  }
 0x4bc   :  { %8903 = vmatprep.subr.bf16.mxu0 %v13591_v54  ;;  %9764 = vmatprep.subr.bf16.mxu1 %v13594_v43  ;;  %v13682_v54 = vld [vmem:[%s18048_s1 + $0x27c4] ss:$16 sps:$4 sm:$0xff]   ;;  %v13685_v43 = vld [vmem:[%s18048_s1 + $0x27cc] ss:$16 sps:$4 sm:$0xff]  }
 0x4bf   :  { %8904 = vmatpush1.bf16.msra.mxu0 %v13589_v55  ;;  %9765 = vmatpush1.bf16.msra.mxu1 %v13592_v56  ;;  %v13680_v55 = vld [vmem:[%s18048_s1 + $0x27c0] ss:$16 sps:$4 sm:$0xff]   ;;  %v13683_v56 = vld [vmem:[%s18048_s1 + $0x27c8] ss:$16 sps:$4 sm:$0xff]  }
 0x4c0   :  { %8914 = vmatprep.subr.bf16.mxu0 %v13598_v47  ;;  %9775 = vmatprep.subr.bf16.mxu1 %v13601_v46  ;;  %v13688_v47 = vld [vmem:[%s18048_s1 + $0x27e4] ss:$16 sps:$4 sm:$0xff]   ;;  %v13691_v46 = vld [vmem:[%s18048_s1 + $0x27ec] ss:$16 sps:$4 sm:$0xff]  }
 0x4c2   :  { %8906 = vmatmul.mubr.bf16.vlgmr.msra.gmra.mrb[0].mxu0 %v17683_v58  ;;  %9767 = vmatmul.mubr.bf16.vlgmr.msra.gmra.mrb[0].mxu1 %v17683_v58 }
 0x4c3   :  { %8915 = vmatpush1.bf16.msra.mxu0 %v13596_v48  ;;  %9776 = vmatpush1.bf16.msra.mxu1 %v13599_v61  ;;  %v13686_v48 = vld [vmem:[%s18048_s1 + $0x27e0] ss:$16 sps:$4 sm:$0xff]   ;;  %v13689_v61 = vld [vmem:[%s18048_s1 + $0x27e8] ss:$16 sps:$4 sm:$0xff]  }
 0x4c4   :  { %8916 = vmatprep.subr.bf16.mxu0 %v13604_v62  ;;  %9777 = vmatprep.subr.bf16.mxu1 %v13607_v50  ;;  %v13694_v62 = vld [vmem:[%s18048_s1 + $0x2804] ss:$16 sps:$4 sm:$0xff]   ;;  %v13697_v50 = vld [vmem:[%s18048_s1 + $0x280c] ss:$16 sps:$4 sm:$0xff]  }
 0x4c5   :  { %8946 = vmatprep.mubr.bf16.mxu0 %v1596_v44  ;;  %9807 = vmatprep.mubr.bf16.mxu1 %v1596_v44  ;;  %v1594_v44 = vcombine.high %v17683_v58, %v17683_v58  ;;  %v13703_v58 = vld [vmem:[%s18048_s1 + $0x282c] ss:$16 sps:$4 sm:$0xff]  }
 0x4c7   :  { %8917 = vmatpush1.bf16.msra.mxu0 %v13602_v0  ;;  %9778 = vmatpush1.bf16.msra.mxu1 %v13605_v1  ;;  %v13692_v0 = vld [vmem:[%s18048_s1 + $0x2800] ss:$16 sps:$4 sm:$0xff]   ;;  %v13695_v1 = vld [vmem:[%s18048_s1 + $0x2808] ss:$16 sps:$4 sm:$0xff]  }
 0x4c8   :  { %8918 = vmatprep.subr.bf16.mxu0 %v13610_v57  ;;  %9779 = vmatprep.subr.bf16.mxu1 %v13613_v2  ;;  %v13700_v57 = vld [vmem:[%s18048_s1 + $0x2824] ss:$16 sps:$4 sm:$0xff]   ;;  %v13698_v2 = vld [vmem:[%s18048_s1 + $0x2820] ss:$16 sps:$4 sm:$0xff]  }
 0x4cb   :  { %8919 = vmatpush1.bf16.msra.mxu0 %v13608_v59  ;;  %9780 = vmatpush1.bf16.msra.mxu1 %v13611_v3  ;;  %v13701_v59 = vld [vmem:[%s18048_s1 + $0x2828] ss:$16 sps:$4 sm:$0xff]   ;;  %v13706_v3 = vld [vmem:[%s18048_s1 + $0x2844] ss:$16 sps:$4 sm:$0xff]  }
 0x4cc   :  { %8920 = vmatprep.subr.bf16.mxu0 %v13616_v5  ;;  %9781 = vmatprep.subr.bf16.mxu1 %v13619_v6  ;;  %v13709_v5 = vld [vmem:[%s18048_s1 + $0x284c] ss:$16 sps:$4 sm:$0xff]   ;;  %v13777_v6 = vmov 0  }
 0x4cf   :  { %8921 = vmatpush1.bf16.msra.mxu0 %v13614_v60  ;;  %9782 = vmatpush1.bf16.msra.mxu1 %v13617_v9  ;;  %v13704_v60 = vld [vmem:[%s18048_s1 + $0x2840] ss:$16 sps:$4 sm:$0xff]   ;;  %v13707_v9 = vld [vmem:[%s18048_s1 + $0x2848] ss:$16 sps:$4 sm:$0xff]  }
 0x4d0   :  { %8922 = vmatprep.subr.bf16.mxu0 %v13622_v11  ;;  %9783 = vmatprep.subr.bf16.mxu1 %v13625_v63  ;;  %v13712_v11 = vld [vmem:[%s18048_s1 + $0x2864] ss:$16 sps:$4 sm:$0xff]   ;;  %v13715_v63 = vld [vmem:[%s18048_s1 + $0x286c] ss:$16 sps:$4 sm:$0xff]  }
 0x4d3   :  { %8923 = vmatpush1.bf16.msra.mxu0 %v13620_v12  ;;  %9784 = vmatpush1.bf16.msra.mxu1 %v13623_v52  ;;  %v13710_v12 = vld [vmem:[%s18048_s1 + $0x2860] ss:$16 sps:$4 sm:$0xff]   ;;  %v13713_v52 = vld [vmem:[%s18048_s1 + $0x2868] ss:$16 sps:$4 sm:$0xff]  }
 0x4d4   :  { %8924 = vmatprep.subr.bf16.mxu0 %v13628_v15  ;;  %9785 = vmatprep.subr.bf16.mxu1 %v13631_v7  ;;  %v10224_v15 = vld.sshfl [vmem:[%s18047_s0 + $0x28] sm:$0x1 pattern:$0x75316420]  ;;  %v13716_v7 = vld [vmem:[%s18050_s3 + $0x40] sm:$0xff]  }
 0x4d7   :  { %8925 = vmatpush1.bf16.msra.mxu0 %v13626_v16  ;;  %9786 = vmatpush1.bf16.msra.mxu1 %v13629_v17  ;;  %v13717_v16 = vld [vmem:[%s18050_s3 + $0xc0] sm:$0xff]   ;;  %v1610_v17 = vrot.slane %v10224_v15, %v13944_v49  ;;  %v13721_v49 = vld [vmem:[%s18050_s3 + $0xc8] sm:$0xff]  }
 0x4d8   :  { %8926 = vmatprep.subr.bf16.mxu0 %v13634_v18  ;;  %9787 = vmatprep.subr.bf16.mxu1 %v13637_v8  ;;  %v13718_v18 = vld [vmem:[%s18050_s3] sm:$0xff]  }
 0x4d9   :  { %v13719_v8 = vld [vmem:[%s18050_s3 + $0x80] sm:$0xff]  }
 0x4db   :  { %8927 = vmatpush1.bf16.msra.mxu0 %v13632_v20  ;;  %9788 = vmatpush1.bf16.msra.mxu1 %v13635_v23  ;;  %v13720_v20 = vld [vmem:[%s18050_s3 + $0x48] sm:$0xff]  }
 0x4dc   :  { %8928 = vmatprep.subr.bf16.mxu0 %v13640_v4  ;;  %9789 = vmatprep.subr.bf16.mxu1 %v13643_v13  ;;  %v13722_v23 = vld [vmem:[%s18050_s3 + $0x8] sm:$0xff]   ;;  %v13724_v13 = vld [vmem:[%s18050_s3 + $0x50] sm:$0xff]  }
 0x4dd   :  { %v13723_v4 = vld [vmem:[%s18050_s3 + $0x88] sm:$0xff]  }
 0x4df   :  { %8929 = vmatpush1.bf16.msra.mxu0 %v13638_v10  ;;  %9790 = vmatpush1.bf16.msra.mxu1 %v13641_v27  ;;  %v13725_v10 = vld [vmem:[%s18050_s3 + $0xd0] sm:$0xff]  }
 0x4e0   :  { %8930 = vmatprep.subr.bf16.mxu0 %v13646_v28  ;;  %9791 = vmatprep.subr.bf16.mxu1 %v13649_v29  ;;  %v13726_v27 = vld [vmem:[%s18050_s3 + $0x10] sm:$0xff]   ;;  %v13728_v29 = vld [vmem:[%s18050_s3 + $0x58] sm:$0xff]  }
 0x4e1   :  { %v13727_v28 = vld [vmem:[%s18050_s3 + $0x90] sm:$0xff]  }
 0x4e3   :  { %8931 = vmatpush1.bf16.msra.mxu0 %v13644_v19  ;;  %9792 = vmatpush1.bf16.msra.mxu1 %v13647_v30  ;;  %v13729_v19 = vld [vmem:[%s18050_s3 + $0xd8] sm:$0xff]  }
 0x4e4   :  { %8932 = vmatprep.subr.bf16.mxu0 %v13652_v31  ;;  %9793 = vmatprep.subr.bf16.mxu1 %v13655_v22  ;;  %v13730_v30 = vld [vmem:[%s18050_s3 + $0x18] sm:$0xff]   ;;  %v13732_v22 = vld [vmem:[%s18050_s3 + $0x60] sm:$0xff]  }
 0x4e5   :  { %v13731_v31 = vld [vmem:[%s18050_s3 + $0x98] sm:$0xff]  }
 0x4e7   :  { %8933 = vmatpush1.bf16.msra.mxu0 %v13650_v33  ;;  %9794 = vmatpush1.bf16.msra.mxu1 %v13653_v36  ;;  %v13733_v33 = vld [vmem:[%s18050_s3 + $0xe0] sm:$0xff]  }
 0x4e8   :  { %8934 = vmatprep.subr.bf16.mxu0 %v13658_v24  ;;  %9795 = vmatprep.subr.bf16.mxu1 %v13661_v37  ;;  %v13734_v36 = vld [vmem:[%s18050_s3 + $0x20] sm:$0xff]   ;;  %v13736_v37 = vld [vmem:[%s18050_s3 + $0x68] sm:$0xff]  }
 0x4e9   :  { %v13735_v24 = vld [vmem:[%s18050_s3 + $0xa0] sm:$0xff]  }
 0x4eb   :  { %8935 = vmatpush1.bf16.msra.mxu0 %v13656_v21  ;;  %9796 = vmatpush1.bf16.msra.mxu1 %v13659_v39  ;;  %v13737_v21 = vld [vmem:[%s18050_s3 + $0xe8] sm:$0xff]  }
 0x4ec   :  { %8936 = vmatprep.subr.bf16.mxu0 %v13664_v25  ;;  %9797 = vmatprep.subr.bf16.mxu1 %v13667_v40  ;;  %v13738_v39 = vld [vmem:[%s18050_s3 + $0x28] sm:$0xff]   ;;  %v13740_v40 = vld [vmem:[%s18050_s3 + $0x70] sm:$0xff]  }
 0x4ed   :  { %v13739_v25 = vld [vmem:[%s18050_s3 + $0xa8] sm:$0xff]  }
 0x4ef   :  { %8937 = vmatpush1.bf16.msra.mxu0 %v13662_v41  ;;  %9798 = vmatpush1.bf16.msra.mxu1 %v13665_v34  ;;  %v13741_v41 = vld [vmem:[%s18050_s3 + $0xf0] sm:$0xff]  }
 0x4f0   :  { %8938 = vmatprep.subr.bf16.mxu0 %v13670_v32  ;;  %9799 = vmatprep.subr.bf16.mxu1 %v13673_v45  ;;  %v13742_v34 = vld [vmem:[%s18050_s3 + $0x30] sm:$0xff]   ;;  %v13744_v45 = vld [vmem:[%s18050_s3 + $0x78] sm:$0xff]  }
 0x4f1   :  { %v13743_v32 = vld [vmem:[%s18050_s3 + $0xb0] sm:$0xff]  }
 0x4f3   :  { %8939 = vmatpush1.bf16.msra.mxu0 %v13668_v35  ;;  %9800 = vmatpush1.bf16.msra.mxu1 %v13671_v14  ;;  %v13745_v35 = vld [vmem:[%s18050_s3 + $0xf8] sm:$0xff]  }
 0x4f4   :  { %8940 = vmatprep.subr.bf16.mxu0 %v13676_v51  ;;  %9801 = vmatprep.subr.bf16.mxu1 %v13679_v26  ;;  %v13746_v14 = vld [vmem:[%s18050_s3 + $0x38] sm:$0xff]   ;;  %v1328_v26 = vsub.s32 0, %v13926_v42 }
 0x4f5   :  { %v13747_v51 = vld [vmem:[%s18050_s3 + $0xb8] sm:$0xff]  }
 0x4f7   :  { %8941 = vmatpush1.bf16.msra.mxu0 %v13674_v53  ;;  %9802 = vmatpush1.bf16.msra.mxu1 %v13677_v38  ;;  %v1336_v53 = vsub.s32 2, %v13926_v42  ;;  %v1324_v38 = vld [vmem:[%s18049_s2] sm:$0xf] }
 0x4f8   :  { %8942 = vmatprep.subr.bf16.mxu0 %v13682_v54  ;;  %9803 = vmatprep.subr.bf16.mxu1 %v13685_v43  ;;  %v1332_v54 = vsub.s32 1, %v13926_v42  ;;  %v1340_v43 = vsub.s32 3, %v13926_v42 }
 0x4fb   :  { %8943 = vmatpush1.bf16.msra.mxu0 %v13680_v55  ;;  %9804 = vmatpush1.bf16.msra.mxu1 %v13683_v56  ;;  %v1329_v55 = vrot.slane %v1324_v38, %v1328_v26  ;;  %v1337_v56 = vrot.slane %v1324_v38, %v1336_v53 }
 0x4fc   :  { %8944 = vmatprep.subr.bf16.mxu0 %v13688_v47  ;;  %9805 = vmatprep.subr.bf16.mxu1 %v13691_v46  ;;  %v1333_v47 = vrot.slane %v1324_v38, %v1332_v54  ;;  %v1341_v46 = vrot.slane %v1324_v38, %v1340_v43 }
 0x4ff   :  { %8945 = vmatpush1.bf16.msra.mxu0 %v13686_v48  ;;  %9806 = vmatpush1.bf16.msra.mxu1 %v13689_v61 }
 0x500   :  { %8955 = vmatprep.subr.bf16.mxu0 %v13694_v62  ;;  %9816 = vmatprep.subr.bf16.mxu1 %v13697_v50 }
 0x502   :  { %8947 = vmatmul.mubr.bf16.vlgmr.msra.gmra.mrb[0].mxu0 %v1594_v44  ;;  %9808 = vmatmul.mubr.bf16.vlgmr.msra.gmra.mrb[0].mxu1 %v1594_v44 }
 0x503   :  { %8956 = vmatpush1.bf16.msra.mxu0 %v13692_v0  ;;  %9817 = vmatpush1.bf16.msra.mxu1 %v13695_v1 }
 0x504   :  { %8957 = vmatprep.subr.bf16.mxu0 %v13700_v57  ;;  %9818 = vmatprep.subr.bf16.mxu1 %v13703_v58 }
 0x505   :  { %8987 = vmatprep.mubr.bf16.mxu0 %v13777_v6  ;;  %9848 = vmatprep.mubr.bf16.mxu1 %v13777_v6 }
 0x507   :  { %8958 = vmatpush1.bf16.msra.mxu0 %v13698_v2  ;;  %9819 = vmatpush1.bf16.msra.mxu1 %v13701_v59 }
 0x508   :  { %8959 = vmatprep.subr.bf16.mxu0 %v13706_v3  ;;  %9820 = vmatprep.subr.bf16.mxu1 %v13709_v5 }
 0x50b   :  { %8960 = vmatpush1.bf16.msra.mxu0 %v13704_v60  ;;  %9821 = vmatpush1.bf16.msra.mxu1 %v13707_v9 }
 0x50c   :  { %8961 = vmatprep.subr.bf16.mxu0 %v13712_v11  ;;  %9822 = vmatprep.subr.bf16.mxu1 %v13715_v63 }
 0x50f   :  { %8962 = vmatpush1.bf16.msra.mxu0 %v13710_v12  ;;  %9823 = vmatpush1.bf16.msra.mxu1 %v13713_v52 }
 0x510   :  { %11556 = vmatprep.subr.bf16.mxu0 %v13716_v7  ;;  %11578 = vmatprep.subr.bf16.mxu1 %v13717_v16  ;;  %v11523_v7 = vld [vmem:[%s18051_s4] ss:$0 sm:$0xff] }
 0x512   :  { %11521 = vmatmul.mubr.msk.bf16.vlgmr.msra.gmra.mrb[0].mxu0 %vm8131_vm0, %v1610_v17  ;;  %11522 = vmatmul.mubr.msk.bf16.vlgmr.msra.gmra.mrb[0].mxu1 %vm8131_vm0, %v1610_v17 }
 0x513   :  { %11557 = vmatpush3.bf16.msra.mxu0 %v13718_v18  ;;  %11579 = vmatpush3.bf16.msra.mxu1 %v13719_v8 }
 0x514   :  { %11558 = vmatprep.subr.bf16.mxu0 %v13720_v20  ;;  %11580 = vmatprep.subr.bf16.mxu1 %v13721_v49 }
 0x517   :  { %11559 = vmatpush3.bf16.msra.mxu0 %v13722_v23  ;;  %11581 = vmatpush3.bf16.msra.mxu1 %v13723_v4 }
 0x518   :  { %11560 = vmatprep.subr.bf16.mxu0 %v13724_v13  ;;  %11582 = vmatprep.subr.bf16.mxu1 %v13725_v10 }
 0x51b   :  { %11561 = vmatpush3.bf16.msra.mxu0 %v13726_v27  ;;  %11583 = vmatpush3.bf16.msra.mxu1 %v13727_v28 }
 0x51c   :  { %11562 = vmatprep.subr.bf16.mxu0 %v13728_v29  ;;  %11584 = vmatprep.subr.bf16.mxu1 %v13729_v19 }
 0x51f   :  { %11563 = vmatpush3.bf16.msra.mxu0 %v13730_v30  ;;  %11585 = vmatpush3.bf16.msra.mxu1 %v13731_v31 }
 0x520   :  { %11564 = vmatprep.subr.bf16.mxu0 %v13732_v22  ;;  %11586 = vmatprep.subr.bf16.mxu1 %v13733_v33 }
 0x523   :  { %11565 = vmatpush3.bf16.msra.mxu0 %v13734_v36  ;;  %11587 = vmatpush3.bf16.msra.mxu1 %v13735_v24 }
 0x524   :  { %11566 = vmatprep.subr.bf16.mxu0 %v13736_v37  ;;  %11588 = vmatprep.subr.bf16.mxu1 %v13737_v21 }
 0x527   :  { %11567 = vmatpush3.bf16.msra.mxu0 %v13738_v39  ;;  %11589 = vmatpush3.bf16.msra.mxu1 %v13739_v25 }
 0x528   :  { %11568 = vmatprep.subr.bf16.mxu0 %v13740_v40  ;;  %11590 = vmatprep.subr.bf16.mxu1 %v13741_v41 }
 0x52b   :  { %11569 = vmatpush3.bf16.msra.mxu0 %v13742_v34  ;;  %11591 = vmatpush3.bf16.msra.mxu1 %v13743_v32 }
 0x52c   :  { %11570 = vmatprep.subr.bf16.mxu0 %v13744_v45  ;;  %11592 = vmatprep.subr.bf16.mxu1 %v13745_v35 }
 0x52f   :  { %11571 = vmatpush3.bf16.msra.mxu0 %v13746_v14  ;;  %11593 = vmatpush3.bf16.msra.mxu1 %v13747_v51 }
 0x5e5   :  { %v8989_v48 = vpop.f32.mrb[0].mxu0  ;;  %v9850_v61 = vpop.f32.mrb[0].mxu1 }
 0x5e6   :  { %v11600_v62 = vadd.f32 %v8989_v48, %v1329_v55  ;;  %v11602_v50 = vadd.f32 %v9850_v61, %v1337_v56  ;;  %v8991_v44 = vpop.f32.mrb[1].mxu0  ;;  %v9852_v0 = vpop.f32.mrb[1].mxu1 }
 0x5e7   :  { %v11601_v1 = vadd.f32 %v8991_v44, %v1333_v47  ;;  %v11603_v57 = vadd.f32 %v9852_v0, %v1341_v46  ;;  %v8993_v58 = vpop.f32.mrb[2].mxu0  ;;  %v9854_v2 = vpop.f32.mrb[2].mxu1 }
 0x5e8   :  { %v9857_v59 = vmax.f32 %v11600_v62, 0.0  ;;  %v9859_v3 = vmax.f32 %v11602_v50, 0.0  ;;  %v8994_v5 = vpop.f32.mrb[3].mxu0  ;;  %v9855_v6 = vpop.f32.mrb[3].mxu1 }
 0x5e9   :  { %v9858_v60 = vmax.f32 %v11601_v1, 0.0  ;;  %v9860_v42 = vmax.f32 %v11603_v57, 0.0 }
 0x5ea   :  { %v9861_v63 = vpack.c.bf16 %v9857_v59, %v9857_v59  ;;  %v9863_v12 = vpack.c.bf16 %v9859_v3, %v9859_v3 }
 0x5eb   :  { %v9862_v9 = vpack.c.bf16 %v9858_v60, %v9858_v60  ;;  %v9864_v11 = vpack.c.bf16 %v9860_v42, %v9860_v42 }
 0x5ed   :  { %10160 = vmatprep.mubr.bf16.mxu0 %v9862_v9  ;;  %10200 = vmatprep.mubr.bf16.mxu1 %v9864_v11 }
 0x5ee   :  { %10161 = vmatmul.mubr.bf16.vlgmr.msra.gmra.mrb[4].mxu0 %v9861_v63  ;;  %10201 = vmatmul.mubr.bf16.vlgmr.msra.gmra.mrb[4].mxu1 %v9863_v12 }
 0x6c1   :  { %v11572_v52 = vpop.f32.mrb[4].mxu0  ;;  %v11594_v15 = vpop.f32.mrb[4].mxu1 }
 0x6c2   :  { %v11573_v16 = vpop.f32.mrb[5].mxu0  ;;  %v11595_v17 = vpop.f32.mrb[5].mxu1 }
 0x6c3   :  { %v11574_v18 = vadd.f32 %v11573_v16, %v11572_v52  ;;  %v11596_v8 = vadd.f32 %v11595_v17, %v11594_v15  ;;  %v11575_v20 = vpop.f32.mrb[6].mxu0  ;;  %v11597_v49 = vpop.f32.mrb[6].mxu1 }
 0x6c4   :  { %v11576_v23 = vpop.f32.mrb[7].mxu0  ;;  %v11598_v4 = vpop.f32.mrb[7].mxu1 }
 0x6c5   :  { %v10163_v13 = vadd.f32 %v11574_v18, %v11523_v7 }
 0x6c7   :  { %v10203_v10 = vadd.f32 %v11596_v8, %v10163_v13 }
 0x6c9   :  { %10209 = vst.msk [vmem:[#allocation2] sm:$0x3] %vm10208_vm1, %v10203_v10 }
 0x6ca   :  { %13763 = shalt.err (!%p13760_p4)
}
 0x6cb   :  { %s13764_s15 = scalar_lea.hbm %s18052_s5, 32 }
 0x6cc   :  { %p13765_p5 = scmp.ne.s32.totalorder %s18052_s5, %s13764_s15  ;;  %p13768_p6 = scmp.lt.u32.totalorder %s13764_s15, %s18052_s5 }
 0x6ce   :  { %p13770_p7 = pnand %p13768_p6, %p13765_p5 }
 0x6d0   :  { %13773 = shalt.err (!%p13770_p7)
}
 0x6d1   :  { %10219 = dma.vmem_to_hbm [thread:$0]  %s10217_s12, 32, %s18052_s5, [#allocation3]  }
 0x6d2   :  { %13774 = dma.done.wait [#allocation3], 32  }
 0x6d3   :  { %13775 = vsyncadd [#allocation3], 4294967264 }
 0x6d4   :  { %10223 = vsyncpa [#allocation3], 1 }

</bundles_post_ra>
